<compile_context>
chip_gen: v5e
topology: v5e:2x2
jax: 0.10.0
libtpu: 0.0.40
codegen_flags: <defaults>
</compile_context>

<pallas_src>
import math

import jax
import jax.numpy as jnp
from jax.experimental import pallas as pl
from jax.experimental.pallas import tpu as pltpu

_LANE = 128


def _round_up(n, m):
    return ((n + m - 1) // m) * m


# ----------------------------- Pallas kernels ------------------------------

def _accumulate_conv(x_ref, w_ref, acc_ref, H, W):
    """Accumulate this Cin tile's 3x3-conv contribution into the f32 accumulator."""
    ci = pl.program_id(2)

    @pl.when(ci == 0)
    def _():
        acc_ref[...] = jnp.zeros_like(acc_ref)

    acc = acc_ref[...]                                         # (H*W, TCO) f32
    for kh in range(3):
        for kw in range(3):
            win = x_ref[0, pl.ds(kh, H), pl.ds(kw, W), :]      # (H, W, TCI) bf16
            wk = w_ref[kh, kw]                                 # (TCI, TCO) bf16
            acc = acc + jnp.dot(win.reshape(H * W, win.shape[-1]), wk,
                                preferred_element_type=jnp.float32)
    acc_ref[...] = acc


def _conv_bn_relu_pad_kernel(x_ref, w_ref, scale_ref, shift_ref, o_ref, acc_ref):
    """conv3x3 + folded-BN affine + ReLU; writes a spatially pre-padded output."""
    _, Hp, Wp, _ = x_ref.shape
    H, W = Hp - 2, Wp - 2
    _accumulate_conv(x_ref, w_ref, acc_ref, H, W)

    @pl.when(pl.program_id(2) == pl.num_programs(2) - 1)
    def _():
        y = acc_ref[...] * scale_ref[...] + shift_ref[...]      # (H*W, TCO) f32
        y = jnp.maximum(y, 0.0).reshape(H, W, y.shape[-1])
        o_ref[0] = jnp.zeros(o_ref.shape[1:], o_ref.dtype)      # zero pad border
        o_ref[0, pl.ds(1, H), pl.ds(1, W), :] = y.astype(o_ref.dtype)


def _conv_bn_add_relu_kernel(x_ref, w_ref, scale_ref, shift_ref, idn_ref,
                             o_ref, acc_ref):
    """conv3x3 + folded-BN affine + residual add + ReLU."""
    _, Hp, Wp, _ = x_ref.shape
    H, W = Hp - 2, Wp - 2
    _accumulate_conv(x_ref, w_ref, acc_ref, H, W)

    @pl.when(pl.program_id(2) == pl.num_programs(2) - 1)
    def _():
        y = acc_ref[...] * scale_ref[...] + shift_ref[...]      # (H*W, TCO) f32
        idn = idn_ref[0, pl.ds(1, H), pl.ds(1, W), :].astype(jnp.float32)
        y = y.reshape(H, W, y.shape[-1]) + idn
        o_ref[0] = jnp.maximum(y, 0.0).astype(o_ref.dtype)


# ------------------------------ Pallas wrapper ------------------------------

def _conv3x3_fused(x_spad, w_mat, scale, shift, identity=None, *,
                   out_dtype=jnp.float32):
    """Fused 3x3 conv (stride 1) + BN affine (+ optional residual) + ReLU.

    x_spad:   (B, H+2, W+2, Cin_p)  bf16, spatially zero-padded, lane-padded C
    w_mat:    (3, 3, Cin_p, Cout_p) bf16
    scale:    (1, Cout_p) f32   folded BatchNorm scale
    shift:    (1, Cout_p) f32   folded BatchNorm shift
    identity: None -> output is the spatially padded (B, H+2, W+2, Cout_p)
              activation (ready to feed the next conv);
              else (B, H+2, W+2, Cout_p) bf16 -> output (B, H, W, Cout_p) with
              residual add + ReLU.
    """
    B, Hp, Wp, Cin_p = x_spad.shape
    H, W = Hp - 2, Wp - 2
    Cout_p = w_mat.shape[-1]
    TCI = min(_LANE, Cin_p)
    TCO = min(_LANE, Cout_p)
    n_ci, n_co = Cin_p // TCI, Cout_p // TCO

    in_specs = [
        pl.BlockSpec((1, Hp, Wp, TCI), lambda b, co, ci: (b, 0, 0, ci)),
        pl.BlockSpec((3, 3, TCI, TCO), lambda b, co, ci: (0, 0, ci, co)),
        pl.BlockSpec((1, TCO), lambda b, co, ci: (0, co)),
        pl.BlockSpec((1, TCO), lambda b, co, ci: (0, co)),
    ]
    inputs = [x_spad, w_mat, scale, shift]

    if identity is None:
        kernel = _conv_bn_relu_pad_kernel
        out_shape = jax.ShapeDtypeStruct((B, Hp, Wp, Cout_p), out_dtype)
        out_spec = pl.BlockSpec((1, Hp, Wp, TCO), lambda b, co, ci: (b, 0, 0, co))
    else:
        kernel = _conv_bn_add_relu_kernel
        in_specs.append(
            pl.BlockSpec((1, Hp, Wp, TCO), lambda b, co, ci: (b, 0, 0, co)))
        inputs.append(identity)
        out_shape = jax.ShapeDtypeStruct((B, H, W, Cout_p), out_dtype)
        out_spec = pl.BlockSpec((1, H, W, TCO), lambda b, co, ci: (b, 0, 0, co))

    flops = 2 * B * H * W * 9 * Cin_p * Cout_p
    bytes_accessed = (
        n_co * x_spad.size * x_spad.dtype.itemsize
        + B * w_mat.size * w_mat.dtype.itemsize
        + math.prod(out_shape.shape) * jnp.dtype(out_dtype).itemsize
        + (identity.size * identity.dtype.itemsize if identity is not None else 0)
    )

    return pl.pallas_call(
        kernel,
        grid_spec=pltpu.PrefetchScalarGridSpec(
            num_scalar_prefetch=0,
            grid=(B, n_co, n_ci),
            in_specs=in_specs,
            out_specs=out_spec,
            scratch_shapes=[pltpu.VMEM((H * W, TCO), jnp.float32)],
        ),
        out_shape=out_shape,
        compiler_params=pltpu.CompilerParams(
            dimension_semantics=("parallel", "parallel", "arbitrary"),
            vmem_limit_bytes=32 * 1024 * 1024,
        ),
        cost_estimate=pl.CostEstimate(flops=flops, transcendentals=0,
                                      bytes_accessed=bytes_accessed),
    )(*inputs)


# -------------------------------- Forward -----------------------------------

def _fold_bn(gamma, beta, mean, var, eps):
    scale = gamma / jnp.sqrt(var + eps)
    shift = beta - mean * scale
    return scale, shift


def basic_block_forward(params, x, eps=1e-5):
    """BasicBlock forward (stride=1, downsample=None) for NCHW float32 input."""
    x = x.astype(jnp.float32)
    B, C, H, W = x.shape
    planes, inplanes = params["w1"].shape[0], params["w1"].shape[1]
    if inplanes != C or planes != inplanes:
        raise NotImplementedError("only the stride=1 / downsample=None path is implemented")

    Cp = _round_up(planes, _LANE)

    def pad_vec(v):                      # (planes,) -> (1, Cp) f32
        return jnp.pad(v.astype(jnp.float32), (0, Cp - v.shape[0])).reshape(1, Cp)

    def pack_weight(w):                  # (O, I, 3, 3) OIHW -> (3, 3, Ip, Op) bf16
        wm = jnp.transpose(w, (2, 3, 1, 0))
        wm = jnp.pad(wm, ((0, 0), (0, 0),
                          (0, Cp - wm.shape[2]), (0, Cp - wm.shape[3])))
        return wm.astype(jnp.bfloat16)

    s1, sh1 = _fold_bn(params["gamma1"], params["beta1"],
                       params["mean1"], params["var1"], eps)
    s2, sh2 = _fold_bn(params["gamma2"], params["beta2"],
                       params["mean2"], params["var2"], eps)
    w1 = pack_weight(params["w1"])
    w2 = pack_weight(params["w2"])

    # NCHW -> NHWC, zero-pad channels to lane width and spatial dims by 1.
    xh = jnp.transpose(x, (0, 2, 3, 1))
    xh = jnp.pad(xh, ((0, 0), (1, 1), (1, 1), (0, Cp - C))).astype(jnp.bfloat16)

    # conv1 -> bn1 -> relu   (output comes back already spatially padded for conv2)
    a1 = _conv3x3_fused(xh, w1, pad_vec(s1), pad_vec(sh1),
                        identity=None, out_dtype=jnp.bfloat16)
    # conv2 -> bn2 -> + identity -> relu
    out = _conv3x3_fused(a1, w2, pad_vec(s2), pad_vec(sh2),
                         identity=xh, out_dtype=jnp.float32)

    out = out[..., :planes]                        # drop channel padding
    return jnp.transpose(out, (0, 3, 1, 2))        # NHWC -> NCHW


# ------------------------------ Parameters -----------------------------------

def init_params(key, inplanes=32, planes=32):
    ks = jax.random.split(key, 10)
    b1 = 1.0 / math.sqrt(inplanes * 9)
    b2 = 1.0 / math.sqrt(planes * 9)
    return dict(
        w1=jax.random.uniform(ks[0], (planes, inplanes, 3, 3), jnp.float32, -b1, b1),
        w2=jax.random.uniform(ks[1], (planes, planes, 3, 3), jnp.float32, -b2, b2),
        gamma1=jax.random.uniform(ks[2], (planes,), jnp.float32, 0.5, 1.5),
        beta1=jax.random.uniform(ks[3], (planes,), jnp.float32, -0.5, 0.5),
        mean1=jax.random.uniform(ks[4], (planes,), jnp.float32, -0.1, 0.1),
        var1=jax.random.uniform(ks[5], (planes,), jnp.float32, 0.5, 1.5),
        gamma2=jax.random.uniform(ks[6], (planes,), jnp.float32, 0.5, 1.5),
        beta2=jax.random.uniform(ks[7], (planes,), jnp.float32, -0.5, 0.5),
        mean2=jax.random.uniform(ks[8], (planes,), jnp.float32, -0.1, 0.1),
        var2=jax.random.uniform(ks[9], (planes,), jnp.float32, 0.5, 1.5),
    )


# ---------------------------- Pure-JAX reference -----------------------------

def basic_block_reference(params, x, eps=1e-5):
    def conv(a, w):
        return jax.lax.conv_general_dilated(
            a, w, window_strides=(1, 1), padding=((1, 1), (1, 1)),
            dimension_numbers=("NCHW", "OIHW", "NCHW"))

    def bn(y, g, b, m, v):
        inv = g / jnp.sqrt(v + eps)
        return y * inv[None, :, None, None] + (b - m * inv)[None, :, None, None]

    out = conv(x, params["w1"])
    out = jnp.maximum(bn(out, params["gamma1"], params["beta1"],
                         params["mean1"], params["var1"]), 0.0)
    out = conv(out, params["w2"])
    out = bn(out, params["gamma2"], params["beta2"],
             params["mean2"], params["var2"])
    return jnp.maximum(out + x, 0.0)


if __name__ == "__main__":
    key = jax.random.PRNGKey(0)
    pkey, xkey = jax.random.split(key)
    B, C, H, W = 2, 32, 16, 16
    params = init_params(pkey, inplanes=C, planes=C)
    x = jax.random.normal(xkey, (B, C, H, W), jnp.float32)

    out = jax.jit(basic_block_forward)(params, x)
    out = jax.block_until_ready(out)

    assert out.shape == (B, C, H, W), out.shape
    assert bool(jnp.all(jnp.isfinite(out)))
    assert bool(jnp.all(out >= 0.0))               # block ends with ReLU

    ref = basic_block_reference(params, x)
    max_err = float(jnp.max(jnp.abs(out - ref)))
    assert bool(jnp.allclose(out, ref, atol=1e-1, rtol=1e-1)), max_err
    print("KERNEL_OK")
</pallas_src>

<mosaic_0001>
module attributes {stable_mosaic.version = 11 : i64} {
  func.func @_conv_bn_relu_pad_kernel(%arg0: i32, %arg1: i32, %arg2: i32, %arg3: memref<1x18x18x128xbf16, #tpu.memory_space<vmem>>, %arg4: memref<3x3x128x128xbf16, #tpu.memory_space<vmem>>, %arg5: memref<1x128xf32, #tpu.memory_space<vmem>>, %arg6: memref<1x128xf32, #tpu.memory_space<vmem>>, %arg7: memref<1x18x18x128xbf16, #tpu.memory_space<vmem>>, %arg8: memref<256x128xf32, #tpu.memory_space<vmem>>) attributes {dimension_semantics = [#tpu.dimension_semantics<parallel>, #tpu.dimension_semantics<parallel>, #tpu.dimension_semantics<arbitrary>], iteration_bounds = array<i64: 2, 1, 1>, scalar_prefetch = 0 : i64, scratch_operands = 1 : i64, tpu.core_type = #tpu.core_type<tc>, window_params = [{transform_indices = @transform_0, window_bounds = array<i64: 1, 18, 18, 128>}, {transform_indices = @transform_1, window_bounds = array<i64: 3, 3, 128, 128>}, {transform_indices = @transform_2, window_bounds = array<i64: 1, 128>}, {transform_indices = @transform_3, window_bounds = array<i64: 1, 128>}, {transform_indices = @transform_4, window_bounds = array<i64: 1, 18, 18, 128>}]} {
    %c0_i32 = arith.constant 0 : i32
    %0 = arith.cmpi eq, %arg2, %c0_i32 : i32
    %1 = arith.extui %0 : i1 to i32
    %c0_i32_0 = arith.constant 0 : i32
    %2 = arith.cmpi ne, %1, %c0_i32_0 : i32
    scf.if %2 {
      %cst_84 = arith.constant 0.000000e+00 : f32
      %71 = vector.broadcast %cst_84 : f32 to vector<256x128xf32>
      %c0_85 = arith.constant 0 : index
      %c0_86 = arith.constant 0 : index
      %72 = vector.load %arg8[%c0_85, %c0_86] : memref<256x128xf32, #tpu.memory_space<vmem>>, vector<256x128xf32>
      tpu.vector_store %arg8[%c0_85, %c0_86], %71 {strides = array<i32>} : memref<256x128xf32, #tpu.memory_space<vmem>>, vector<256x128xf32>,
    } else {
    }
    %c0 = arith.constant 0 : index
    %c0_1 = arith.constant 0 : index
    %3 = vector.load %arg8[%c0, %c0_1] : memref<256x128xf32, #tpu.memory_space<vmem>>, vector<256x128xf32>
    %c0_2 = arith.constant 0 : index
    %c0_3 = arith.constant 0 : index
    %c0_4 = arith.constant 0 : index
    %c0_5 = arith.constant 0 : index
    %4 = vector.load %arg3[%c0_2, %c0_3, %c0_4, %c0_5] : memref<1x18x18x128xbf16, #tpu.memory_space<vmem>>, vector<1x16x16x128xbf16>
    %5 = vector.shape_cast %4 : vector<1x16x16x128xbf16> to vector<16x16x128xbf16>
    %c0_6 = arith.constant 0 : index
    %c0_7 = arith.constant 0 : index
    %c0_8 = arith.constant 0 : index
    %c0_9 = arith.constant 0 : index
    %6 = vector.load %arg4[%c0_6, %c0_7, %c0_8, %c0_9] : memref<3x3x128x128xbf16, #tpu.memory_space<vmem>>, vector<1x1x128x128xbf16>
    %7 = vector.shape_cast %6 : vector<1x1x128x128xbf16> to vector<128x128xbf16>
    %8 = vector.shape_cast %5 : vector<16x16x128xbf16> to vector<256x128xbf16>
    %cst = arith.constant dense<0.000000e+00> : vector<256x128xf32>
    %9 = tpu.matmul %8, %7, %cst {dimension_numbers = #tpu.dot_dimension_numbers<[1], [0], [0], [1], [0, 0, 1, 1], [], []>} : vector<256x128xbf16>, vector<128x128xbf16>, vector<256x128xf32> -> vector<256x128xf32>
    %10 = arith.addf %3, %9 : vector<256x128xf32>
    %c0_10 = arith.constant 0 : index
    %c0_11 = arith.constant 0 : index
    %c1 = arith.constant 1 : index
    %c0_12 = arith.constant 0 : index
    %11 = vector.load %arg3[%c0_10, %c0_11, %c1, %c0_12] : memref<1x18x18x128xbf16, #tpu.memory_space<vmem>>, vector<1x16x16x128xbf16>
    %12 = vector.shape_cast %11 : vector<1x16x16x128xbf16> to vector<16x16x128xbf16>
    %c0_13 = arith.constant 0 : index
    %c1_14 = arith.constant 1 : index
    %c0_15 = arith.constant 0 : index
    %c0_16 = arith.constant 0 : index
    %13 = vector.load %arg4[%c0_13, %c1_14, %c0_15, %c0_16] : memref<3x3x128x128xbf16, #tpu.memory_space<vmem>>, vector<1x1x128x128xbf16>
    %14 = vector.shape_cast %13 : vector<1x1x128x128xbf16> to vector<128x128xbf16>
    %15 = vector.shape_cast %12 : vector<16x16x128xbf16> to vector<256x128xbf16>
    %cst_17 = arith.constant dense<0.000000e+00> : vector<256x128xf32>
    %16 = tpu.matmul %15, %14, %cst_17 {dimension_numbers = #tpu.dot_dimension_numbers<[1], [0], [0], [1], [0, 0, 1, 1], [], []>} : vector<256x128xbf16>, vector<128x128xbf16>, vector<256x128xf32> -> vector<256x128xf32>
    %17 = arith.addf %10, %16 : vector<256x128xf32>
    %c0_18 = arith.constant 0 : index
    %c0_19 = arith.constant 0 : index
    %c2 = arith.constant 2 : index
    %c0_20 = arith.constant 0 : index
    %18 = vector.load %arg3[%c0_18, %c0_19, %c2, %c0_20] : memref<1x18x18x128xbf16, #tpu.memory_space<vmem>>, vector<1x16x16x128xbf16>
    %19 = vector.shape_cast %18 : vector<1x16x16x128xbf16> to vector<16x16x128xbf16>
    %c0_21 = arith.constant 0 : index
    %c2_22 = arith.constant 2 : index
    %c0_23 = arith.constant 0 : index
    %c0_24 = arith.constant 0 : index
    %20 = vector.load %arg4[%c0_21, %c2_22, %c0_23, %c0_24] : memref<3x3x128x128xbf16, #tpu.memory_space<vmem>>, vector<1x1x128x128xbf16>
    %21 = vector.shape_cast %20 : vector<1x1x128x128xbf16> to vector<128x128xbf16>
    %22 = vector.shape_cast %19 : vector<16x16x128xbf16> to vector<256x128xbf16>
    %cst_25 = arith.constant dense<0.000000e+00> : vector<256x128xf32>
    %23 = tpu.matmul %22, %21, %cst_25 {dimension_numbers = #tpu.dot_dimension_numbers<[1], [0], [0], [1], [0, 0, 1, 1], [], []>} : vector<256x128xbf16>, vector<128x128xbf16>, vector<256x128xf32> -> vector<256x128xf32>
    %24 = arith.addf %17, %23 : vector<256x128xf32>
    %c0_26 = arith.constant 0 : index
    %c1_27 = arith.constant 1 : index
    %c0_28 = arith.constant 0 : index
    %c0_29 = arith.constant 0 : index
    %25 = vector.load %arg3[%c0_26, %c1_27, %c0_28, %c0_29] : memref<1x18x18x128xbf16, #tpu.memory_space<vmem>>, vector<1x16x16x128xbf16>
    %26 = vector.shape_cast %25 : vector<1x16x16x128xbf16> to vector<16x16x128xbf16>
    %c1_30 = arith.constant 1 : index
    %c0_31 = arith.constant 0 : index
    %c0_32 = arith.constant 0 : index
    %c0_33 = arith.constant 0 : index
    %27 = vector.load %arg4[%c1_30, %c0_31, %c0_32, %c0_33] : memref<3x3x128x128xbf16, #tpu.memory_space<vmem>>, vector<1x1x128x128xbf16>
    %28 = vector.shape_cast %27 : vector<1x1x128x128xbf16> to vector<128x128xbf16>
    %29 = vector.shape_cast %26 : vector<16x16x128xbf16> to vector<256x128xbf16>
    %cst_34 = arith.constant dense<0.000000e+00> : vector<256x128xf32>
    %30 = tpu.matmul %29, %28, %cst_34 {dimension_numbers = #tpu.dot_dimension_numbers<[1], [0], [0], [1], [0, 0, 1, 1], [], []>} : vector<256x128xbf16>, vector<128x128xbf16>, vector<256x128xf32> -> vector<256x128xf32>
    %31 = arith.addf %24, %30 : vector<256x128xf32>
    %c0_35 = arith.constant 0 : index
    %c1_36 = arith.constant 1 : index
    %c1_37 = arith.constant 1 : index
    %c0_38 = arith.constant 0 : index
    %32 = vector.load %arg3[%c0_35, %c1_36, %c1_37, %c0_38] : memref<1x18x18x128xbf16, #tpu.memory_space<vmem>>, vector<1x16x16x128xbf16>
    %33 = vector.shape_cast %32 : vector<1x16x16x128xbf16> to vector<16x16x128xbf16>
    %c1_39 = arith.constant 1 : index
    %c1_40 = arith.constant 1 : index
    %c0_41 = arith.constant 0 : index
    %c0_42 = arith.constant 0 : index
    %34 = vector.load %arg4[%c1_39, %c1_40, %c0_41, %c0_42] : memref<3x3x128x128xbf16, #tpu.memory_space<vmem>>, vector<1x1x128x128xbf16>
    %35 = vector.shape_cast %34 : vector<1x1x128x128xbf16> to vector<128x128xbf16>
    %36 = vector.shape_cast %33 : vector<16x16x128xbf16> to vector<256x128xbf16>
    %cst_43 = arith.constant dense<0.000000e+00> : vector<256x128xf32>
    %37 = tpu.matmul %36, %35, %cst_43 {dimension_numbers = #tpu.dot_dimension_numbers<[1], [0], [0], [1], [0, 0, 1, 1], [], []>} : vector<256x128xbf16>, vector<128x128xbf16>, vector<256x128xf32> -> vector<256x128xf32>
    %38 = arith.addf %31, %37 : vector<256x128xf32>
    %c0_44 = arith.constant 0 : index
    %c1_45 = arith.constant 1 : index
    %c2_46 = arith.constant 2 : index
    %c0_47 = arith.constant 0 : index
    %39 = vector.load %arg3[%c0_44, %c1_45, %c2_46, %c0_47] : memref<1x18x18x128xbf16, #tpu.memory_space<vmem>>, vector<1x16x16x128xbf16>
    %40 = vector.shape_cast %39 : vector<1x16x16x128xbf16> to vector<16x16x128xbf16>
    %c1_48 = arith.constant 1 : index
    %c2_49 = arith.constant 2 : index
    %c0_50 = arith.constant 0 : index
    %c0_51 = arith.constant 0 : index
    %41 = vector.load %arg4[%c1_48, %c2_49, %c0_50, %c0_51] : memref<3x3x128x128xbf16, #tpu.memory_space<vmem>>, vector<1x1x128x128xbf16>
    %42 = vector.shape_cast %41 : vector<1x1x128x128xbf16> to vector<128x128xbf16>
    %43 = vector.shape_cast %40 : vector<16x16x128xbf16> to vector<256x128xbf16>
    %cst_52 = arith.constant dense<0.000000e+00> : vector<256x128xf32>
    %44 = tpu.matmul %43, %42, %cst_52 {dimension_numbers = #tpu.dot_dimension_numbers<[1], [0], [0], [1], [0, 0, 1, 1], [], []>} : vector<256x128xbf16>, vector<128x128xbf16>, vector<256x128xf32> -> vector<256x128xf32>
    %45 = arith.addf %38, %44 : vector<256x128xf32>
    %c0_53 = arith.constant 0 : index
    %c2_54 = arith.constant 2 : index
    %c0_55 = arith.constant 0 : index
    %c0_56 = arith.constant 0 : index
    %46 = vector.load %arg3[%c0_53, %c2_54, %c0_55, %c0_56] : memref<1x18x18x128xbf16, #tpu.memory_space<vmem>>, vector<1x16x16x128xbf16>
    %47 = vector.shape_cast %46 : vector<1x16x16x128xbf16> to vector<16x16x128xbf16>
    %c2_57 = arith.constant 2 : index
    %c0_58 = arith.constant 0 : index
    %c0_59 = arith.constant 0 : index
    %c0_60 = arith.constant 0 : index
    %48 = vector.load %arg4[%c2_57, %c0_58, %c0_59, %c0_60] : memref<3x3x128x128xbf16, #tpu.memory_space<vmem>>, vector<1x1x128x128xbf16>
    %49 = vector.shape_cast %48 : vector<1x1x128x128xbf16> to vector<128x128xbf16>
    %50 = vector.shape_cast %47 : vector<16x16x128xbf16> to vector<256x128xbf16>
    %cst_61 = arith.constant dense<0.000000e+00> : vector<256x128xf32>
    %51 = tpu.matmul %50, %49, %cst_61 {dimension_numbers = #tpu.dot_dimension_numbers<[1], [0], [0], [1], [0, 0, 1, 1], [], []>} : vector<256x128xbf16>, vector<128x128xbf16>, vector<256x128xf32> -> vector<256x128xf32>
    %52 = arith.addf %45, %51 : vector<256x128xf32>
    %c0_62 = arith.constant 0 : index
    %c2_63 = arith.constant 2 : index
    %c1_64 = arith.constant 1 : index
    %c0_65 = arith.constant 0 : index
    %53 = vector.load %arg3[%c0_62, %c2_63, %c1_64, %c0_65] : memref<1x18x18x128xbf16, #tpu.memory_space<vmem>>, vector<1x16x16x128xbf16>
    %54 = vector.shape_cast %53 : vector<1x16x16x128xbf16> to vector<16x16x128xbf16>
    %c2_66 = arith.constant 2 : index
    %c1_67 = arith.constant 1 : index
    %c0_68 = arith.constant 0 : index
    %c0_69 = arith.constant 0 : index
    %55 = vector.load %arg4[%c2_66, %c1_67, %c0_68, %c0_69] : memref<3x3x128x128xbf16, #tpu.memory_space<vmem>>, vector<1x1x128x128xbf16>
    %56 = vector.shape_cast %55 : vector<1x1x128x128xbf16> to vector<128x128xbf16>
    %57 = vector.shape_cast %54 : vector<16x16x128xbf16> to vector<256x128xbf16>
    %cst_70 = arith.constant dense<0.000000e+00> : vector<256x128xf32>
    %58 = tpu.matmul %57, %56, %cst_70 {dimension_numbers = #tpu.dot_dimension_numbers<[1], [0], [0], [1], [0, 0, 1, 1], [], []>} : vector<256x128xbf16>, vector<128x128xbf16>, vector<256x128xf32> -> vector<256x128xf32>
    %59 = arith.addf %52, %58 : vector<256x128xf32>
    %c0_71 = arith.constant 0 : index
    %c2_72 = arith.constant 2 : index
    %c2_73 = arith.constant 2 : index
    %c0_74 = arith.constant 0 : index
    %60 = vector.load %arg3[%c0_71, %c2_72, %c2_73, %c0_74] : memref<1x18x18x128xbf16, #tpu.memory_space<vmem>>, vector<1x16x16x128xbf16>
    %61 = vector.shape_cast %60 : vector<1x16x16x128xbf16> to vector<16x16x128xbf16>
    %c2_75 = arith.constant 2 : index
    %c2_76 = arith.constant 2 : index
    %c0_77 = arith.constant 0 : index
    %c0_78 = arith.constant 0 : index
    %62 = vector.load %arg4[%c2_75, %c2_76, %c0_77, %c0_78] : memref<3x3x128x128xbf16, #tpu.memory_space<vmem>>, vector<1x1x128x128xbf16>
    %63 = vector.shape_cast %62 : vector<1x1x128x128xbf16> to vector<128x128xbf16>
    %64 = vector.shape_cast %61 : vector<16x16x128xbf16> to vector<256x128xbf16>
    %cst_79 = arith.constant dense<0.000000e+00> : vector<256x128xf32>
    %65 = tpu.matmul %64, %63, %cst_79 {dimension_numbers = #tpu.dot_dimension_numbers<[1], [0], [0], [1], [0, 0, 1, 1], [], []>} : vector<256x128xbf16>, vector<128x128xbf16>, vector<256x128xf32> -> vector<256x128xf32>
    %66 = arith.addf %59, %65 : vector<256x128xf32>
    %c0_80 = arith.constant 0 : index
    %c0_81 = arith.constant 0 : index
    %67 = vector.load %arg8[%c0_80, %c0_81] : memref<256x128xf32, #tpu.memory_space<vmem>>, vector<256x128xf32>
    tpu.vector_store %arg8[%c0_80, %c0_81], %66 {strides = array<i32>} : memref<256x128xf32, #tpu.memory_space<vmem>>, vector<256x128xf32>,
    %c0_i32_82 = arith.constant 0 : i32
    %68 = arith.cmpi eq, %arg2, %c0_i32_82 : i32
    %69 = arith.extui %68 : i1 to i32
    %c0_i32_83 = arith.constant 0 : i32
    %70 = arith.cmpi ne, %69, %c0_i32_83 : i32
    scf.if %70 {
      %c0_84 = arith.constant 0 : index
      %c0_85 = arith.constant 0 : index
      %71 = vector.load %arg8[%c0_84, %c0_85] : memref<256x128xf32, #tpu.memory_space<vmem>>, vector<256x128xf32>
      %c0_86 = arith.constant 0 : index
      %c0_87 = arith.constant 0 : index
      %72 = vector.load %arg5[%c0_86, %c0_87] : memref<1x128xf32, #tpu.memory_space<vmem>>, vector<1x128xf32>
      %73 = vector.broadcast %72 : vector<1x128xf32> to vector<256x128xf32>
      %74 = arith.mulf %71, %73 : vector<256x128xf32>
      %c0_88 = arith.constant 0 : index
      %c0_89 = arith.constant 0 : index
      %75 = vector.load %arg6[%c0_88, %c0_89] : memref<1x128xf32, #tpu.memory_space<vmem>>, vector<1x128xf32>
      %76 = vector.broadcast %75 : vector<1x128xf32> to vector<256x128xf32>
      %77 = arith.addf %74, %76 : vector<256x128xf32>
      %cst_90 = arith.constant 0.000000e+00 : f32
      %78 = vector.broadcast %cst_90 : f32 to vector<256x128xf32>
      %79 = arith.maximumf %77, %78 : vector<256x128xf32>
      %80 = vector.shape_cast %79 : vector<256x128xf32> to vector<16x16x128xf32>
      %cst_91 = arith.constant 0.000000e+00 : bf16
      %81 = vector.broadcast %cst_91 : bf16 to vector<18x18x128xbf16>
      %c0_92 = arith.constant 0 : index
      %c0_93 = arith.constant 0 : index
      %c0_94 = arith.constant 0 : index
      %c0_95 = arith.constant 0 : index
      %82 = vector.load %arg7[%c0_92, %c0_93, %c0_94, %c0_95] : memref<1x18x18x128xbf16, #tpu.memory_space<vmem>>, vector<1x18x18x128xbf16>
      %83 = vector.shape_cast %82 : vector<1x18x18x128xbf16> to vector<18x18x128xbf16>
      %84 = vector.shape_cast %81 : vector<18x18x128xbf16> to vector<1x18x18x128xbf16>
      tpu.vector_store %arg7[%c0_92, %c0_93, %c0_94, %c0_95], %84 {strides = array<i32>} : memref<1x18x18x128xbf16, #tpu.memory_space<vmem>>, vector<1x18x18x128xbf16>,
      %85 = arith.truncf %80 : vector<16x16x128xf32> to vector<16x16x128xbf16>
      %c0_96 = arith.constant 0 : index
      %c1_97 = arith.constant 1 : index
      %c1_98 = arith.constant 1 : index
      %c0_99 = arith.constant 0 : index
      %86 = vector.load %arg7[%c0_96, %c1_97, %c1_98, %c0_99] : memref<1x18x18x128xbf16, #tpu.memory_space<vmem>>, vector<1x16x16x128xbf16>
      %87 = vector.shape_cast %86 : vector<1x16x16x128xbf16> to vector<16x16x128xbf16>
      %88 = vector.shape_cast %85 : vector<16x16x128xbf16> to vector<1x16x16x128xbf16>
      tpu.vector_store %arg7[%c0_96, %c1_97, %c1_98, %c0_99], %88 {strides = array<i32>} : memref<1x18x18x128xbf16, #tpu.memory_space<vmem>>, vector<1x16x16x128xbf16>,
    } else {
    }
    return
  }
  func.func @transform_0(%arg0: i32, %arg1: i32, %arg2: i32) -> (i32, i32, i32, i32) {
    %c0_i32 = arith.constant 0 : i32
    %c0_i32_0 = arith.constant 0 : i32
    %c0_i32_1 = arith.constant 0 : i32
    return %arg0, %c0_i32, %c0_i32_0, %arg2 : i32, i32, i32, i32
  }
  func.func @transform_1(%arg0: i32, %arg1: i32, %arg2: i32) -> (i32, i32, i32, i32) {
    %c0_i32 = arith.constant 0 : i32
    %c0_i32_0 = arith.constant 0 : i32
    %c0_i32_1 = arith.constant 0 : i32
    return %c0_i32, %c0_i32_0, %arg2, %arg1 : i32, i32, i32, i32
  }
  func.func @transform_2(%arg0: i32, %arg1: i32, %arg2: i32) -> (i32, i32) {
    %c0_i32 = arith.constant 0 : i32
    %c0_i32_0 = arith.constant 0 : i32
    return %c0_i32, %arg1 : i32, i32
  }
  func.func @transform_3(%arg0: i32, %arg1: i32, %arg2: i32) -> (i32, i32) {
    %c0_i32 = arith.constant 0 : i32
    %c0_i32_0 = arith.constant 0 : i32
    return %c0_i32, %arg1 : i32, i32
  }
  func.func @transform_4(%arg0: i32, %arg1: i32, %arg2: i32) -> (i32, i32, i32, i32) {
    %c0_i32 = arith.constant 0 : i32
    %c0_i32_0 = arith.constant 0 : i32
    %c0_i32_1 = arith.constant 0 : i32
    return %arg0, %c0_i32, %c0_i32_0, %arg1 : i32, i32, i32, i32
  }
}

module attributes {stable_mosaic.version = 11 : i64} {
  func.func @_conv_bn_add_relu_kernel(%arg0: i32, %arg1: i32, %arg2: i32, %arg3: memref<1x18x18x128xbf16, #tpu.memory_space<vmem>>, %arg4: memref<3x3x128x128xbf16, #tpu.memory_space<vmem>>, %arg5: memref<1x128xf32, #tpu.memory_space<vmem>>, %arg6: memref<1x128xf32, #tpu.memory_space<vmem>>, %arg7: memref<1x18x18x128xbf16, #tpu.memory_space<vmem>>, %arg8: memref<1x16x16x128xf32, #tpu.memory_space<vmem>>, %arg9: memref<256x128xf32, #tpu.memory_space<vmem>>) attributes {dimension_semantics = [#tpu.dimension_semantics<parallel>, #tpu.dimension_semantics<parallel>, #tpu.dimension_semantics<arbitrary>], iteration_bounds = array<i64: 2, 1, 1>, scalar_prefetch = 0 : i64, scratch_operands = 1 : i64, tpu.core_type = #tpu.core_type<tc>, window_params = [{transform_indices = @transform_0, window_bounds = array<i64: 1, 18, 18, 128>}, {transform_indices = @transform_1, window_bounds = array<i64: 3, 3, 128, 128>}, {transform_indices = @transform_2, window_bounds = array<i64: 1, 128>}, {transform_indices = @transform_3, window_bounds = array<i64: 1, 128>}, {transform_indices = @transform_4, window_bounds = array<i64: 1, 18, 18, 128>}, {transform_indices = @transform_5, window_bounds = array<i64: 1, 16, 16, 128>}]} {
    %c0_i32 = arith.constant 0 : i32
    %0 = arith.cmpi eq, %arg2, %c0_i32 : i32
    %1 = arith.extui %0 : i1 to i32
    %c0_i32_0 = arith.constant 0 : i32
    %2 = arith.cmpi ne, %1, %c0_i32_0 : i32
    scf.if %2 {
      %cst_84 = arith.constant 0.000000e+00 : f32
      %71 = vector.broadcast %cst_84 : f32 to vector<256x128xf32>
      %c0_85 = arith.constant 0 : index
      %c0_86 = arith.constant 0 : index
      %72 = vector.load %arg9[%c0_85, %c0_86] : memref<256x128xf32, #tpu.memory_space<vmem>>, vector<256x128xf32>
      tpu.vector_store %arg9[%c0_85, %c0_86], %71 {strides = array<i32>} : memref<256x128xf32, #tpu.memory_space<vmem>>, vector<256x128xf32>,
    } else {
    }
    %c0 = arith.constant 0 : index
    %c0_1 = arith.constant 0 : index
    %3 = vector.load %arg9[%c0, %c0_1] : memref<256x128xf32, #tpu.memory_space<vmem>>, vector<256x128xf32>
    %c0_2 = arith.constant 0 : index
    %c0_3 = arith.constant 0 : index
    %c0_4 = arith.constant 0 : index
    %c0_5 = arith.constant 0 : index
    %4 = vector.load %arg3[%c0_2, %c0_3, %c0_4, %c0_5] : memref<1x18x18x128xbf16, #tpu.memory_space<vmem>>, vector<1x16x16x128xbf16>
    %5 = vector.shape_cast %4 : vector<1x16x16x128xbf16> to vector<16x16x128xbf16>
    %c0_6 = arith.constant 0 : index
    %c0_7 = arith.constant 0 : index
    %c0_8 = arith.constant 0 : index
    %c0_9 = arith.constant 0 : index
    %6 = vector.load %arg4[%c0_6, %c0_7, %c0_8, %c0_9] : memref<3x3x128x128xbf16, #tpu.memory_space<vmem>>, vector<1x1x128x128xbf16>
    %7 = vector.shape_cast %6 : vector<1x1x128x128xbf16> to vector<128x128xbf16>
    %8 = vector.shape_cast %5 : vector<16x16x128xbf16> to vector<256x128xbf16>
    %cst = arith.constant dense<0.000000e+00> : vector<256x128xf32>
    %9 = tpu.matmul %8, %7, %cst {dimension_numbers = #tpu.dot_dimension_numbers<[1], [0], [0], [1], [0, 0, 1, 1], [], []>} : vector<256x128xbf16>, vector<128x128xbf16>, vector<256x128xf32> -> vector<256x128xf32>
    %10 = arith.addf %3, %9 : vector<256x128xf32>
    %c0_10 = arith.constant 0 : index
    %c0_11 = arith.constant 0 : index
    %c1 = arith.constant 1 : index
    %c0_12 = arith.constant 0 : index
    %11 = vector.load %arg3[%c0_10, %c0_11, %c1, %c0_12] : memref<1x18x18x128xbf16, #tpu.memory_space<vmem>>, vector<1x16x16x128xbf16>
    %12 = vector.shape_cast %11 : vector<1x16x16x128xbf16> to vector<16x16x128xbf16>
    %c0_13 = arith.constant 0 : index
    %c1_14 = arith.constant 1 : index
    %c0_15 = arith.constant 0 : index
    %c0_16 = arith.constant 0 : index
    %13 = vector.load %arg4[%c0_13, %c1_14, %c0_15, %c0_16] : memref<3x3x128x128xbf16, #tpu.memory_space<vmem>>, vector<1x1x128x128xbf16>
    %14 = vector.shape_cast %13 : vector<1x1x128x128xbf16> to vector<128x128xbf16>
    %15 = vector.shape_cast %12 : vector<16x16x128xbf16> to vector<256x128xbf16>
    %cst_17 = arith.constant dense<0.000000e+00> : vector<256x128xf32>
    %16 = tpu.matmul %15, %14, %cst_17 {dimension_numbers = #tpu.dot_dimension_numbers<[1], [0], [0], [1], [0, 0, 1, 1], [], []>} : vector<256x128xbf16>, vector<128x128xbf16>, vector<256x128xf32> -> vector<256x128xf32>
    %17 = arith.addf %10, %16 : vector<256x128xf32>
    %c0_18 = arith.constant 0 : index
    %c0_19 = arith.constant 0 : index
    %c2 = arith.constant 2 : index
    %c0_20 = arith.constant 0 : index
    %18 = vector.load %arg3[%c0_18, %c0_19, %c2, %c0_20] : memref<1x18x18x128xbf16, #tpu.memory_space<vmem>>, vector<1x16x16x128xbf16>
    %19 = vector.shape_cast %18 : vector<1x16x16x128xbf16> to vector<16x16x128xbf16>
    %c0_21 = arith.constant 0 : index
    %c2_22 = arith.constant 2 : index
    %c0_23 = arith.constant 0 : index
    %c0_24 = arith.constant 0 : index
    %20 = vector.load %arg4[%c0_21, %c2_22, %c0_23, %c0_24] : memref<3x3x128x128xbf16, #tpu.memory_space<vmem>>, vector<1x1x128x128xbf16>
    %21 = vector.shape_cast %20 : vector<1x1x128x128xbf16> to vector<128x128xbf16>
    %22 = vector.shape_cast %19 : vector<16x16x128xbf16> to vector<256x128xbf16>
    %cst_25 = arith.constant dense<0.000000e+00> : vector<256x128xf32>
    %23 = tpu.matmul %22, %21, %cst_25 {dimension_numbers = #tpu.dot_dimension_numbers<[1], [0], [0], [1], [0, 0, 1, 1], [], []>} : vector<256x128xbf16>, vector<128x128xbf16>, vector<256x128xf32> -> vector<256x128xf32>
    %24 = arith.addf %17, %23 : vector<256x128xf32>
    %c0_26 = arith.constant 0 : index
    %c1_27 = arith.constant 1 : index
    %c0_28 = arith.constant 0 : index
    %c0_29 = arith.constant 0 : index
    %25 = vector.load %arg3[%c0_26, %c1_27, %c0_28, %c0_29] : memref<1x18x18x128xbf16, #tpu.memory_space<vmem>>, vector<1x16x16x128xbf16>
    %26 = vector.shape_cast %25 : vector<1x16x16x128xbf16> to vector<16x16x128xbf16>
    %c1_30 = arith.constant 1 : index
    %c0_31 = arith.constant 0 : index
    %c0_32 = arith.constant 0 : index
    %c0_33 = arith.constant 0 : index
    %27 = vector.load %arg4[%c1_30, %c0_31, %c0_32, %c0_33] : memref<3x3x128x128xbf16, #tpu.memory_space<vmem>>, vector<1x1x128x128xbf16>
    %28 = vector.shape_cast %27 : vector<1x1x128x128xbf16> to vector<128x128xbf16>
    %29 = vector.shape_cast %26 : vector<16x16x128xbf16> to vector<256x128xbf16>
    %cst_34 = arith.constant dense<0.000000e+00> : vector<256x128xf32>
    %30 = tpu.matmul %29, %28, %cst_34 {dimension_numbers = #tpu.dot_dimension_numbers<[1], [0], [0], [1], [0, 0, 1, 1], [], []>} : vector<256x128xbf16>, vector<128x128xbf16>, vector<256x128xf32> -> vector<256x128xf32>
    %31 = arith.addf %24, %30 : vector<256x128xf32>
    %c0_35 = arith.constant 0 : index
    %c1_36 = arith.constant 1 : index
    %c1_37 = arith.constant 1 : index
    %c0_38 = arith.constant 0 : index
    %32 = vector.load %arg3[%c0_35, %c1_36, %c1_37, %c0_38] : memref<1x18x18x128xbf16, #tpu.memory_space<vmem>>, vector<1x16x16x128xbf16>
    %33 = vector.shape_cast %32 : vector<1x16x16x128xbf16> to vector<16x16x128xbf16>
    %c1_39 = arith.constant 1 : index
    %c1_40 = arith.constant 1 : index
    %c0_41 = arith.constant 0 : index
    %c0_42 = arith.constant 0 : index
    %34 = vector.load %arg4[%c1_39, %c1_40, %c0_41, %c0_42] : memref<3x3x128x128xbf16, #tpu.memory_space<vmem>>, vector<1x1x128x128xbf16>
    %35 = vector.shape_cast %34 : vector<1x1x128x128xbf16> to vector<128x128xbf16>
    %36 = vector.shape_cast %33 : vector<16x16x128xbf16> to vector<256x128xbf16>
    %cst_43 = arith.constant dense<0.000000e+00> : vector<256x128xf32>
    %37 = tpu.matmul %36, %35, %cst_43 {dimension_numbers = #tpu.dot_dimension_numbers<[1], [0], [0], [1], [0, 0, 1, 1], [], []>} : vector<256x128xbf16>, vector<128x128xbf16>, vector<256x128xf32> -> vector<256x128xf32>
    %38 = arith.addf %31, %37 : vector<256x128xf32>
    %c0_44 = arith.constant 0 : index
    %c1_45 = arith.constant 1 : index
    %c2_46 = arith.constant 2 : index
    %c0_47 = arith.constant 0 : index
    %39 = vector.load %arg3[%c0_44, %c1_45, %c2_46, %c0_47] : memref<1x18x18x128xbf16, #tpu.memory_space<vmem>>, vector<1x16x16x128xbf16>
    %40 = vector.shape_cast %39 : vector<1x16x16x128xbf16> to vector<16x16x128xbf16>
    %c1_48 = arith.constant 1 : index
    %c2_49 = arith.constant 2 : index
    %c0_50 = arith.constant 0 : index
    %c0_51 = arith.constant 0 : index
    %41 = vector.load %arg4[%c1_48, %c2_49, %c0_50, %c0_51] : memref<3x3x128x128xbf16, #tpu.memory_space<vmem>>, vector<1x1x128x128xbf16>
    %42 = vector.shape_cast %41 : vector<1x1x128x128xbf16> to vector<128x128xbf16>
    %43 = vector.shape_cast %40 : vector<16x16x128xbf16> to vector<256x128xbf16>
    %cst_52 = arith.constant dense<0.000000e+00> : vector<256x128xf32>
    %44 = tpu.matmul %43, %42, %cst_52 {dimension_numbers = #tpu.dot_dimension_numbers<[1], [0], [0], [1], [0, 0, 1, 1], [], []>} : vector<256x128xbf16>, vector<128x128xbf16>, vector<256x128xf32> -> vector<256x128xf32>
    %45 = arith.addf %38, %44 : vector<256x128xf32>
    %c0_53 = arith.constant 0 : index
    %c2_54 = arith.constant 2 : index
    %c0_55 = arith.constant 0 : index
    %c0_56 = arith.constant 0 : index
    %46 = vector.load %arg3[%c0_53, %c2_54, %c0_55, %c0_56] : memref<1x18x18x128xbf16, #tpu.memory_space<vmem>>, vector<1x16x16x128xbf16>
    %47 = vector.shape_cast %46 : vector<1x16x16x128xbf16> to vector<16x16x128xbf16>
    %c2_57 = arith.constant 2 : index
    %c0_58 = arith.constant 0 : index
    %c0_59 = arith.constant 0 : index
    %c0_60 = arith.constant 0 : index
    %48 = vector.load %arg4[%c2_57, %c0_58, %c0_59, %c0_60] : memref<3x3x128x128xbf16, #tpu.memory_space<vmem>>, vector<1x1x128x128xbf16>
    %49 = vector.shape_cast %48 : vector<1x1x128x128xbf16> to vector<128x128xbf16>
    %50 = vector.shape_cast %47 : vector<16x16x128xbf16> to vector<256x128xbf16>
    %cst_61 = arith.constant dense<0.000000e+00> : vector<256x128xf32>
    %51 = tpu.matmul %50, %49, %cst_61 {dimension_numbers = #tpu.dot_dimension_numbers<[1], [0], [0], [1], [0, 0, 1, 1], [], []>} : vector<256x128xbf16>, vector<128x128xbf16>, vector<256x128xf32> -> vector<256x128xf32>
    %52 = arith.addf %45, %51 : vector<256x128xf32>
    %c0_62 = arith.constant 0 : index
    %c2_63 = arith.constant 2 : index
    %c1_64 = arith.constant 1 : index
    %c0_65 = arith.constant 0 : index
    %53 = vector.load %arg3[%c0_62, %c2_63, %c1_64, %c0_65] : memref<1x18x18x128xbf16, #tpu.memory_space<vmem>>, vector<1x16x16x128xbf16>
    %54 = vector.shape_cast %53 : vector<1x16x16x128xbf16> to vector<16x16x128xbf16>
    %c2_66 = arith.constant 2 : index
    %c1_67 = arith.constant 1 : index
    %c0_68 = arith.constant 0 : index
    %c0_69 = arith.constant 0 : index
    %55 = vector.load %arg4[%c2_66, %c1_67, %c0_68, %c0_69] : memref<3x3x128x128xbf16, #tpu.memory_space<vmem>>, vector<1x1x128x128xbf16>
    %56 = vector.shape_cast %55 : vector<1x1x128x128xbf16> to vector<128x128xbf16>
    %57 = vector.shape_cast %54 : vector<16x16x128xbf16> to vector<256x128xbf16>
    %cst_70 = arith.constant dense<0.000000e+00> : vector<256x128xf32>
    %58 = tpu.matmul %57, %56, %cst_70 {dimension_numbers = #tpu.dot_dimension_numbers<[1], [0], [0], [1], [0, 0, 1, 1], [], []>} : vector<256x128xbf16>, vector<128x128xbf16>, vector<256x128xf32> -> vector<256x128xf32>
    %59 = arith.addf %52, %58 : vector<256x128xf32>
    %c0_71 = arith.constant 0 : index
    %c2_72 = arith.constant 2 : index
    %c2_73 = arith.constant 2 : index
    %c0_74 = arith.constant 0 : index
    %60 = vector.load %arg3[%c0_71, %c2_72, %c2_73, %c0_74] : memref<1x18x18x128xbf16, #tpu.memory_space<vmem>>, vector<1x16x16x128xbf16>
    %61 = vector.shape_cast %60 : vector<1x16x16x128xbf16> to vector<16x16x128xbf16>
    %c2_75 = arith.constant 2 : index
    %c2_76 = arith.constant 2 : index
    %c0_77 = arith.constant 0 : index
    %c0_78 = arith.constant 0 : index
    %62 = vector.load %arg4[%c2_75, %c2_76, %c0_77, %c0_78] : memref<3x3x128x128xbf16, #tpu.memory_space<vmem>>, vector<1x1x128x128xbf16>
    %63 = vector.shape_cast %62 : vector<1x1x128x128xbf16> to vector<128x128xbf16>
    %64 = vector.shape_cast %61 : vector<16x16x128xbf16> to vector<256x128xbf16>
    %cst_79 = arith.constant dense<0.000000e+00> : vector<256x128xf32>
    %65 = tpu.matmul %64, %63, %cst_79 {dimension_numbers = #tpu.dot_dimension_numbers<[1], [0], [0], [1], [0, 0, 1, 1], [], []>} : vector<256x128xbf16>, vector<128x128xbf16>, vector<256x128xf32> -> vector<256x128xf32>
    %66 = arith.addf %59, %65 : vector<256x128xf32>
    %c0_80 = arith.constant 0 : index
    %c0_81 = arith.constant 0 : index
    %67 = vector.load %arg9[%c0_80, %c0_81] : memref<256x128xf32, #tpu.memory_space<vmem>>, vector<256x128xf32>
    tpu.vector_store %arg9[%c0_80, %c0_81], %66 {strides = array<i32>} : memref<256x128xf32, #tpu.memory_space<vmem>>, vector<256x128xf32>,
    %c0_i32_82 = arith.constant 0 : i32
    %68 = arith.cmpi eq, %arg2, %c0_i32_82 : i32
    %69 = arith.extui %68 : i1 to i32
    %c0_i32_83 = arith.constant 0 : i32
    %70 = arith.cmpi ne, %69, %c0_i32_83 : i32
    scf.if %70 {
      %c0_84 = arith.constant 0 : index
      %c0_85 = arith.constant 0 : index
      %71 = vector.load %arg9[%c0_84, %c0_85] : memref<256x128xf32, #tpu.memory_space<vmem>>, vector<256x128xf32>
      %c0_86 = arith.constant 0 : index
      %c0_87 = arith.constant 0 : index
      %72 = vector.load %arg5[%c0_86, %c0_87] : memref<1x128xf32, #tpu.memory_space<vmem>>, vector<1x128xf32>
      %73 = vector.broadcast %72 : vector<1x128xf32> to vector<256x128xf32>
      %74 = arith.mulf %71, %73 : vector<256x128xf32>
      %c0_88 = arith.constant 0 : index
      %c0_89 = arith.constant 0 : index
      %75 = vector.load %arg6[%c0_88, %c0_89] : memref<1x128xf32, #tpu.memory_space<vmem>>, vector<1x128xf32>
      %76 = vector.broadcast %75 : vector<1x128xf32> to vector<256x128xf32>
      %77 = arith.addf %74, %76 : vector<256x128xf32>
      %c0_90 = arith.constant 0 : index
      %c1_91 = arith.constant 1 : index
      %c1_92 = arith.constant 1 : index
      %c0_93 = arith.constant 0 : index
      %78 = vector.load %arg7[%c0_90, %c1_91, %c1_92, %c0_93] : memref<1x18x18x128xbf16, #tpu.memory_space<vmem>>, vector<1x16x16x128xbf16>
      %79 = vector.shape_cast %78 : vector<1x16x16x128xbf16> to vector<16x16x128xbf16>
      %80 = arith.extf %79 : vector<16x16x128xbf16> to vector<16x16x128xf32>
      %81 = vector.shape_cast %77 : vector<256x128xf32> to vector<16x16x128xf32>
      %82 = arith.addf %81, %80 : vector<16x16x128xf32>
      %cst_94 = arith.constant 0.000000e+00 : f32
      %83 = vector.broadcast %cst_94 : f32 to vector<16x16x128xf32>
      %84 = arith.maximumf %82, %83 : vector<16x16x128xf32>
      %c0_95 = arith.constant 0 : index
      %c0_96 = arith.constant 0 : index
      %c0_97 = arith.constant 0 : index
      %c0_98 = arith.constant 0 : index
      %85 = vector.load %arg8[%c0_95, %c0_96, %c0_97, %c0_98] : memref<1x16x16x128xf32, #tpu.memory_space<vmem>>, vector<1x16x16x128xf32>
      %86 = vector.shape_cast %85 : vector<1x16x16x128xf32> to vector<16x16x128xf32>
      %87 = vector.shape_cast %84 : vector<16x16x128xf32> to vector<1x16x16x128xf32>
      tpu.vector_store %arg8[%c0_95, %c0_96, %c0_97, %c0_98], %87 {strides = array<i32>} : memref<1x16x16x128xf32, #tpu.memory_space<vmem>>, vector<1x16x16x128xf32>,
    } else {
    }
    return
  }
  func.func @transform_0(%arg0: i32, %arg1: i32, %arg2: i32) -> (i32, i32, i32, i32) {
    %c0_i32 = arith.constant 0 : i32
    %c0_i32_0 = arith.constant 0 : i32
    %c0_i32_1 = arith.constant 0 : i32
    return %arg0, %c0_i32, %c0_i32_0, %arg2 : i32, i32, i32, i32
  }
  func.func @transform_1(%arg0: i32, %arg1: i32, %arg2: i32) -> (i32, i32, i32, i32) {
    %c0_i32 = arith.constant 0 : i32
    %c0_i32_0 = arith.constant 0 : i32
    %c0_i32_1 = arith.constant 0 : i32
    return %c0_i32, %c0_i32_0, %arg2, %arg1 : i32, i32, i32, i32
  }
  func.func @transform_2(%arg0: i32, %arg1: i32, %arg2: i32) -> (i32, i32) {
    %c0_i32 = arith.constant 0 : i32
    %c0_i32_0 = arith.constant 0 : i32
    return %c0_i32, %arg1 : i32, i32
  }
  func.func @transform_3(%arg0: i32, %arg1: i32, %arg2: i32) -> (i32, i32) {
    %c0_i32 = arith.constant 0 : i32
    %c0_i32_0 = arith.constant 0 : i32
    return %c0_i32, %arg1 : i32, i32
  }
  func.func @transform_4(%arg0: i32, %arg1: i32, %arg2: i32) -> (i32, i32, i32, i32) {
    %c0_i32 = arith.constant 0 : i32
    %c0_i32_0 = arith.constant 0 : i32
    %c0_i32_1 = arith.constant 0 : i32
    return %arg0, %c0_i32, %c0_i32_0, %arg1 : i32, i32, i32, i32
  }
  func.func @transform_5(%arg0: i32, %arg1: i32, %arg2: i32) -> (i32, i32, i32, i32) {
    %c0_i32 = arith.constant 0 : i32
    %c0_i32_0 = arith.constant 0 : i32
    %c0_i32_1 = arith.constant 0 : i32
    return %arg0, %c0_i32, %c0_i32_0, %arg1 : i32, i32, i32, i32
  }
}

</mosaic_0001>

<bundles_post_ra>
// kernel: basic_block_forward.3
= control target key start
LH: loop header
LB: loop body
LE: loop exit
PB: predicated region body
PF: predicated region fallthrough
CT: control target
= control target key end

     0   :  { %s6546_s18 = smov 0   ;;  %s6548_s19 = smov 0   ;;  %s8245_s0 = inlined_call_operand.vmem [shape: bf16[2,18,18,128], index: 0, kind: input, shape index: {}]   ;;  %s8246_s1 = inlined_call_operand.vmem [shape: bf16[3,3,128,128], index: 1, kind: input, shape index: {}]   ;;  %s8247_s2 = inlined_call_operand.vmem [shape: f32[1,128], index: 2, kind: input, shape index: {}]   ;;  %s8248_s3 = inlined_call_operand.vmem [shape: f32[1,128], index: 3, kind: input, shape index: {}]   ;;  %s8249_s4 = inlined_call_operand.vmem [shape: bf16[2,18,18,128], index: 4, kind: input, shape index: {}]   ;;  %s8250_s5 = inlined_call_operand.vmem [shape: f32[2,16,16,128], index: 5, kind: output, shape index: {}]  }
   0x1   :  { %s6550_s20 = smov 0  }
   0x2 LB: > { %s34_s21 = sadd.s32 1, %s6510_s19  ;;  %p5343_p0 = scmp.ge.s32.totalorder %s6514_s20, 1  ;;  %s6514_s20 = sphi %s6550_s20, %s15_s20   ;;  %s6510_s19 = sphi %s6548_s19, %s8288_s19   ;;  %s6506_s18 = sphi %s6546_s18, %s8287_s18  }
   0x3   : > { %p36_p1 = scmp.ge.s32.totalorder %s34_s21, 2  ;;  %p260_p2 = scmp.lt.s32.totalorder %s6514_s20, 3 }
   0x5   : > { %s8290_s21 = smov (%p36_p1, %s34_s21), 0  ;;  %p261_p3 = pnand %p5343_p0, %p260_p2 }
   0x7   : > { %264 = sbr.rel (%p261_p3) target bundleno = 759 (0x2f7), region = 40 }
   0xc   : > { %v6270_v0 = vld [vmem:[%s8246_s1 + $0x38] sm:$0xff]  ;;  %v6269_v1 = vld [vmem:[%s8246_s1 + $0x30] sm:$0xff]  ;;  %v6268_v2 = vld [vmem:[%s8246_s1 + $0x28] sm:$0xff]  ;;  %p316_p4 = scmp.lt.s32.totalorder %s6506_s18, 1  ;;  %vm801_vm0 = vsmask.f32 3328 }
   0xd   : > { %6407 = vmatpush.bf16.msra.mxu1 %v6270_v0  ;;  %6408 = vmatpush.bf16.msra.mxu2 %v6270_v0  ;;  %v6267_v3 = vld [vmem:[%s8246_s1 + $0x20] sm:$0xff]  ;;  %v6266_v4 = vld [vmem:[%s8246_s1 + $0x18] sm:$0xff]  ;;  %v6265_v5 = vld [vmem:[%s8246_s1 + $0x10] sm:$0xff]  ;;  %vm802_vm1 = vsmask.f32 7440  ;;  %vm1502_vm2 = vcmask 1042432  }
   0xe   : > { %6409 = vmatpush.bf16.msra.mxu3 %v6270_v0  ;;  %615 = vmatpush.bf16.msra.mxu0 %v6270_v0  ;;  %s8292_s18 = smov (!%p316_p4, %s6506_s18), 1  ;;  %v6264_v6 = vld [vmem:[%s8246_s1 + $0x8] sm:$0xff]  ;;  %v6263_v7 = vld [vmem:[%s8246_s1] sm:$0xff]  ;;  %v6286_v8 = vld [vmem:[%s8246_s1 + $0xb8] sm:$0xff]  ;;  %vm1503_vm3 = vcmask 1046532   ;;  %vm4980_vm6 = vcmask 1046528  }
   0xf   : > { %s6431_s11 = smul.u32 216, %s8292_s18  ;;  %v6310_v9 = vld [vmem:[%s8246_s1 + $0xf8] sm:$0xff]  ;;  %v6285_v16 = vld [vmem:[%s8246_s1 + $0xb0] sm:$0xff]  ;;  %v6284_v20 = vld [vmem:[%s8246_s1 + $0xa8] sm:$0xff]  ;;  %s6246_s22 = sshll.u32 %s8292_s18, 8 }
  0x10   : > { %v6278_v14 = vld [vmem:[%s8246_s1 + $0x78] sm:$0xff]  ;;  %v6309_v17 = vld [vmem:[%s8246_s1 + $0xf0] sm:$0xff]  ;;  %v6308_v21 = vld [vmem:[%s8246_s1 + $0xe8] sm:$0xff]  ;;  %s7850_s24 = scalar_lea.vmem %s8250_s5, %s6246_s22 }
  0x11   : > { %6410 = vmatpush.bf16.msra.mxu1 %v6269_v1  ;;  %6411 = vmatpush.bf16.msra.mxu2 %v6269_v1  ;;  %s6600_s16 = scalar_lea.vmem %s8245_s0, %s6431_s11  ;;  %v6318_v15 = vld [vmem:[%s8246_s1 + $0x138] sm:$0xff]  ;;  %v6277_v18 = vld [vmem:[%s8246_s1 + $0x70] sm:$0xff]  ;;  %v6276_v22 = vld [vmem:[%s8246_s1 + $0x68] sm:$0xff]  ;;  %s7779_s13 = scalar_lea.vmem %s8249_s4, %s6431_s11 }
  0x12   : > { %6412 = vmatpush.bf16.msra.mxu3 %v6269_v1  ;;  %616 = vmatpush.bf16.msra.mxu0 %v6269_v1  ;;  %v6251_v10 = vld [vmem:[%s6600_s16 + $0x30] sm:$0xff]  ;;  %v6255_v11 = vld [vmem:[%s6600_s16 + $0x60] sm:$0xff]  ;;  %v6316_v23 = vld [vmem:[%s8246_s1 + $0x128] sm:$0xff] }
  0x13   : > { %v6259_v12 = vld [vmem:[%s6600_s16 + $0x90] sm:$0xff]  ;;  %v6247_v13 = vld [vmem:[%s6600_s16] sm:$0xff]  ;;  %v6282_v28 = vld [vmem:[%s8246_s1 + $0x98] sm:$0xff] }
  0x14   : > { %v6317_v19 = vld [vmem:[%s8246_s1 + $0x130] sm:$0xff]  ;;  %v6283_v24 = vld [vmem:[%s8246_s1 + $0xa0] sm:$0xff]  ;;  %v6306_v29 = vld [vmem:[%s8246_s1 + $0xd8] sm:$0xff] }
  0x15   : > { %6413 = vmatpush.bf16.msra.mxu1 %v6268_v2  ;;  %6414 = vmatpush.bf16.msra.mxu2 %v6268_v2  ;;  %v6307_v25 = vld [vmem:[%s8246_s1 + $0xe0] sm:$0xff]  ;;  %v6256_v31 = vld [vmem:[%s6600_s16 + $0x6c] sm:$0xff]  ;;  %v6274_v34 = vld [vmem:[%s8246_s1 + $0x58] sm:$0xff] }
  0x16   : > { %6415 = vmatpush.bf16.msra.mxu3 %v6268_v2  ;;  %617 = vmatpush.bf16.msra.mxu0 %v6268_v2  ;;  %v6275_v26 = vld [vmem:[%s8246_s1 + $0x60] sm:$0xff]  ;;  %v6248_v33 = vld [vmem:[%s6600_s16 + $0xc] sm:$0xff]  ;;  %v6314_v35 = vld [vmem:[%s8246_s1 + $0x118] sm:$0xff] }
  0x17   : > { %v6315_v27 = vld [vmem:[%s8246_s1 + $0x120] sm:$0xff]  ;;  %v6281_v36 = vld [vmem:[%s8246_s1 + $0x90] sm:$0xff]  ;;  %v6280_v40 = vld [vmem:[%s8246_s1 + $0x88] sm:$0xff] }
  0x18   : > { %v6252_v30 = vld [vmem:[%s6600_s16 + $0x3c] sm:$0xff]  ;;  %v6305_v37 = vld [vmem:[%s8246_s1 + $0xd0] sm:$0xff]  ;;  %v6304_v41 = vld [vmem:[%s8246_s1 + $0xc8] sm:$0xff] }
  0x19   : > { %6416 = vmatpush.bf16.msra.mxu1 %v6267_v3  ;;  %6417 = vmatpush.bf16.msra.mxu2 %v6267_v3  ;;  %v6260_v32 = vld [vmem:[%s6600_s16 + $0x9c] sm:$0xff]  ;;  %v6273_v38 = vld [vmem:[%s8246_s1 + $0x50] sm:$0xff]  ;;  %v6272_v42 = vld [vmem:[%s8246_s1 + $0x48] sm:$0xff] }
  0x1a   : > { %6418 = vmatpush.bf16.msra.mxu3 %v6267_v3  ;;  %618 = vmatpush.bf16.msra.mxu0 %v6267_v3  ;;  %v6313_v39 = vld [vmem:[%s8246_s1 + $0x110] sm:$0xff]  ;;  %v6312_v43 = vld [vmem:[%s8246_s1 + $0x108] sm:$0xff]  ;;  %v6279_v44 = vld [vmem:[%s8246_s1 + $0x80] sm:$0xff] }
  0x1b   : > { %v6303_v45 = vld [vmem:[%s8246_s1 + $0xc0] sm:$0xff]  ;;  %v6253_v48 = vld [vmem:[%s6600_s16 + $0x48] sm:$0xff]  ;;  %v6257_v49 = vld [vmem:[%s6600_s16 + $0x78] sm:$0xff] }
  0x1c   : > { %v6271_v46 = vld [vmem:[%s8246_s1 + $0x40] sm:$0xff]  ;;  %v6261_v50 = vld [vmem:[%s6600_s16 + $0xa8] sm:$0xff]  ;;  %v6249_v51 = vld [vmem:[%s6600_s16 + $0x18] sm:$0xff] }
  0x1d   : > { %6419 = vmatpush.bf16.msra.mxu1 %v6266_v4  ;;  %6420 = vmatpush.bf16.msra.mxu2 %v6266_v4  ;;  %v6311_v47 = vld [vmem:[%s8246_s1 + $0x100] sm:$0xff]  ;;  %v5700_v54 = vld [vmem:[%s6600_s16 + $0xc] sm:$0xf]  ;;  %v6350_v55 = vld [vmem:[%s8246_s1 + $0x1b8] sm:$0xff] }
  0x1e   : > { %6421 = vmatpush.bf16.msra.mxu3 %v6266_v4  ;;  %619 = vmatpush.bf16.msra.mxu0 %v6266_v4  ;;  %v736_v52 = vld [vmem:[%s6600_s16] sm:$0xf]  ;;  %v6712_v53 = vld [vmem:[%s6600_s16 + $0x4] sm:$0xf]  ;;  %v5701_v56 = vld [vmem:[%s6600_s16 + $0x10] sm:$0xf] }
  0x1f   : > { %v6358_v57 = vld [vmem:[%s8246_s1 + $0x1f8] sm:$0xff]  ;;  %v805_v60 = vshrl.u32 %v736_v52, 16  ;;  %v808_v61 = vshll.u32 %v736_v52, 16  ;;  %v814_v62 = vshll.u32 %v6712_v53, 16  ;;  %v818_v63 = vshrl.u32 %v6712_v53, 16  ;;  %vm6739_vm4 = vmor %vm801_vm0, %vm802_vm1 }
  0x20   : > { %v6326_v58 = vld [vmem:[%s8246_s1 + $0x178] sm:$0xff]  ;;  %v2231_v0 = vshrl.u32 %v5700_v54, 16  ;;  %v2234_v1 = vshll.u32 %v5700_v54, 16  ;;  %v2240_v2 = vshll.u32 %v5701_v56, 16  ;;  %v2244_v3 = vshrl.u32 %v5701_v56, 16  ;;  %vm6744_vm5 = vmor %vm1502_vm2, %vm1503_vm3 }
  0x21   : > { %6422 = vmatpush.bf16.msra.mxu1 %v6265_v5  ;;  %6423 = vmatpush.bf16.msra.mxu2 %v6265_v5  ;;  %v6366_v59 = vld [vmem:[%s8246_s1 + $0x238] sm:$0xff]  ;;  %v738_v4 = vld [vmem:[%s6600_s16 + $0x8] sm:$0x1] }
  0x22   : > { %6424 = vmatpush.bf16.msra.mxu3 %v6265_v5  ;;  %620 = vmatpush.bf16.msra.mxu0 %v6265_v5  ;;  %v807_v5 = vrot.slane %v805_v60, 4 }
  0x25   : > { %6425 = vmatpush.bf16.msra.mxu1 %v6264_v6  ;;  %6426 = vmatpush.bf16.msra.mxu2 %v6264_v6 }
  0x26   : > { %6427 = vmatpush.bf16.msra.mxu3 %v6264_v6  ;;  %621 = vmatpush.bf16.msra.mxu0 %v6264_v6  ;;  %v810_v6 = vrot.slane %v808_v61, 5 }
  0x29   : > { %6428 = vmatpush.bf16.msra.mxu1 %v6263_v7  ;;  %6429 = vmatpush.bf16.msra.mxu2 %v6263_v7 }
  0x2a   : > { %6430 = vmatpush.bf16.msra.mxu3 %v6263_v7  ;;  %622 = vmatpush.bf16.msra.mxu0 %v6263_v7  ;;  %v816_v7 = vrot.slane %v814_v62, 5 }
  0x2c   : > { %643 = vmatmul.bf16.vlgmr.msra.gmra.mxu1 %v6251_v10  ;;  %663 = vmatmul.bf16.vlgmr.msra.gmra.mxu2 %v6255_v11  ;;  %v2236_v10 = vrot.slane %v2234_v1, 5  ;;  %v2242_v11 = vrot.slane %v2240_v2, 5 }
  0x2d   : > { %1729 = vmatpush.bf16.msrb.mxu2 %v6286_v8  ;;  %683 = vmatmul.bf16.vlgmr.msra.gmra.mxu3 %v6259_v12  ;;  %v820_v8 = vrot.slane %v818_v63, 4  ;;  %v2246_v12 = vrot.slane %v2244_v3, 4 }
  0x2e   : > { %2044 = vmatpush.bf16.msrb.mxu3 %v6310_v9  ;;  %623 = vmatmul.bf16.vlgmr.msra.gmra.mxu0 %v6247_v13  ;;  %v2233_v9 = vrot.slane %v2231_v0, 4  ;;  %v5702_v13 = vld [vmem:[%s6600_s16 + $0x14] sm:$0x1] }
  0x2f   : > { %1300 = vmatpush.bf16.msrb.mxu1 %v6278_v14  ;;  %2726 = vmatpush.bf16.msrb.mxu0 %v6318_v15  ;;  %v824_v14 = vshll.u32 %v738_v4, 16  ;;  %v6254_v15 = vld [vmem:[%s6600_s16 + $0x54] sm:$0xff] }
  0x31   : > { %1730 = vmatpush.bf16.msrb.mxu2 %v6285_v16  ;;  %v811_v16 = vor.u32 %v810_v6, %v807_v5 }
  0x32   : > { %2045 = vmatpush.bf16.msrb.mxu3 %v6309_v17  ;;  %v821_v17 = vor.u32 %v820_v8, %v816_v7  ;;  %v5705_v8 = vld [vmem:[%s6600_s16 + $0x20] sm:$0x1] }
  0x33   : > { %1301 = vmatpush.bf16.msrb.mxu1 %v6277_v18  ;;  %2727 = vmatpush.bf16.msrb.mxu0 %v6317_v19  ;;  %v1507_v18 = vrot.slane %v6712_v53, 5  ;;  %v6258_v19 = vld [vmem:[%s6600_s16 + $0x84] sm:$0xff] }
  0x35   : > { %1731 = vmatpush.bf16.msrb.mxu2 %v6284_v20  ;;  %v1421_v20 = vld [vmem:[%s6600_s16] sm:$0xe] }
  0x36   : > { %2046 = vmatpush.bf16.msrb.mxu3 %v6308_v21  ;;  %v2237_v21 = vor.u32 %v2236_v10, %v2233_v9 }
  0x37   : > { %1302 = vmatpush.bf16.msrb.mxu1 %v6276_v22  ;;  %2728 = vmatpush.bf16.msrb.mxu0 %v6316_v23  ;;  %v2247_v22 = vor.u32 %v2246_v12, %v2242_v11  ;;  %v2250_v23 = vshll.u32 %v5702_v13, 16  ;;  %v1422_v12 = vld [vmem:[%s6600_s16 + $0xc] sm:$0xe] }
  0x39   : > { %1732 = vmatpush.bf16.msrb.mxu2 %v6283_v24  ;;  %v6262_v24 = vld [vmem:[%s6600_s16 + $0xb4] sm:$0xff] }
  0x3a   : > { %2047 = vmatpush.bf16.msrb.mxu3 %v6307_v25  ;;  %v6250_v25 = vld [vmem:[%s6600_s16 + $0x24] sm:$0xff] }
  0x3b   : > { %1303 = vmatpush.bf16.msrb.mxu1 %v6275_v26  ;;  %2729 = vmatpush.bf16.msrb.mxu0 %v6315_v27  ;;  %v826_v26 = vrot.slane %v824_v14, 5  ;;  %v6287_v14 = vld [vmem:[%s6600_s16 + $0xc] sm:$0xff] }
  0x3c   : > { %648 = vmatmul.bf16.gmra.mxu1 %v6252_v30  ;;  %668 = vmatmul.bf16.gmra.mxu2 %v6256_v31  ;;  %v5508_v30 = vrot.slane %v1421_v20, 9  ;;  %v1509_v31 = vrot.slane %v1507_v18, 4 }
  0x3d   : > { %1733 = vmatpush.bf16.msrb.mxu2 %v6282_v28  ;;  %688 = vmatmul.bf16.gmra.mxu3 %v6260_v32  ;;  %v812_v28 = vrot.slane %v811_v16, 4  ;;  %v739_v32 = vld [vmem:[%s6600_s16 + $0xc] sm:$0xf] }
  0x3e   : > { %2048 = vmatpush.bf16.msrb.mxu3 %v6306_v29  ;;  %628 = vmatmul.bf16.gmra.mxu0 %v6248_v33  ;;  %v822_v29 = vrot.slane %v821_v17, 4 }
  0x3f   : > { %1304 = vmatpush.bf16.msrb.mxu1 %v6274_v34  ;;  %2730 = vmatpush.bf16.msrb.mxu0 %v6314_v35  ;;  %v1510_v34 = vrot.slane %v738_v4, 5  ;;  %v2238_v35 = vrot.slane %v2237_v21, 4 }
  0x41   : > { %1734 = vmatpush.bf16.msrb.mxu2 %v6281_v36  ;;  %v2248_v36 = vrot.slane %v2247_v22, 4  ;;  %v5509_v22 = vrot.slane %v1422_v12, 9 }
  0x42   : > { %2049 = vmatpush.bf16.msrb.mxu3 %v6305_v37  ;;  %v2252_v37 = vrot.slane %v2250_v23, 5  ;;  %v742_v23 = vld [vmem:[%s6600_s16 + $0x18] sm:$0xf] }
  0x43   : > { %1305 = vmatpush.bf16.msrb.mxu1 %v6273_v38  ;;  %2731 = vmatpush.bf16.msrb.mxu0 %v6313_v39  ;;  %v6749_v38 = vld [vmem:[%s6600_s16 + $0x10] sm:$0xf]  ;;  %v829_v39 = vshrl.u32 %v739_v32, 16 }
  0x44   : > { %v1514_v13 = vrot.slane %v6749_v38, 5 }
  0x45   : > { %1735 = vmatpush.bf16.msrb.mxu2 %v6280_v40  ;;  %v832_v40 = vshll.u32 %v739_v32, 16 }
  0x46   : > { %2050 = vmatpush.bf16.msrb.mxu3 %v6304_v41  ;;  %v5703_v41 = vld [vmem:[%s6600_s16 + $0x18] sm:$0xf] }
  0x47   : > { %1306 = vmatpush.bf16.msrb.mxu1 %v6272_v42  ;;  %2732 = vmatpush.bf16.msrb.mxu0 %v6312_v43  ;;  %v5704_v42 = vld [vmem:[%s6600_s16 + $0x1c] sm:$0xf]  ;;  %v817_v43 = vsel %vm6739_vm4, %v812_v28, %v816_v7  ;;  %v2258_v52 = vshll.u32 %v5703_v41, 16  ;;  %v834_v56 = vrot.slane %v832_v40, 5  ;;  %v5706_v28 = vld [vmem:[%s6600_s16 + $0x24] sm:$0xf] }
  0x48   : > { %v2264_v53 = vshll.u32 %v5704_v42, 16  ;;  %v2268_v54 = vshrl.u32 %v5704_v42, 16  ;;  %v2279_v42 = vshrl.u32 %v5706_v28, 16 }
  0x49   : > { %1736 = vmatpush.bf16.msrb.mxu2 %v6279_v44  ;;  %v1508_v44 = vsel %vm6744_vm5, %v5508_v30, %v1507_v18  ;;  %v2260_v3 = vrot.slane %v2258_v52, 5  ;;  %v2274_v18 = vshll.u32 %v5705_v8, 16 }
  0x4a   : > { %2051 = vmatpush.bf16.msrb.mxu3 %v6303_v45  ;;  %v838_v45 = vshll.u32 %v6749_v38, 16  ;;  %v6770_v4 = vrot.slane %v2264_v53, 5  ;;  %v2270_v5 = vrot.slane %v2268_v54, 4 }
  0x4b   : > { %1307 = vmatpush.bf16.msrb.mxu1 %v6271_v46  ;;  %2733 = vmatpush.bf16.msrb.mxu0 %v6311_v47  ;;  %v842_v46 = vshrl.u32 %v6749_v38, 16  ;;  %v827_v47 = vsel %vm6739_vm4, %v822_v29, %v826_v26  ;;  %v5707_v29 = vld [vmem:[%s6600_s16 + $0x28] sm:$0xf]  ;;  %v2276_v32 = vrot.slane %v2274_v18, 5  ;;  %v856_v38 = vshll.u32 %v742_v23, 16 }
  0x4c   : > { %653 = vmatmul.bf16.gmra.mxu1 %v6253_v48  ;;  %673 = vmatmul.bf16.gmra.mxu2 %v6257_v49  ;;  %v1511_v48 = vsel %vm6744_vm5, %v1509_v31, %v1510_v34  ;;  %v2243_v49 = vsel %vm6739_vm4, %v2238_v35, %v2242_v11  ;;  %v6768_v60 = vrot.slane %v838_v45, 5  ;;  %v1189_v62 = vunpack.c.l.b16 %v827_v47  ;;  %v6349_v34 = vld [vmem:[%s8246_s1 + $0x1b0] sm:$0xff] }
  0x4d   : > { %693 = vmatmul.bf16.gmra.mxu3 %v6261_v50  ;;  %3467 = vmatpush.bf16.msra.mxu2 %v6350_v55  ;;  %v2253_v50 = vsel %vm6739_vm4, %v2248_v36, %v2252_v37  ;;  %v831_v55 = vrot.slane %v829_v39, 4  ;;  %v844_v61 = vrot.slane %v842_v46, 4  ;;  %v1618_v63 = vunpack.c.l.b16 %v1511_v48  ;;  %v6357_v35 = vld [vmem:[%s8246_s1 + $0x1f0] sm:$0xff] }
  0x4e   : > { %633 = vmatmul.bf16.gmra.mxu0 %v6249_v51  ;;  %4149 = vmatpush.bf16.msra.mxu3 %v6358_v57  ;;  %v2255_v51 = vshrl.u32 %v5703_v41, 16  ;;  %v1188_v57 = vunpack.c.l.b16 %v817_v43  ;;  %v2614_v0 = vunpack.c.l.b16 %v2243_v49  ;;  %v2615_v1 = vunpack.c.l.b16 %v2253_v50  ;;  %v6325_v36 = vld [vmem:[%s8246_s1 + $0x170] sm:$0xff] }
  0x4f   : > { %3152 = vmatpush.bf16.msra.mxu1 %v6326_v58  ;;  %4575 = vmatpush.bf16.msra.mxu0 %v6366_v59  ;;  %v1617_v58 = vunpack.c.l.b16 %v1508_v44  ;;  %v741_v59 = vld [vmem:[%s6600_s16 + $0x14] sm:$0x1]  ;;  %v835_v6 = vor.u32 %v834_v56, %v831_v55  ;;  %v845_v9 = vor.u32 %v844_v61, %v6768_v60  ;;  %v2271_v17 = vor.u32 %v2270_v5, %v6770_v4 }
  0x50   : > { %v2257_v2 = vrot.slane %v2255_v51, 4  ;;  %v848_v7 = vshll.u32 %v741_v59, 16  ;;  %v1220_v10 = vpack.c.b16 %v1189_v62, %v1188_v57  ;;  %v1517_v26 = vrot.slane %v741_v59, 5  ;;  %v6365_v41 = vld [vmem:[%s8246_s1 + $0x230] sm:$0xff] }
  0x51   : > { %v1649_v11 = vpack.c.b16 %v1618_v63, %v1617_v58  ;;  %v846_v21 = vrot.slane %v845_v9, 4  ;;  %v2272_v31 = vrot.slane %v2271_v17, 4  ;;  %v853_v37 = vshrl.u32 %v742_v23, 16  ;;  %3468 = vmatpush.bf16.msra.mxu2 %v6349_v34  ;;  %v744_v58 = vld [vmem:[%s6600_s16 + $0x20] sm:$0x1] }
  0x52   : > { %v2261_v16 = vor.u32 %v2260_v3, %v2257_v2  ;;  %v850_v20 = vrot.slane %v848_v7, 5  ;;  %v2282_v43 = vshll.u32 %v5706_v28, 16  ;;  %4150 = vmatpush.bf16.msra.mxu3 %v6357_v35  ;;  %v2288_v46 = vshll.u32 %v5707_v29, 16  ;;  %v5708_v3 = vld [vmem:[%s6600_s16 + $0x2c] sm:$0x1] }
  0x53   : > { %v2292_v47 = vshrl.u32 %v5707_v29, 16  ;;  %3153 = vmatpush.bf16.msra.mxu1 %v6325_v36  ;;  %4576 = vmatpush.bf16.msra.mxu0 %v6365_v41  ;;  %v1515_v48 = vsel %vm6744_vm5, %v5509_v22, %v1514_v13  ;;  %v2277_v51 = vsel %vm6739_vm4, %v2272_v31, %v2276_v32  ;;  %v855_v52 = vrot.slane %v853_v37, 4  ;;  %v5709_v32 = vld [vmem:[%s6600_s16 + $0x30] sm:$0xf] }
  0x54   : > { %v2262_v30 = vrot.slane %v2261_v16, 4  ;;  %v851_v45 = vsel %vm6739_vm4, %v846_v21, %v850_v20  ;;  %v858_v53 = vrot.slane %v856_v38, 5  ;;  %v2281_v59 = vrot.slane %v2279_v42, 4  ;;  %v745_v16 = vld [vmem:[%s6600_s16 + $0x24] sm:$0xf] }
  0x55   : > { %v1191_v57 = vunpack.c.l.b16 %v851_v45  ;;  %v1619_v61 = vunpack.c.l.b16 %v1515_v48  ;;  %v2290_v63 = vrot.slane %v2288_v46, 5  ;;  %v2617_v2 = vunpack.c.l.b16 %v2277_v51  ;;  %v6819_v20 = vld [vmem:[%s6600_s16 + $0x28] sm:$0xf]  ;;  %v5710_v38 = vld [vmem:[%s6600_s16 + $0x34] sm:$0xf] }
  0x56   : > { %v2267_v50 = vsel %vm6739_vm4, %v2262_v30, %v6770_v4  ;;  %v859_v4 = vor.u32 %v858_v53, %v855_v52  ;;  %v1524_v23 = vrot.slane %v744_v58, 5  ;;  %v877_v28 = vshrl.u32 %v745_v16, 16 }
  0x57   : > { %v880_v29 = vshll.u32 %v745_v16, 16  ;;  %v886_v30 = vshll.u32 %v6819_v20, 16  ;;  %v890_v31 = vshrl.u32 %v6819_v20, 16  ;;  %v2303_v46 = vshrl.u32 %v5709_v32, 16  ;;  %v6850_v16 = vld [vmem:[%s6600_s16 + $0x34] sm:$0xf] }
  0x58   : > { %v860_v17 = vrot.slane %v859_v4, 4  ;;  %v879_v41 = vrot.slane %v877_v28, 4  ;;  %v2312_v48 = vshll.u32 %v5710_v38, 16  ;;  %v1424_v4 = vld [vmem:[%s6600_s16 + $0x24] sm:$0xe] }
  0x59   : > { %v882_v42 = vrot.slane %v880_v29, 5  ;;  %v892_v45 = vrot.slane %v890_v31, 4  ;;  %v910_v31 = vshll.u32 %v6850_v16, 16 }
  0x5c   : > { %658 = vmatmul.bf16.gmra.mxu1 %v6254_v15  ;;  %678 = vmatmul.bf16.gmra.mxu2 %v6258_v19  ;;  %v2646_v15 = vpack.c.b16 %v2615_v1, %v2614_v0  ;;  %v836_v19 = vrot.slane %v835_v6, 4  ;;  %v2294_v0 = vrot.slane %v2292_v47, 4  ;;  %v2616_v1 = vunpack.c.l.b16 %v2267_v50 }
  0x5d   : > { %698 = vmatmul.bf16.gmra.mxu3 %v6262_v24  ;;  %v6780_v24 = vld [vmem:[%s6600_s16 + $0x1c] sm:$0xf]  ;;  %v872_v6 = vshll.u32 %v744_v58, 16  ;;  %v2306_v47 = vshll.u32 %v5709_v32, 16  ;;  %v914_v32 = vshrl.u32 %v6850_v16, 16 }
  0x5e   : > { %638 = vmatmul.bf16.gmra.mxu0 %v6250_v25  ;;  %v1516_v25 = vrot.slane %v1514_v13, 4  ;;  %v862_v39 = vshll.u32 %v6780_v24, 16  ;;  %v866_v40 = vshrl.u32 %v6780_v24, 16  ;;  %v841_v44 = vsel %vm6739_vm4, %v836_v19, %v6768_v60 }
  0x5f   : > { %v1190_v56 = vunpack.c.l.b16 %v841_v44  ;;  %v2284_v60 = vrot.slane %v2282_v43, 5  ;;  %v1521_v7 = vrot.slane %v6780_v24, 5  ;;  %v2295_v12 = vor.u32 %v2294_v0, %v2290_v63  ;;  %v747_v43 = vld [vmem:[%s6600_s16 + $0x2c] sm:$0x1]  ;;  %v5711_v0 = vld [vmem:[%s6600_s16 + $0x38] sm:$0x1] }
  0x60   : > { %v1518_v49 = vsel %vm6744_vm5, %v1516_v25, %v1517_v26  ;;  %v864_v54 = vrot.slane %v862_v39, 5  ;;  %v868_v55 = vrot.slane %v866_v40, 4  ;;  %v2298_v13 = vshll.u32 %v5708_v3, 16 }
  0x61   : > { %v1620_v62 = vunpack.c.l.b16 %v1518_v49  ;;  %v2285_v8 = vor.u32 %v2284_v60, %v2281_v59  ;;  %v1221_v9 = vpack.c.b16 %v1191_v57, %v1190_v56  ;;  %v874_v19 = vrot.slane %v872_v6, 5 }
  0x62   : > { %v869_v5 = vor.u32 %v868_v55, %v864_v54  ;;  %v1523_v22 = vrot.slane %v1521_v7, 4  ;;  %v2296_v24 = vrot.slane %v2295_v12, 4  ;;  %v2300_v26 = vrot.slane %v2298_v13, 5 }
  0x63   : > { %v2286_v25 = vrot.slane %v2285_v8, 4  ;;  %v865_v34 = vsel %vm6739_vm4, %v860_v17, %v864_v54  ;;  %v6838_v44 = vrot.slane %v886_v30, 5  ;;  %v2316_v49 = vshrl.u32 %v5710_v38, 16  ;;  %v5712_v17 = vld [vmem:[%s6600_s16 + $0x3c] sm:$0xf]  ;;  %v6324_v38 = vld [vmem:[%s8246_s1 + $0x168] sm:$0xff] }
  0x64   : > { %v870_v18 = vrot.slane %v869_v5, 4  ;;  %v1525_v37 = vsel %vm6744_vm5, %v1523_v22, %v1524_v23  ;;  %v2301_v40 = vsel %vm6739_vm4, %v2296_v24, %v2300_v26  ;;  %v1192_v50 = vunpack.c.l.b16 %v865_v34  ;;  %v6289_v5 = vld [vmem:[%s6600_s16 + $0x24] sm:$0xff]  ;;  %v5713_v22 = vld [vmem:[%s6600_s16 + $0x40] sm:$0xf]  ;;  %3154 = vmatpush.bf16.msra.mxu1 %v6324_v38 }
  0x65   : > { %v2291_v39 = vsel %vm6739_vm4, %v2286_v25, %v2290_v63  ;;  %v1622_v53 = vunpack.c.l.b16 %v1525_v37  ;;  %v2619_v55 = vunpack.c.l.b16 %v2301_v40  ;;  %v896_v56 = vshll.u32 %v747_v43, 16  ;;  %v6356_v23 = vld [vmem:[%s8246_s1 + $0x1e8] sm:$0xff] }
  0x66   : > { %v875_v35 = vsel %vm6739_vm4, %v870_v18, %v874_v19  ;;  %v2618_v54 = vunpack.c.l.b16 %v2291_v39  ;;  %v883_v57 = vor.u32 %v882_v42, %v879_v41  ;;  %v893_v58 = vor.u32 %v892_v45, %v6838_v44  ;;  %4151 = vmatpush.bf16.msra.mxu3 %v6356_v23  ;;  %v6364_v45 = vld [vmem:[%s8246_s1 + $0x228] sm:$0xff] }
  0x67   : > { %v1193_v51 = vunpack.c.l.b16 %v875_v35  ;;  %v2305_v59 = vrot.slane %v2303_v46, 4  ;;  %v2308_v60 = vrot.slane %v2306_v47, 5  ;;  %v1528_v63 = vrot.slane %v6819_v20, 5  ;;  %4577 = vmatpush.bf16.msra.mxu0 %v6364_v45  ;;  %v5715_v23 = vld [vmem:[%s6600_s16 + $0x48] sm:$0xf] }
  0x68   : > { %v2648_v3 = vpack.c.b16 %v2619_v55, %v2618_v54  ;;  %v884_v6 = vrot.slane %v883_v57, 4  ;;  %v898_v8 = vrot.slane %v896_v56, 5  ;;  %v5511_v12 = vrot.slane %v1424_v4, 9  ;;  %v5714_v57 = vld [vmem:[%s6600_s16 + $0x44] sm:$0x1]  ;;  %v6290_v4 = vld [vmem:[%s6600_s16 + $0x30] sm:$0xff] }
  0x69   : > { %v1530_v13 = vrot.slane %v1528_v63, 4  ;;  %v2327_v34 = vshrl.u32 %v5712_v17, 16  ;;  %v2330_v35 = vshll.u32 %v5712_v17, 16  ;;  %v2340_v37 = vshrl.u32 %v5713_v22, 16 }
  0x6a   : > { %v889_v18 = vsel %vm6739_vm4, %v884_v6, %v6838_v44  ;;  %v1529_v29 = vsel %vm6744_vm5, %v5511_v12, %v1528_v63 }
  0x6b   : > { %v1194_v39 = vunpack.c.l.b16 %v889_v18  ;;  %v1623_v46 = vunpack.c.l.b16 %v1529_v29  ;;  %v2342_v54 = vrot.slane %v2340_v37, 4 }
  0x6c   : > { %1308 = vmatmul.bf16.vlgmr.msrb.gmra.mxu1 %v1220_v10  ;;  %1737 = vmatmul.bf16.vlgmr.msrb.gmra.mxu2 %v1649_v11  ;;  %v1650_v10 = vpack.c.b16 %v1620_v62, %v1619_v61  ;;  %v1423_v11 = vld [vmem:[%s6600_s16 + $0x18] sm:$0xe]  ;;  %v6841_v61 = vrot.slane %v2312_v48, 5  ;;  %v2318_v62 = vrot.slane %v2316_v49, 4  ;;  %v912_v48 = vrot.slane %v910_v31, 5 }
  0x6d   : > { %2052 = vmatmul.bf16.vlgmr.msrb.gmra.mxu3 %v6287_v14  ;;  %v6288_v14 = vld [vmem:[%s6600_s16 + $0x18] sm:$0xff]  ;;  %v5510_v21 = vrot.slane %v1423_v11, 9  ;;  %v2322_v11 = vshll.u32 %v5711_v0, 16  ;;  %v916_v49 = vrot.slane %v914_v32, 4  ;;  %v1425_v0 = vld [vmem:[%s6600_s16 + $0x30] sm:$0xe] }
  0x6e   : > { %2734 = vmatmul.bf16.vlgmr.msrb.gmra.mxu0 %v2646_v15  ;;  %v2647_v15 = vpack.c.b16 %v2617_v2, %v2616_v1  ;;  %v1222_v1 = vpack.c.b16 %v1193_v51, %v1192_v50  ;;  %v750_v50 = vld [vmem:[%s6600_s16 + $0x38] sm:$0x1]  ;;  %v2329_v51 = vrot.slane %v2327_v34, 4 }
  0x6f   : > { %v1522_v36 = vsel %vm6744_vm5, %v5510_v21, %v1521_v7  ;;  %v894_v7 = vrot.slane %v893_v58, 4  ;;  %v6348_v21 = vld [vmem:[%s8246_s1 + $0x1a8] sm:$0xff]  ;;  %v2324_v24 = vrot.slane %v2322_v11, 5  ;;  %v5512_v11 = vrot.slane %v1425_v0, 9 }
  0x70   : > { %v1621_v52 = vunpack.c.l.b16 %v1522_v36  ;;  %3469 = vmatpush.bf16.msra.mxu2 %v6348_v21  ;;  %v2336_v36 = vshll.u32 %v5713_v22, 16 }
  0x71   : > { %v899_v19 = vsel %vm6739_vm4, %v894_v7, %v898_v8  ;;  %v751_v7 = vld [vmem:[%s6600_s16 + $0x3c] sm:$0xf]  ;;  %v6889_v8 = vld [vmem:[%s6600_s16 + $0x40] sm:$0xf] }
  0x72   : > { %v1651_v2 = vpack.c.b16 %v1622_v53, %v1621_v52  ;;  %v1195_v40 = vunpack.c.l.b16 %v899_v19  ;;  %v2332_v52 = vrot.slane %v2330_v35, 5  ;;  %v2338_v53 = vrot.slane %v2336_v36, 5 }
  0x73   : > { %v925_v17 = vshrl.u32 %v751_v7, 16  ;;  %v928_v18 = vshll.u32 %v751_v7, 16  ;;  %v934_v19 = vshll.u32 %v6889_v8, 16  ;;  %v2351_v35 = vshrl.u32 %v5715_v23, 16  ;;  %v754_v7 = vld [vmem:[%s6600_s16 + $0x48] sm:$0xf] }
  0x74   : > { %v2354_v36 = vshll.u32 %v5715_v23, 16  ;;  %v952_v23 = vshll.u32 %v754_v7, 16 }
  0x75   : > { %v930_v31 = vrot.slane %v928_v18, 5  ;;  %v6907_v32 = vrot.slane %v934_v19, 5 }
  0x7c   : > { %1313 = vmatmul.bf16.gmra.mxu1 %v1221_v9  ;;  %1742 = vmatmul.bf16.gmra.mxu2 %v1650_v10  ;;  %v2309_v9 = vor.u32 %v2308_v60, %v2305_v59  ;;  %v2319_v10 = vor.u32 %v2318_v62, %v6841_v61  ;;  %v1223_v59 = vpack.c.b16 %v1195_v40, %v1194_v39  ;;  %v1535_v62 = vrot.slane %v6850_v16, 5 }
  0x7d   : > { %2057 = vmatmul.bf16.gmra.mxu3 %v6288_v14  ;;  %v1531_v14 = vrot.slane %v747_v43, 5  ;;  %v917_v60 = vor.u32 %v916_v49, %v912_v48  ;;  %v2356_v49 = vrot.slane %v2354_v36, 5 }
  0x7e   : > { %2739 = vmatmul.bf16.gmra.mxu0 %v2647_v15  ;;  %v748_v15 = vld [vmem:[%s6600_s16 + $0x30] sm:$0xf]  ;;  %v2310_v20 = vrot.slane %v2309_v9, 4  ;;  %v2320_v25 = vrot.slane %v2319_v10, 4  ;;  %v1537_v12 = vrot.slane %v1535_v62, 4 }
  0x7f   : > { %v901_v26 = vshrl.u32 %v748_v15, 16  ;;  %v904_v28 = vshll.u32 %v748_v15, 16  ;;  %v1532_v30 = vsel %vm6744_vm5, %v1530_v13, %v1531_v14  ;;  %v918_v9 = vrot.slane %v917_v60, 4 }
  0x80   : > { %v2315_v41 = vsel %vm6739_vm4, %v2310_v20, %v6841_v61  ;;  %v2325_v42 = vsel %vm6739_vm4, %v2320_v25, %v2324_v24  ;;  %v1624_v47 = vunpack.c.l.b16 %v1532_v30  ;;  %v920_v61 = vshll.u32 %v750_v50, 16  ;;  %v5716_v25 = vld [vmem:[%s6600_s16 + $0x4c] sm:$0xf] }
  0x81   : > { %v903_v43 = vrot.slane %v901_v26, 4  ;;  %v906_v44 = vrot.slane %v904_v28, 5  ;;  %v2620_v55 = vunpack.c.l.b16 %v2315_v41  ;;  %v2621_v56 = vunpack.c.l.b16 %v2325_v42 }
  0x82   : > { %v1652_v63 = vpack.c.b16 %v1624_v47, %v1623_v46  ;;  %v922_v10 = vrot.slane %v920_v61, 5  ;;  %v1538_v13 = vrot.slane %v750_v50, 5  ;;  %v938_v20 = vshrl.u32 %v6889_v8, 16 }
  0x83   : > { %v907_v58 = vor.u32 %v906_v44, %v903_v43  ;;  %v1536_v24 = vsel %vm6744_vm5, %v5512_v11, %v1535_v62  ;;  %v927_v30 = vrot.slane %v925_v17, 4  ;;  %v2360_v37 = vshll.u32 %v5716_v25, 16  ;;  %v753_v43 = vld [vmem:[%s6600_s16 + $0x44] sm:$0x1] }
  0x84   : > { %v923_v22 = vsel %vm6739_vm4, %v918_v9, %v922_v10  ;;  %v1539_v26 = vsel %vm6744_vm5, %v1537_v12, %v1538_v13  ;;  %v940_v34 = vrot.slane %v938_v20, 4  ;;  %v2364_v38 = vshrl.u32 %v5716_v25, 16  ;;  %v6347_v9 = vld [vmem:[%s8246_s1 + $0x1a0] sm:$0xff]  ;;  %v5719_v20 = vld [vmem:[%s6600_s16 + $0x58] sm:$0xf] }
  0x85   : > { %v908_v6 = vrot.slane %v907_v58, 4  ;;  %v1197_v40 = vunpack.c.l.b16 %v923_v22  ;;  %v1625_v41 = vunpack.c.l.b16 %v1536_v24  ;;  %v1626_v42 = vunpack.c.l.b16 %v1539_v26  ;;  %v6355_v10 = vld [vmem:[%s8246_s1 + $0x1e0] sm:$0xff]  ;;  %3470 = vmatpush.bf16.msra.mxu2 %v6347_v9  ;;  %v757_v9 = vld [vmem:[%s6600_s16 + $0x54] sm:$0xf] }
  0x86   : > { %v931_v46 = vor.u32 %v930_v31, %v927_v30  ;;  %v941_v47 = vor.u32 %v940_v34, %v6907_v32  ;;  %v6911_v50 = vrot.slane %v2360_v37, 5  ;;  %4152 = vmatpush.bf16.msra.mxu3 %v6355_v10  ;;  %v949_v22 = vshrl.u32 %v754_v7, 16  ;;  %v6323_v26 = vld [vmem:[%s8246_s1 + $0x160] sm:$0xff] }
  0x87   : > { %v913_v21 = vsel %vm6739_vm4, %v908_v6, %v912_v48  ;;  %v2353_v48 = vrot.slane %v2351_v35, 4  ;;  %v1545_v6 = vrot.slane %v753_v43, 5  ;;  %v2384_v35 = vshll.u32 %v5719_v20, 16  ;;  %3155 = vmatpush.bf16.msra.mxu1 %v6323_v26  ;;  %v6363_v37 = vld [vmem:[%s8246_s1 + $0x220] sm:$0xff] }
  0x88   : > { %v1196_v39 = vunpack.c.l.b16 %v913_v21  ;;  %v932_v61 = vrot.slane %v931_v46, 4  ;;  %v2388_v36 = vshrl.u32 %v5719_v20, 16  ;;  %4578 = vmatpush.bf16.msra.mxu0 %v6363_v37 }
  0x89   : > { %v2357_v0 = vor.u32 %v2356_v49, %v2353_v48  ;;  %v756_v48 = vld [vmem:[%s6600_s16 + $0x50] sm:$0x1] }
  0x8a   : > { %v937_v11 = vsel %vm6739_vm4, %v932_v61, %v6907_v32  ;;  %v968_v61 = vshll.u32 %v756_v48, 16 }
  0x8b   : > { %v2358_v12 = vrot.slane %v2357_v0, 4  ;;  %v6292_v0 = vld [vmem:[%s6600_s16 + $0x48] sm:$0xff] }
  0x8c   : > { %1318 = vmatmul.bf16.gmra.mxu1 %v1222_v1  ;;  %1747 = vmatmul.bf16.gmra.mxu2 %v1651_v2  ;;  %v2333_v1 = vor.u32 %v2332_v52, %v2329_v51  ;;  %v2343_v2 = vor.u32 %v2342_v54, %v2338_v53  ;;  %v2366_v51 = vrot.slane %v2364_v38, 4  ;;  %v944_v52 = vshll.u32 %v753_v43, 16  ;;  %v5717_v54 = vld [vmem:[%s6600_s16 + $0x50] sm:$0x1] }
  0x8d   : > { %2062 = vmatmul.bf16.gmra.mxu3 %v6289_v5  ;;  %v2649_v5 = vpack.c.b16 %v2621_v56, %v2620_v55  ;;  %v1224_v55 = vpack.c.b16 %v1197_v40, %v1196_v39  ;;  %v1653_v56 = vpack.c.b16 %v1626_v42, %v1625_v41  ;;  %v2363_v32 = vsel %vm6739_vm4, %v2358_v12, %v6911_v50 }
  0x8e   : > { %2744 = vmatmul.bf16.gmra.mxu0 %v2648_v3  ;;  %v2346_v3 = vshll.u32 %v5714_v57, 16  ;;  %v2334_v14 = vrot.slane %v2333_v1, 4  ;;  %v2344_v15 = vrot.slane %v2343_v2, 4  ;;  %v1426_v57 = vld [vmem:[%s6600_s16 + $0x3c] sm:$0xe]  ;;  %v2367_v1 = vor.u32 %v2366_v51, %v6911_v50 }
  0x8f   : > { %v2370_v2 = vshll.u32 %v5717_v54, 16  ;;  %v1198_v38 = vunpack.c.l.b16 %v937_v11  ;;  %v951_v42 = vrot.slane %v949_v22, 4  ;;  %v954_v43 = vrot.slane %v952_v23, 5 }
  0x90   : > { %v2348_v16 = vrot.slane %v2346_v3, 5  ;;  %v2339_v28 = vsel %vm6739_vm4, %v2334_v14, %v2338_v53  ;;  %v1542_v53 = vrot.slane %v6889_v8, 5  ;;  %v946_v3 = vrot.slane %v944_v52, 5  ;;  %v6924_v8 = vld [vmem:[%s6600_s16 + $0x4c] sm:$0xf] }
  0x91   : > { %v2622_v44 = vunpack.c.l.b16 %v2339_v28  ;;  %v2368_v13 = vrot.slane %v2367_v1, 4  ;;  %v2372_v14 = vrot.slane %v2370_v2, 5  ;;  %v958_v25 = vshll.u32 %v6924_v8, 16 }
  0x92   : > { %v2349_v29 = vsel %vm6739_vm4, %v2344_v15, %v2348_v16  ;;  %v5718_v15 = vld [vmem:[%s6600_s16 + $0x54] sm:$0xf]  ;;  %v962_v24 = vshrl.u32 %v6924_v8, 16  ;;  %v2624_v46 = vunpack.c.l.b16 %v2363_v32  ;;  %v6967_v51 = vrot.slane %v2384_v35, 5 }
  0x93   : > { %v2623_v45 = vunpack.c.l.b16 %v2349_v29  ;;  %v2375_v29 = vshrl.u32 %v5718_v15, 16  ;;  %v2378_v30 = vshll.u32 %v5718_v15, 16  ;;  %v2373_v34 = vsel %vm6739_vm4, %v2368_v13, %v2372_v14  ;;  %v6985_v13 = vld [vmem:[%s6600_s16 + $0x58] sm:$0xf] }
  0x94   : > { %v2390_v52 = vrot.slane %v2388_v36, 4  ;;  %v1549_v2 = vrot.slane %v6924_v8, 5  ;;  %v970_v12 = vrot.slane %v968_v61, 5  ;;  %v1552_v15 = vrot.slane %v756_v48, 5 }
  0x95   : > { %v2650_v60 = vpack.c.b16 %v2623_v45, %v2622_v44  ;;  %v6964_v44 = vrot.slane %v958_v25, 5  ;;  %v964_v45 = vrot.slane %v962_v24, 4  ;;  %v2377_v49 = vrot.slane %v2375_v29, 4  ;;  %v5722_v25 = vld [vmem:[%s6600_s16 + $0x64] sm:$0xf] }
  0x96   : > { %v2380_v50 = vrot.slane %v2378_v30, 5  ;;  %v1551_v14 = vrot.slane %v1549_v2, 4  ;;  %v973_v22 = vshrl.u32 %v757_v9, 16  ;;  %v976_v23 = vshll.u32 %v757_v9, 16 }
  0x97   : > { %v982_v26 = vshll.u32 %v6985_v13, 16  ;;  %v986_v29 = vshrl.u32 %v6985_v13, 16 }
  0x9c   : > { %1323 = vmatmul.bf16.gmra.mxu1 %v1223_v59  ;;  %1752 = vmatmul.bf16.gmra.mxu2 %v1652_v63  ;;  %v6291_v59 = vld [vmem:[%s6600_s16 + $0x3c] sm:$0xff]  ;;  %v942_v63 = vrot.slane %v941_v47, 4  ;;  %v2625_v47 = vunpack.c.l.b16 %v2373_v34 }
  0x9d   : > { %2067 = vmatmul.bf16.gmra.mxu3 %v6290_v4  ;;  %v5513_v4 = vrot.slane %v1426_v57, 9 }
  0x9e   : > { %2749 = vmatmul.bf16.gmra.mxu0 %v2649_v5  ;;  %v1544_v5 = vrot.slane %v1542_v53, 4  ;;  %v947_v17 = vsel %vm6739_vm4, %v942_v63, %v946_v3  ;;  %v2651_v1 = vpack.c.b16 %v2625_v47, %v2624_v46  ;;  %v2381_v3 = vor.u32 %v2380_v50, %v2377_v49 }
  0x9f   : > { %v1543_v18 = vsel %vm6744_vm5, %v5513_v4, %v1542_v53  ;;  %v1199_v39 = vunpack.c.l.b16 %v947_v17  ;;  %v978_v46 = vrot.slane %v976_v23, 5  ;;  %v7013_v49 = vrot.slane %v982_v26, 5  ;;  %v760_v26 = vld [vmem:[%s6600_s16 + $0x60] sm:$0xf] }
  0xa0   : > { %v1546_v19 = vsel %vm6744_vm5, %v1544_v5, %v1545_v6  ;;  %v1627_v40 = vunpack.c.l.b16 %v1543_v18  ;;  %v1427_v5 = vld [vmem:[%s6600_s16 + $0x48] sm:$0xe]  ;;  %v2391_v6 = vor.u32 %v2390_v52, %v6967_v51  ;;  %v2382_v17 = vrot.slane %v2381_v3, 4  ;;  %v5721_v18 = vld [vmem:[%s6600_s16 + $0x60] sm:$0xf] }
  0xa1   : > { %v1628_v41 = vunpack.c.l.b16 %v1546_v19  ;;  %v1225_v54 = vpack.c.b16 %v1199_v39, %v1198_v38  ;;  %v5514_v8 = vrot.slane %v1427_v5, 9  ;;  %v2399_v35 = vshrl.u32 %v5721_v18, 16 }
  0xa2   : > { %v2392_v19 = vrot.slane %v2391_v6, 4  ;;  %v2402_v36 = vshll.u32 %v5721_v18, 16  ;;  %v1553_v39 = vsel %vm6744_vm5, %v1551_v14, %v1552_v15  ;;  %v988_v50 = vrot.slane %v986_v29, 4  ;;  %v6293_v14 = vld [vmem:[%s6600_s16 + $0x54] sm:$0xff]  ;;  %v7034_v29 = vld [vmem:[%s6600_s16 + $0x64] sm:$0xf] }
  0xa3   : > { %v1654_v57 = vpack.c.b16 %v1628_v41, %v1627_v40  ;;  %v1550_v38 = vsel %vm6744_vm5, %v5514_v8, %v1549_v2  ;;  %v2408_v40 = vshll.u32 %v5722_v25, 16  ;;  %v2412_v41 = vshrl.u32 %v5722_v25, 16  ;;  %v5723_v2 = vld [vmem:[%s6600_s16 + $0x68] sm:$0x1] }
  0xa4   : > { %v1629_v52 = vunpack.c.l.b16 %v1550_v38  ;;  %v989_v5 = vor.u32 %v988_v50, %v7013_v49 }
  0xa6   : > { %v990_v23 = vrot.slane %v989_v5, 4 }
  0xa9   : > { %v6916_v58 = vpop.f32.mrf.mxu1 }
  0xab   : > { %v6919_v62 = vpop.f32.mrf.mxu0 }
  0xac   : > { %1328 = vmatmul.bf16.gmra.mxu1 %v1224_v55  ;;  %1757 = vmatmul.bf16.gmra.mxu2 %v1653_v56  ;;  %v5720_v55 = vld [vmem:[%s6600_s16 + $0x5c] sm:$0x1] }
  0xad   : > { %2072 = vmatmul.bf16.gmra.mxu3 %v6291_v59  ;;  %v955_v59 = vor.u32 %v954_v43, %v951_v42  ;;  %v2394_v7 = vshll.u32 %v5720_v55, 16  ;;  %v2387_v43 = vsel %vm6739_vm4, %v2382_v17, %v6967_v51  ;;  %v759_v55 = vld [vmem:[%s6600_s16 + $0x5c] sm:$0x1]  ;;  %v7016_v51 = vrot.slane %v2408_v40, 5  ;;  %v1428_v17 = vld [vmem:[%s6600_s16 + $0x54] sm:$0xe] }
  0xae   : > { %2754 = vmatmul.bf16.gmra.mxu0 %v2650_v60  ;;  %v965_v60 = vor.u32 %v964_v45, %v6964_v44  ;;  %v975_v45 = vrot.slane %v973_v22, 4  ;;  %v992_v6 = vshll.u32 %v759_v55, 16  ;;  %v5724_v40 = vld [vmem:[%s6600_s16 + $0x6c] sm:$0xf] }
  0xaf   : > { %v6936_v16 = vpop.f32.mrf.mxu2  ;;  %v956_v10 = vrot.slane %v955_v59, 4  ;;  %v2396_v20 = vrot.slane %v2394_v7, 5  ;;  %v2404_v59 = vrot.slane %v2402_v36, 5 }
  0xb0   : > { %v6945_v21 = vpop.f32.mrf.mxu3  ;;  %v966_v11 = vrot.slane %v965_v60, 4  ;;  %v2626_v60 = vunpack.c.l.b16 %v2387_v43  ;;  %v994_v25 = vrot.slane %v992_v6, 5  ;;  %v997_v43 = vshrl.u32 %v760_v26, 16 }
  0xb1   : > { %v6952_v28 = vpop.f32.mrf.mxu1  ;;  %v961_v32 = vsel %vm6739_vm4, %v956_v10, %v6964_v44  ;;  %v2397_v44 = vsel %vm6739_vm4, %v2392_v19, %v2396_v20  ;;  %v2418_v19 = vshll.u32 %v5723_v2, 16 }
  0xb2   : > { %v971_v34 = vsel %vm6739_vm4, %v966_v11, %v970_v12  ;;  %v1200_v47 = vunpack.c.l.b16 %v961_v32  ;;  %v2627_v61 = vunpack.c.l.b16 %v2397_v44  ;;  %v1556_v11 = vrot.slane %v6985_v13, 5 }
  0xb3   : > { %v6954_v31 = vpop.f32.mrf.mxu0  ;;  %v1201_v48 = vunpack.c.l.b16 %v971_v34  ;;  %v5515_v13 = vrot.slane %v1428_v17, 9  ;;  %v1559_v34 = vrot.slane %v759_v55, 5  ;;  %v2420_v38 = vrot.slane %v2418_v19, 5  ;;  %v762_v17 = vld [vmem:[%s6600_s16 + $0x68] sm:$0x1] }
  0xb4   : > { %v2652_v15 = vpack.c.b16 %v2627_v61, %v2626_v60  ;;  %v1558_v32 = vrot.slane %v1556_v11, 4  ;;  %v1000_v44 = vshll.u32 %v760_v26, 16  ;;  %v2426_v60 = vshll.u32 %v5724_v40, 16 }
  0xb5   : > { %v1226_v9 = vpack.c.b16 %v1201_v48, %v1200_v47  ;;  %v5725_v47 = vld [vmem:[%s6600_s16 + $0x70] sm:$0xf]  ;;  %v1557_v55 = vsel %vm6744_vm5, %v5515_v13, %v1556_v11  ;;  %v999_v6 = vrot.slane %v997_v43, 4 }
  0xb6   : > { %v2436_v2 = vshrl.u32 %v5725_v47, 16 }
  0xb7   : > { %v6969_v53 = vpop.f32.mrf.mxu2 }
  0xb8   : > { %v6972_v56 = vpop.f32.mrf.mxu3 }
  0xb9   : > { %v6975_v63 = vpop.f32.mrf.mxu1 }
  0xbb   : > { %v6979_v4 = vpop.f32.mrf.mxu0 }
  0xbc   : > { %1333 = vmatmul.bf16.gmra.mxu1 %v1225_v54  ;;  %1762 = vmatmul.bf16.gmra.mxu2 %v1654_v57  ;;  %v1630_v54 = vunpack.c.l.b16 %v1553_v39  ;;  %v2401_v57 = vrot.slane %v2399_v35, 4  ;;  %v6346_v39 = vld [vmem:[%s8246_s1 + $0x198] sm:$0xff] }
  0xbd   : > { %2077 = vmatmul.bf16.gmra.mxu3 %v6292_v0  ;;  %v2414_v0 = vrot.slane %v2412_v41, 4  ;;  %v6354_v41 = vld [vmem:[%s8246_s1 + $0x1d8] sm:$0xff]  ;;  %3471 = vmatpush.bf16.msra.mxu2 %v6346_v39 }
  0xbe   : > { %2759 = vmatmul.bf16.gmra.mxu0 %v2651_v1  ;;  %v979_v1 = vor.u32 %v978_v46, %v975_v45  ;;  %v1655_v10 = vpack.c.b16 %v1630_v54, %v1629_v52  ;;  %v2405_v12 = vor.u32 %v2404_v59, %v2401_v57  ;;  %v1006_v45 = vshll.u32 %v7034_v29, 16  ;;  %4153 = vmatpush.bf16.msra.mxu3 %v6354_v41 }
  0xbf   : > { %v6989_v24 = vpop.f32.mrf.mxu2  ;;  %v2415_v18 = vor.u32 %v2414_v0, %v7016_v51  ;;  %v1010_v46 = vshrl.u32 %v7034_v29, 16  ;;  %v995_v52 = vsel %vm6739_vm4, %v990_v23, %v994_v25  ;;  %v1560_v57 = vsel %vm6744_vm5, %v1558_v32, %v1559_v34 }
  0xc0   : > { %v6993_v30 = vpop.f32.mrf.mxu3  ;;  %v980_v22 = vrot.slane %v979_v1, 4  ;;  %v2406_v35 = vrot.slane %v2405_v12, 4  ;;  %v2423_v59 = vshrl.u32 %v5724_v40, 16  ;;  %v2432_v1 = vshll.u32 %v5725_v47, 16  ;;  %v6322_v12 = vld [vmem:[%s8246_s1 + $0x158] sm:$0xff] }
  0xc1   : > { %v7000_v37 = vpop.f32.mrf.mxu1  ;;  %v2416_v36 = vrot.slane %v2415_v18, 4  ;;  %v1012_v11 = vrot.slane %v1010_v46, 4  ;;  %v1631_v18 = vunpack.c.l.b16 %v1557_v55  ;;  %v1632_v19 = vunpack.c.l.b16 %v1560_v57  ;;  %3156 = vmatpush.bf16.msra.mxu1 %v6322_v12  ;;  %v1429_v40 = vld [vmem:[%s6600_s16 + $0x60] sm:$0xe] }
  0xc2   : > { %v985_v50 = vsel %vm6739_vm4, %v980_v22, %v7013_v49  ;;  %v2411_v49 = vsel %vm6739_vm4, %v2406_v35, %v7016_v51  ;;  %v6362_v51 = vld [vmem:[%s8246_s1 + $0x218] sm:$0xff]  ;;  %v2425_v22 = vrot.slane %v2423_v59, 4  ;;  %v2428_v23 = vrot.slane %v2426_v60, 5 }
  0xc3   : > { %v7006_v42 = vpop.f32.mrf.mxu0  ;;  %v2421_v0 = vsel %vm6739_vm4, %v2416_v36, %v2420_v38  ;;  %4579 = vmatpush.bf16.msra.mxu0 %v6362_v51  ;;  %v2628_v25 = vunpack.c.l.b16 %v2411_v49  ;;  %v7077_v13 = vrot.slane %v2432_v1, 5  ;;  %v2438_v32 = vrot.slane %v2436_v2, 4  ;;  %v5726_v38 = vld [vmem:[%s6600_s16 + $0x74] sm:$0x1] }
  0xc4   : > { %v2629_v26 = vunpack.c.l.b16 %v2421_v0  ;;  %v1016_v36 = vshll.u32 %v762_v17, 16  ;;  %v1563_v41 = vrot.slane %v7034_v29, 5  ;;  %v2429_v46 = vor.u32 %v2428_v23, %v2425_v22 }
  0xc5   : > { %v2439_v55 = vor.u32 %v2438_v32, %v7077_v13  ;;  %v2442_v57 = vshll.u32 %v5726_v38, 16  ;;  %v5516_v0 = vrot.slane %v1429_v40, 9  ;;  %v1566_v2 = vrot.slane %v762_v17, 5 }
  0xc6   : > { %v1018_v49 = vrot.slane %v1016_v36, 5  ;;  %v1565_v1 = vrot.slane %v1563_v41, 4 }
  0xc7   : > { %v7019_v3 = vpop.f32.mrf.mxu2  ;;  %v2440_v12 = vrot.slane %v2439_v55, 4  ;;  %v2444_v51 = vrot.slane %v2442_v57, 5  ;;  %v1564_v32 = vsel %vm6744_vm5, %v5516_v0, %v1563_v41 }
  0xc8   : > { %v7022_v7 = vpop.f32.mrf.mxu3 }
  0xc9   : > { %8255 = vst [vmem:[#allocation3_spill] sm:$0xff] %v7022_v7  ;;  %v7025_v8 = vpop.f32.mrf.mxu1 }
  0xcb   : > { %v7030_v20 = vpop.f32.mrf.mxu0 }
  0xcc   : > { %1338 = vmatmul.bf16.gmra.mxu1 %v1226_v9  ;;  %1767 = vmatmul.bf16.gmra.mxu2 %v1655_v10  ;;  %v1002_v9 = vrot.slane %v1000_v44, 5  ;;  %v7068_v10 = vrot.slane %v1006_v45, 5  ;;  %v1656_v45 = vpack.c.b16 %v1632_v19, %v1631_v18 }
  0xcd   : > { %2082 = vmatmul.bf16.gmra.mxu3 %v6293_v14  ;;  %v1202_v14 = vunpack.c.l.b16 %v985_v50  ;;  %v6294_v50 = vld [vmem:[%s6600_s16 + $0x60] sm:$0xff] }
  0xce   : > { %2764 = vmatmul.bf16.gmra.mxu0 %v2652_v15  ;;  %v1203_v15 = vunpack.c.l.b16 %v995_v52  ;;  %v1003_v34 = vor.u32 %v1002_v9, %v999_v6  ;;  %v1013_v35 = vor.u32 %v1012_v11, %v7068_v10  ;;  %v2653_v52 = vpack.c.b16 %v2629_v26, %v2628_v25  ;;  %v763_v6 = vld [vmem:[%s6600_s16 + $0x6c] sm:$0xf]  ;;  %v7095_v9 = vld [vmem:[%s6600_s16 + $0x70] sm:$0xf] }
  0xcf   : > { %v7046_v48 = vpop.f32.mrf.mxu2  ;;  %v2430_v11 = vrot.slane %v2429_v46, 4  ;;  %v1021_v18 = vshrl.u32 %v763_v6, 16  ;;  %v1024_v19 = vshll.u32 %v763_v6, 16  ;;  %v1030_v22 = vshll.u32 %v7095_v9, 16 }
  0xd0   : > { %v7053_v54 = vpop.f32.mrf.mxu3  ;;  %v1227_v44 = vpack.c.b16 %v1203_v15, %v1202_v14  ;;  %v1004_v60 = vrot.slane %v1003_v34, 4  ;;  %v1014_v29 = vrot.slane %v1013_v35, 4  ;;  %v5727_v14 = vld [vmem:[%s6600_s16 + $0x78] sm:$0xf]  ;;  %v5728_v15 = vld [vmem:[%s6600_s16 + $0x7c] sm:$0xf]  ;;  %v1567_v34 = vsel %vm6744_vm5, %v1565_v1, %v1566_v2 }
  0xd1   : > { %8256 = vst [vmem:[#allocation4_spill] sm:$0xff] %v7053_v54  ;;  %v7059_v61 = vpop.f32.mrf.mxu1  ;;  %v1034_v23 = vshrl.u32 %v7095_v9, 16  ;;  %v2447_v36 = vshrl.u32 %v5727_v14, 16  ;;  %v2450_v38 = vshll.u32 %v5727_v14, 16  ;;  %v2456_v40 = vshll.u32 %v5728_v15, 16 }
  0xd2   : > { %v1009_v17 = vsel %vm6739_vm4, %v1004_v60, %v7068_v10  ;;  %v1019_v26 = vsel %vm6739_vm4, %v1014_v29, %v1018_v49  ;;  %v2435_v10 = vsel %vm6739_vm4, %v2430_v11, %v7077_v13  ;;  %v2445_v46 = vsel %vm6739_vm4, %v2440_v12, %v2444_v51  ;;  %v765_v1 = vld [vmem:[%s6600_s16 + $0x74] sm:$0x1]  ;;  %v5729_v14 = vld [vmem:[%s6600_s16 + $0x80] sm:$0x1] }
  0xd3   : > { %v7066_v5 = vpop.f32.mrf.mxu0  ;;  %v7123_v55 = vrot.slane %v1030_v22, 5  ;;  %v1036_v57 = vrot.slane %v1034_v23, 4  ;;  %v1204_v60 = vunpack.c.l.b16 %v1009_v17  ;;  %v1205_v29 = vunpack.c.l.b16 %v1019_v26 }
  0xd4   : > { %v1633_v49 = vunpack.c.l.b16 %v1564_v32  ;;  %v1634_v0 = vunpack.c.l.b16 %v1567_v34  ;;  %v2449_v2 = vrot.slane %v2447_v36, 4  ;;  %v2452_v6 = vrot.slane %v2450_v38, 5  ;;  %v1430_v34 = vld [vmem:[%s6600_s16 + $0x6c] sm:$0xe] }
  0xd5   : > { %v7126_v13 = vrot.slane %v2456_v40, 5  ;;  %v2630_v12 = vunpack.c.l.b16 %v2435_v10  ;;  %v2631_v51 = vunpack.c.l.b16 %v2445_v46  ;;  %v1228_v22 = vpack.c.b16 %v1205_v29, %v1204_v60  ;;  %v6295_v10 = vld [vmem:[%s6600_s16 + $0x6c] sm:$0xff] }
  0xd6   : > { %v1040_v23 = vshll.u32 %v765_v1, 16  ;;  %v1570_v17 = vrot.slane %v7095_v9, 5  ;;  %v1657_v32 = vpack.c.b16 %v1634_v0, %v1633_v49  ;;  %v2453_v36 = vor.u32 %v2452_v6, %v2449_v2  ;;  %v766_v9 = vld [vmem:[%s6600_s16 + $0x78] sm:$0xf]  ;;  %v7143_v2 = vld [vmem:[%s6600_s16 + $0x7c] sm:$0xf] }
  0xd7   : > { %v7081_v39 = vpop.f32.mrf.mxu2  ;;  %v2466_v40 = vshll.u32 %v5729_v14, 16  ;;  %v2654_v46 = vpack.c.b16 %v2631_v51, %v2630_v12  ;;  %v5517_v49 = vrot.slane %v1430_v34, 9  ;;  %v5730_v51 = vld [vmem:[%s6600_s16 + $0x84] sm:$0xf]  ;;  %v1048_v14 = vshll.u32 %v766_v9, 16 }
  0xd8   : > { %v7085_v43 = vpop.f32.mrf.mxu3  ;;  %v1042_v29 = vrot.slane %v1040_v23, 5  ;;  %v1572_v0 = vrot.slane %v1570_v17, 4  ;;  %v2454_v6 = vrot.slane %v2453_v36, 4  ;;  %v1054_v23 = vshll.u32 %v7143_v2, 16 }
  0xd9   : > { %8257 = vst [vmem:[#allocation5_spill] sm:$0xff] %v7085_v43  ;;  %v7087_v47 = vpop.f32.mrf.mxu1  ;;  %v2468_v12 = vrot.slane %v2466_v40, 5 }
  0xdb   : > { %v7091_v59 = vpop.f32.mrf.mxu0 }
  0xdc   : > { %1343 = vmatmul.bf16.gmra.mxu1 %v1227_v44  ;;  %1772 = vmatmul.bf16.gmra.mxu2 %v1656_v45  ;;  %v2460_v44 = vshrl.u32 %v5728_v15, 16 }
  0xdd   : > { %2087 = vmatmul.bf16.gmra.mxu3 %v6294_v50  ;;  %v1023_v50 = vrot.slane %v1021_v18, 4  ;;  %v1037_v18 = vor.u32 %v1036_v57, %v7123_v55 }
  0xde   : > { %2769 = vmatmul.bf16.gmra.mxu0 %v2653_v52  ;;  %v1026_v52 = vrot.slane %v1024_v19, 5  ;;  %v2462_v11 = vrot.slane %v2460_v44, 4 }
  0xdf   : > { %v7101_v25 = vpop.f32.mrf.mxu2  ;;  %v1038_v60 = vrot.slane %v1037_v18, 4  ;;  %v5731_v18 = vld [vmem:[%s6600_s16 + $0x88] sm:$0xf] }
  0xe0   : > { %v7112_v35 = vpop.f32.mrf.mxu3  ;;  %v1027_v15 = vor.u32 %v1026_v52, %v1023_v50  ;;  %v2463_v38 = vor.u32 %v2462_v11, %v7126_v13 }
  0xe1   : > { %8258 = vst [vmem:[#allocation6_spill] sm:$0xff] %v7112_v35  ;;  %v7114_v45 = vpop.f32.mrf.mxu1  ;;  %v1043_v36 = vsel %vm6739_vm4, %v1038_v60, %v1042_v29  ;;  %v2459_v60 = vsel %vm6739_vm4, %v2454_v6, %v7126_v13  ;;  %v6361_v13 = vld [vmem:[%s8246_s1 + $0x210] sm:$0xff] }
  0xe2   : > { %v1028_v57 = vrot.slane %v1027_v15, 4  ;;  %v2464_v11 = vrot.slane %v2463_v38, 4  ;;  %v6345_v15 = vld [vmem:[%s8246_s1 + $0x190] sm:$0xff]  ;;  %v1571_v38 = vsel %vm6744_vm5, %v5517_v49, %v1570_v17  ;;  %v1050_v49 = vrot.slane %v1048_v14, 5  ;;  %v7179_v14 = vld [vmem:[%s6600_s16 + $0x80] sm:$0x1]  ;;  %4580 = vmatpush.bf16.msra.mxu0 %v6361_v13 }
  0xe3   : > { %v7121_v41 = vpop.f32.mrf.mxu0  ;;  %3472 = vmatpush.bf16.msra.mxu2 %v6345_v15 }
  0xe4   : > { %v2469_v17 = vsel %vm6739_vm4, %v2464_v11, %v2468_v12  ;;  %v1207_v11 = vunpack.c.l.b16 %v1043_v36  ;;  %v1635_v12 = vunpack.c.l.b16 %v1571_v38  ;;  %v1064_v36 = vshll.u32 %v7179_v14, 16  ;;  %v5732_v38 = vld [vmem:[%s6600_s16 + $0x8c] sm:$0x1] }
  0xe5   : > { %v2490_v43 = vshll.u32 %v5732_v38, 16 }
  0xe7   : > { %v7130_v19 = vpop.f32.mrf.mxu2 }
  0xe8   : > { %v7133_v26 = vpop.f32.mrf.mxu3 }
  0xe9   : > { %8259 = vst [vmem:[#allocation7_spill] sm:$0xff] %v7133_v26  ;;  %v1309_v44 = vpop.f32.mrf.mxu1  ;;  %v1573_v26 = vrot.slane %v765_v1, 5  ;;  %v6353_v1 = vld [vmem:[%s8246_s1 + $0x1d0] sm:$0xff] }
  0xea   : > { %v1389_v50 = vadd.f32 %v1309_v44, %v6919_v62  ;;  %v1045_v62 = vshrl.u32 %v766_v9, 16  ;;  %v2471_v44 = vshrl.u32 %v5730_v51, 16  ;;  %4154 = vmatpush.bf16.msra.mxu3 %v6353_v1  ;;  %v2484_v9 = vshrl.u32 %v5731_v18, 16 }
  0xeb   : > { %v7139_v52 = vpop.f32.mrf.mxu0  ;;  %v1574_v40 = vsel %vm6744_vm5, %v1572_v0, %v1573_v26 }
  0xec   : > { %1348 = vmatmul.bf16.gmra.mxu1 %v1228_v22  ;;  %1777 = vmatmul.bf16.gmra.mxu2 %v1657_v32  ;;  %v1033_v22 = vsel %vm6739_vm4, %v1028_v57, %v7123_v55  ;;  %v1058_v32 = vshrl.u32 %v7143_v2, 16  ;;  %v2474_v55 = vshll.u32 %v5730_v51, 16  ;;  %v2480_v57 = vshll.u32 %v5731_v18, 16  ;;  %v6321_v18 = vld [vmem:[%s8246_s1 + $0x150] sm:$0xff] }
  0xed   : > { %2092 = vmatmul.bf16.gmra.mxu3 %v6295_v10  ;;  %v1047_v29 = vrot.slane %v1045_v62, 4  ;;  %v1206_v6 = vunpack.c.l.b16 %v1033_v22  ;;  %v1636_v62 = vunpack.c.l.b16 %v1574_v40  ;;  %3157 = vmatpush.bf16.msra.mxu1 %v6321_v18  ;;  %v1431_v18 = vld [vmem:[%s6600_s16 + $0x78] sm:$0xe] }
  0xee   : > { %2774 = vmatmul.bf16.gmra.mxu0 %v2654_v46  ;;  %v1060_v51 = vrot.slane %v1058_v32, 4  ;;  %v7181_v1 = vrot.slane %v2480_v57, 5  ;;  %v2632_v32 = vunpack.c.l.b16 %v2459_v60 }
  0xef   : > { %v1738_v34 = vpop.f32.mrf.mxu2 }
  0xf0   : > { %v1818_v10 = vadd.f32 %v1738_v34, %v1389_v50  ;;  %v2053_v46 = vpop.f32.mrf.mxu3  ;;  %v7170_v50 = vrot.slane %v1054_v23, 5  ;;  %v2486_v23 = vrot.slane %v2484_v9, 4  ;;  %v2633_v34 = vunpack.c.l.b16 %v2469_v17 }
  0xf1   : > { %v1311_v35 = vpop.f32.mrf.mxu1  ;;  %v1658_v9 = vpack.c.b16 %v1636_v62, %v1635_v12  ;;  %v7195_v12 = vld [vmem:[%s6600_s16 + $0x88] sm:$0xf]  ;;  %v5518_v62 = vrot.slane %v1431_v18, 9 }
  0xf2   : > { %v2133_v26 = vadd.f32 %v2053_v46, %v1818_v10  ;;  %v1390_v0 = vadd.f32 %v1311_v35, %v6954_v31  ;;  %v2473_v31 = vrot.slane %v2471_v44, 4  ;;  %v2476_v35 = vrot.slane %v2474_v55, 5 }
  0xf3   : > { %v2737_v15 = vpop.f32.mrf.mxu0  ;;  %v1051_v10 = vor.u32 %v1050_v49, %v1047_v29  ;;  %v1061_v22 = vor.u32 %v1060_v51, %v7170_v50  ;;  %v1229_v46 = vpack.c.b16 %v1207_v11, %v1206_v6  ;;  %v1577_v44 = vrot.slane %v7143_v2, 5  ;;  %v6296_v29 = vld [vmem:[%s6600_s16 + $0x78] sm:$0xff] }
  0xf4   : > { %v2477_v13 = vor.u32 %v2476_v35, %v2473_v31  ;;  %v2487_v60 = vor.u32 %v2486_v23, %v7181_v1  ;;  %v2655_v49 = vpack.c.b16 %v2633_v34, %v2632_v32  ;;  %v1066_v11 = vrot.slane %v1064_v36, 5  ;;  %v5733_v34 = vld [vmem:[%s6600_s16 + $0x90] sm:$0xf] }
  0xf5   : > { %v1052_v51 = vrot.slane %v1051_v10, 4  ;;  %v1579_v31 = vrot.slane %v1577_v44, 4  ;;  %v1580_v35 = vrot.slane %v7179_v14, 5  ;;  %v5734_v10 = vld [vmem:[%s6600_s16 + $0x94] sm:$0xf]  ;;  %v7201_v38 = vadd.f32 %v7139_v52, %v2133_v26 }
  0xf6   : > { %v2478_v23 = vrot.slane %v2477_v13, 4  ;;  %v2488_v32 = vrot.slane %v2487_v60, 4  ;;  %v2495_v26 = vshrl.u32 %v5733_v34, 16  ;;  %v2508_v18 = vshrl.u32 %v5734_v10, 16 }
  0xf7   : > { %v1740_v40 = vpop.f32.mrf.mxu2  ;;  %8260 = vst [vmem:[#allocation8_spill] sm:$0xff] %v7201_v38  ;;  %v1057_v14 = vsel %vm6739_vm4, %v1052_v51, %v7170_v50  ;;  %v1578_v60 = vsel %vm6744_vm5, %v5518_v62, %v1577_v44  ;;  %v1581_v50 = vsel %vm6744_vm5, %v1579_v31, %v1580_v35  ;;  %v771_v62 = vld [vmem:[%s6600_s16 + $0x8c] sm:$0x1]  ;;  %v1584_v31 = vrot.slane %v7195_v12, 5  ;;  %v1432_v35 = vld [vmem:[%s6600_s16 + $0x84] sm:$0xe] }
  0xf8   : > { %v1819_v55 = vadd.f32 %v1740_v40, %v1390_v0  ;;  %v2055_v57 = vpop.f32.mrf.mxu3  ;;  %v1062_v0 = vrot.slane %v1061_v22, 4  ;;  %v769_v40 = vld [vmem:[%s6600_s16 + $0x84] sm:$0xf]  ;;  %v2492_v22 = vrot.slane %v2490_v43, 5  ;;  %v772_v38 = vld [vmem:[%s6600_s16 + $0x90] sm:$0xf] }
  0xf9   : > { %v1314_v17 = vpop.f32.mrf.mxu1  ;;  %v1069_v36 = vshrl.u32 %v769_v40, 16 }
  0xfa   : > { %v2134_v54 = vadd.f32 %v2055_v57, %v1819_v55  ;;  %v1391_v6 = vadd.f32 %v1314_v17, %v6979_v4  ;;  %v1072_v55 = vshll.u32 %v769_v40, 16  ;;  %v1078_v57 = vshll.u32 %v7195_v12, 16 }
  0xfb   : > { %v7191_v2 = vpop.f32.mrf.mxu0  ;;  %v2483_v17 = vsel %vm6739_vm4, %v2478_v23, %v7181_v1  ;;  %v1071_v51 = vrot.slane %v1069_v36, 4  ;;  %v1637_v36 = vunpack.c.l.b16 %v1578_v60 }
  0xfc   : > { %1353 = vmatmul.bf16.gmra.mxu1 %v1229_v46  ;;  %1782 = vmatmul.bf16.gmra.mxu2 %v1658_v9  ;;  %v7203_v4 = vadd.f32 %v2737_v15, %v2134_v54  ;;  %v1067_v46 = vsel %vm6739_vm4, %v1062_v0, %v1066_v11  ;;  %v1082_v9 = vshrl.u32 %v7195_v12, 16  ;;  %v2498_v54 = vshll.u32 %v5733_v34, 16 }
  0xfd   : > { %2097 = vmatmul.bf16.gmra.mxu3 %v6296_v29  ;;  %v2504_v15 = vshll.u32 %v5734_v10, 16  ;;  %v1074_v0 = vrot.slane %v1072_v55, 5  ;;  %v7221_v11 = vrot.slane %v1078_v57, 5  ;;  %v2497_v10 = vrot.slane %v2495_v26, 4  ;;  %v5735_v57 = vld [vmem:[%s6600_s16 + $0x98] sm:$0x1] }
  0xfe   : > { %8261 = vst [vmem:[#allocation9_spill] sm:$0xff] %v7203_v4  ;;  %2779 = vmatmul.bf16.gmra.mxu0 %v2655_v49  ;;  %v2493_v49 = vsel %vm6739_vm4, %v2488_v32, %v2492_v22  ;;  %v1084_v34 = vrot.slane %v1082_v9, 4  ;;  %v2500_v1 = vrot.slane %v2498_v54, 5  ;;  %v1208_v32 = vunpack.c.l.b16 %v1057_v14 }
  0xff   : > { %v1743_v52 = vpop.f32.mrf.mxu2  ;;  %v7227_v23 = vrot.slane %v2504_v15, 5  ;;  %v1209_v22 = vunpack.c.l.b16 %v1067_v46  ;;  %v1638_v55 = vunpack.c.l.b16 %v1581_v50  ;;  %v2634_v4 = vunpack.c.l.b16 %v2483_v17 }
 0x100   : > { %v1820_v43 = vadd.f32 %v1743_v52, %v1391_v6  ;;  %v2058_v13 = vpop.f32.mrf.mxu3  ;;  %v2510_v52 = vrot.slane %v2508_v18, 4  ;;  %v1085_v9 = vor.u32 %v1084_v34, %v7221_v11  ;;  %v1586_v12 = vrot.slane %v1584_v31, 4 }
 0x101   : > { %v1316_v29 = vpop.f32.mrf.mxu1  ;;  %v1587_v54 = vrot.slane %v771_v62, 5  ;;  %v2501_v15 = vor.u32 %v2500_v1, %v2497_v10  ;;  %v2514_v14 = vshll.u32 %v5735_v57, 16  ;;  %v1230_v50 = vpack.c.b16 %v1209_v22, %v1208_v32  ;;  %v5736_v32 = vld [vmem:[%s6600_s16 + $0x9c] sm:$0xf]  ;;  %v5737_v57 = vld [vmem:[%s6600_s16 + $0xa0] sm:$0xf] }
 0x102   : > { %v2135_v6 = vadd.f32 %v2058_v13, %v1820_v43  ;;  %v1392_v40 = vadd.f32 %v1316_v29, %v7006_v42  ;;  %v2635_v43 = vunpack.c.l.b16 %v2493_v49  ;;  %v1075_v42 = vor.u32 %v1074_v0, %v1071_v51  ;;  %v6297_v51 = vld [vmem:[%s6600_s16 + $0x84] sm:$0xff] }
 0x103   : > { %v2742_v44 = vpop.f32.mrf.mxu0  ;;  %v1088_v13 = vshll.u32 %v771_v62, 16  ;;  %v5519_v29 = vrot.slane %v1432_v35, 9  ;;  %v2511_v18 = vor.u32 %v2510_v52, %v7227_v23  ;;  %v1659_v17 = vpack.c.b16 %v1638_v55, %v1637_v36  ;;  %v7242_v52 = vld [vmem:[%s6600_s16 + $0x94] sm:$0xf] }
 0x104   : > { %v2656_v0 = vpack.c.b16 %v2635_v43, %v2634_v4  ;;  %v1076_v34 = vrot.slane %v1075_v42, 4  ;;  %v1086_v1 = vrot.slane %v1085_v9, 4  ;;  %v7247_v22 = vsel %vm6744_vm5, %v1586_v12, %v1587_v54 }
 0x105   : > { %v1090_v35 = vrot.slane %v1088_v13, 5  ;;  %v2502_v4 = vrot.slane %v2501_v15, 4  ;;  %v2512_v36 = vrot.slane %v2511_v18, 4  ;;  %v2516_v55 = vrot.slane %v2514_v14, 5 }
 0x106   : > { %v1096_v43 = vshll.u32 %v772_v38, 16  ;;  %v7251_v42 = vadd.f32 %v7191_v2, %v2135_v6  ;;  %v1102_v13 = vshll.u32 %v7242_v52, 16  ;;  %v1106_v9 = vshrl.u32 %v7242_v52, 16 }
 0x107   : > { %v1745_v26 = vpop.f32.mrf.mxu2  ;;  %v2519_v12 = vshrl.u32 %v5736_v32, 16  ;;  %v2528_v2 = vshll.u32 %v5737_v57, 16  ;;  %v2532_v6 = vshrl.u32 %v5737_v57, 16  ;;  %v1091_v54 = vsel %vm6739_vm4, %v1086_v1, %v1090_v35 }
 0x108   : > { %v1821_v46 = vadd.f32 %v1745_v26, %v1392_v40  ;;  %v2060_v60 = vpop.f32.mrf.mxu3  ;;  %v7239_v40 = vsel %vm6744_vm5, %v5519_v29, %v1584_v31  ;;  %v6344_v29 = vld [vmem:[%s8246_s1 + $0x188] sm:$0xff]  ;;  %v2522_v26 = vshll.u32 %v5736_v32, 16  ;;  %v1640_v18 = vunpack.c.l.b16 %v7247_v22 }
 0x109   : > { %v1319_v49 = vpop.f32.mrf.mxu1  ;;  %v1639_v15 = vunpack.c.l.b16 %v7239_v40  ;;  %v2507_v14 = vsel %vm6739_vm4, %v2502_v4, %v7227_v23  ;;  %3473 = vmatpush.bf16.msra.mxu2 %v6344_v29  ;;  %v2521_v35 = vrot.slane %v2519_v12, 4  ;;  %v2534_v22 = vrot.slane %v2532_v6, 4  ;;  %v6320_v4 = vld [vmem:[%s8246_s1 + $0x148] sm:$0xff] }
 0x10a   : > { %v2136_v7 = vadd.f32 %v2060_v60, %v1821_v46  ;;  %v1393_v62 = vadd.f32 %v1319_v49, %v7030_v20  ;;  %v1093_v20 = vshrl.u32 %v772_v38, 16  ;;  %v6352_v38 = vld [vmem:[%s8246_s1 + $0x1c8] sm:$0xff]  ;;  %v2524_v1 = vrot.slane %v2522_v26, 5  ;;  %3158 = vmatpush.bf16.msra.mxu1 %v6320_v4  ;;  %v1433_v26 = vld [vmem:[%s6600_s16 + $0x90] sm:$0xe] }
 0x10b   : > { %v7235_v10 = vpop.f32.mrf.mxu0  ;;  %4155 = vmatpush.bf16.msra.mxu3 %v6352_v38  ;;  %v1211_v57 = vunpack.c.l.b16 %v1091_v54  ;;  %v1660_v54 = vpack.c.b16 %v1640_v18, %v1639_v15 }
 0x10c   : > { %1358 = vmatmul.bf16.gmra.mxu1 %v1230_v50  ;;  %1787 = vmatmul.bf16.gmra.mxu2 %v1659_v17  ;;  %v7253_v31 = vadd.f32 %v2742_v44, %v2136_v7  ;;  %v1081_v7 = vsel %vm6739_vm4, %v1076_v34, %v7221_v11  ;;  %v2517_v11 = vsel %vm6739_vm4, %v2512_v36, %v2516_v55  ;;  %v1095_v50 = vrot.slane %v1093_v20, 4  ;;  %v6360_v36 = vld [vmem:[%s8246_s1 + $0x208] sm:$0xff] }
 0x10d   : > { %2102 = vmatmul.bf16.gmra.mxu3 %v6297_v51  ;;  %v1098_v17 = vrot.slane %v1096_v43, 5  ;;  %v774_v51 = vld [vmem:[%s6600_s16 + $0x98] sm:$0x1]  ;;  %v1108_v34 = vrot.slane %v1106_v9, 4  ;;  %v1210_v55 = vunpack.c.l.b16 %v1081_v7  ;;  %v2636_v20 = vunpack.c.l.b16 %v2507_v14  ;;  %4581 = vmatpush.bf16.msra.mxu0 %v6360_v36 }
 0x10e   : > { %2784 = vmatmul.bf16.gmra.mxu0 %v2656_v0  ;;  %v7276_v0 = vrot.slane %v1102_v13, 5  ;;  %v2637_v43 = vunpack.c.l.b16 %v2517_v11  ;;  %v5738_v13 = vld [vmem:[%s6600_s16 + $0xa4] sm:$0x1]  ;;  %v1112_v9 = vshll.u32 %v774_v51, 16  ;;  %v2525_v38 = vor.u32 %v2524_v1, %v2521_v35 }
 0x10f   : > { %v1748_v44 = vpop.f32.mrf.mxu2  ;;  %v1099_v29 = vor.u32 %v1098_v17, %v1095_v50  ;;  %v2538_v6 = vshll.u32 %v5738_v13, 16  ;;  %v1231_v7 = vpack.c.b16 %v1211_v57, %v1210_v55  ;;  %v6298_v17 = vld [vmem:[%s6600_s16 + $0x90] sm:$0xff]  ;;  %v1594_v35 = vrot.slane %v774_v51, 5  ;;  %v775_v55 = vld [vmem:[%s6600_s16 + $0x9c] sm:$0xf] }
 0x110   : > { %v1822_v46 = vadd.f32 %v1748_v44, %v1393_v62  ;;  %v2063_v60 = vpop.f32.mrf.mxu3  ;;  %v7279_v62 = vrot.slane %v2528_v2, 5  ;;  %v1109_v12 = vor.u32 %v1108_v34, %v7276_v0  ;;  %v2657_v14 = vpack.c.b16 %v2637_v43, %v2636_v20  ;;  %v7298_v57 = vld [vmem:[%s6600_s16 + $0xa0] sm:$0xf]  ;;  %v5739_v20 = vld [vmem:[%s6600_s16 + $0xa8] sm:$0xf] }
 0x111   : > { %v1321_v49 = vpop.f32.mrf.mxu1  ;;  %v1114_v11 = vrot.slane %v1112_v9, 5  ;;  %v1100_v34 = vrot.slane %v1099_v29, 4  ;;  %v2526_v1 = vrot.slane %v2525_v38, 4  ;;  %v5740_v29 = vld [vmem:[%s6600_s16 + $0xac] sm:$0xf]  ;;  %v1126_v38 = vshll.u32 %v7298_v57, 16 }
 0x112   : > { %v2137_v40 = vadd.f32 %v2063_v60, %v1822_v46  ;;  %v1394_v23 = vadd.f32 %v1321_v49, %v7066_v5  ;;  %v1591_v5 = vrot.slane %v7242_v52, 5  ;;  %v2535_v2 = vor.u32 %v2534_v22, %v7279_v62 }
 0x113   : > { %v2747_v32 = vpop.f32.mrf.mxu0  ;;  %v5520_v52 = vrot.slane %v1433_v26, 9  ;;  %v1110_v4 = vrot.slane %v1109_v12, 4 }
 0x114   : > { %v1593_v49 = vrot.slane %v1591_v5, 4  ;;  %v2536_v18 = vrot.slane %v2535_v2, 4  ;;  %v7302_v43 = vadd.f32 %v7235_v10, %v2137_v40  ;;  %v2531_v10 = vsel %vm6739_vm4, %v2526_v1, %v7279_v62 }
 0x115   : > { %v1592_v51 = vsel %vm6744_vm5, %v5520_v52, %v1591_v5  ;;  %v1115_v12 = vsel %vm6739_vm4, %v1110_v4, %v1114_v11  ;;  %v1130_v5 = vshrl.u32 %v7298_v57, 16  ;;  %v2543_v2 = vshrl.u32 %v5739_v20, 16 }
 0x116   : > { %v1595_v9 = vsel %vm6744_vm5, %v1593_v49, %v1594_v35  ;;  %v1213_v62 = vunpack.c.l.b16 %v1115_v12  ;;  %v1641_v11 = vunpack.c.l.b16 %v1592_v51  ;;  %v1598_v51 = vrot.slane %v7298_v57, 5 }
 0x117   : > { %v1750_v44 = vpop.f32.mrf.mxu2  ;;  %v1642_v52 = vunpack.c.l.b16 %v1595_v9 }
 0x118   : > { %v1823_v46 = vadd.f32 %v1750_v44, %v1394_v23  ;;  %v2065_v60 = vpop.f32.mrf.mxu3  ;;  %v2540_v23 = vrot.slane %v2538_v6, 5 }
 0x119   : > { %v1324_v50 = vpop.f32.mrf.mxu1  ;;  %v1661_v9 = vpack.c.b16 %v1642_v52, %v1641_v11  ;;  %v778_v11 = vld [vmem:[%s6600_s16 + $0xa8] sm:$0xf] }
 0x11a   : > { %v2138_v22 = vadd.f32 %v2065_v60, %v1823_v46  ;;  %v1395_v36 = vadd.f32 %v1324_v50, %v7091_v59  ;;  %v1105_v59 = vsel %vm6739_vm4, %v1100_v34, %v7276_v0  ;;  %v2541_v40 = vsel %vm6739_vm4, %v2536_v18, %v2540_v23  ;;  %v777_v18 = vld [vmem:[%s6600_s16 + $0xa4] sm:$0x1] }
 0x11b   : > { %v7294_v15 = vpop.f32.mrf.mxu0  ;;  %v1120_v0 = vshll.u32 %v775_v55, 16  ;;  %v1212_v60 = vunpack.c.l.b16 %v1105_v59  ;;  %v2638_v34 = vunpack.c.l.b16 %v2531_v10  ;;  %v2639_v4 = vunpack.c.l.b16 %v2541_v40 }
 0x11c   : > { %1363 = vmatmul.bf16.gmra.mxu1 %v1231_v7  ;;  %1792 = vmatmul.bf16.gmra.mxu2 %v1660_v54  ;;  %v7304_v13 = vadd.f32 %v2747_v32, %v2138_v22  ;;  %v1117_v32 = vshrl.u32 %v775_v55, 16  ;;  %v2546_v7 = vshll.u32 %v5739_v20, 16  ;;  %v2552_v54 = vshll.u32 %v5740_v29, 16 }
 0x11d   : > { %2107 = vmatmul.bf16.gmra.mxu3 %v6298_v17  ;;  %v1122_v1 = vrot.slane %v1120_v0, 5  ;;  %v7324_v22 = vrot.slane %v1126_v38, 5  ;;  %v2545_v23 = vrot.slane %v2543_v2, 4  ;;  %v1232_v10 = vpack.c.b16 %v1213_v62, %v1212_v60 }
 0x11e   : > { %2789 = vmatmul.bf16.gmra.mxu0 %v2657_v14  ;;  %v2556_v14 = vshrl.u32 %v5740_v29, 16  ;;  %v1119_v35 = vrot.slane %v1117_v32, 4  ;;  %v2548_v55 = vrot.slane %v2546_v7, 5  ;;  %v7327_v20 = vrot.slane %v2552_v54, 5  ;;  %v5741_v29 = vld [vmem:[%s6600_s16 + $0xb0] sm:$0x1] }
 0x11f   : > { %v1753_v26 = vpop.f32.mrf.mxu2  ;;  %v6299_v7 = vld [vmem:[%s6600_s16 + $0x9c] sm:$0xff]  ;;  %v1600_v54 = vrot.slane %v1598_v51, 4 }
 0x120   : > { %v1824_v6 = vadd.f32 %v1753_v26, %v1395_v36  ;;  %v2068_v44 = vpop.f32.mrf.mxu3  ;;  %v1132_v36 = vrot.slane %v1130_v5, 4  ;;  %v2558_v59 = vrot.slane %v2556_v14, 4  ;;  %v1123_v40 = vor.u32 %v1122_v1, %v1119_v35  ;;  %v7339_v1 = vld [vmem:[%s6600_s16 + $0xac] sm:$0xf] }
 0x121   : > { %v1326_v46 = vpop.f32.mrf.mxu1  ;;  %v1136_v26 = vshll.u32 %v777_v18, 16  ;;  %v2658_v5 = vpack.c.b16 %v2639_v4, %v2638_v34  ;;  %v2549_v2 = vor.u32 %v2548_v55, %v2545_v23  ;;  %v1601_v14 = vrot.slane %v777_v18, 5 }
 0x122   : > { %v2139_v49 = vadd.f32 %v2068_v44, %v1824_v6  ;;  %v1396_v50 = vadd.f32 %v1326_v46, %v7121_v41  ;;  %v1434_v41 = vld [vmem:[%s6600_s16 + $0x9c] sm:$0xe]  ;;  %v1133_v32 = vor.u32 %v1132_v36, %v7324_v22  ;;  %v2559_v6 = vor.u32 %v2558_v59, %v7327_v20  ;;  %v5742_v36 = vld [vmem:[%s6600_s16 + $0xb4] sm:$0xf] }
 0x123   : > { %v2752_v17 = vpop.f32.mrf.mxu0  ;;  %v5521_v57 = vrot.slane %v1434_v41, 9  ;;  %v2562_v46 = vshll.u32 %v5741_v29, 16  ;;  %v1124_v52 = vrot.slane %v1123_v40, 4  ;;  %v2550_v34 = vrot.slane %v2549_v2, 4 }
 0x124   : > { %v1134_v35 = vrot.slane %v1133_v32, 4  ;;  %v2560_v4 = vrot.slane %v2559_v6, 4  ;;  %v7343_v23 = vadd.f32 %v7294_v15, %v2139_v49  ;;  %v1602_v59 = vsel %vm6744_vm5, %v1600_v54, %v1601_v14  ;;  %v6351_v15 = vld [vmem:[%s8246_s1 + $0x1c0] sm:$0xff] }
 0x125   : > { %v1599_v55 = vsel %vm6744_vm5, %v5521_v57, %v1598_v51  ;;  %v2564_v41 = vrot.slane %v2562_v46, 5  ;;  %v1141_v29 = vshrl.u32 %v778_v11, 16  ;;  %v1154_v51 = vshrl.u32 %v7339_v1, 16  ;;  %4156 = vmatpush.bf16.msra.mxu3 %v6351_v15 }
 0x126   : > { %v1129_v32 = vsel %vm6739_vm4, %v1124_v52, %v7324_v22  ;;  %v1644_v57 = vunpack.c.l.b16 %v1602_v59  ;;  %v2555_v54 = vsel %vm6739_vm4, %v2550_v34, %v7327_v20  ;;  %v6359_v20 = vld [vmem:[%s8246_s1 + $0x200] sm:$0xff]  ;;  %v780_v34 = vld [vmem:[%s6600_s16 + $0xb0] sm:$0x1] }
 0x127   : > { %v1755_v12 = vpop.f32.mrf.mxu2  ;;  %v2565_v22 = vsel %vm6739_vm4, %v2560_v4, %v2564_v41  ;;  %v1143_v14 = vrot.slane %v1141_v29, 4  ;;  %v1214_v59 = vunpack.c.l.b16 %v1129_v32  ;;  %v1435_v29 = vld [vmem:[%s6600_s16 + $0xa8] sm:$0xe]  ;;  %4582 = vmatpush.bf16.msra.mxu0 %v6359_v20 }
 0x128   : > { %v1825_v0 = vadd.f32 %v1755_v12, %v1396_v50  ;;  %v2070_v38 = vpop.f32.mrf.mxu3  ;;  %v1138_v50 = vrot.slane %v1136_v26, 5  ;;  %v5743_v12 = vld [vmem:[%s6600_s16 + $0xb8] sm:$0xf]  ;;  %v5522_v32 = vrot.slane %v1435_v29, 9 }
 0x129   : > { %v1329_v44 = vpop.f32.mrf.mxu1  ;;  %v2576_v6 = vshll.u32 %v5743_v12, 16 }
 0x12a   : > { %v2140_v60 = vadd.f32 %v2070_v38, %v1825_v0  ;;  %v1397_v49 = vadd.f32 %v1329_v44, %v6916_v58  ;;  %v1139_v26 = vsel %vm6739_vm4, %v1134_v35, %v1138_v50  ;;  %v2567_v0 = vshrl.u32 %v5742_v36, 16  ;;  %v6319_v50 = vld [vmem:[%s8246_s1 + $0x140] sm:$0xff] }
 0x12b   : > { %v7335_v62 = vpop.f32.mrf.mxu0  ;;  %v2570_v38 = vshll.u32 %v5742_v36, 16  ;;  %v1643_v58 = vunpack.c.l.b16 %v1599_v55  ;;  %v2580_v44 = vshrl.u32 %v5743_v12, 16  ;;  %v1156_v35 = vrot.slane %v1154_v51, 4  ;;  %3159 = vmatpush.bf16.msra.mxu1 %v6319_v50 }
 0x12c   : > { %1368 = vmatmul.bf16.gmra.mxu1 %v1232_v10  ;;  %1797 = vmatmul.bf16.gmra.mxu2 %v1661_v9  ;;  %v7345_v18 = vadd.f32 %v2752_v17, %v2140_v60  ;;  %v6343_v9 = vld [vmem:[%s8246_s1 + $0x180] sm:$0xff]  ;;  %v1144_v17 = vshll.u32 %v778_v11, 16  ;;  %v1150_v10 = vshll.u32 %v7339_v1, 16  ;;  %v1605_v36 = vrot.slane %v7339_v1, 5 }
 0x12d   : > { %2112 = vmatmul.bf16.gmra.mxu3 %v6299_v7  ;;  %3474 = vmatpush.bf16.msra.mxu2 %v6343_v9  ;;  %v2569_v4 = vrot.slane %v2567_v0, 4  ;;  %v2572_v55 = vrot.slane %v2570_v38, 5  ;;  %v1215_v41 = vunpack.c.l.b16 %v1139_v26  ;;  %v7382_v9 = vrot.slane %v2576_v6, 5 }
 0x12e   : > { %8262 = vst [vmem:[#allocation10_spill] sm:$0xff] %v7345_v18  ;;  %2794 = vmatmul.bf16.gmra.mxu0 %v2658_v5  ;;  %v1146_v11 = vrot.slane %v1144_v17, 5  ;;  %v7371_v52 = vrot.slane %v1150_v10, 5  ;;  %v2582_v12 = vrot.slane %v2580_v44, 4  ;;  %v1662_v15 = vpack.c.b16 %v1644_v57, %v1643_v58  ;;  %v5744_v10 = vld [vmem:[%s6600_s16 + $0xbc] sm:$0x1] }
 0x12f   : > { %v1758_v40 = vpop.f32.mrf.mxu2  ;;  %v2641_v17 = vunpack.c.l.b16 %v2565_v22  ;;  %v1160_v0 = vshll.u32 %v780_v34, 16  ;;  %v1607_v26 = vrot.slane %v1605_v36, 4  ;;  %v1233_v50 = vpack.c.b16 %v1215_v41, %v1214_v59  ;;  %v6300_v22 = vld [vmem:[%s6600_s16 + $0xa8] sm:$0xff] }
 0x130   : > { %v1826_v5 = vadd.f32 %v1758_v40, %v1397_v49  ;;  %v2073_v2 = vpop.f32.mrf.mxu3  ;;  %v2640_v49 = vunpack.c.l.b16 %v2555_v54  ;;  %v1147_v40 = vor.u32 %v1146_v11, %v1143_v14  ;;  %v1157_v1 = vor.u32 %v1156_v35, %v7371_v52 }
 0x131   : > { %v1331_v7 = vpop.f32.mrf.mxu1  ;;  %v2583_v58 = vor.u32 %v2582_v12, %v7382_v9  ;;  %v2586_v57 = vshll.u32 %v5744_v10, 16  ;;  %v1162_v14 = vrot.slane %v1160_v0, 5  ;;  %v1606_v35 = vsel %vm6744_vm5, %v5522_v32, %v1605_v36  ;;  %v781_v12 = vld [vmem:[%s6600_s16 + $0xb4] sm:$0xf]  ;;  %v6458_v36 = vld [vmem:[%s6600_s16 + $0x10] sm:$0xf] }
 0x132   : > { %v2141_v46 = vadd.f32 %v2073_v2, %v1826_v5  ;;  %v1398_v51 = vadd.f32 %v1331_v7, %v6952_v28  ;;  %v1608_v5 = vrot.slane %v780_v34, 5  ;;  %v2573_v2 = vor.u32 %v2572_v55, %v2569_v4 }
 0x133   : > { %v2757_v60 = vpop.f32.mrf.mxu0  ;;  %v2659_v20 = vpack.c.b16 %v2641_v17, %v2640_v49  ;;  %v1148_v7 = vrot.slane %v1147_v40, 4  ;;  %v1158_v11 = vrot.slane %v1157_v1, 4  ;;  %v2584_v55 = vrot.slane %v2583_v58, 4  ;;  %v6459_v17 = vld [vmem:[%s6600_s16 + $0x14] sm:$0x1] }
 0x134   : > { %v1609_v34 = vsel %vm6744_vm5, %v1607_v26, %v1608_v5  ;;  %v2574_v4 = vrot.slane %v2573_v2, 4  ;;  %v2588_v59 = vrot.slane %v2586_v57, 5  ;;  %v7394_v41 = vadd.f32 %v7335_v62, %v2141_v46  ;;  %v7406_v40 = vld [vmem:[%s6600_s16 + $0xb8] sm:$0xf]  ;;  %v5745_v62 = vld [vmem:[%s6600_s16 + $0xc0] sm:$0xf] }
 0x135   : > { %v2930_v49 = vrot.slane %v6458_v36, 5  ;;  %v2933_v10 = vrot.slane %v6459_v17, 5  ;;  %v1646_v1 = vunpack.c.l.b16 %v1609_v34  ;;  %v1168_v5 = vshll.u32 %v781_v12, 16 }
 0x136   : > { %v2579_v0 = vsel %vm6739_vm4, %v2574_v4, %v7382_v9  ;;  %v2589_v26 = vsel %vm6739_vm4, %v2584_v55, %v2588_v59  ;;  %v2594_v58 = vshll.u32 %v5745_v62, 16  ;;  %v7420_v4 = vld [vmem:[%s6600_s16 + $0xbc] sm:$0x1] }
 0x137   : > { %v1760_v38 = vpop.f32.mrf.mxu2  ;;  %v2932_v57 = vrot.slane %v2930_v49, 4  ;;  %v1170_v59 = vrot.slane %v1168_v5, 5 }
 0x138   : > { %v1827_v6 = vadd.f32 %v1760_v38, %v1398_v51  ;;  %v2075_v44 = vpop.f32.mrf.mxu3  ;;  %v5746_v38 = vld [vmem:[%s6600_s16 + $0xc4] sm:$0xf] }
 0x139   : > { %v1334_v54 = vpop.f32.mrf.mxu1  ;;  %v2600_v9 = vshll.u32 %v5746_v38, 16 }
 0x13a   : > { %v2142_v18 = vadd.f32 %v2075_v44, %v1827_v6  ;;  %v1399_v51 = vadd.f32 %v1334_v54, %v6975_v63  ;;  %v1174_v6 = vshll.u32 %v7406_v40, 16  ;;  %v1178_v44 = vshrl.u32 %v7406_v40, 16 }
 0x13b   : > { %v2760_v28 = vpop.f32.mrf.mxu0 }
 0x13c   : > { %1373 = vmatmul.bf16.gmra.mxu1 %v1233_v50  ;;  %1802 = vmatmul.bf16.gmra.mxu2 %v1662_v15  ;;  %v7396_v29 = vadd.f32 %v2757_v60, %v2142_v18  ;;  %v1153_v15 = vsel %vm6739_vm4, %v1148_v7, %v7371_v52  ;;  %v1163_v18 = vsel %vm6739_vm4, %v1158_v11, %v1162_v14  ;;  %v1645_v60 = vunpack.c.l.b16 %v1606_v35 }
 0x13d   : > { %2117 = vmatmul.bf16.gmra.mxu3 %v6300_v22  ;;  %v1165_v52 = vshrl.u32 %v781_v12, 16  ;;  %v2591_v50 = vshrl.u32 %v5745_v62, 16  ;;  %v1216_v7 = vunpack.c.l.b16 %v1153_v15  ;;  %v1217_v14 = vunpack.c.l.b16 %v1163_v18  ;;  %v1436_v15 = vld [vmem:[%s6600_s16 + $0xb4] sm:$0xe] }
 0x13e   : > { %2799 = vmatmul.bf16.gmra.mxu0 %v2659_v20  ;;  %v2604_v20 = vshrl.u32 %v5746_v38, 16  ;;  %v2642_v11 = vunpack.c.l.b16 %v2579_v0  ;;  %v2643_v35 = vunpack.c.l.b16 %v2589_v26  ;;  %v1663_v34 = vpack.c.b16 %v1646_v1, %v1645_v60 }
 0x13f   : > { %v1763_v46 = vpop.f32.mrf.mxu2  ;;  %v1167_v55 = vrot.slane %v1165_v52, 4  ;;  %v7424_v36 = vrot.slane %v1174_v6, 5  ;;  %v1180_v17 = vrot.slane %v1178_v44, 4  ;;  %v2596_v62 = vrot.slane %v2594_v58, 5  ;;  %v5747_v52 = vld [vmem:[%s6600_s16 + $0xc8] sm:$0x1] }
 0x140   : > { %v1828_v32 = vadd.f32 %v1763_v46, %v1399_v51  ;;  %v2078_v63 = vpop.f32.mrf.mxu3  ;;  %v2593_v51 = vrot.slane %v2591_v50, 4  ;;  %v5796_v46 = vld [vmem:[%s6600_s16 + $0xc] sm:$0xe]  ;;  %v7429_v18 = vrot.slane %v2600_v9, 5  ;;  %v2606_v60 = vrot.slane %v2604_v20, 4  ;;  %v6301_v58 = vld [vmem:[%s6600_s16 + $0xb4] sm:$0xff] }
 0x141   : > { %v1336_v2 = vpop.f32.mrf.mxu1  ;;  %v5828_v1 = vrot.slane %v5796_v46, 9  ;;  %v1612_v26 = vrot.slane %v7406_v40, 5  ;;  %v1171_v44 = vor.u32 %v1170_v59, %v1167_v55  ;;  %v5523_v9 = vrot.slane %v1436_v15, 9  ;;  %v7445_v46 = vld [vmem:[%s6600_s16 + $0x1c] sm:$0xf] }
 0x142   : > { %v2143_v54 = vadd.f32 %v2078_v63, %v1828_v32  ;;  %v1400_v38 = vadd.f32 %v1336_v2, %v7000_v37  ;;  %v1234_v32 = vpack.c.b16 %v1217_v14, %v1216_v7  ;;  %v2660_v63 = vpack.c.b16 %v2643_v35, %v2642_v11 }
 0x143   : > { %v2762_v22 = vpop.f32.mrf.mxu0  ;;  %v2931_v37 = vsel %vm6744_vm5, %v5828_v1, %v2930_v49  ;;  %v2934_v2 = vsel %vm6744_vm5, %v2932_v57, %v2933_v10  ;;  %v2597_v11 = vor.u32 %v2596_v62, %v2593_v51  ;;  %v2607_v35 = vor.u32 %v2606_v60, %v7429_v18  ;;  %v6020_v57 = vld [vmem:[%s6600_s16 + $0x18] sm:$0xf] }
 0x144   : > { %v7422_v12 = vadd.f32 %v2760_v28, %v2143_v54  ;;  %v1184_v28 = vshll.u32 %v7420_v4, 16  ;;  %v1181_v54 = vor.u32 %v1180_v17, %v7424_v36  ;;  %v3040_v20 = vunpack.c.l.b16 %v2931_v37 }
 0x145   : > { %v3041_v7 = vunpack.c.l.b16 %v2934_v2  ;;  %v2610_v55 = vshll.u32 %v5747_v52, 16  ;;  %v1614_v10 = vrot.slane %v1612_v26, 4  ;;  %v1172_v17 = vrot.slane %v1171_v44, 4 }
 0x146   : > { %v1186_v49 = vrot.slane %v1184_v28, 5  ;;  %v1182_v15 = vrot.slane %v1181_v54, 4  ;;  %v1613_v51 = vsel %vm6744_vm5, %v5523_v9, %v1612_v26  ;;  %v1615_v62 = vrot.slane %v7420_v4, 5 }
 0x147   : > { %v1765_v0 = vpop.f32.mrf.mxu2  ;;  %v7441_v59 = vpack.c.b16 %v3041_v7, %v3040_v20  ;;  %v2598_v1 = vrot.slane %v2597_v11, 4  ;;  %v3654_v28 = vshrl.u32 %v6020_v57, 16  ;;  %v3657_v52 = vshll.u32 %v6020_v57, 16 }
 0x148   : > { %v1829_v5 = vadd.f32 %v1765_v0, %v1400_v38  ;;  %v2080_v6 = vpop.f32.mrf.mxu3  ;;  %v2612_v0 = vrot.slane %v2610_v55, 5  ;;  %v1177_v4 = vsel %vm6739_vm4, %v1172_v17, %v7424_v36  ;;  %v1616_v26 = vsel %vm6744_vm5, %v1614_v10, %v1615_v62  ;;  %v6022_v55 = vld [vmem:[%s6600_s16 + $0x20] sm:$0x1] }
 0x149   : > { %v1339_v50 = vpop.f32.mrf.mxu1  ;;  %v3656_v9 = vrot.slane %v3654_v28, 4  ;;  %v3659_v20 = vrot.slane %v3657_v52, 5  ;;  %v3673_v62 = vshll.u32 %v6022_v55, 16  ;;  %v6302_v52 = vld [vmem:[%s6600_s16 + $0xc0] sm:$0xff] }
 0x14a   : > { %v2144_v40 = vadd.f32 %v2080_v6, %v1829_v5  ;;  %v1401_v60 = vadd.f32 %v1339_v50, %v7025_v8  ;;  %v3667_v5 = vshrl.u32 %v7445_v46, 16  ;;  %v1187_v8 = vsel %vm6739_vm4, %v1182_v15, %v1186_v49 }
 0x14b   : > { %v2765_v14 = vpop.f32.mrf.mxu0  ;;  %v1647_v50 = vunpack.c.l.b16 %v1613_v51  ;;  %v1219_v11 = vunpack.c.l.b16 %v1187_v8  ;;  %v3660_v15 = vor.u32 %v3659_v20, %v3656_v9 }
 0x14c   : > { %1378 = vmatmul.bf16.gmra.mxu1 %v1234_v32  ;;  %1807 = vmatmul.bf16.gmra.mxu2 %v1663_v34  ;;  %v7447_v38 = vadd.f32 %v2762_v22, %v2144_v40  ;;  %v2608_v34 = vrot.slane %v2607_v35, 4  ;;  %v3663_v22 = vshll.u32 %v7445_v46, 16  ;;  %v3669_v36 = vrot.slane %v3667_v5, 4 }
 0x14d   : > { %2122 = vmatmul.bf16.gmra.mxu3 %v6301_v58  ;;  %v2603_v58 = vsel %vm6739_vm4, %v2598_v1, %v7429_v18  ;;  %v1218_v40 = vunpack.c.l.b16 %v1177_v4  ;;  %v1648_v35 = vunpack.c.l.b16 %v1616_v26  ;;  %v4356_v26 = vrot.slane %v6022_v55, 5 }
 0x14e   : > { %2804 = vmatmul.bf16.gmra.mxu0 %v2660_v63  ;;  %v2613_v54 = vsel %vm6739_vm4, %v2608_v34, %v2612_v0  ;;  %v3665_v7 = vrot.slane %v3663_v22, 5  ;;  %v2644_v10 = vunpack.c.l.b16 %v2603_v58  ;;  %v7479_v58 = vld [vmem:[%s6600_s16 + $0x28] sm:$0xf] }
 0x14f   : > { %v1768_v32 = vpop.f32.mrf.mxu2  ;;  %v2645_v57 = vunpack.c.l.b16 %v2613_v54  ;;  %v1235_v34 = vpack.c.b16 %v1219_v11, %v1218_v40  ;;  %v1664_v0 = vpack.c.b16 %v1648_v35, %v1647_v50  ;;  %v6023_v50 = vld [vmem:[%s6600_s16 + $0x24] sm:$0xf] }
 0x150   : > { %v1830_v63 = vadd.f32 %v1768_v32, %v1401_v60  ;;  %v2083_v6 = vpop.f32.mrf.mxu3  ;;  %v3670_v51 = vor.u32 %v3669_v36, %v3665_v7  ;;  %v4353_v32 = vrot.slane %v7445_v46, 5  ;;  %v3681_v55 = vshll.u32 %v6023_v50, 16 }
 0x151   : > { %v1341_v44 = vpop.f32.mrf.mxu1  ;;  %v2661_v22 = vpack.c.b16 %v2645_v57, %v2644_v10  ;;  %v3687_v10 = vshll.u32 %v7479_v58, 16  ;;  %v3691_v57 = vshrl.u32 %v7479_v58, 16 }
 0x152   : > { %v2145_v37 = vadd.f32 %v2083_v6, %v1830_v63  ;;  %v1402_v17 = vadd.f32 %v1341_v44, %v7059_v61  ;;  %v3661_v6 = vrot.slane %v3660_v15, 4  ;;  %v3671_v61 = vrot.slane %v3670_v51, 4 }
 0x153   : > { %v2767_v2 = vpop.f32.mrf.mxu0  ;;  %v3675_v44 = vrot.slane %v3673_v62, 5  ;;  %v4355_v8 = vrot.slane %v4353_v32, 4 }
 0x154   : > { %v7468_v49 = vadd.f32 %v2765_v14, %v2145_v37  ;;  %v6116_v14 = vld [vmem:[%s6600_s16 + $0x18] sm:$0xe]  ;;  %v3666_v9 = vsel %vm6739_vm4, %v3661_v6, %v3665_v7 }
 0x155   : > { %v6148_v4 = vrot.slane %v6116_v14, 9  ;;  %v3676_v40 = vsel %vm6739_vm4, %v3671_v61, %v3675_v44  ;;  %v4357_v11 = vsel %vm6744_vm5, %v4355_v8, %v4356_v26  ;;  %v6327_v6 = vld [vmem:[%s6600_s16 + $0x18] sm:$0xff] }
 0x156   : > { %v4038_v15 = vunpack.c.l.b16 %v3676_v40  ;;  %v4464_v62 = vunpack.c.l.b16 %v4357_v11  ;;  %v6460_v44 = vld [vmem:[%s6600_s16 + $0x1c] sm:$0xf]  ;;  %v5797_v26 = vld [vmem:[%s6600_s16 + $0x18] sm:$0xe]  ;;  %v6026_v11 = vld [vmem:[%s6600_s16 + $0x30] sm:$0xf] }
 0x157   : > { %v1770_v18 = vpop.f32.mrf.mxu2  ;;  %v5829_v40 = vrot.slane %v5797_v26, 9 }
 0x158   : > { %v1831_v60 = vadd.f32 %v1770_v18, %v1402_v17  ;;  %v2085_v1 = vpop.f32.mrf.mxu3  ;;  %v4037_v18 = vunpack.c.l.b16 %v3666_v9 }
 0x159   : > { %v1344_v28 = vpop.f32.mrf.mxu1 }
 0x15a   : > { %v2146_v5 = vadd.f32 %v2085_v1, %v1831_v60  ;;  %v1403_v46 = vadd.f32 %v1344_v28, %v7087_v47  ;;  %v3678_v47 = vshrl.u32 %v6023_v50, 16  ;;  %v4069_v61 = vpack.c.b16 %v4038_v15, %v4037_v18 }
 0x15b   : > { %v2770_v63 = vpop.f32.mrf.mxu0 }
 0x15c   : > { %1383 = vmatmul.bf16.gmra.mxu1 %v1235_v34  ;;  %1812 = vmatmul.bf16.gmra.mxu2 %v1664_v0  ;;  %v7474_v37 = vadd.f32 %v2767_v2, %v2146_v5  ;;  %v4354_v2 = vsel %vm6744_vm5, %v6148_v4, %v4353_v32  ;;  %v3680_v1 = vrot.slane %v3678_v47, 4  ;;  %v3683_v34 = vrot.slane %v3681_v55, 5  ;;  %v6461_v55 = vld [vmem:[%s6600_s16 + $0x20] sm:$0x1] }
 0x15d   : > { %2127 = vmatmul.bf16.gmra.mxu3 %v6302_v52  ;;  %v4463_v51 = vunpack.c.l.b16 %v4354_v2  ;;  %v7493_v0 = vrot.slane %v3687_v10, 5  ;;  %v3693_v32 = vrot.slane %v3691_v57, 4  ;;  %v6025_v52 = vld [vmem:[%s6600_s16 + $0x2c] sm:$0x1]  ;;  %v2937_v4 = vrot.slane %v6460_v44, 5 }
 0x15e   : > { %2809 = vmatmul.bf16.gmra.mxu0 %v2661_v22  ;;  %v2940_v10 = vrot.slane %v6461_v55, 5 }
 0x15f   : > { %v1773_v54 = vpop.f32.mrf.mxu2  ;;  %v4495_v8 = vpack.c.b16 %v4464_v62, %v4463_v51  ;;  %v3694_v50 = vor.u32 %v3693_v32, %v7493_v0  ;;  %v2939_v2 = vrot.slane %v2937_v4, 4 }
 0x160   : > { %v1832_v20 = vadd.f32 %v1773_v54, %v1403_v46  ;;  %v2088_v36 = vpop.f32.mrf.mxu3  ;;  %v3684_v46 = vor.u32 %v3683_v34, %v3680_v1  ;;  %v3697_v54 = vshll.u32 %v6025_v52, 16  ;;  %v3702_v1 = vshrl.u32 %v6026_v11, 16 }
 0x161   : > { %v1346_v35 = vpop.f32.mrf.mxu1  ;;  %v3705_v34 = vshll.u32 %v6026_v11, 16 }
 0x162   : > { %v2147_v7 = vadd.f32 %v2088_v36, %v1832_v20  ;;  %v1404_v28 = vadd.f32 %v1346_v35, %v7114_v45  ;;  %v4360_v20 = vrot.slane %v7479_v58, 5  ;;  %v6117_v36 = vld [vmem:[%s6600_s16 + $0x24] sm:$0xe]  ;;  %v7506_v35 = vld [vmem:[%s6600_s16 + $0x34] sm:$0xf]  ;;  %v3685_v57 = vrot.slane %v3684_v46, 4 }
 0x163   : > { %v2772_v17 = vpop.f32.mrf.mxu0  ;;  %v3699_v18 = vrot.slane %v3697_v54, 5  ;;  %v6149_v15 = vrot.slane %v6117_v36, 9  ;;  %v3711_v32 = vshll.u32 %v7506_v35, 16  ;;  %v3707_v26 = vrot.slane %v3705_v34, 5 }
 0x164   : > { %v7491_v60 = vadd.f32 %v2770_v63, %v2147_v7  ;;  %v3695_v7 = vrot.slane %v3694_v50, 4  ;;  %v4362_v51 = vrot.slane %v4360_v20, 4  ;;  %v4367_v34 = vrot.slane %v7506_v35, 5 }
 0x165   : > { %v7527_v46 = vrot.slane %v3711_v32, 5 }
 0x166   : > { %v3700_v44 = vsel %vm6739_vm4, %v3695_v7, %v3699_v18  ;;  %v5798_v18 = vld [vmem:[%s6600_s16 + $0x24] sm:$0xe] }
 0x167   : > { %v1775_v22 = vpop.f32.mrf.mxu2 }
 0x168   : > { %v1833_v14 = vadd.f32 %v1775_v22, %v1404_v28  ;;  %v2090_v5 = vpop.f32.mrf.mxu3 }
 0x169   : > { %v1349_v63 = vpop.f32.mrf.mxu1 }
 0x16a   : > { %v2148_v45 = vadd.f32 %v2090_v5, %v1833_v14  ;;  %v1405_v58 = vadd.f32 %v1349_v63, %v6936_v16  ;;  %v2938_v5 = vsel %vm6744_vm5, %v5829_v40, %v2937_v4  ;;  %v2941_v16 = vsel %vm6744_vm5, %v2939_v2, %v2940_v10  ;;  %v6462_v10 = vld [vmem:[%s6600_s16 + $0x28] sm:$0xf] }
 0x16b   : > { %v2775_v9 = vpop.f32.mrf.mxu0  ;;  %v4361_v63 = vsel %vm6744_vm5, %v6149_v15, %v4360_v20  ;;  %v3704_v4 = vrot.slane %v3702_v1, 4  ;;  %v3042_v54 = vunpack.c.l.b16 %v2938_v5  ;;  %v4040_v2 = vunpack.c.l.b16 %v3700_v44  ;;  %v6328_v1 = vld [vmem:[%s6600_s16 + $0x24] sm:$0xff] }
 0x16c   : > { %3160 = vmatmul.bf16.vlgmr.msra.gmra.mxu1 %v7441_v59  ;;  %3475 = vmatmul.bf16.vlgmr.msra.gmra.mxu2 %v6327_v6  ;;  %v7508_v47 = vadd.f32 %v2772_v17, %v2148_v45  ;;  %v4363_v59 = vrot.slane %v6025_v52, 5  ;;  %v3715_v17 = vshrl.u32 %v7506_v35, 16  ;;  %v3690_v52 = vsel %vm6739_vm4, %v3685_v57, %v7493_v0  ;;  %v6028_v45 = vld [vmem:[%s6600_s16 + $0x38] sm:$0x1] }
 0x16d   : > { %4157 = vmatmul.bf16.vlgmr.msra.gmra.mxu3 %v4069_v61  ;;  %v3043_v0 = vunpack.c.l.b16 %v2941_v16  ;;  %v4039_v40 = vunpack.c.l.b16 %v3690_v52  ;;  %v4465_v11 = vunpack.c.l.b16 %v4361_v63  ;;  %v2944_v57 = vrot.slane %v6462_v10, 5  ;;  %v6463_v52 = vld [vmem:[%s6600_s16 + $0x2c] sm:$0x1] }
 0x16e   : > { %4583 = vmatmul.bf16.vlgmr.msra.gmra.mxu0 %v4495_v8  ;;  %v4364_v8 = vsel %vm6744_vm5, %v4362_v51, %v4363_v59  ;;  %v3717_v50 = vrot.slane %v3715_v17, 4  ;;  %v3721_v51 = vshll.u32 %v6028_v45, 16  ;;  %v5830_v5 = vrot.slane %v5798_v18, 9 }
 0x16f   : > { %v1778_v62 = vpop.f32.mrf.mxu2  ;;  %v4466_v55 = vunpack.c.l.b16 %v4364_v8  ;;  %v4070_v17 = vpack.c.b16 %v4040_v2, %v4039_v40  ;;  %v2946_v16 = vrot.slane %v2944_v57, 4  ;;  %v4370_v35 = vrot.slane %v6028_v45, 5  ;;  %v7545_v40 = vld [vmem:[%s6600_s16 + $0x40] sm:$0xf] }
 0x170   : > { %v1834_v28 = vadd.f32 %v1778_v62, %v1405_v58  ;;  %v2093_v22 = vpop.f32.mrf.mxu3  ;;  %v3708_v58 = vor.u32 %v3707_v26, %v3704_v4  ;;  %v3718_v15 = vor.u32 %v3717_v50, %v7527_v46  ;;  %v3073_v62 = vpack.c.b16 %v3043_v0, %v3042_v54  ;;  %v6029_v0 = vld [vmem:[%s6600_s16 + $0x3c] sm:$0xf] }
 0x171   : > { %v1351_v14 = vpop.f32.mrf.mxu1  ;;  %v3723_v8 = vrot.slane %v3721_v51, 5  ;;  %v4369_v26 = vrot.slane %v4367_v34, 4  ;;  %v3739_v51 = vshrl.u32 %v7545_v40, 16 }
 0x172   : > { %v2149_v6 = vadd.f32 %v2093_v22, %v1834_v28  ;;  %v1406_v20 = vadd.f32 %v1351_v14, %v6969_v53  ;;  %v4496_v28 = vpack.c.b16 %v4466_v55, %v4465_v11  ;;  %v6118_v53 = vld [vmem:[%s6600_s16 + $0x30] sm:$0xe]  ;;  %v3709_v44 = vrot.slane %v3708_v58, 4 }
 0x173   : > { %v2777_v61 = vpop.f32.mrf.mxu0  ;;  %v3719_v63 = vrot.slane %v3718_v15, 4  ;;  %v6150_v4 = vrot.slane %v6118_v53, 9  ;;  %v2945_v11 = vsel %vm6744_vm5, %v5830_v5, %v2944_v57  ;;  %v3726_v57 = vshrl.u32 %v6029_v0, 16 }
 0x174   : > { %v7530_v36 = vadd.f32 %v2775_v9, %v2149_v6  ;;  %v2947_v6 = vrot.slane %v6463_v52, 5  ;;  %v3714_v45 = vsel %vm6739_vm4, %v3709_v44, %v7527_v46  ;;  %v3729_v58 = vshll.u32 %v6029_v0, 16 }
 0x175   : > { %v3724_v10 = vsel %vm6739_vm4, %v3719_v63, %v3723_v8  ;;  %v3735_v15 = vshll.u32 %v7545_v40, 16  ;;  %v3728_v53 = vrot.slane %v3726_v57, 4  ;;  %v6032_v57 = vld [vmem:[%s6600_s16 + $0x48] sm:$0xf] }
 0x176   : > { %v2948_v55 = vsel %vm6744_vm5, %v2946_v16, %v2947_v6  ;;  %v3741_v16 = vrot.slane %v3739_v51, 4  ;;  %v6031_v6 = vld [vmem:[%s6600_s16 + $0x44] sm:$0x1]  ;;  %v6465_v51 = vld [vmem:[%s6600_s16 + $0x38] sm:$0x1] }
 0x177   : > { %v1780_v7 = vpop.f32.mrf.mxu2  ;;  %v7564_v5 = vrot.slane %v3735_v15, 5 }
 0x178   : > { %v1835_v59 = vadd.f32 %v1780_v7, %v1406_v20  ;;  %v2095_v9 = vpop.f32.mrf.mxu3  ;;  %v4371_v7 = vsel %vm6744_vm5, %v4369_v26, %v4370_v35  ;;  %v6329_v26 = vld [vmem:[%s6600_s16 + $0x30] sm:$0xff] }
 0x179   : > { %v1354_v32 = vpop.f32.mrf.mxu1 }
 0x17a   : > { %v2150_v22 = vadd.f32 %v2095_v9, %v1835_v59  ;;  %v1407_v54 = vadd.f32 %v1354_v32, %v6989_v24  ;;  %v4368_v24 = vsel %vm6744_vm5, %v6150_v4, %v4367_v34  ;;  %v3044_v9 = vunpack.c.l.b16 %v2945_v11  ;;  %v5799_v11 = vld [vmem:[%s6600_s16 + $0x30] sm:$0xe] }
 0x17b   : > { %v2780_v14 = vpop.f32.mrf.mxu0  ;;  %v4042_v32 = vunpack.c.l.b16 %v3724_v10  ;;  %v4467_v34 = vunpack.c.l.b16 %v4368_v24  ;;  %v4374_v10 = vrot.slane %v7545_v40, 5  ;;  %v6119_v24 = vld [vmem:[%s6600_s16 + $0x3c] sm:$0xe] }
 0x17c   : > { %3165 = vmatmul.bf16.gmra.mxu1 %v3073_v62  ;;  %3480 = vmatmul.bf16.gmra.mxu2 %v6328_v1  ;;  %v7540_v50 = vadd.f32 %v2777_v61, %v2150_v22  ;;  %v3045_v62 = vunpack.c.l.b16 %v2948_v55  ;;  %v4041_v1 = vunpack.c.l.b16 %v3714_v45  ;;  %v3731_v22 = vrot.slane %v3729_v58, 5  ;;  %v7576_v58 = vld [vmem:[%s6600_s16 + $0x4c] sm:$0xf] }
 0x17d   : > { %4162 = vmatmul.bf16.gmra.mxu3 %v4070_v17  ;;  %v4468_v17 = vunpack.c.l.b16 %v4371_v7  ;;  %v3742_v45 = vor.u32 %v3741_v16, %v7564_v5  ;;  %v5831_v7 = vrot.slane %v5799_v11, 9  ;;  %v6151_v40 = vrot.slane %v6119_v24, 9 }
 0x17e   : > { %4588 = vmatmul.bf16.gmra.mxu0 %v4496_v28  ;;  %v3074_v4 = vpack.c.b16 %v3045_v62, %v3044_v9  ;;  %v4071_v35 = vpack.c.b16 %v4042_v32, %v4041_v1  ;;  %v3732_v55 = vor.u32 %v3731_v22, %v3728_v53  ;;  %v3750_v22 = vshrl.u32 %v6032_v57, 16 }
 0x17f   : > { %v1783_v2 = vpop.f32.mrf.mxu2  ;;  %v3743_v62 = vrot.slane %v3742_v45, 4  ;;  %v3753_v16 = vshll.u32 %v6032_v57, 16 }
 0x180   : > { %v1836_v61 = vadd.f32 %v1783_v2, %v1407_v54  ;;  %v2098_v20 = vpop.f32.mrf.mxu3  ;;  %v6464_v54 = vld [vmem:[%s6600_s16 + $0x34] sm:$0xf]  ;;  %v4497_v2 = vpack.c.b16 %v4468_v17, %v4467_v34  ;;  %v3733_v9 = vrot.slane %v3732_v55, 4  ;;  %v4376_v34 = vrot.slane %v4374_v10, 4 }
 0x181   : > { %v1356_v18 = vpop.f32.mrf.mxu1  ;;  %v4377_v17 = vrot.slane %v6031_v6, 5  ;;  %v3755_v11 = vrot.slane %v3753_v16, 5  ;;  %v4381_v16 = vrot.slane %v7576_v58, 5 }
 0x182   : > { %v2151_v46 = vadd.f32 %v2098_v20, %v1836_v61  ;;  %v1408_v52 = vadd.f32 %v1356_v18, %v7019_v3  ;;  %v3745_v3 = vshll.u32 %v6031_v6, 16  ;;  %v3738_v6 = vsel %vm6739_vm4, %v3733_v9, %v7564_v5 }
 0x183   : > { %v2782_v59 = vpop.f32.mrf.mxu0 }
 0x184   : > { %v7562_v28 = vadd.f32 %v2780_v14, %v2151_v46  ;;  %v2951_v14 = vrot.slane %v6464_v54, 5  ;;  %v2954_v46 = vrot.slane %v6465_v51, 5  ;;  %v3747_v1 = vrot.slane %v3745_v3, 5 }
 0x186   : > { %v2953_v18 = vrot.slane %v2951_v14, 4  ;;  %v3748_v54 = vsel %vm6739_vm4, %v3743_v62, %v3747_v1  ;;  %v5800_v1 = vld [vmem:[%s6600_s16 + $0x3c] sm:$0xe] }
 0x187   : > { %v1785_v44 = vpop.f32.mrf.mxu2 }
 0x188   : > { %v1837_v63 = vadd.f32 %v1785_v44, %v1408_v52  ;;  %v2100_v8 = vpop.f32.mrf.mxu3  ;;  %v3759_v52 = vshll.u32 %v7576_v58, 16 }
 0x189   : > { %v1359_v0 = vpop.f32.mrf.mxu1 }
 0x18a   : > { %v2152_v61 = vadd.f32 %v2100_v8, %v1837_v63  ;;  %v1409_v32 = vadd.f32 %v1359_v0, %v7046_v48  ;;  %v2955_v48 = vsel %vm6744_vm5, %v2953_v18, %v2954_v46  ;;  %v4375_v0 = vsel %vm6744_vm5, %v6151_v40, %v4374_v10  ;;  %v6466_v46 = vld [vmem:[%s6600_s16 + $0x40] sm:$0xf] }
 0x18b   : > { %v2785_v20 = vpop.f32.mrf.mxu0  ;;  %v7597_v55 = vrot.slane %v3759_v52, 5  ;;  %v3047_v5 = vunpack.c.l.b16 %v2955_v48  ;;  %v4044_v18 = vunpack.c.l.b16 %v3748_v54  ;;  %v4469_v57 = vunpack.c.l.b16 %v4375_v0 }
 0x18c   : > { %3170 = vmatmul.bf16.gmra.mxu1 %v3074_v4  ;;  %3485 = vmatmul.bf16.gmra.mxu2 %v6329_v26  ;;  %v7578_v15 = vadd.f32 %v2782_v59, %v2152_v61  ;;  %v3763_v59 = vshrl.u32 %v7576_v58, 16  ;;  %v2952_v4 = vsel %vm6744_vm5, %v5831_v7, %v2951_v14  ;;  %v3752_v14 = vrot.slane %v3750_v22, 4  ;;  %v6034_v61 = vld [vmem:[%s6600_s16 + $0x50] sm:$0x1]  ;;  %v6330_v22 = vld [vmem:[%s6600_s16 + $0x3c] sm:$0xff] }
 0x18d   : > { %4167 = vmatmul.bf16.gmra.mxu3 %v4071_v35  ;;  %v3046_v3 = vunpack.c.l.b16 %v2952_v4  ;;  %v4043_v7 = vunpack.c.l.b16 %v3738_v6  ;;  %v2958_v9 = vrot.slane %v6466_v46, 5  ;;  %v5832_v4 = vrot.slane %v5800_v1, 9  ;;  %v6467_v6 = vld [vmem:[%s6600_s16 + $0x44] sm:$0x1] }
 0x18e   : > { %4593 = vmatmul.bf16.gmra.mxu0 %v4497_v2  ;;  %v4378_v2 = vsel %vm6744_vm5, %v4376_v34, %v4377_v17  ;;  %v3765_v45 = vrot.slane %v3763_v59, 4  ;;  %v3769_v34 = vshll.u32 %v6034_v61, 16  ;;  %v4384_v58 = vrot.slane %v6034_v61, 5 }
 0x18f   : > { %v1788_v53 = vpop.f32.mrf.mxu2  ;;  %v4470_v51 = vunpack.c.l.b16 %v4378_v2  ;;  %v4072_v59 = vpack.c.b16 %v4044_v18, %v4043_v7  ;;  %v2960_v48 = vrot.slane %v2958_v9, 4  ;;  %v7615_v7 = vld [vmem:[%s6600_s16 + $0x58] sm:$0xf] }
 0x190   : > { %v1838_v44 = vadd.f32 %v1788_v53, %v1409_v32  ;;  %v2103_v63 = vpop.f32.mrf.mxu3  ;;  %v3756_v32 = vor.u32 %v3755_v11, %v3752_v14  ;;  %v3766_v40 = vor.u32 %v3765_v45, %v7597_v55  ;;  %v3075_v53 = vpack.c.b16 %v3047_v5, %v3046_v3  ;;  %v6035_v5 = vld [vmem:[%s6600_s16 + $0x54] sm:$0xf] }
 0x191   : > { %v1361_v8 = vpop.f32.mrf.mxu1  ;;  %v3771_v2 = vrot.slane %v3769_v34, 5  ;;  %v4383_v11 = vrot.slane %v4381_v16, 4  ;;  %v3787_v34 = vshrl.u32 %v7615_v7, 16 }
 0x192   : > { %v2153_v26 = vadd.f32 %v2103_v63, %v1838_v44  ;;  %v1410_v10 = vadd.f32 %v1361_v8, %v7081_v39  ;;  %v4498_v44 = vpack.c.b16 %v4470_v51, %v4469_v57  ;;  %v6120_v39 = vld [vmem:[%s6600_s16 + $0x48] sm:$0xe]  ;;  %v3757_v54 = vrot.slane %v3756_v32, 4 }
 0x193   : > { %v2787_v35 = vpop.f32.mrf.mxu0  ;;  %v3767_v0 = vrot.slane %v3766_v40, 4  ;;  %v6152_v14 = vrot.slane %v6120_v39, 9  ;;  %v2959_v57 = vsel %vm6744_vm5, %v5832_v4, %v2958_v9  ;;  %v3774_v9 = vshrl.u32 %v6035_v5, 16 }
 0x194   : > { %v7600_v24 = vadd.f32 %v2785_v20, %v2153_v26  ;;  %v2961_v26 = vrot.slane %v6467_v6, 5  ;;  %v3762_v61 = vsel %vm6739_vm4, %v3757_v54, %v7597_v55  ;;  %v3777_v32 = vshll.u32 %v6035_v5, 16 }
 0x195   : > { %v3772_v46 = vsel %vm6739_vm4, %v3767_v0, %v3771_v2  ;;  %v3783_v40 = vshll.u32 %v7615_v7, 16  ;;  %v3776_v39 = vrot.slane %v3774_v9, 4  ;;  %v6038_v9 = vld [vmem:[%s6600_s16 + $0x60] sm:$0xf] }
 0x196   : > { %v2962_v51 = vsel %vm6744_vm5, %v2960_v48, %v2961_v26  ;;  %v3789_v48 = vrot.slane %v3787_v34, 4  ;;  %v6037_v26 = vld [vmem:[%s6600_s16 + $0x5c] sm:$0x1]  ;;  %v6469_v34 = vld [vmem:[%s6600_s16 + $0x50] sm:$0x1] }
 0x197   : > { %v1790_v62 = vpop.f32.mrf.mxu2  ;;  %v7634_v4 = vrot.slane %v3783_v40, 5 }
 0x198   : > { %v1839_v17 = vadd.f32 %v1790_v62, %v1410_v10  ;;  %v2105_v20 = vpop.f32.mrf.mxu3  ;;  %v4385_v62 = vsel %vm6744_vm5, %v4383_v11, %v4384_v58  ;;  %v6331_v11 = vld [vmem:[%s6600_s16 + $0x48] sm:$0xff] }
 0x199   : > { %v1364_v52 = vpop.f32.mrf.mxu1 }
 0x19a   : > { %v2154_v63 = vadd.f32 %v2105_v20, %v1839_v17  ;;  %v1411_v3 = vadd.f32 %v1364_v52, %v7101_v25  ;;  %v4382_v25 = vsel %vm6744_vm5, %v6152_v14, %v4381_v16  ;;  %v3048_v20 = vunpack.c.l.b16 %v2959_v57  ;;  %v5801_v57 = vld [vmem:[%s6600_s16 + $0x48] sm:$0xe] }
 0x19b   : > { %v2790_v8 = vpop.f32.mrf.mxu0  ;;  %v4046_v52 = vunpack.c.l.b16 %v3772_v46  ;;  %v4471_v16 = vunpack.c.l.b16 %v4382_v25  ;;  %v4388_v46 = vrot.slane %v7615_v7, 5  ;;  %v6121_v25 = vld [vmem:[%s6600_s16 + $0x54] sm:$0xe] }
 0x19c   : > { %3175 = vmatmul.bf16.gmra.mxu1 %v3075_v53  ;;  %3490 = vmatmul.bf16.gmra.mxu2 %v6330_v22  ;;  %v7610_v45 = vadd.f32 %v2787_v35, %v2154_v63  ;;  %v3049_v53 = vunpack.c.l.b16 %v2962_v51  ;;  %v4045_v22 = vunpack.c.l.b16 %v3762_v61  ;;  %v3779_v63 = vrot.slane %v3777_v32, 5  ;;  %v7646_v32 = vld [vmem:[%s6600_s16 + $0x64] sm:$0xf] }
 0x19d   : > { %4172 = vmatmul.bf16.gmra.mxu3 %v4072_v59  ;;  %v4472_v59 = vunpack.c.l.b16 %v4385_v62  ;;  %v3790_v61 = vor.u32 %v3789_v48, %v7634_v4  ;;  %v5833_v62 = vrot.slane %v5801_v57, 9  ;;  %v6153_v7 = vrot.slane %v6121_v25, 9 }
 0x19e   : > { %4598 = vmatmul.bf16.gmra.mxu0 %v4498_v44  ;;  %v3076_v14 = vpack.c.b16 %v3049_v53, %v3048_v20  ;;  %v4073_v58 = vpack.c.b16 %v4046_v52, %v4045_v22  ;;  %v3780_v51 = vor.u32 %v3779_v63, %v3776_v39  ;;  %v3798_v63 = vshrl.u32 %v6038_v9, 16 }
 0x19f   : > { %v1793_v18 = vpop.f32.mrf.mxu2  ;;  %v3791_v53 = vrot.slane %v3790_v61, 4  ;;  %v3801_v48 = vshll.u32 %v6038_v9, 16 }
 0x1a0   : > { %v1840_v35 = vadd.f32 %v1793_v18, %v1411_v3  ;;  %v2108_v10 = vpop.f32.mrf.mxu3  ;;  %v6468_v3 = vld [vmem:[%s6600_s16 + $0x4c] sm:$0xf]  ;;  %v4499_v18 = vpack.c.b16 %v4472_v59, %v4471_v16  ;;  %v3781_v20 = vrot.slane %v3780_v51, 4  ;;  %v4390_v16 = vrot.slane %v4388_v46, 4 }
 0x1a1   : > { %v1366_v1 = vpop.f32.mrf.mxu1  ;;  %v4391_v59 = vrot.slane %v6037_v26, 5  ;;  %v3803_v57 = vrot.slane %v3801_v48, 5  ;;  %v4395_v48 = vrot.slane %v7646_v32, 5 }
 0x1a2   : > { %v2155_v55 = vadd.f32 %v2108_v10, %v1840_v35  ;;  %v1412_v6 = vadd.f32 %v1366_v1, %v7130_v19  ;;  %v3793_v19 = vshll.u32 %v6037_v26, 16  ;;  %v3786_v26 = vsel %vm6739_vm4, %v3781_v20, %v7634_v4 }
 0x1a3   : > { %v2792_v17 = vpop.f32.mrf.mxu0 }
 0x1a4   : > { %v7632_v44 = vadd.f32 %v2790_v8, %v2155_v55  ;;  %v2965_v8 = vrot.slane %v6468_v3, 5  ;;  %v2968_v55 = vrot.slane %v6469_v34, 5  ;;  %v3795_v22 = vrot.slane %v3793_v19, 5 }
 0x1a6   : > { %v2967_v1 = vrot.slane %v2965_v8, 4  ;;  %v3796_v3 = vsel %vm6739_vm4, %v3791_v53, %v3795_v22  ;;  %v5802_v22 = vld [vmem:[%s6600_s16 + $0x54] sm:$0xe] }
 0x1a7   : > { %v1795_v54 = vpop.f32.mrf.mxu2 }
 0x1a8   : > { %v1841_v0 = vadd.f32 %v1795_v54, %v1412_v6  ;;  %v2110_v2 = vpop.f32.mrf.mxu3  ;;  %v3807_v6 = vshll.u32 %v7646_v32, 16 }
 0x1a9   : > { %v1369_v5 = vpop.f32.mrf.mxu1 }
 0x1aa   : > { %v2156_v35 = vadd.f32 %v2110_v2, %v1841_v0  ;;  %v1413_v52 = vadd.f32 %v1369_v5, %v6945_v21  ;;  %v2969_v21 = vsel %vm6744_vm5, %v2967_v1, %v2968_v55  ;;  %v4389_v5 = vsel %vm6744_vm5, %v6153_v7, %v4388_v46  ;;  %v6470_v55 = vld [vmem:[%s6600_s16 + $0x58] sm:$0xf] }
 0x1ab   : > { %v2795_v10 = vpop.f32.mrf.mxu0  ;;  %v7667_v51 = vrot.slane %v3807_v6, 5  ;;  %v3051_v4 = vunpack.c.l.b16 %v2969_v21  ;;  %v4048_v1 = vunpack.c.l.b16 %v3796_v3  ;;  %v4473_v9 = vunpack.c.l.b16 %v4389_v5 }
 0x1ac   : > { %3180 = vmatmul.bf16.gmra.mxu1 %v3076_v14  ;;  %3495 = vmatmul.bf16.gmra.mxu2 %v6331_v11  ;;  %v7648_v40 = vadd.f32 %v2792_v17, %v2156_v35  ;;  %v3811_v17 = vshrl.u32 %v7646_v32, 16  ;;  %v2966_v14 = vsel %vm6744_vm5, %v5833_v62, %v2965_v8  ;;  %v3800_v8 = vrot.slane %v3798_v63, 4  ;;  %v6040_v35 = vld [vmem:[%s6600_s16 + $0x68] sm:$0x1]  ;;  %v6332_v63 = vld [vmem:[%s6600_s16 + $0x54] sm:$0xff] }
 0x1ad   : > { %4177 = vmatmul.bf16.gmra.mxu3 %v4073_v58  ;;  %v3050_v19 = vunpack.c.l.b16 %v2966_v14  ;;  %v4047_v62 = vunpack.c.l.b16 %v3786_v26  ;;  %v2972_v20 = vrot.slane %v6470_v55, 5  ;;  %v5834_v14 = vrot.slane %v5802_v22, 9  ;;  %v6471_v26 = vld [vmem:[%s6600_s16 + $0x5c] sm:$0x1] }
 0x1ae   : > { %4603 = vmatmul.bf16.gmra.mxu0 %v4499_v18  ;;  %v4392_v18 = vsel %vm6744_vm5, %v4390_v16, %v4391_v59  ;;  %v3813_v61 = vrot.slane %v3811_v17, 4  ;;  %v3817_v16 = vshll.u32 %v6040_v35, 16  ;;  %v4398_v32 = vrot.slane %v6040_v35, 5 }
 0x1af   : > { %v1798_v39 = vpop.f32.mrf.mxu2  ;;  %v4474_v34 = vunpack.c.l.b16 %v4392_v18  ;;  %v4074_v17 = vpack.c.b16 %v4048_v1, %v4047_v62  ;;  %v2974_v21 = vrot.slane %v2972_v20, 4  ;;  %v7685_v62 = vld [vmem:[%s6600_s16 + $0x70] sm:$0xf] }
 0x1b0   : > { %v1842_v54 = vadd.f32 %v1798_v39, %v1413_v52  ;;  %v2113_v0 = vpop.f32.mrf.mxu3  ;;  %v3804_v52 = vor.u32 %v3803_v57, %v3800_v8  ;;  %v3814_v7 = vor.u32 %v3813_v61, %v7667_v51  ;;  %v3077_v39 = vpack.c.b16 %v3051_v4, %v3050_v19  ;;  %v6041_v4 = vld [vmem:[%s6600_s16 + $0x6c] sm:$0xf] }
 0x1b1   : > { %v1371_v2 = vpop.f32.mrf.mxu1  ;;  %v3819_v18 = vrot.slane %v3817_v16, 5  ;;  %v4397_v57 = vrot.slane %v4395_v48, 4  ;;  %v3835_v16 = vshrl.u32 %v7685_v62, 16 }
 0x1b2   : > { %v2157_v11 = vadd.f32 %v2113_v0, %v1842_v54  ;;  %v1414_v46 = vadd.f32 %v1371_v2, %v6972_v56  ;;  %v4500_v54 = vpack.c.b16 %v4474_v34, %v4473_v9  ;;  %v6122_v56 = vld [vmem:[%s6600_s16 + $0x60] sm:$0xe]  ;;  %v3805_v3 = vrot.slane %v3804_v52, 4 }
 0x1b3   : > { %v2797_v58 = vpop.f32.mrf.mxu0  ;;  %v3815_v5 = vrot.slane %v3814_v7, 4  ;;  %v6154_v8 = vrot.slane %v6122_v56, 9  ;;  %v2973_v9 = vsel %vm6744_vm5, %v5834_v14, %v2972_v20  ;;  %v3822_v20 = vshrl.u32 %v6041_v4, 16 }
 0x1b4   : > { %v7670_v25 = vadd.f32 %v2795_v10, %v2157_v11  ;;  %v2975_v11 = vrot.slane %v6471_v26, 5  ;;  %v3810_v35 = vsel %vm6739_vm4, %v3805_v3, %v7667_v51  ;;  %v3825_v52 = vshll.u32 %v6041_v4, 16  ;;  %v8266_v26 = vld [vmem:[#allocation3_spill] sm:$0xff]  ;;  %v6043_v3 = vld [vmem:[%s6600_s16 + $0x74] sm:$0x1] }
 0x1b5   : > { %v3820_v55 = vsel %vm6739_vm4, %v3815_v5, %v3819_v18  ;;  %v3831_v7 = vshll.u32 %v7685_v62, 16  ;;  %v3824_v56 = vrot.slane %v3822_v20, 4  ;;  %v6472_v4 = vld [vmem:[%s6600_s16 + $0x64] sm:$0xf] }
 0x1b6   : > { %8263 = vst [vmem:[#allocation11_spill] sm:$0xff] %v7670_v25  ;;  %v2976_v34 = vsel %vm6744_vm5, %v2974_v21, %v2975_v11  ;;  %v3837_v21 = vrot.slane %v3835_v16, 4  ;;  %v7716_v16 = vld [vmem:[%s6600_s16 + $0x7c] sm:$0xf] }
 0x1b7   : > { %v1800_v53 = vpop.f32.mrf.mxu2  ;;  %v7704_v14 = vrot.slane %v3831_v7, 5  ;;  %v6044_v7 = vld [vmem:[%s6600_s16 + $0x78] sm:$0xf] }
 0x1b8   : > { %v1843_v59 = vadd.f32 %v1800_v53, %v1414_v46  ;;  %v2115_v10 = vpop.f32.mrf.mxu3  ;;  %v4399_v53 = vsel %vm6744_vm5, %v4397_v57, %v4398_v32  ;;  %v6333_v32 = vld [vmem:[%s6600_s16 + $0x60] sm:$0xff] }
 0x1b9   : > { %v1374_v6 = vpop.f32.mrf.mxu1 }
 0x1ba   : > { %v2158_v0 = vadd.f32 %v2115_v10, %v1843_v59  ;;  %v1415_v19 = vadd.f32 %v1374_v6, %v6993_v30  ;;  %v4396_v30 = vsel %vm6744_vm5, %v6154_v8, %v4395_v48  ;;  %v3052_v10 = vunpack.c.l.b16 %v2973_v9 }
 0x1bb   : > { %v2800_v2 = vpop.f32.mrf.mxu0  ;;  %v4050_v6 = vunpack.c.l.b16 %v3820_v55  ;;  %v4475_v48 = vunpack.c.l.b16 %v4396_v30 }
 0x1bc   : > { %3185 = vmatmul.bf16.gmra.mxu1 %v3077_v39  ;;  %3500 = vmatmul.bf16.gmra.mxu2 %v6332_v63  ;;  %v7680_v61 = vadd.f32 %v2797_v58, %v2158_v0  ;;  %v3053_v39 = vunpack.c.l.b16 %v2976_v34  ;;  %v4049_v63 = vunpack.c.l.b16 %v3810_v35  ;;  %v3827_v0 = vrot.slane %v3825_v52, 5  ;;  %v5803_v34 = vld [vmem:[%s6600_s16 + $0x60] sm:$0xe] }
 0x1bd   : > { %4182 = vmatmul.bf16.gmra.mxu3 %v4074_v17  ;;  %v4476_v17 = vunpack.c.l.b16 %v4399_v53  ;;  %v4402_v53 = vrot.slane %v7685_v62, 5  ;;  %v5835_v20 = vrot.slane %v5803_v34, 9 }
 0x1be   : > { %8264 = vst [vmem:[#allocation12_spill] sm:$0xff] %v7680_v61  ;;  %4608 = vmatmul.bf16.gmra.mxu0 %v4500_v54  ;;  %v3078_v57 = vpack.c.b16 %v3053_v39, %v3052_v10  ;;  %v3828_v35 = vor.u32 %v3827_v0, %v3824_v56  ;;  %v6473_v10 = vld [vmem:[%s6600_s16 + $0x68] sm:$0x1]  ;;  %v6126_v61 = vld [vmem:[%s6600_s16 + $0x90] sm:$0xe] }
 0x1bf   : > { %v1803_v1 = vpop.f32.mrf.mxu2  ;;  %v4501_v9 = vpack.c.b16 %v4476_v17, %v4475_v48  ;;  %v2982_v39 = vrot.slane %v6473_v10, 5  ;;  %v8268_v17 = vld [vmem:[#allocation4_spill] sm:$0xff]  ;;  %v4404_v0 = vrot.slane %v4402_v53, 4 }
 0x1c0   : > { %v1844_v58 = vadd.f32 %v1803_v1, %v1415_v19  ;;  %v2118_v46 = vpop.f32.mrf.mxu3  ;;  %v4075_v19 = vpack.c.b16 %v4050_v6, %v4049_v63  ;;  %v3829_v63 = vrot.slane %v3828_v35, 4 }
 0x1c1   : > { %v1376_v22 = vpop.f32.mrf.mxu1 }
 0x1c2   : > { %v2159_v51 = vadd.f32 %v2118_v46, %v1844_v58  ;;  %v1416_v11 = vadd.f32 %v1376_v22, %v8266_v26  ;;  %v3838_v58 = vor.u32 %v3837_v21, %v7704_v14  ;;  %v3841_v46 = vshll.u32 %v6043_v3, 16  ;;  %v6123_v22 = vld [vmem:[%s6600_s16 + $0x6c] sm:$0xe] }
 0x1c3   : > { %v2802_v59 = vpop.f32.mrf.mxu0  ;;  %v6155_v62 = vrot.slane %v6123_v22, 9  ;;  %v4405_v21 = vrot.slane %v6043_v3, 5  ;;  %v3834_v3 = vsel %vm6739_vm4, %v3829_v63, %v7704_v14 }
 0x1c4   : > { %v7702_v54 = vadd.f32 %v2800_v2, %v2159_v51  ;;  %v2979_v2 = vrot.slane %v6472_v4, 5  ;;  %v3839_v6 = vrot.slane %v3838_v58, 4  ;;  %v3843_v48 = vrot.slane %v3841_v46, 5 }
 0x1c5   : > { %v4403_v35 = vsel %vm6744_vm5, %v6155_v62, %v4402_v53  ;;  %v4406_v58 = vsel %vm6744_vm5, %v4404_v0, %v4405_v21  ;;  %v4051_v10 = vunpack.c.l.b16 %v3834_v3  ;;  %v6474_v62 = vld [vmem:[%s6600_s16 + $0x70] sm:$0xf] }
 0x1c6   : > { %8265 = vst [vmem:[#allocation13_spill] sm:$0xff] %v7702_v54  ;;  %v2981_v52 = vrot.slane %v2979_v2, 4  ;;  %v3844_v34 = vsel %vm6739_vm4, %v3839_v6, %v3843_v48  ;;  %v4477_v63 = vunpack.c.l.b16 %v4403_v35  ;;  %v4478_v53 = vunpack.c.l.b16 %v4406_v58  ;;  %v8270_v6 = vld [vmem:[#allocation5_spill] sm:$0xff] }
 0x1c7   : > { %v1805_v5 = vpop.f32.mrf.mxu2  ;;  %v2986_v0 = vrot.slane %v6474_v62, 5  ;;  %v6475_v35 = vld [vmem:[%s6600_s16 + $0x74] sm:$0x1] }
 0x1c8   : > { %v1845_v18 = vadd.f32 %v1805_v5, %v1416_v11  ;;  %v2120_v8 = vpop.f32.mrf.mxu3  ;;  %v3846_v11 = vshrl.u32 %v6044_v7, 16  ;;  %v3849_v5 = vshll.u32 %v6044_v7, 16  ;;  %v2983_v4 = vsel %vm6744_vm5, %v2981_v52, %v2982_v39  ;;  %v6046_v52 = vld [vmem:[%s6600_s16 + $0x80] sm:$0x1] }
 0x1c9   : > { %v1379_v1 = vpop.f32.mrf.mxu1  ;;  %v3055_v14 = vunpack.c.l.b16 %v2983_v4  ;;  %v4052_v39 = vunpack.c.l.b16 %v3844_v34  ;;  %v4502_v4 = vpack.c.b16 %v4478_v53, %v4477_v63  ;;  %v2989_v58 = vrot.slane %v6475_v35, 5  ;;  %v6047_v63 = vld [vmem:[%s6600_s16 + $0x84] sm:$0xf]  ;;  %v7755_v53 = vld [vmem:[%s6600_s16 + $0x88] sm:$0xf] }
 0x1ca   : > { %v2160_v55 = vadd.f32 %v2120_v8, %v1845_v18  ;;  %v1417_v56 = vadd.f32 %v1379_v1, %v8268_v17  ;;  %v3855_v18 = vshll.u32 %v7716_v16, 16  ;;  %v3851_v46 = vrot.slane %v3849_v5, 5 }
 0x1cb   : > { %v2805_v30 = vpop.f32.mrf.mxu0 }
 0x1cc   : > { %3190 = vmatmul.bf16.gmra.mxu1 %v3078_v57  ;;  %3505 = vmatmul.bf16.gmra.mxu2 %v6333_v32  ;;  %v7718_v51 = vadd.f32 %v2802_v59, %v2160_v55  ;;  %v3859_v59 = vshrl.u32 %v7716_v16, 16  ;;  %v7737_v55 = vrot.slane %v3855_v18, 5 }
 0x1cd   : > { %4187 = vmatmul.bf16.gmra.mxu3 %v4075_v19  ;;  %v2980_v19 = vsel %vm6744_vm5, %v5835_v20, %v2979_v2  ;;  %v3848_v2 = vrot.slane %v3846_v11, 4  ;;  %v3865_v11 = vshll.u32 %v6046_v52, 16 }
 0x1ce   : > { %8267 = vst [vmem:[#allocation3_spill] sm:$0xff] %v7718_v51  ;;  %4613 = vmatmul.bf16.gmra.mxu0 %v4501_v9  ;;  %v3861_v22 = vrot.slane %v3859_v59, 4  ;;  %v3054_v20 = vunpack.c.l.b16 %v2980_v19  ;;  %v6334_v59 = vld [vmem:[%s6600_s16 + $0x6c] sm:$0xff]  ;;  %v4076_v19 = vpack.c.b16 %v4052_v39, %v4051_v10  ;;  %v8272_v10 = vld [vmem:[#allocation6_spill] sm:$0xff] }
 0x1cf   : > { %v1808_v26 = vpop.f32.mrf.mxu2  ;;  %v3852_v21 = vor.u32 %v3851_v46, %v3848_v2  ;;  %v2988_v2 = vrot.slane %v2986_v0, 4 }
 0x1d0   : > { %v1846_v8 = vadd.f32 %v1808_v26, %v1417_v56  ;;  %v2123_v57 = vpop.f32.mrf.mxu3  ;;  %v5804_v56 = vld [vmem:[%s6600_s16 + $0x6c] sm:$0xe]  ;;  %v3862_v26 = vor.u32 %v3861_v22, %v7737_v55  ;;  %v3079_v18 = vpack.c.b16 %v3055_v14, %v3054_v20 }
 0x1d1   : > { %v1381_v32 = vpop.f32.mrf.mxu1  ;;  %v5836_v34 = vrot.slane %v5804_v56, 9  ;;  %v3853_v46 = vrot.slane %v3852_v21, 4  ;;  %v2990_v62 = vsel %vm6744_vm5, %v2988_v2, %v2989_v58 }
 0x1d2   : > { %v2161_v1 = vadd.f32 %v2123_v57, %v1846_v8  ;;  %v1418_v48 = vadd.f32 %v1381_v32, %v8270_v6  ;;  %v4409_v8 = vrot.slane %v7716_v16, 5  ;;  %v6124_v32 = vld [vmem:[%s6600_s16 + $0x78] sm:$0xe]  ;;  %v3863_v22 = vrot.slane %v3862_v26, 4 }
 0x1d3   : > { %v2807_v9 = vpop.f32.mrf.mxu0  ;;  %v3867_v6 = vrot.slane %v3865_v11, 5  ;;  %v6156_v20 = vrot.slane %v6124_v32, 9  ;;  %v4412_v16 = vrot.slane %v6046_v52, 5  ;;  %v2987_v56 = vsel %vm6744_vm5, %v5836_v34, %v2986_v0 }
 0x1d4   : > { %v7740_v7 = vadd.f32 %v2805_v30, %v2161_v1  ;;  %v4411_v14 = vrot.slane %v4409_v8, 4  ;;  %v3858_v52 = vsel %vm6739_vm4, %v3853_v46, %v7737_v55  ;;  %v3057_v32 = vunpack.c.l.b16 %v2990_v62  ;;  %v6196_v62 = vld [vmem:[%s7779_s13 + $0xc] sm:$0xff]  }
 0x1d5   : > { %v3868_v26 = vsel %vm6739_vm4, %v3863_v22, %v3867_v6  ;;  %v4410_v11 = vsel %vm6744_vm5, %v6156_v20, %v4409_v8  ;;  %v8274_v20 = vld [vmem:[#allocation7_spill] sm:$0xff] }
 0x1d6   : > { %8269 = vst [vmem:[#allocation4_spill] sm:$0xff] %v7740_v7  ;;  %v4054_v34 = vunpack.c.l.b16 %v3868_v26  ;;  %v4479_v8 = vunpack.c.l.b16 %v4410_v11  ;;  %v5805_v11 = vld [vmem:[%s6600_s16 + $0x78] sm:$0xe] }
 0x1d7   : > { %v1810_v17 = vpop.f32.mrf.mxu2 }
 0x1d8   : > { %v1847_v5 = vadd.f32 %v1810_v17, %v1418_v48  ;;  %v2125_v30 = vpop.f32.mrf.mxu3 }
 0x1d9   : > { %v1384_v57 = vpop.f32.mrf.mxu1 }
 0x1da   : > { %v2162_v3 = vadd.f32 %v2125_v30, %v1847_v5  ;;  %v1419_v39 = vadd.f32 %v1384_v57, %v8272_v10  ;;  %v4413_v5 = vsel %vm6744_vm5, %v4411_v14, %v4412_v16  ;;  %v3870_v30 = vshrl.u32 %v6047_v63, 16  ;;  %v6049_v16 = vld [vmem:[%s6600_s16 + $0x8c] sm:$0x1] }
 0x1db   : > { %v2810_v1 = vpop.f32.mrf.mxu0  ;;  %v3883_v57 = vshrl.u32 %v7755_v53, 16  ;;  %v4480_v35 = vunpack.c.l.b16 %v4413_v5 }
 0x1dc   : > { %3195 = vmatmul.bf16.gmra.mxu1 %v3079_v18  ;;  %3510 = vmatmul.bf16.gmra.mxu2 %v6334_v59  ;;  %v7750_v48 = vadd.f32 %v2807_v9, %v2162_v3  ;;  %v3873_v18 = vshll.u32 %v6047_v63, 16  ;;  %v3879_v59 = vshll.u32 %v7755_v53, 16  ;;  %v4053_v3 = vunpack.c.l.b16 %v3858_v52  ;;  %v6476_v52 = vld [vmem:[%s6600_s16 + $0x7c] sm:$0xf] }
 0x1dd   : > { %4192 = vmatmul.bf16.gmra.mxu3 %v4076_v19  ;;  %v3872_v2 = vrot.slane %v3870_v30, 4  ;;  %v3885_v6 = vrot.slane %v3883_v57, 4  ;;  %v4503_v26 = vpack.c.b16 %v4480_v35, %v4479_v8  ;;  %v4416_v57 = vrot.slane %v7755_v53, 5  ;;  %v7794_v8 = vld [vmem:[%s6600_s16 + $0x94] sm:$0xf]  ;;  %v8276_v53 = vld [vmem:[#allocation8_spill] sm:$0xff] }
 0x1de   : > { %8271 = vst [vmem:[#allocation5_spill] sm:$0xff] %v7750_v48  ;;  %4618 = vmatmul.bf16.gmra.mxu0 %v4502_v4  ;;  %v3056_v4 = vunpack.c.l.b16 %v2987_v56  ;;  %v3875_v46 = vrot.slane %v3873_v18, 5  ;;  %v7781_v22 = vrot.slane %v3879_v59, 5  ;;  %v4077_v56 = vpack.c.b16 %v4054_v34, %v4053_v3 }
 0x1df   : > { %v1813_v17 = vpop.f32.mrf.mxu2  ;;  %v5837_v3 = vrot.slane %v5805_v11, 9  ;;  %v4423_v25 = vrot.slane %v7794_v8, 5 }
 0x1e0   : > { %v1848_v9 = vadd.f32 %v1813_v17, %v1419_v39  ;;  %v2128_v21 = vpop.f32.mrf.mxu3  ;;  %v3080_v63 = vpack.c.b16 %v3057_v32, %v3056_v4  ;;  %v6335_v17 = vld [vmem:[%s6600_s16 + $0x78] sm:$0xff]  ;;  %v3876_v5 = vor.u32 %v3875_v46, %v3872_v2  ;;  %v3886_v30 = vor.u32 %v3885_v6, %v7781_v22  ;;  %v6125_v4 = vld [vmem:[%s6600_s16 + $0x84] sm:$0xe]  ;;  %v6477_v2 = vld [vmem:[%s6600_s16 + $0x80] sm:$0x1] }
 0x1e1   : > { %v1386_v0 = vpop.f32.mrf.mxu1  ;;  %v4885_v32 = vunpack.c.h.bf16 %v6196_v62  ;;  %v2996_v46 = vrot.slane %v6477_v2, 5 }
 0x1e2   : > { %v2163_v55 = vadd.f32 %v2128_v21, %v1848_v9  ;;  %v1420_v14 = vadd.f32 %v1386_v0, %v8274_v20  ;;  %v2993_v9 = vrot.slane %v6476_v52, 5  ;;  %v3889_v0 = vshll.u32 %v6049_v16, 16  ;;  %v6050_v20 = vld [vmem:[%s6600_s16 + $0x90] sm:$0xf] }
 0x1e3   : > { %v2812_v19 = vpop.f32.mrf.mxu0  ;;  %v3877_v6 = vrot.slane %v3876_v5, 4  ;;  %v3894_v52 = vshrl.u32 %v6050_v20, 16  ;;  %v3897_v11 = vshll.u32 %v6050_v20, 16  ;;  %v7802_v5 = vrot.slane %v4885_v32, 1 }
 0x1e4   : > { %v7772_v58 = vadd.f32 %v2810_v1, %v2163_v55  ;;  %v4884_v55 = vunpack.c.l.bf16 %v6196_v62  ;;  %v2995_v34 = vrot.slane %v2993_v9, 4 }
 0x1e6   : > { %8273 = vst [vmem:[#allocation6_spill] sm:$0xff] %v7772_v58  ;;  %v3903_v58 = vshll.u32 %v7794_v8, 16 }
 0x1e7   : > { %v1815_v10 = vpop.f32.mrf.mxu2 }
 0x1e8   : > { %v1849_v39 = vadd.f32 %v1815_v10, %v1420_v14  ;;  %v2130_v1 = vpop.f32.mrf.mxu3  ;;  %v3887_v14 = vrot.slane %v3886_v30, 4  ;;  %v3891_v10 = vrot.slane %v3889_v0, 5  ;;  %v6198_v0 = vld [vmem:[%s7779_s13 + $0x14] sm:$0x1] }
 0x1e9   : > { %v3161_v21 = vpop.f32.mrf.mxu1 }
 0x1ea   : > { %v2164_v18 = vadd.f32 %v2130_v1, %v1849_v39  ;;  %v3241_v39 = vadd.f32 %v3161_v21, %v8276_v53  ;;  %v6157_v1 = vrot.slane %v6125_v4, 9  ;;  %v2994_v21 = vsel %vm6744_vm5, %v5837_v3, %v2993_v9 }
 0x1eb   : > { %v4584_v59 = vpop.f32.mrf.mxu0  ;;  %v3882_v4 = vsel %vm6739_vm4, %v3877_v6, %v7781_v22  ;;  %v3892_v2 = vsel %vm6739_vm4, %v3887_v14, %v3891_v10  ;;  %v3899_v22 = vrot.slane %v3897_v11, 5  ;;  %v4886_v14 = vunpack.c.l.bf16 %v6198_v0  ;;  %v8277_v11 = vld [vmem:[#allocation9_spill] sm:$0xff] }
 0x1ec   : > { %3200 = vmatmul.bf16.gmra.mxu1 %v3080_v63  ;;  %3515 = vmatmul.bf16.gmra.mxu2 %v6335_v17  ;;  %v7796_v35 = vadd.f32 %v2812_v19, %v2164_v18  ;;  %v4418_v63 = vrot.slane %v4416_v57, 4  ;;  %v4419_v17 = vrot.slane %v6049_v16, 5  ;;  %v3907_v19 = vshrl.u32 %v7794_v8, 16 }
 0x1ed   : > { %4197 = vmatmul.bf16.gmra.mxu3 %v4077_v56  ;;  %v4981_v18 = vrot.slane %v4884_v55, 1  ;;  %v2997_v16 = vsel %vm6744_vm5, %v2995_v34, %v2996_v46  ;;  %v7815_v55 = vld [vmem:[%s8247_s2] ss:$0 sm:$0xff]  ;;  %v4417_v9 = vsel %vm6744_vm5, %v6157_v1, %v4416_v57  ;;  %v3896_v34 = vrot.slane %v3894_v52, 4  ;;  %v7831_v1 = vld [vmem:[%s6600_s16 + $0x98] sm:$0x1] }
 0x1ee   : > { %8275 = vst [vmem:[#allocation7_spill] sm:$0xff] %v7796_v35  ;;  %4623 = vmatmul.bf16.gmra.mxu0 %v4503_v26  ;;  %v4420_v3 = vsel %vm6744_vm5, %v4418_v63, %v4419_v17  ;;  %v7823_v46 = vrot.slane %v3903_v58, 5  ;;  %v3909_v6 = vrot.slane %v3907_v19, 4  ;;  %v3058_v10 = vunpack.c.l.b16 %v2994_v21 }
 0x1ef   : > { %v3476_v62 = vpop.f32.mrf.mxu2  ;;  %v3059_v57 = vunpack.c.l.b16 %v2997_v16  ;;  %v4055_v63 = vunpack.c.l.b16 %v3882_v4  ;;  %v4056_v17 = vunpack.c.l.b16 %v3892_v2  ;;  %v4482_v52 = vunpack.c.l.b16 %v4420_v3 }
 0x1f0   : > { %v3556_v56 = vadd.f32 %v3476_v62, %v3241_v39  ;;  %v4158_v26 = vpop.f32.mrf.mxu3  ;;  %v7828_v39 = vld [vmem:[%s8248_s3] ss:$0 sm:$0xff]  ;;  %v4481_v62 = vunpack.c.l.b16 %v4417_v9  ;;  %v4983_v0 = vsel %vm4980_vm6, %v4981_v18, %v7802_v5  ;;  %v3900_v16 = vor.u32 %v3899_v22, %v3896_v34 }
 0x1f1   : > { %v3163_v30 = vpop.f32.mrf.mxu1  ;;  %v3910_v35 = vor.u32 %v3909_v6, %v7823_v46  ;;  %v3913_v4 = vshll.u32 %v7831_v1, 16  ;;  %v4984_v3 = vrot.slane %v4886_v14, 1  ;;  %v4078_v48 = vpack.c.b16 %v4056_v17, %v4055_v63  ;;  %v6479_v14 = vld [vmem:[%s6600_s16 + $0x8c] sm:$0x1] }
 0x1f2   : > { %v4238_v20 = vadd.f32 %v4158_v26, %v3556_v56  ;;  %v3242_v19 = vadd.f32 %v3163_v30, %v8277_v11  ;;  %v5806_v56 = vld [vmem:[%s6600_s16 + $0x84] sm:$0xe]  ;;  %v6478_v26 = vld [vmem:[%s6600_s16 + $0x88] sm:$0xf]  ;;  %v4504_v7 = vpack.c.b16 %v4482_v52, %v4481_v62 }
 0x1f3   : > { %v4586_v32 = vpop.f32.mrf.mxu0  ;;  %v6336_v11 = vld [vmem:[%s6600_s16 + $0x84] sm:$0xff]  ;;  %v5838_v51 = vrot.slane %v5806_v56, 9  ;;  %v3911_v63 = vrot.slane %v3910_v35, 4  ;;  %v3915_v17 = vrot.slane %v3913_v4, 5  ;;  %v4985_v8 = vsel %vm4980_vm6, %v7802_v5, %v4984_v3  ;;  %v7863_v4 = vld [vmem:[%s6600_s16 + $0xa0] sm:$0xf] }
 0x1f4   : > { %v4664_v53 = vadd.f32 %v4584_v59, %v4238_v20  ;;  %v6399_v59 = vld [vmem:[%s7779_s13 + $0x18] sm:$0xff]   ;;  %v3000_v20 = vrot.slane %v6478_v26, 5  ;;  %v6158_v56 = vrot.slane %v6126_v61, 9 }
 0x1f5   : > { %v6369_v18 = vunpack.c.l.bf16 %v6399_v59 }
 0x1f6   : > { %v4767_v58 = vmul.f32 %v7815_v55, %v4664_v53  ;;  %v3081_v53 = vpack.c.b16 %v3059_v57, %v3058_v10  ;;  %v3002_v54 = vrot.slane %v3000_v20, 4  ;;  %v3003_v10 = vrot.slane %v6479_v14, 5 }
 0x1f7   : > { %v3478_v21 = vpop.f32.mrf.mxu2  ;;  %v3901_v57 = vrot.slane %v3900_v16, 4  ;;  %v4426_v16 = vrot.slane %v7831_v1, 5 }
 0x1f8   : > { %v4803_v2 = vadd.f32 %v7828_v39, %v4767_v58  ;;  %v3557_v9 = vadd.f32 %v3478_v21, %v3242_v19  ;;  %v4160_v30 = vpop.f32.mrf.mxu3  ;;  %v6370_v58 = vunpack.c.h.bf16 %v6399_v59  ;;  %v3001_v19 = vsel %vm6744_vm5, %v5838_v51, %v3000_v20 }
 0x1f9   : > { %v3166_v26 = vpop.f32.mrf.mxu1  ;;  %v3906_v61 = vsel %vm6739_vm4, %v3901_v57, %v7823_v46  ;;  %v3916_v51 = vsel %vm6739_vm4, %v3911_v63, %v3915_v17 }
 0x1fa   : > { %v5093_v34 = vadd.f32 %v4983_v0, %v4803_v2  ;;  %v4239_v22 = vadd.f32 %v4160_v30, %v3557_v9  ;;  %v6053_v0 = vld [vmem:[%s6600_s16 + $0x9c] sm:$0xf]  ;;  %v3243_v21 = vadd.f32 %v3166_v26, %v7251_v42  ;;  %v6201_v2 = vld [vmem:[%s7779_s13 + $0x20] sm:$0x1]  ;;  %v4987_v30 = vrot.slane %v6370_v58, 1 }
 0x1fb   : > { %v4589_v6 = vpop.f32.mrf.mxu0  ;;  %v3918_v1 = vshrl.u32 %v6053_v0, 16  ;;  %v3921_v9 = vshll.u32 %v6053_v0, 16  ;;  %v4889_v14 = vunpack.c.l.bf16 %v6201_v2  ;;  %v4057_v57 = vunpack.c.l.b16 %v3906_v61  ;;  %v6480_v61 = vld [vmem:[%s6600_s16 + $0x94] sm:$0xf] }
 0x1fc   : > { %v5125_v62 = vmax.f32 %v5093_v34, 0.0  ;;  %v4665_v52 = vadd.f32 %v4586_v32, %v4239_v22  ;;  %3205 = vmatmul.bf16.gmra.mxu1 %v3081_v53  ;;  %3520 = vmatmul.bf16.gmra.mxu2 %v6336_v11  ;;  %v4425_v32 = vrot.slane %v4423_v25, 4  ;;  %v3060_v53 = vunpack.c.l.b16 %v3001_v19  ;;  %v6337_v2 = vld [vmem:[%s6600_s16 + $0x90] sm:$0xff] }
 0x1fd   : > { %4202 = vmatmul.bf16.gmra.mxu3 %v4078_v48  ;;  %v4986_v48 = vrot.slane %v6369_v18, 1  ;;  %v3927_v11 = vshll.u32 %v7863_v4, 16  ;;  %v4424_v34 = vsel %vm6744_vm5, %v6158_v56, %v4423_v25  ;;  %v4058_v63 = vunpack.c.l.b16 %v3916_v51 }
 0x1fe   : > { %4628 = vmatmul.bf16.gmra.mxu0 %v4504_v7  ;;  %5157 = vst [vmem:[%s7850_s24] sm:$0xff] %v5125_v62  ;;  %v4768_v35 = vmul.f32 %v7815_v55, %v4665_v52  ;;  %v3004_v7 = vsel %vm6744_vm5, %v3002_v54, %v3003_v10  ;;  %v3931_v54 = vshrl.u32 %v7863_v4, 16  ;;  %v4427_v22 = vsel %vm6744_vm5, %v4425_v32, %v4426_v16  ;;  %v7887_v32 = vld [vmem:[%s6600_s16 + $0xa4] sm:$0x1] }
 0x1ff   : > { %v3481_v5 = vpop.f32.mrf.mxu2  ;;  %v3061_v10 = vunpack.c.l.b16 %v3004_v7  ;;  %v3920_v52 = vrot.slane %v3918_v1, 4  ;;  %v4483_v58 = vunpack.c.l.b16 %v4424_v34  ;;  %v4484_v19 = vunpack.c.l.b16 %v4427_v22  ;;  %v6127_v22 = vld [vmem:[%s6600_s16 + $0x9c] sm:$0xe] }
 0x200   : > { %v4804_v59 = vadd.f32 %v7828_v39, %v4768_v35  ;;  %v3558_v42 = vadd.f32 %v3481_v5, %v3243_v21  ;;  %v4163_v20 = vpop.f32.mrf.mxu3  ;;  %v7880_v0 = vrot.slane %v3927_v11, 5  ;;  %v3933_v25 = vrot.slane %v3931_v54, 4  ;;  %v5807_v21 = vld [vmem:[%s6600_s16 + $0x90] sm:$0xe] }
 0x201   : > { %v3168_v3 = vpop.f32.mrf.mxu1  ;;  %v4989_v5 = vrot.slane %v4889_v14, 1  ;;  %v3082_v7 = vpack.c.b16 %v3061_v10, %v3060_v53  ;;  %v3007_v51 = vrot.slane %v6480_v61, 5  ;;  %v4079_v1 = vpack.c.b16 %v4058_v63, %v4057_v57 }
 0x202   : > { %v5094_v26 = vadd.f32 %v4985_v8, %v4804_v59  ;;  %v4240_v18 = vadd.f32 %v4163_v20, %v3558_v42  ;;  %v3923_v8 = vrot.slane %v3921_v9, 5  ;;  %v3244_v35 = vadd.f32 %v3168_v3, %v7253_v31  ;;  %v6202_v9 = vld [vmem:[%s7779_s13 + $0x24] sm:$0xff]  }
 0x203   : > { %v4591_v46 = vpop.f32.mrf.mxu0  ;;  %v4505_v11 = vpack.c.b16 %v4484_v19, %v4483_v58  ;;  %v5839_v54 = vrot.slane %v5807_v21, 9  ;;  %v4430_v14 = vrot.slane %v7863_v4, 5  ;;  %v4990_v10 = vsel %vm4980_vm6, %v4987_v30, %v4989_v5 }
 0x204   : > { %v5126_v17 = vmax.f32 %v5094_v26, 0.0  ;;  %v4666_v62 = vadd.f32 %v4589_v6, %v4240_v18  ;;  %v4988_v6 = vsel %vm4980_vm6, %v4986_v48, %v4987_v30  ;;  %v3924_v31 = vor.u32 %v3923_v8, %v3920_v52 }
 0x205   : > { %v3934_v48 = vor.u32 %v3933_v25, %v7880_v0  ;;  %v3937_v26 = vshll.u32 %v7887_v32, 16  ;;  %v4890_v57 = vunpack.c.l.bf16 %v6202_v9  ;;  %v3009_v63 = vrot.slane %v3007_v51, 4  ;;  %v6056_v25 = vld [vmem:[%s6600_s16 + $0xa8] sm:$0xf] }
 0x206   : > { %5158 = vst [vmem:[%s7850_s24 + $0x8] sm:$0xff] %v5126_v17  ;;  %v4769_v56 = vmul.f32 %v7815_v55, %v4666_v62  ;;  %v6481_v17 = vld [vmem:[%s6600_s16 + $0x98] sm:$0x1]  ;;  %v4891_v58 = vunpack.c.h.bf16 %v6202_v9  ;;  %v3925_v19 = vrot.slane %v3924_v31, 4  ;;  %v3008_v4 = vsel %vm6744_vm5, %v5839_v54, %v3007_v51  ;;  %v6204_v54 = vld [vmem:[%s7779_s13 + $0x2c] sm:$0x1] }
 0x207   : > { %v3483_v16 = vpop.f32.mrf.mxu2  ;;  %v3010_v62 = vrot.slane %v6481_v17, 5  ;;  %v3935_v30 = vrot.slane %v3934_v48, 4  ;;  %v6159_v21 = vrot.slane %v6127_v22, 9  ;;  %v4433_v5 = vrot.slane %v7887_v32, 5 }
 0x208   : > { %v4805_v59 = vadd.f32 %v7828_v39, %v4769_v56  ;;  %v3559_v42 = vadd.f32 %v3483_v16, %v3244_v35  ;;  %v4165_v20 = vpop.f32.mrf.mxu3  ;;  %v7902_v56 = vld [vmem:[%s6600_s16 + $0xac] sm:$0xf]  ;;  %v3939_v35 = vrot.slane %v3937_v26, 5  ;;  %v4432_v16 = vrot.slane %v4430_v14, 4 }
 0x209   : > { %v3171_v3 = vpop.f32.mrf.mxu1  ;;  %v3942_v61 = vshrl.u32 %v6056_v25, 16  ;;  %v4991_v9 = vrot.slane %v4890_v57, 1  ;;  %v7913_v31 = vrot.slane %v4891_v58, 1  ;;  %v3062_v32 = vunpack.c.l.b16 %v3008_v4  ;;  %v7930_v58 = vld [vmem:[%s6600_s16 + $0xb0] sm:$0x1] }
 0x20a   : > { %v5095_v53 = vadd.f32 %v4988_v6, %v4805_v59  ;;  %v4241_v18 = vadd.f32 %v4165_v20, %v3559_v42  ;;  %v3945_v59 = vshll.u32 %v6056_v25, 16  ;;  %v3951_v42 = vshll.u32 %v7902_v56, 16 }
 0x20b   : > { %v4594_v34 = vpop.f32.mrf.mxu0  ;;  %v3955_v20 = vshrl.u32 %v7902_v56, 16  ;;  %v4431_v48 = vsel %vm6744_vm5, %v6159_v21, %v4430_v14  ;;  %v3940_v22 = vsel %vm6739_vm4, %v3935_v30, %v3939_v35  ;;  %v4434_v57 = vsel %vm6744_vm5, %v4432_v16, %v4433_v5  ;;  %v6482_v16 = vld [vmem:[%s6600_s16 + $0xa0] sm:$0xf] }
 0x20c   : > { %v5127_v52 = vmax.f32 %v5095_v53, 0.0  ;;  %v4667_v8 = vadd.f32 %v4591_v46, %v4241_v18  ;;  %3210 = vmatmul.bf16.gmra.mxu1 %v3082_v7  ;;  %3525 = vmatmul.bf16.gmra.mxu2 %v6337_v2  ;;  %v3245_v46 = vadd.f32 %v3171_v3, %v7302_v43  ;;  %v3011_v43 = vsel %vm6744_vm5, %v3009_v63, %v3010_v62 }
 0x20d   : > { %4207 = vmatmul.bf16.gmra.mxu3 %v4079_v1  ;;  %v3930_v3 = vsel %vm6739_vm4, %v3925_v19, %v7880_v0  ;;  %v3944_v63 = vrot.slane %v3942_v61, 4  ;;  %v3947_v17 = vrot.slane %v3945_v59, 5  ;;  %v7927_v62 = vrot.slane %v3951_v42, 5 }
 0x20e   : > { %4633 = vmatmul.bf16.gmra.mxu0 %v4505_v11  ;;  %5159 = vst [vmem:[%s7850_s24 + $0x10] sm:$0xff] %v5127_v52  ;;  %v4770_v6 = vmul.f32 %v7815_v55, %v4667_v8  ;;  %v3957_v0 = vrot.slane %v3955_v20, 4  ;;  %v3063_v8 = vunpack.c.l.b16 %v3011_v43  ;;  %v4059_v19 = vunpack.c.l.b16 %v3930_v3 }
 0x20f   : > { %v3486_v7 = vpop.f32.mrf.mxu2  ;;  %v4060_v25 = vunpack.c.l.b16 %v3940_v22  ;;  %v4485_v4 = vunpack.c.l.b16 %v4431_v48  ;;  %v4486_v30 = vunpack.c.l.b16 %v4434_v57  ;;  %v3014_v5 = vrot.slane %v6482_v16, 5 }
 0x210   : > { %v4806_v51 = vadd.f32 %v7828_v39, %v4770_v6  ;;  %v3560_v2 = vadd.f32 %v3486_v7, %v3245_v46  ;;  %v4168_v1 = vpop.f32.mrf.mxu3  ;;  %v6400_v6 = vld [vmem:[%s7779_s13 + $0x30] sm:$0xff]   ;;  %v5808_v46 = vld [vmem:[%s6600_s16 + $0x9c] sm:$0xe]  ;;  %v3948_v61 = vor.u32 %v3947_v17, %v3944_v63  ;;  %v3958_v59 = vor.u32 %v3957_v0, %v7927_v62  ;;  %v6128_v63 = vld [vmem:[%s6600_s16 + $0xa8] sm:$0xe] }
 0x211   : > { %v3173_v11 = vpop.f32.mrf.mxu1  ;;  %v3961_v42 = vshll.u32 %v7930_v58, 16  ;;  %v4080_v43 = vpack.c.b16 %v4060_v25, %v4059_v19  ;;  %v4506_v3 = vpack.c.b16 %v4486_v30, %v4485_v4  ;;  %v6373_v48 = vunpack.c.l.bf16 %v6400_v6  ;;  %v6483_v0 = vld [vmem:[%s6600_s16 + $0xa4] sm:$0x1] }
 0x212   : > { %v5096_v26 = vadd.f32 %v4990_v10, %v4806_v51  ;;  %v4242_v53 = vadd.f32 %v4168_v1, %v3560_v2  ;;  %v4892_v10 = vunpack.c.l.bf16 %v6204_v54  ;;  %v3246_v21 = vadd.f32 %v3173_v11, %v7304_v13  ;;  %v6338_v11 = vld [vmem:[%s6600_s16 + $0x9c] sm:$0xff] }
 0x213   : > { %v4596_v18 = vpop.f32.mrf.mxu0  ;;  %v3083_v1 = vpack.c.b16 %v3063_v8, %v3062_v32  ;;  %v3016_v57 = vrot.slane %v3014_v5, 4  ;;  %v4437_v17 = vrot.slane %v7902_v56, 5  ;;  %v3963_v32 = vrot.slane %v3961_v42, 5 }
 0x214   : > { %v5128_v52 = vmax.f32 %v5096_v26, 0.0  ;;  %v4668_v14 = vadd.f32 %v4594_v34, %v4242_v53  ;;  %v4993_v34 = vsel %vm4980_vm6, %v4991_v9, %v7913_v31  ;;  %v4994_v13 = vrot.slane %v4892_v10, 1 }
 0x215   : > { %v5840_v9 = vrot.slane %v5808_v46, 9  ;;  %v3959_v10 = vrot.slane %v3958_v59, 4  ;;  %v6374_v4 = vunpack.c.h.bf16 %v6400_v6  ;;  %v6160_v30 = vrot.slane %v6128_v63, 9 }
 0x216   : > { %5160 = vst [vmem:[%s7850_s24 + $0x18] sm:$0xff] %v5128_v52  ;;  %v4771_v35 = vmul.f32 %v7815_v55, %v4668_v14  ;;  %v3017_v52 = vrot.slane %v6483_v0, 5  ;;  %v3949_v14 = vrot.slane %v3948_v61, 4  ;;  %v4995_v25 = vsel %vm4980_vm6, %v7913_v31, %v4994_v13 }
 0x217   : > { %v3488_v7 = vpop.f32.mrf.mxu2  ;;  %v3015_v56 = vsel %vm6744_vm5, %v5840_v9, %v3014_v5  ;;  %v4440_v16 = vrot.slane %v7930_v58, 5  ;;  %v3964_v61 = vsel %vm6739_vm4, %v3959_v10, %v3963_v32 }
 0x218   : > { %v4807_v20 = vadd.f32 %v7828_v39, %v4771_v35  ;;  %v3561_v51 = vadd.f32 %v3488_v7, %v3246_v21  ;;  %v4170_v2 = vpop.f32.mrf.mxu3  ;;  %v6059_v35 = vld [vmem:[%s6600_s16 + $0xb4] sm:$0xf]  ;;  %v4996_v7 = vrot.slane %v6373_v48, 1  ;;  %v3018_v6 = vsel %vm6744_vm5, %v3016_v57, %v3017_v52 }
 0x219   : > { %v3176_v54 = vpop.f32.mrf.mxu1  ;;  %v3954_v5 = vsel %vm6739_vm4, %v3949_v14, %v7927_v62  ;;  %v3966_v58 = vshrl.u32 %v6059_v35, 16  ;;  %v4438_v48 = vsel %vm6744_vm5, %v6160_v30, %v4437_v17  ;;  %v4062_v63 = vunpack.c.l.b16 %v3964_v61  ;;  %v5809_v30 = vld [vmem:[%s6600_s16 + $0xa8] sm:$0xe] }
 0x21a   : > { %v5097_v26 = vadd.f32 %v4993_v34, %v4807_v20  ;;  %v4243_v53 = vadd.f32 %v4170_v2, %v3561_v51  ;;  %v3247_v46 = vadd.f32 %v3176_v54, %v7343_v23  ;;  %v7957_v34 = vld [vmem:[%s6600_s16 + $0xb8] sm:$0xf]  ;;  %v3969_v51 = vshll.u32 %v6059_v35, 16  ;;  %v7981_v35 = vld [vmem:[%s6600_s16 + $0xbc] sm:$0x1] }
 0x21b   : > { %v4599_v22 = vpop.f32.mrf.mxu0  ;;  %v6207_v20 = vld [vmem:[%s7779_s13 + $0x38] sm:$0x1]  ;;  %v4997_v2 = vrot.slane %v6374_v4, 1  ;;  %v3979_v54 = vshrl.u32 %v7957_v34, 16  ;;  %v4061_v57 = vunpack.c.l.b16 %v3954_v5  ;;  %v3968_v14 = vrot.slane %v3966_v58, 4 }
 0x21c   : > { %v5129_v8 = vmax.f32 %v5097_v26, 0.0  ;;  %v4669_v19 = vadd.f32 %v4596_v18, %v4243_v53  ;;  %3215 = vmatmul.bf16.gmra.mxu1 %v3083_v1  ;;  %3530 = vmatmul.bf16.gmra.mxu2 %v6338_v11  ;;  %v4439_v18 = vrot.slane %v4437_v17, 4  ;;  %v3064_v1 = vunpack.c.l.b16 %v3015_v56  ;;  %v8278_v4 = vld [vmem:[#allocation10_spill] sm:$0xff] }
 0x21d   : > { %4212 = vmatmul.bf16.gmra.mxu3 %v4080_v43  ;;  %v3975_v11 = vshll.u32 %v7957_v34, 16  ;;  %v4895_v26 = vunpack.c.l.bf16 %v6207_v20  ;;  %v3065_v53 = vunpack.c.l.b16 %v3018_v6  ;;  %v3971_v10 = vrot.slane %v3969_v51, 5 }
 0x21e   : > { %4638 = vmatmul.bf16.gmra.mxu0 %v4506_v3  ;;  %5161 = vst [vmem:[%s7850_s24 + $0x20] sm:$0xff] %v5129_v8  ;;  %v4772_v21 = vmul.f32 %v7815_v55, %v4669_v19  ;;  %v4441_v9 = vsel %vm6744_vm5, %v4439_v18, %v4440_v16  ;;  %v4487_v32 = vunpack.c.l.b16 %v4438_v48  ;;  %v3981_v17 = vrot.slane %v3979_v54, 4  ;;  %v6484_v16 = vld [vmem:[%s6600_s16 + $0xac] sm:$0xf] }
 0x21f   : > { %v3491_v31 = vpop.f32.mrf.mxu2  ;;  %v4488_v8 = vunpack.c.l.b16 %v4441_v9  ;;  %v7974_v19 = vrot.slane %v3975_v11, 5  ;;  %v3084_v18 = vpack.c.b16 %v3065_v53, %v3064_v1  ;;  %v3972_v20 = vor.u32 %v3971_v10, %v3968_v14 }
 0x220   : > { %v4808_v59 = vadd.f32 %v7828_v39, %v4772_v21  ;;  %v3562_v23 = vadd.f32 %v3491_v31, %v3247_v46  ;;  %v4173_v42 = vpop.f32.mrf.mxu3  ;;  %v4999_v46 = vrot.slane %v4895_v26, 1  ;;  %v3021_v31 = vrot.slane %v6484_v16, 5 }
 0x221   : > { %v3178_v13 = vpop.f32.mrf.mxu1  ;;  %v4507_v51 = vpack.c.b16 %v4488_v8, %v4487_v32  ;;  %v3985_v11 = vshll.u32 %v7981_v35, 16  ;;  %v4444_v48 = vrot.slane %v7957_v34, 5  ;;  %v3973_v10 = vrot.slane %v3972_v20, 4  ;;  %v6062_v32 = vld [vmem:[%s6600_s16 + $0xc0] sm:$0xf] }
 0x222   : > { %v5098_v43 = vadd.f32 %v4995_v25, %v4808_v59  ;;  %v4244_v3 = vadd.f32 %v4173_v42, %v3562_v23  ;;  %v3248_v56 = vadd.f32 %v3178_v13, %v8278_v4  ;;  %v6339_v59 = vld [vmem:[%s6600_s16 + $0xa8] sm:$0xff]  ;;  %v4081_v23 = vpack.c.b16 %v4062_v63, %v4061_v57  ;;  %v6208_v42 = vld [vmem:[%s7779_s13 + $0x3c] sm:$0xff]   ;;  %v6485_v57 = vld [vmem:[%s6600_s16 + $0xb0] sm:$0x1] }
 0x223   : > { %v4601_v62 = vpop.f32.mrf.mxu0  ;;  %v5841_v13 = vrot.slane %v5809_v30, 9  ;;  %v5000_v9 = vsel %vm4980_vm6, %v4997_v2, %v4999_v46  ;;  %v4896_v26 = vunpack.c.l.bf16 %v6208_v42  ;;  %v3023_v53 = vrot.slane %v3021_v31, 4  ;;  %v7996_v8 = vld [vmem:[%s6600_s16 + $0xc4] sm:$0xf] }
 0x224   : > { %v5130_v0 = vmax.f32 %v5098_v43, 0.0  ;;  %v4670_v52 = vadd.f32 %v4599_v22, %v4244_v3  ;;  %v4998_v22 = vsel %vm4980_vm6, %v4996_v7, %v4997_v2  ;;  %v3982_v7 = vor.u32 %v3981_v17, %v7974_v19  ;;  %v6129_v3 = vld [vmem:[%s6600_s16 + $0xb4] sm:$0xe] }
 0x225   : > { %v3024_v63 = vrot.slane %v6485_v57, 5  ;;  %v4897_v14 = vunpack.c.h.bf16 %v6208_v42  ;;  %v3022_v34 = vsel %vm6744_vm5, %v5841_v13, %v3021_v31  ;;  %v3987_v17 = vrot.slane %v3985_v11, 5  ;;  %v6210_v42 = vld [vmem:[%s7779_s13 + $0x44] sm:$0x1] }
 0x226   : > { %5162 = vst [vmem:[%s7850_s24 + $0x28] sm:$0xff] %v5130_v0  ;;  %v4773_v25 = vmul.f32 %v7815_v55, %v4670_v52  ;;  %v3983_v2 = vrot.slane %v3982_v7, 4  ;;  %v4447_v30 = vrot.slane %v7981_v35, 5  ;;  %v3993_v46 = vshll.u32 %v6062_v32, 16 }
 0x227   : > { %v3493_v21 = vpop.f32.mrf.mxu2  ;;  %v4003_v16 = vshrl.u32 %v7996_v8, 16  ;;  %v3066_v35 = vunpack.c.l.b16 %v3022_v34  ;;  %v3978_v20 = vsel %vm6739_vm4, %v3973_v10, %v7974_v19 }
 0x228   : > { %v4809_v6 = vadd.f32 %v7828_v39, %v4773_v25  ;;  %v3563_v5 = vadd.f32 %v3493_v21, %v3248_v56  ;;  %v4175_v61 = vpop.f32.mrf.mxu3  ;;  %v6161_v25 = vrot.slane %v6129_v3, 9  ;;  %v4446_v56 = vrot.slane %v4444_v48, 4 }
 0x229   : > { %v3181_v58 = vpop.f32.mrf.mxu1  ;;  %v3990_v21 = vshrl.u32 %v6062_v32, 16  ;;  %v3995_v3 = vrot.slane %v3993_v46, 5  ;;  %v4005_v19 = vrot.slane %v4003_v16, 4  ;;  %v6130_v16 = vld [vmem:[%s6600_s16 + $0xc0] sm:$0xe] }
 0x22a   : > { %v5099_v1 = vadd.f32 %v4998_v22, %v4809_v6  ;;  %v4245_v54 = vadd.f32 %v4175_v61, %v3563_v5  ;;  %v5001_v61 = vrot.slane %v4896_v26, 1  ;;  %v4445_v11 = vsel %vm6744_vm5, %v6161_v25, %v4444_v48 }
 0x22b   : > { %v4604_v43 = vpop.f32.mrf.mxu0  ;;  %v4489_v10 = vunpack.c.l.b16 %v4445_v11 }
 0x22c   : > { %v5131_v0 = vmax.f32 %v5099_v1, 0.0  ;;  %v4671_v52 = vadd.f32 %v4601_v62, %v4245_v54  ;;  %3220 = vmatmul.bf16.gmra.mxu1 %v3084_v18  ;;  %3535 = vmatmul.bf16.gmra.mxu2 %v6339_v59  ;;  %v3249_v62 = vadd.f32 %v3181_v58, %v7394_v41  ;;  %v3999_v18 = vshll.u32 %v7996_v8, 16 }
 0x22d   : > { %4217 = vmatmul.bf16.gmra.mxu3 %v4081_v23  ;;  %v8007_v59 = vrot.slane %v4897_v14, 1  ;;  %v3025_v41 = vsel %vm6744_vm5, %v3023_v53, %v3024_v63  ;;  %v3988_v58 = vsel %vm6739_vm4, %v3983_v2, %v3987_v17  ;;  %v4448_v1 = vsel %vm6744_vm5, %v4446_v56, %v4447_v30  ;;  %v5810_v2 = vld [vmem:[%s6600_s16 + $0xb4] sm:$0xe]  ;;  %v6486_v17 = vld [vmem:[%s6600_s16 + $0xb8] sm:$0xf] }
 0x22e   : > { %4643 = vmatmul.bf16.gmra.mxu0 %v4507_v51  ;;  %5163 = vst [vmem:[%s7850_s24 + $0x30] sm:$0xff] %v5131_v0  ;;  %v4774_v4 = vmul.f32 %v7815_v55, %v4671_v52  ;;  %v3992_v54 = vrot.slane %v3990_v21, 4  ;;  %v8021_v26 = vrot.slane %v3999_v18, 5  ;;  %v4898_v63 = vunpack.c.l.bf16 %v6210_v42  ;;  %v8024_v0 = vld [vmem:[%s6600_s16 + $0xc8] sm:$0x1] }
 0x22f   : > { %v3496_v22 = vpop.f32.mrf.mxu2  ;;  %v4063_v52 = vunpack.c.l.b16 %v3978_v20  ;;  %v4064_v14 = vunpack.c.l.b16 %v3988_v58  ;;  %v4490_v48 = vunpack.c.l.b16 %v4448_v1  ;;  %v3028_v25 = vrot.slane %v6486_v17, 5  ;;  %v6401_v1 = vld [vmem:[%s7779_s13 + $0x48] sm:$0xff]  }
 0x230   : > { %v4810_v31 = vadd.f32 %v7828_v39, %v4774_v4  ;;  %v3564_v6 = vadd.f32 %v3496_v22, %v3249_v62  ;;  %v4178_v5 = vpop.f32.mrf.mxu3  ;;  %v3996_v62 = vor.u32 %v3995_v3, %v3992_v54  ;;  %v4006_v56 = vor.u32 %v4005_v19, %v8021_v26 }
 0x231   : > { %v3183_v23 = vpop.f32.mrf.mxu1  ;;  %v4009_v30 = vshll.u32 %v8024_v0, 16  ;;  %v5842_v42 = vrot.slane %v5810_v2, 9  ;;  %v6162_v19 = vrot.slane %v6130_v16, 9 }
 0x232   : > { %v5100_v51 = vadd.f32 %v5000_v9, %v4810_v31  ;;  %v4246_v13 = vadd.f32 %v4178_v5, %v3564_v6  ;;  %v3067_v9 = vunpack.c.l.b16 %v3025_v41  ;;  %v3250_v34 = vadd.f32 %v3183_v23, %v7396_v29  ;;  %v6340_v29 = vld [vmem:[%s6600_s16 + $0xb4] sm:$0xff] }
 0x233   : > { %v4606_v7 = vpop.f32.mrf.mxu0  ;;  %v4451_v31 = vrot.slane %v7996_v8, 5  ;;  %v5004_v6 = vrot.slane %v4898_v63, 1  ;;  %v4508_v23 = vpack.c.b16 %v4490_v48, %v4489_v10  ;;  %v3997_v54 = vrot.slane %v3996_v62, 4 }
 0x234   : > { %v5132_v53 = vmax.f32 %v5100_v51, 0.0  ;;  %v4672_v57 = vadd.f32 %v4604_v43, %v4246_v13  ;;  %v5003_v43 = vsel %vm4980_vm6, %v5001_v61, %v8007_v59  ;;  %v3085_v18 = vpack.c.b16 %v3067_v9, %v3066_v35  ;;  %v6487_v13 = vld [vmem:[%s6600_s16 + $0xbc] sm:$0x1] }
 0x235   : > { %v4082_v61 = vpack.c.b16 %v4064_v14, %v4063_v52  ;;  %v3030_v51 = vrot.slane %v3028_v25, 4  ;;  %v3031_v11 = vrot.slane %v6487_v13, 5  ;;  %v4007_v3 = vrot.slane %v4006_v56, 4 }
 0x236   : > { %5164 = vst [vmem:[%s7850_s24 + $0x38] sm:$0xff] %v5132_v53  ;;  %v4775_v32 = vmul.f32 %v7815_v55, %v4672_v57  ;;  %v4011_v35 = vrot.slane %v4009_v30, 5  ;;  %v4453_v57 = vrot.slane %v4451_v31, 4  ;;  %v4454_v63 = vrot.slane %v8024_v0, 5 }
 0x237   : > { %v3498_v4 = vpop.f32.mrf.mxu2  ;;  %v5005_v9 = vsel %vm4980_vm6, %v8007_v59, %v5004_v6  ;;  %v6377_v10 = vunpack.c.l.bf16 %v6401_v1  ;;  %v6378_v48 = vunpack.c.h.bf16 %v6401_v1  ;;  %v3029_v2 = vsel %vm6744_vm5, %v5842_v42, %v3028_v25 }
 0x238   : > { %v4811_v22 = vadd.f32 %v7828_v39, %v4775_v32  ;;  %v3565_v21 = vadd.f32 %v3498_v4, %v3250_v34  ;;  %v4180_v46 = vpop.f32.mrf.mxu3  ;;  %v6065_v32 = vld [vmem:[%s6600_s16 + $0xcc] sm:$0xf]  ;;  %v8049_v34 = vld [vmem:[%s6600_s16 + $0xd0] sm:$0xf]  ;;  %v3032_v0 = vsel %vm6744_vm5, %v3030_v51, %v3031_v11  ;;  %v4002_v59 = vsel %vm6739_vm4, %v3997_v54, %v8021_v26 }
 0x239   : > { %v3186_v5 = vpop.f32.mrf.mxu1  ;;  %v4012_v17 = vsel %vm6739_vm4, %v4007_v3, %v4011_v35  ;;  %v4452_v62 = vsel %vm6744_vm5, %v6162_v19, %v4451_v31  ;;  %v4455_v25 = vsel %vm6744_vm5, %v4453_v57, %v4454_v63  ;;  %v4014_v30 = vshrl.u32 %v6065_v32, 16 }
 0x23a   : > { %v5101_v41 = vadd.f32 %v5003_v43, %v4811_v22  ;;  %v4247_v20 = vadd.f32 %v4180_v46, %v3565_v21  ;;  %v3251_v14 = vadd.f32 %v3186_v5, %v7422_v12  ;;  %v4017_v22 = vshll.u32 %v6065_v32, 16  ;;  %v5811_v32 = vld [vmem:[%s6600_s16 + $0xc0] sm:$0xe] }
 0x23b   : > { %v4609_v58 = vpop.f32.mrf.mxu0  ;;  %v4023_v21 = vshll.u32 %v8049_v34, 16  ;;  %v4027_v26 = vshrl.u32 %v8049_v34, 16  ;;  %v8067_v16 = vrot.slane %v6378_v48, 1  ;;  %v3068_v5 = vunpack.c.l.b16 %v3029_v2 }
 0x23c   : > { %v5133_v8 = vmax.f32 %v5101_v41, 0.0  ;;  %v4673_v53 = vadd.f32 %v4606_v7, %v4247_v20  ;;  %3225 = vmatmul.bf16.gmra.mxu1 %v3085_v18  ;;  %3540 = vmatmul.bf16.gmra.mxu2 %v6340_v29  ;;  %v5006_v29 = vrot.slane %v6377_v10, 1  ;;  %v3069_v31 = vunpack.c.l.b16 %v3032_v0  ;;  %v6213_v20 = vld [vmem:[%s7779_s13 + $0x50] sm:$0x1]  ;;  %v6341_v10 = vld [vmem:[%s6600_s16 + $0xc0] sm:$0xff] }
 0x23d   : > { %4222 = vmatmul.bf16.gmra.mxu3 %v4082_v61  ;;  %v4065_v61 = vunpack.c.l.b16 %v4002_v59  ;;  %v4491_v51 = vunpack.c.l.b16 %v4452_v62  ;;  %v4492_v13 = vunpack.c.l.b16 %v4455_v25  ;;  %v4016_v11 = vrot.slane %v4014_v30, 4  ;;  %v6131_v25 = vld [vmem:[%s6600_s16 + $0xcc] sm:$0xe] }
 0x23e   : > { %4648 = vmatmul.bf16.gmra.mxu0 %v4508_v23  ;;  %5165 = vst [vmem:[%s7850_s24 + $0x40] sm:$0xff] %v5133_v8  ;;  %v4776_v52 = vmul.f32 %v7815_v55, %v4673_v53  ;;  %v4066_v23 = vunpack.c.l.b16 %v4012_v17  ;;  %v4019_v1 = vrot.slane %v4017_v22, 5  ;;  %v8070_v54 = vrot.slane %v4023_v21, 5  ;;  %v6067_v8 = vld [vmem:[%s6600_s16 + $0xd4] sm:$0x1] }
 0x23f   : > { %v3501_v7 = vpop.f32.mrf.mxu2  ;;  %v4029_v3 = vrot.slane %v4027_v26, 4  ;;  %v4901_v57 = vunpack.c.l.bf16 %v6213_v20  ;;  %v3086_v63 = vpack.c.b16 %v3069_v31, %v3068_v5  ;;  %v5843_v22 = vrot.slane %v5811_v32, 9 }
 0x240   : > { %v4812_v12 = vadd.f32 %v7828_v39, %v4776_v52  ;;  %v3566_v43 = vadd.f32 %v3501_v7, %v3251_v14  ;;  %v4183_v4 = vpop.f32.mrf.mxu3  ;;  %v4083_v48 = vpack.c.b16 %v4066_v23, %v4065_v61  ;;  %v6488_v7 = vld [vmem:[%s6600_s16 + $0xc4] sm:$0xf]  ;;  %v4020_v59 = vor.u32 %v4019_v1, %v4016_v11 }
 0x241   : > { %v3188_v56 = vpop.f32.mrf.mxu1  ;;  %v3035_v2 = vrot.slane %v6488_v7, 5  ;;  %v4030_v17 = vor.u32 %v4029_v3, %v8070_v54  ;;  %v5009_v30 = vrot.slane %v4901_v57, 1 }
 0x242   : > { %v5102_v46 = vadd.f32 %v5005_v9, %v4812_v12  ;;  %v4248_v18 = vadd.f32 %v4183_v4, %v3566_v43  ;;  %v3252_v19 = vadd.f32 %v3188_v56, %v7447_v38  ;;  %v4509_v38 = vpack.c.b16 %v4492_v13, %v4491_v51 }
 0x243   : > { %v4611_v6 = vpop.f32.mrf.mxu0  ;;  %v4033_v12 = vshll.u32 %v6067_v8, 16  ;;  %v4458_v56 = vrot.slane %v8049_v34, 5  ;;  %v4021_v31 = vrot.slane %v4020_v59, 4  ;;  %v4031_v61 = vrot.slane %v4030_v17, 4 }
 0x244   : > { %v5134_v42 = vmax.f32 %v5102_v46, 0.0  ;;  %v4674_v41 = vadd.f32 %v4609_v58, %v4248_v18  ;;  %v5008_v58 = vsel %vm4980_vm6, %v5006_v29, %v8067_v16  ;;  %v6214_v46 = vld [vmem:[%s7779_s13 + $0x54] sm:$0xff]   ;;  %v3037_v18 = vrot.slane %v3035_v2, 4  ;;  %v6489_v29 = vld [vmem:[%s6600_s16 + $0xc8] sm:$0x1] }
 0x245   : > { %v3038_v5 = vrot.slane %v6489_v29, 5  ;;  %v4035_v23 = vrot.slane %v4033_v12, 5  ;;  %v4460_v20 = vrot.slane %v4458_v56, 4  ;;  %v4461_v51 = vrot.slane %v6067_v8, 5 }
 0x246   : > { %5166 = vst [vmem:[%s7850_s24 + $0x48] sm:$0xff] %v5134_v42  ;;  %v4777_v35 = vmul.f32 %v7815_v55, %v4674_v41  ;;  %v6163_v42 = vrot.slane %v6131_v25, 9  ;;  %v4902_v11 = vunpack.c.l.bf16 %v6214_v46  ;;  %v4903_v1 = vunpack.c.h.bf16 %v6214_v46 }
 0x247   : > { %v3503_v53 = vpop.f32.mrf.mxu2  ;;  %v4026_v8 = vsel %vm6739_vm4, %v4021_v31, %v8070_v54 }
 0x248   : > { %v4813_v9 = vadd.f32 %v7828_v39, %v4777_v35  ;;  %v3567_v52 = vadd.f32 %v3503_v53, %v3252_v19  ;;  %v4185_v14 = vpop.f32.mrf.mxu3  ;;  %v3036_v53 = vsel %vm6744_vm5, %v5843_v22, %v3035_v2  ;;  %v6216_v2 = vld [vmem:[%s7779_s13 + $0x5c] sm:$0x1]  ;;  %v4067_v27 = vunpack.c.l.b16 %v4026_v8 }
 0x249   : > { %v3191_v0 = vpop.f32.mrf.mxu1  ;;  %v4904_v25 = vunpack.c.l.bf16 %v6216_v2 }
 0x24a   : > { %v5103_v43 = vadd.f32 %v5008_v58, %v4813_v9  ;;  %v4249_v4 = vadd.f32 %v4185_v14, %v3567_v52  ;;  %v3253_v41 = vadd.f32 %v3191_v0, %v7468_v49  ;;  %v3039_v49 = vsel %vm6744_vm5, %v3037_v18, %v3038_v5 }
 0x24b   : > { %v4614_v62 = vpop.f32.mrf.mxu0  ;;  %v4459_v52 = vsel %vm6744_vm5, %v6163_v42, %v4458_v56  ;;  %v4462_v14 = vsel %vm6744_vm5, %v4460_v20, %v4461_v51  ;;  %v3070_v0 = vunpack.c.l.b16 %v3036_v53  ;;  %v3071_v54 = vunpack.c.l.b16 %v3039_v49 }
 0x24c   : > { %v5135_v21 = vmax.f32 %v5103_v43, 0.0  ;;  %v4675_v26 = vadd.f32 %v4611_v6, %v4249_v4  ;;  %3230 = vmatmul.bf16.gmra.mxu1 %v3086_v63  ;;  %3545 = vmatmul.bf16.gmra.mxu2 %v6341_v10  ;;  %v5010_v6 = vsel %vm4980_vm6, %v8067_v16, %v5009_v30  ;;  %v4036_v16 = vsel %vm6739_vm4, %v4031_v61, %v4035_v23  ;;  %v6402_v23 = vld [vmem:[%s7779_s13 + $0x60] sm:$0xff]  }
 0x24d   : > { %4227 = vmatmul.bf16.gmra.mxu3 %v4083_v48  ;;  %v5011_v10 = vrot.slane %v4902_v11, 1  ;;  %v5012_v48 = vrot.slane %v4903_v1, 1  ;;  %v4493_v59 = vunpack.c.l.b16 %v4459_v52  ;;  %v4494_v17 = vunpack.c.l.b16 %v4462_v14 }
 0x24e   : > { %4653 = vmatmul.bf16.gmra.mxu0 %v4509_v38  ;;  %5167 = vst [vmem:[%s7850_s24 + $0x50] sm:$0xff] %v5135_v21  ;;  %v4778_v34 = vmul.f32 %v7815_v55, %v4675_v26  ;;  %v4068_v38 = vunpack.c.l.b16 %v4036_v16  ;;  %v3087_v22 = vpack.c.b16 %v3071_v54, %v3070_v0  ;;  %v6342_v21 = vld [vmem:[%s6600_s16 + $0xcc] sm:$0xff]  ;;  %v5014_v31 = vrot.slane %v4904_v25, 1 }
 0x24f   : > { %v3506_v13 = vpop.f32.mrf.mxu2  ;;  %v5013_v33 = vsel %vm4980_vm6, %v5011_v10, %v5012_v48  ;;  %v4510_v18 = vpack.c.b16 %v4494_v17, %v4493_v59  ;;  %v6381_v51 = vunpack.c.l.bf16 %v6402_v23 }
 0x250   : > { %v4814_v3 = vadd.f32 %v7828_v39, %v4778_v34  ;;  %v3568_v35 = vadd.f32 %v3506_v13, %v3253_v41  ;;  %v4188_v19 = vpop.f32.mrf.mxu3  ;;  %v4084_v46 = vpack.c.b16 %v4068_v38, %v4067_v27  ;;  %v5015_v41 = vsel %vm4980_vm6, %v5012_v48, %v5014_v31  ;;  %v8126_v13 = vld [vmem:[%s8248_s3] ss:$0 sm:$0xff] }
 0x251   : > { %v3193_v58 = vpop.f32.mrf.mxu1  ;;  %v5016_v53 = vrot.slane %v6381_v51, 1 }
 0x252   : > { %v5104_v57 = vadd.f32 %v5010_v6, %v4814_v3  ;;  %v4250_v63 = vadd.f32 %v4188_v19, %v3568_v35  ;;  %v3254_v43 = vadd.f32 %v3193_v58, %v7474_v37  ;;  %v6382_v6 = vunpack.c.h.bf16 %v6402_v23 }
 0x253   : > { %v4616_v9 = vpop.f32.mrf.mxu0 }
 0x254   : > { %v5136_v32 = vmax.f32 %v5104_v57, 0.0  ;;  %v4676_v7 = vadd.f32 %v4614_v62, %v4250_v63  ;;  %v5017_v49 = vrot.slane %v6382_v6, 1  ;;  %v6219_v57 = vld [vmem:[%s7779_s13 + $0x68] sm:$0x1] }
 0x255   : > { %v4907_v10 = vunpack.c.l.bf16 %v6219_v57 }
 0x256   : > { %5168 = vst [vmem:[%s7850_s24 + $0x58] sm:$0xff] %v5136_v32  ;;  %v4779_v12 = vmul.f32 %v7815_v55, %v4676_v7  ;;  %v5018_v52 = vsel %vm4980_vm6, %v5016_v53, %v5017_v49 }
 0x257   : > { %v3508_v4 = vpop.f32.mrf.mxu2  ;;  %v5019_v38 = vrot.slane %v4907_v10, 1 }
 0x258   : > { %v4815_v56 = vadd.f32 %v7828_v39, %v4779_v12  ;;  %v3569_v62 = vadd.f32 %v3508_v4, %v3254_v43  ;;  %v4190_v30 = vpop.f32.mrf.mxu3  ;;  %v8118_v39 = vld [vmem:[%s8247_s2] ss:$0 sm:$0xff]  ;;  %v6220_v12 = vld [vmem:[%s7779_s13 + $0x6c] sm:$0xff]  }
 0x259   : > { %v3196_v26 = vpop.f32.mrf.mxu1  ;;  %v4908_v25 = vunpack.c.l.bf16 %v6220_v12 }
 0x25a   : > { %v5105_v29 = vadd.f32 %v5013_v33, %v4815_v56  ;;  %v4251_v5 = vadd.f32 %v4190_v30, %v3569_v62  ;;  %v3255_v34 = vadd.f32 %v3196_v26, %v7491_v60  ;;  %v5020_v33 = vsel %vm4980_vm6, %v5017_v49, %v5019_v38 }
 0x25b   : > { %v4619_v55 = vpop.f32.mrf.mxu0  ;;  %v4909_v56 = vunpack.c.h.bf16 %v6220_v12 }
 0x25c   : > { %v5137_v37 = vmax.f32 %v5105_v29, 0.0  ;;  %v4677_v61 = vadd.f32 %v4616_v9, %v4251_v5  ;;  %3235 = vmatmul.bf16.gmra.mxu1 %v3087_v22  ;;  %3550 = vmatmul.bf16.gmra.mxu2 %v6342_v21  ;;  %v5021_v29 = vrot.slane %v4908_v25, 1 }
 0x25d   : > { %4232 = vmatmul.bf16.gmra.mxu3 %v4084_v46  ;;  %v5022_v5 = vrot.slane %v4909_v56, 1 }
 0x25e   : > { %4658 = vmatmul.bf16.gmra.mxu0 %v4510_v18  ;;  %5169 = vst [vmem:[%s7850_s24 + $0x60] sm:$0xff] %v5137_v37  ;;  %v4780_v42 = vmul.f32 %v8118_v39, %v4677_v61 }
 0x25f   : > { %v3511_v20 = vpop.f32.mrf.mxu2  ;;  %v5023_v23 = vsel %vm4980_vm6, %v5021_v29, %v5022_v5 }
 0x260   : > { %v4816_v11 = vadd.f32 %v8126_v13, %v4780_v42  ;;  %v3570_v1 = vadd.f32 %v3511_v20, %v3255_v34  ;;  %v4193_v3 = vpop.f32.mrf.mxu3 }
 0x261   : > { %v3198_v35 = vpop.f32.mrf.mxu1 }
 0x262   : > { %v5106_v19 = vadd.f32 %v5015_v41, %v4816_v11  ;;  %v4252_v58 = vadd.f32 %v4193_v3, %v3570_v1  ;;  %v3256_v9 = vadd.f32 %v3198_v35, %v7508_v47 }
 0x263   : > { %v4621_v60 = vpop.f32.mrf.mxu0 }
 0x264   : > { %v5138_v8 = vmax.f32 %v5106_v19, 0.0  ;;  %v4678_v16 = vadd.f32 %v4619_v55, %v4252_v58 }
 0x266   : > { %5170 = vst [vmem:[%s7850_s24 + $0x68] sm:$0xff] %v5138_v8  ;;  %v4781_v63 = vmul.f32 %v8118_v39, %v4678_v16 }
 0x267   : > { %v3513_v14 = vpop.f32.mrf.mxu2 }
 0x268   : > { %v4817_v48 = vadd.f32 %v8126_v13, %v4781_v63  ;;  %v3571_v32 = vadd.f32 %v3513_v14, %v3256_v9  ;;  %v4195_v7 = vpop.f32.mrf.mxu3 }
 0x269   : > { %v3201_v2 = vpop.f32.mrf.mxu1 }
 0x26a   : > { %v5107_v0 = vadd.f32 %v5018_v52, %v4817_v48  ;;  %v4253_v54 = vadd.f32 %v4195_v7, %v3571_v32  ;;  %v3257_v47 = vadd.f32 %v3201_v2, %v7530_v36  ;;  %v6222_v36 = vld [vmem:[%s7779_s13 + $0x74] sm:$0x1] }
 0x26b   : > { %v4624_v27 = vpop.f32.mrf.mxu0  ;;  %v4910_v34 = vunpack.c.l.bf16 %v6222_v36 }
 0x26c   : > { %v5139_v59 = vmax.f32 %v5107_v0, 0.0  ;;  %v4679_v17 = vadd.f32 %v4621_v60, %v4253_v54  ;;  %v6403_v60 = vld [vmem:[%s7779_s13 + $0x78] sm:$0xff]  }
 0x26d   : > { %v5024_v35 = vrot.slane %v4910_v34, 1  ;;  %v6385_v16 = vunpack.c.l.bf16 %v6403_v60  ;;  %v6386_v57 = vunpack.c.h.bf16 %v6403_v60 }
 0x26e   : > { %5171 = vst [vmem:[%s7850_s24 + $0x70] sm:$0xff] %v5139_v59  ;;  %v4782_v43 = vmul.f32 %v8118_v39, %v4679_v17 }
 0x26f   : > { %v3516_v4 = vpop.f32.mrf.mxu2  ;;  %v5025_v49 = vsel %vm4980_vm6, %v5022_v5, %v5024_v35  ;;  %v5026_v7 = vrot.slane %v6385_v16, 1  ;;  %v5027_v2 = vrot.slane %v6386_v57, 1 }
 0x270   : > { %v4818_v62 = vadd.f32 %v8126_v13, %v4782_v43  ;;  %v3572_v30 = vadd.f32 %v3516_v4, %v3257_v47  ;;  %v4198_v22 = vpop.f32.mrf.mxu3 }
 0x271   : > { %v3203_v21 = vpop.f32.mrf.mxu1  ;;  %v5028_v59 = vsel %vm4980_vm6, %v5026_v7, %v5027_v2 }
 0x272   : > { %v5108_v26 = vadd.f32 %v5020_v33, %v4818_v62  ;;  %v4254_v46 = vadd.f32 %v4198_v22, %v3572_v30  ;;  %v3258_v61 = vadd.f32 %v3203_v21, %v7540_v50 }
 0x273   : > { %v4626_v18 = vpop.f32.mrf.mxu0 }
 0x274   : > { %v5140_v55 = vmax.f32 %v5108_v26, 0.0  ;;  %v4680_v31 = vadd.f32 %v4624_v27, %v4254_v46  ;;  %v6226_v26 = vld [vmem:[%s7779_s13 + $0x84] sm:$0xff]  }
 0x275   : > { %v4914_v5 = vunpack.c.l.bf16 %v6226_v26 }
 0x276   : > { %5172 = vst [vmem:[%s7850_s24 + $0x78] sm:$0xff] %v5140_v55  ;;  %v4783_v37 = vmul.f32 %v8118_v39, %v4680_v31  ;;  %v4915_v55 = vunpack.c.h.bf16 %v6226_v26 }
 0x277   : > { %v3518_v42 = vpop.f32.mrf.mxu2 }
 0x278   : > { %v4819_v41 = vadd.f32 %v8126_v13, %v4783_v37  ;;  %v3573_v20 = vadd.f32 %v3518_v42, %v3258_v61  ;;  %v4200_v51 = vpop.f32.mrf.mxu3 }
 0x279   : > { %v3206_v6 = vpop.f32.mrf.mxu1 }
 0x27a   : > { %v5109_v11 = vadd.f32 %v5023_v23, %v4819_v41  ;;  %v4255_v1 = vadd.f32 %v4200_v51, %v3573_v20  ;;  %v3259_v50 = vadd.f32 %v3206_v6, %v7562_v28  ;;  %v6225_v28 = vld [vmem:[%s7779_s13 + $0x80] sm:$0x1]  ;;  %v5031_v41 = vrot.slane %v4914_v5, 1 }
 0x27b   : > { %v4629_v3 = vpop.f32.mrf.mxu0  ;;  %v4913_v12 = vunpack.c.l.bf16 %v6225_v28  ;;  %v5032_v20 = vrot.slane %v4915_v55, 1 }
 0x27c   : > { %v5141_v19 = vmax.f32 %v5109_v11, 0.0  ;;  %v4681_v58 = vadd.f32 %v4626_v18, %v4255_v1 }
 0x27d   : > { %v5029_v30 = vrot.slane %v4913_v12, 1 }
 0x27e   : > { %5173 = vst [vmem:[%s7850_s24 + $0x80] sm:$0xff] %v5141_v19  ;;  %v4784_v53 = vmul.f32 %v8118_v39, %v4681_v58 }
 0x27f   : > { %v3521_v8 = vpop.f32.mrf.mxu2  ;;  %v5030_v18 = vsel %vm4980_vm6, %v5027_v2, %v5029_v30 }
 0x280   : > { %v4820_v63 = vadd.f32 %v8126_v13, %v4784_v53  ;;  %v3574_v9 = vadd.f32 %v3521_v8, %v3259_v50  ;;  %v4203_v52 = vpop.f32.mrf.mxu3 }
 0x281   : > { %v3208_v14 = vpop.f32.mrf.mxu1 }
 0x282   : > { %v5110_v10 = vadd.f32 %v5025_v49, %v4820_v63  ;;  %v4256_v48 = vadd.f32 %v4203_v52, %v3574_v9  ;;  %v3260_v38 = vadd.f32 %v3208_v14, %v7578_v15  ;;  %v6404_v52 = vld [vmem:[%s7779_s13 + $0x90] sm:$0xff]  }
 0x283   : > { %v4631_v32 = vpop.f32.mrf.mxu0  ;;  %v6390_v7 = vunpack.c.h.bf16 %v6404_v52 }
 0x284   : > { %v5142_v0 = vmax.f32 %v5110_v10, 0.0  ;;  %v4682_v54 = vadd.f32 %v4629_v3, %v4256_v48  ;;  %v5033_v3 = vsel %vm4980_vm6, %v5031_v41, %v5032_v20 }
 0x285   : > { %v5037_v12 = vrot.slane %v6390_v7, 1 }
 0x286   : > { %5174 = vst [vmem:[%s7850_s24 + $0x88] sm:$0xff] %v5142_v0  ;;  %v4785_v27 = vmul.f32 %v8118_v39, %v4682_v54 }
 0x287   : > { %v3523_v17 = vpop.f32.mrf.mxu2 }
 0x288   : > { %v4821_v43 = vadd.f32 %v8126_v13, %v4785_v27  ;;  %v3575_v47 = vadd.f32 %v3523_v17, %v3260_v38  ;;  %v4205_v33 = vpop.f32.mrf.mxu3 }
 0x289   : > { %v3211_v4 = vpop.f32.mrf.mxu1 }
 0x28a   : > { %v5111_v25 = vadd.f32 %v5028_v59, %v4821_v43  ;;  %v4257_v56 = vadd.f32 %v4205_v33, %v3575_v47  ;;  %v3261_v15 = vadd.f32 %v3211_v4, %v7600_v24  ;;  %v6228_v24 = vld [vmem:[%s7779_s13 + $0x8c] sm:$0x1] }
 0x28b   : > { %v4634_v62 = vpop.f32.mrf.mxu0  ;;  %v4916_v19 = vunpack.c.l.bf16 %v6228_v24 }
 0x28c   : > { %v5143_v22 = vmax.f32 %v5111_v25, 0.0  ;;  %v4683_v21 = vadd.f32 %v4631_v32, %v4257_v56  ;;  %v6389_v32 = vunpack.c.l.bf16 %v6404_v52 }
 0x28d   : > { %v5034_v57 = vrot.slane %v4916_v19, 1 }
 0x28e   : > { %5175 = vst [vmem:[%s7850_s24 + $0x90] sm:$0xff] %v5143_v22  ;;  %v4786_v46 = vmul.f32 %v8118_v39, %v4683_v21  ;;  %v5036_v17 = vrot.slane %v6389_v32, 1 }
 0x28f   : > { %v3526_v29 = vpop.f32.mrf.mxu2  ;;  %v5035_v10 = vsel %vm4980_vm6, %v5032_v20, %v5034_v57 }
 0x290   : > { %v4822_v31 = vadd.f32 %v8126_v13, %v4786_v46  ;;  %v3576_v36 = vadd.f32 %v3526_v29, %v3261_v15  ;;  %v4208_v37 = vpop.f32.mrf.mxu3  ;;  %v5038_v25 = vsel %vm4980_vm6, %v5036_v17, %v5037_v12 }
 0x291   : > { %v3213_v61 = vpop.f32.mrf.mxu1 }
 0x292   : > { %v5112_v23 = vadd.f32 %v5030_v18, %v4822_v31  ;;  %v4258_v42 = vadd.f32 %v4208_v37, %v3576_v36  ;;  %v3262_v1 = vadd.f32 %v3213_v61, %v7610_v45  ;;  %v6232_v31 = vld [vmem:[%s7779_s13 + $0x9c] sm:$0xff]  }
 0x293   : > { %v4636_v34 = vpop.f32.mrf.mxu0 }
 0x294   : > { %v5144_v51 = vmax.f32 %v5112_v23, 0.0  ;;  %v4684_v6 = vadd.f32 %v4634_v62, %v4258_v42  ;;  %v4920_v42 = vunpack.c.l.bf16 %v6232_v31 }
 0x296   : > { %5176 = vst [vmem:[%s7850_s24 + $0x98] sm:$0xff] %v5144_v51  ;;  %v4787_v11 = vmul.f32 %v8118_v39, %v4684_v6 }
 0x297   : > { %v3528_v35 = vpop.f32.mrf.mxu2 }
 0x298   : > { %v4823_v58 = vadd.f32 %v8126_v13, %v4787_v11  ;;  %v3577_v60 = vadd.f32 %v3528_v35, %v3262_v1  ;;  %v4210_v53 = vpop.f32.mrf.mxu3 }
 0x299   : > { %v3216_v50 = vpop.f32.mrf.mxu1 }
 0x29a   : > { %v5113_v49 = vadd.f32 %v5033_v3, %v4823_v58  ;;  %v4259_v8 = vadd.f32 %v4210_v53, %v3577_v60  ;;  %v3263_v45 = vadd.f32 %v3216_v50, %v7632_v44  ;;  %v6231_v44 = vld [vmem:[%s7779_s13 + $0x98] sm:$0x1]  ;;  %v5041_v3 = vrot.slane %v4920_v42, 1  ;;  %v6234_v60 = vld [vmem:[%s7779_s13 + $0xa4] sm:$0x1]  ;;  %v8280_v50 = vld [vmem:[#allocation12_spill] sm:$0xff] }
 0x29b   : > { %v4639_v16 = vpop.f32.mrf.mxu0  ;;  %v4919_v62 = vunpack.c.l.bf16 %v6231_v44  ;;  %v4922_v57 = vunpack.c.l.bf16 %v6234_v60 }
 0x29c   : > { %v5145_v63 = vmax.f32 %v5113_v49, 0.0  ;;  %v4685_v9 = vadd.f32 %v4636_v34, %v4259_v8  ;;  %v4921_v34 = vunpack.c.h.bf16 %v6232_v31 }
 0x29d   : > { %v5039_v29 = vrot.slane %v4919_v62, 1  ;;  %v5044_v32 = vrot.slane %v4922_v57, 1 }
 0x29e   : > { %5177 = vst [vmem:[%s7850_s24 + $0xa0] sm:$0xff] %v5145_v63  ;;  %v4788_v14 = vmul.f32 %v8118_v39, %v4685_v9  ;;  %v5042_v35 = vrot.slane %v4921_v34, 1 }
 0x29f   : > { %v3531_v48 = vpop.f32.mrf.mxu2  ;;  %v5040_v61 = vsel %vm4980_vm6, %v5037_v12, %v5039_v29 }
 0x2a0   : > { %v4824_v2 = vadd.f32 %v8126_v13, %v4788_v14  ;;  %v3578_v0 = vadd.f32 %v3531_v48, %v3263_v45  ;;  %v4213_v54 = vpop.f32.mrf.mxu3  ;;  %v5043_v8 = vsel %vm4980_vm6, %v5041_v3, %v5042_v35 }
 0x2a1   : > { %v3218_v28 = vpop.f32.mrf.mxu1 }
 0x2a2   : > { %v5114_v27 = vadd.f32 %v5035_v10, %v4824_v2  ;;  %v4260_v38 = vadd.f32 %v4213_v54, %v3578_v0  ;;  %v3264_v4 = vadd.f32 %v3218_v28, %v7648_v40  ;;  %v8279_v40 = vld [vmem:[#allocation11_spill] sm:$0xff]  ;;  %v6405_v0 = vld [vmem:[%s7779_s13 + $0xa8] sm:$0xff]   ;;  %v8281_v28 = vld [vmem:[#allocation13_spill] sm:$0xff] }
 0x2a3   : > { %v4641_v59 = vpop.f32.mrf.mxu0  ;;  %v6393_v17 = vunpack.c.l.bf16 %v6405_v0  ;;  %v6394_v12 = vunpack.c.h.bf16 %v6405_v0 }
 0x2a4   : > { %v5146_v43 = vmax.f32 %v5114_v27, 0.0  ;;  %v4686_v47 = vadd.f32 %v4639_v16, %v4260_v38  ;;  %v5045_v38 = vsel %vm4980_vm6, %v5042_v35, %v5044_v32 }
 0x2a5   : > { %v5047_v62 = vrot.slane %v6394_v12, 1 }
 0x2a6   : > { %5178 = vst [vmem:[%s7850_s24 + $0xa8] sm:$0xff] %v5146_v43  ;;  %v4789_v33 = vmul.f32 %v8118_v39, %v4686_v47 }
 0x2a7   : > { %v3533_v56 = vpop.f32.mrf.mxu2 }
 0x2a8   : > { %v4825_v30 = vadd.f32 %v8126_v13, %v4789_v33  ;;  %v3579_v22 = vadd.f32 %v3533_v56, %v3264_v4  ;;  %v4215_v21 = vpop.f32.mrf.mxu3  ;;  %v5046_v56 = vrot.slane %v6393_v17, 1 }
 0x2a9   : > { %v3221_v26 = vpop.f32.mrf.mxu1 }
 0x2aa   : > { %v5115_v46 = vadd.f32 %v5038_v25, %v4825_v30  ;;  %v4261_v15 = vadd.f32 %v4215_v21, %v3579_v22  ;;  %v3265_v37 = vadd.f32 %v3221_v26, %v8279_v40  ;;  %v6237_v26 = vld [vmem:[%s7779_s13 + $0xb0] sm:$0x1]  ;;  %v5048_v29 = vsel %vm4980_vm6, %v5046_v56, %v5047_v62 }
 0x2ab   : > { %v4644_v18 = vpop.f32.mrf.mxu0 }
 0x2ac   : > { %v5147_v5 = vmax.f32 %v5115_v46, 0.0  ;;  %v4687_v55 = vadd.f32 %v4641_v59, %v4261_v15  ;;  %v8282_v15 = vld [vmem:[#allocation3_spill] sm:$0xff] }
 0x2ae   : > { %5179 = vst [vmem:[%s7850_s24 + $0xb0] sm:$0xff] %v5147_v5  ;;  %v4790_v36 = vmul.f32 %v8118_v39, %v4687_v55  ;;  %v4925_v55 = vunpack.c.l.bf16 %v6237_v26 }
 0x2af   : > { %v3536_v23 = vpop.f32.mrf.mxu2 }
 0x2b0   : > { %v4826_v41 = vadd.f32 %v8126_v13, %v4790_v36  ;;  %v3580_v20 = vadd.f32 %v3536_v23, %v3265_v37  ;;  %v4218_v51 = vpop.f32.mrf.mxu3  ;;  %v5049_v42 = vrot.slane %v4925_v55, 1 }
 0x2b1   : > { %v3223_v6 = vpop.f32.mrf.mxu1 }
 0x2b2   : > { %v5116_v24 = vadd.f32 %v5040_v61, %v4826_v41  ;;  %v4262_v11 = vadd.f32 %v4218_v51, %v3580_v20  ;;  %v3266_v49 = vadd.f32 %v3223_v6, %v8280_v50  ;;  %v6238_v20 = vld [vmem:[%s7779_s13 + $0xb4] sm:$0xff]  }
 0x2b3   : > { %v4646_v1 = vpop.f32.mrf.mxu0  ;;  %v4926_v35 = vunpack.c.l.bf16 %v6238_v20 }
 0x2b4   : > { %v5148_v19 = vmax.f32 %v5116_v24, 0.0  ;;  %v4688_v58 = vadd.f32 %v4644_v18, %v4262_v11  ;;  %v8283_v24 = vld [vmem:[#allocation4_spill] sm:$0xff] }
 0x2b6   : > { %5180 = vst [vmem:[%s7850_s24 + $0xb8] sm:$0xff] %v5148_v19  ;;  %v4791_v53 = vmul.f32 %v8118_v39, %v4688_v58  ;;  %v4927_v19 = vunpack.c.h.bf16 %v6238_v20 }
 0x2b7   : > { %v3538_v16 = vpop.f32.mrf.mxu2 }
 0x2b8   : > { %v4827_v63 = vadd.f32 %v8126_v13, %v4791_v53  ;;  %v3581_v9 = vadd.f32 %v3538_v16, %v3266_v49  ;;  %v4220_v52 = vpop.f32.mrf.mxu3  ;;  %v5051_v16 = vrot.slane %v4926_v35, 1  ;;  %v5052_v57 = vrot.slane %v4927_v19, 1 }
 0x2b9   : > { %v3226_v14 = vpop.f32.mrf.mxu1 }
 0x2ba   : > { %v5117_v45 = vadd.f32 %v5043_v8, %v4827_v63  ;;  %v4263_v10 = vadd.f32 %v4220_v52, %v3581_v9  ;;  %v3267_v27 = vadd.f32 %v3226_v14, %v8281_v28  ;;  %v6240_v52 = vld [vmem:[%s7779_s13 + $0xbc] sm:$0x1] }
 0x2bb   : > { %v4649_v48 = vpop.f32.mrf.mxu0 }
 0x2bc   : > { %v5149_v7 = vmax.f32 %v5117_v45, 0.0  ;;  %v4689_v2 = vadd.f32 %v4646_v1, %v4263_v10  ;;  %v5050_v1 = vsel %vm4980_vm6, %v5047_v62, %v5049_v42  ;;  %v8284_v45 = vld [vmem:[#allocation5_spill] sm:$0xff] }
 0x2be   : > { %5181 = vst [vmem:[%s7850_s24 + $0xc0] sm:$0xff] %v5149_v7  ;;  %v4792_v54 = vmul.f32 %v8118_v39, %v4689_v2  ;;  %v4928_v2 = vunpack.c.l.bf16 %v6240_v52 }
 0x2bf   : > { %v3541_v59 = vpop.f32.mrf.mxu2 }
 0x2c0   : > { %v4828_v43 = vadd.f32 %v8126_v13, %v4792_v54  ;;  %v3582_v47 = vadd.f32 %v3541_v59, %v3267_v27  ;;  %v4223_v44 = vpop.f32.mrf.mxu3  ;;  %v5054_v17 = vrot.slane %v4928_v2, 1 }
 0x2c1   : > { %v3228_v33 = vpop.f32.mrf.mxu1 }
 0x2c2   : > { %v5118_v4 = vadd.f32 %v5045_v38, %v4828_v43  ;;  %v4264_v25 = vadd.f32 %v4223_v44, %v3582_v47  ;;  %v3268_v18 = vadd.f32 %v3228_v33, %v8282_v15  ;;  %v6406_v47 = vld [vmem:[%s7779_s13 + $0xc0] sm:$0xff]   ;;  %v8285_v33 = vld [vmem:[#allocation6_spill] sm:$0xff] }
 0x2c3   : > { %v4651_v30 = vpop.f32.mrf.mxu0  ;;  %v6397_v62 = vunpack.c.l.bf16 %v6406_v47 }
 0x2c4   : > { %v5150_v22 = vmax.f32 %v5118_v4, 0.0  ;;  %v4690_v21 = vadd.f32 %v4649_v48, %v4264_v25  ;;  %v5053_v48 = vsel %vm4980_vm6, %v5051_v16, %v5052_v57  ;;  %v5055_v25 = vsel %vm4980_vm6, %v5052_v57, %v5054_v17 }
 0x2c6   : > { %5182 = vst [vmem:[%s7850_s24 + $0xc8] sm:$0xff] %v5150_v22  ;;  %v4793_v46 = vmul.f32 %v8118_v39, %v4690_v21 }
 0x2c7   : > { %v3543_v5 = vpop.f32.mrf.mxu2 }
 0x2c8   : > { %v4829_v31 = vadd.f32 %v8126_v13, %v4793_v46  ;;  %v3583_v36 = vadd.f32 %v3543_v5, %v3268_v18  ;;  %v4225_v40 = vpop.f32.mrf.mxu3 }
 0x2c9   : > { %v3231_v37 = vpop.f32.mrf.mxu1 }
 0x2ca   : > { %v5119_v61 = vadd.f32 %v5048_v29, %v4829_v31  ;;  %v4265_v23 = vadd.f32 %v4225_v40, %v3583_v36  ;;  %v3269_v11 = vadd.f32 %v3231_v37, %v8283_v24  ;;  %v5056_v29 = vrot.slane %v6397_v62, 1  ;;  %v6243_v40 = vld [vmem:[%s7779_s13 + $0xc8] sm:$0x1] }
 0x2cb   : > { %v4654_v51 = vpop.f32.mrf.mxu0 }
 0x2cc   : > { %v5151_v34 = vmax.f32 %v5119_v61, 0.0  ;;  %v4691_v41 = vadd.f32 %v4651_v30, %v4265_v23  ;;  %v6398_v30 = vunpack.c.h.bf16 %v6406_v47  ;;  %v8286_v61 = vld [vmem:[#allocation7_spill] sm:$0xff] }
 0x2ce   : > { %5183 = vst [vmem:[%s7850_s24 + $0xd0] sm:$0xff] %v5151_v34  ;;  %v4794_v6 = vmul.f32 %v8118_v39, %v4691_v41  ;;  %v5057_v5 = vrot.slane %v6398_v30, 1  ;;  %v4931_v41 = vunpack.c.l.bf16 %v6243_v40 }
 0x2cf   : > { %v3546_v3 = vpop.f32.mrf.mxu2 }
 0x2d0   : > { %v4830_v58 = vadd.f32 %v8126_v13, %v4794_v6  ;;  %v3584_v60 = vadd.f32 %v3546_v3, %v3269_v11  ;;  %v4228_v53 = vpop.f32.mrf.mxu3  ;;  %v5058_v42 = vsel %vm4980_vm6, %v5056_v29, %v5057_v5  ;;  %v5059_v3 = vrot.slane %v4931_v41, 1 }
 0x2d1   : > { %v3233_v50 = vpop.f32.mrf.mxu1 }
 0x2d2   : > { %v5120_v49 = vadd.f32 %v5050_v1, %v4830_v58  ;;  %v4266_v8 = vadd.f32 %v4228_v53, %v3584_v60  ;;  %v3270_v10 = vadd.f32 %v3233_v50, %v8284_v45  ;;  %v5060_v60 = vsel %vm4980_vm6, %v5057_v5, %v5059_v3 }
 0x2d3   : > { %v4656_v32 = vpop.f32.mrf.mxu0 }
 0x2d4   : > { %v5152_v63 = vmax.f32 %v5120_v49, 0.0  ;;  %v4692_v9 = vadd.f32 %v4654_v51, %v4266_v8 }
 0x2d6   : > { %5184 = vst [vmem:[%s7850_s24 + $0xd8] sm:$0xff] %v5152_v63  ;;  %v4795_v14 = vmul.f32 %v8118_v39, %v4692_v9 }
 0x2d7   : > { %v3548_v7 = vpop.f32.mrf.mxu2 }
 0x2d8   : > { %v4831_v0 = vadd.f32 %v8126_v13, %v4795_v14  ;;  %v3585_v54 = vadd.f32 %v3548_v7, %v3270_v10  ;;  %v4230_v28 = vpop.f32.mrf.mxu3 }
 0x2d9   : > { %v3236_v27 = vpop.f32.mrf.mxu1 }
 0x2da   : > { %v5121_v38 = vadd.f32 %v5053_v48, %v4831_v0  ;;  %v4267_v59 = vadd.f32 %v4230_v28, %v3585_v54  ;;  %v3271_v4 = vadd.f32 %v3236_v27, %v8285_v33 }
 0x2db   : > { %v4659_v46 = vpop.f32.mrf.mxu0 }
 0x2dc   : > { %v5153_v12 = vmax.f32 %v5121_v38, 0.0  ;;  %v4693_v43 = vadd.f32 %v4656_v32, %v4267_v59 }
 0x2de   : > { %5185 = vst [vmem:[%s7850_s24 + $0xe0] sm:$0xff] %v5153_v12  ;;  %v4796_v44 = vmul.f32 %v8118_v39, %v4693_v43 }
 0x2df   : > { %v3551_v56 = vpop.f32.mrf.mxu2 }
 0x2e0   : > { %v4832_v22 = vadd.f32 %v8126_v13, %v4796_v44  ;;  %v3586_v21 = vadd.f32 %v3551_v56, %v3271_v4  ;;  %v4233_v26 = vpop.f32.mrf.mxu3 }
 0x2e1   : > { %v3238_v55 = vpop.f32.mrf.mxu1 }
 0x2e2   : > { %v5122_v15 = vadd.f32 %v5055_v25, %v4832_v22  ;;  %v4268_v18 = vadd.f32 %v4233_v26, %v3586_v21  ;;  %v3272_v23 = vadd.f32 %v3238_v55, %v8286_v61 }
 0x2e3   : > { %v4661_v1 = vpop.f32.mrf.mxu0 }
 0x2e4   : > { %v5154_v31 = vmax.f32 %v5122_v15, 0.0  ;;  %v4694_v36 = vadd.f32 %v4659_v46, %v4268_v18 }
 0x2e6   : > { %5186 = vst [vmem:[%s7850_s24 + $0xe8] sm:$0xff] %v5154_v31  ;;  %v4797_v37 = vmul.f32 %v8118_v39, %v4694_v36 }
 0x2e7   : > { %v3553_v34 = vpop.f32.mrf.mxu2 }
 0x2e8   : > { %v4833_v20 = vadd.f32 %v8126_v13, %v4797_v37  ;;  %v3587_v51 = vadd.f32 %v3553_v34, %v3272_v23  ;;  %v4235_v6 = vpop.f32.mrf.mxu3 }
 0x2ea   : > { %v5123_v24 = vadd.f32 %v5058_v42, %v4833_v20  ;;  %v4269_v11 = vadd.f32 %v4235_v6, %v3587_v51 }
 0x2ec   : > { %v5155_v35 = vmax.f32 %v5123_v24, 0.0  ;;  %v4695_v19 = vadd.f32 %v4661_v1, %v4269_v11 }
 0x2ee   : > { %5187 = vst [vmem:[%s7850_s24 + $0xf0] sm:$0xff] %v5155_v35  ;;  %v4798_v58 = vmul.f32 %v8118_v39, %v4695_v19 }
 0x2f0   : > { %v4834_v53 = vadd.f32 %v8126_v13, %v4798_v58 }
 0x2f2   : > { %v5124_v50 = vadd.f32 %v5060_v60, %v4834_v53 }
 0x2f4   : > { %v5156_v49 = vmax.f32 %v5124_v50, 0.0 }
 0x2f6   : > { %5188 = vst [vmem:[%s7850_s24 + $0xf8] sm:$0xff] %v5156_v49 }
 0x2f7 PF: > { %s15_s20 = sadd.s32 1, %s6514_s20   ;;  %s8287_s18 = smov %s6510_s19 }
 0x2f8   : > { %p12_p5 = scmp.ge.s32.totalorder %s15_s20, 4   ;;  %s8288_s19 = smov %s8290_s21 }
 0x2fa   :  { %14 = sbr.rel (!%p12_p5) target bundleno = 2 (0x2), region = 101 }

// kernel: basic_block_forward.2
= control target key start
LH: loop header
LB: loop body
LE: loop exit
PB: predicated region body
PF: predicated region fallthrough
CT: control target
= control target key end

     0   :  { %s6662_s15 = smov 0   ;;  %s6664_s16 = smov 0   ;;  %s8637_s0 = inlined_call_operand.vmem [shape: bf16[2,18,18,128], index: 0, kind: input, shape index: {}]   ;;  %s8638_s1 = inlined_call_operand.vmem [shape: bf16[3,3,128,128], index: 1, kind: input, shape index: {}]   ;;  %s8639_s2 = inlined_call_operand.vmem [shape: f32[1,128], index: 2, kind: input, shape index: {}]   ;;  %s8640_s3 = inlined_call_operand.vmem [shape: f32[1,128], index: 3, kind: input, shape index: {}]   ;;  %s8641_s4 = inlined_call_operand.vmem [shape: bf16[2,18,18,128], index: 4, kind: output, shape index: {}]  }
   0x1   :  { %s6666_s17 = smov 0  }
   0x2 LB: > { %s33_s18 = sadd.s32 1, %s6630_s16  ;;  %p5473_p0 = scmp.ge.s32.totalorder %s6634_s17, 1  ;;  %s6634_s17 = sphi %s6666_s17, %s14_s17   ;;  %s6630_s16 = sphi %s6664_s16, %s8681_s16   ;;  %s6626_s15 = sphi %s6662_s15, %s8680_s15  }
   0x3   : > { %p35_p1 = scmp.ge.s32.totalorder %s33_s18, 2  ;;  %p220_p2 = scmp.lt.s32.totalorder %s6634_s17, 3 }
   0x5   : > { %s8683_s18 = smov (%p35_p1, %s33_s18), 0  ;;  %p221_p3 = pnand %p5473_p0, %p220_p2 }
   0x7   : > { %224 = sbr.rel (%p221_p3) target bundleno = 768 (0x300), region = 36 }
   0xc   : > { %v6429_v0 = vld [vmem:[%s8638_s1 + $0x38] sm:$0xff]  ;;  %v6428_v1 = vld [vmem:[%s8638_s1 + $0x30] sm:$0xff]  ;;  %v6427_v2 = vld [vmem:[%s8638_s1 + $0x28] sm:$0xff]  ;;  %p266_p4 = scmp.lt.s32.totalorder %s6626_s15, 1  ;;  %vm744_vm0 = vsmask.f32 3328 }
   0xd   : > { %6526 = vmatpush.bf16.msra.mxu1 %v6429_v0  ;;  %6527 = vmatpush.bf16.msra.mxu2 %v6429_v0  ;;  %v6426_v3 = vld [vmem:[%s8638_s1 + $0x20] sm:$0xff]  ;;  %v6425_v4 = vld [vmem:[%s8638_s1 + $0x18] sm:$0xff]  ;;  %v6424_v5 = vld [vmem:[%s8638_s1 + $0x10] sm:$0xff]  ;;  %vm745_vm1 = vsmask.f32 7440  ;;  %vm1445_vm2 = vcmask 1042432  }
   0xe   : > { %6528 = vmatpush.bf16.msra.mxu3 %v6429_v0  ;;  %558 = vmatpush.bf16.msra.mxu0 %v6429_v0  ;;  %s8685_s15 = smov (!%p266_p4, %s6626_s15), 1  ;;  %v6423_v6 = vld [vmem:[%s8638_s1 + $0x8] sm:$0xff]  ;;  %v6422_v7 = vld [vmem:[%s8638_s1] sm:$0xff]  ;;  %v6445_v8 = vld [vmem:[%s8638_s1 + $0xb8] sm:$0xff]  ;;  %vm1446_vm3 = vcmask 1046532   ;;  %vm5220_vm6 = vcmask 1043456  }
   0xf   : > { %s6550_s7 = smul.u32 216, %s8685_s15  ;;  %v6469_v9 = vld [vmem:[%s8638_s1 + $0xf8] sm:$0xff]  ;;  %v6444_v16 = vld [vmem:[%s8638_s1 + $0xb0] sm:$0xff]  ;;  %v6443_v20 = vld [vmem:[%s8638_s1 + $0xa8] sm:$0xff]  ;;  %vm5221_vm7 = vsmask.f32 7938 }
  0x10   : > { %v6437_v14 = vld [vmem:[%s8638_s1 + $0x78] sm:$0xff]  ;;  %v6468_v17 = vld [vmem:[%s8638_s1 + $0xf0] sm:$0xff]  ;;  %v6467_v21 = vld [vmem:[%s8638_s1 + $0xe8] sm:$0xff]  ;;  %vm4896_vm8 = vsmask.f32 256  ;;  %vm5227_vm11 = vcmask 1040384  }
  0x11   : > { %6529 = vmatpush.bf16.msra.mxu1 %v6428_v1  ;;  %6530 = vmatpush.bf16.msra.mxu2 %v6428_v1  ;;  %s6716_s12 = scalar_lea.vmem %s8637_s0, %s6550_s7  ;;  %v6477_v15 = vld [vmem:[%s8638_s1 + $0x138] sm:$0xff]  ;;  %v6436_v18 = vld [vmem:[%s8638_s1 + $0x70] sm:$0xff]  ;;  %v6435_v22 = vld [vmem:[%s8638_s1 + $0x68] sm:$0xff]  ;;  %s7868_s27 = scalar_lea.vmem %s8641_s4, %s6550_s7  ;;  %vm4897_vm10 = vsmask.f32 4368 }
  0x12   : > { %6531 = vmatpush.bf16.msra.mxu3 %v6428_v1  ;;  %559 = vmatpush.bf16.msra.mxu0 %v6428_v1  ;;  %v6410_v10 = vld [vmem:[%s6716_s12 + $0x30] sm:$0xff]  ;;  %v6414_v11 = vld [vmem:[%s6716_s12 + $0x60] sm:$0xff]  ;;  %v6475_v23 = vld [vmem:[%s8638_s1 + $0x128] sm:$0xff] }
  0x13   : > { %v6418_v12 = vld [vmem:[%s6716_s12 + $0x90] sm:$0xff]  ;;  %v6406_v13 = vld [vmem:[%s6716_s12] sm:$0xff]  ;;  %v6441_v28 = vld [vmem:[%s8638_s1 + $0x98] sm:$0xff] }
  0x14   : > { %v6476_v19 = vld [vmem:[%s8638_s1 + $0x130] sm:$0xff]  ;;  %v6442_v24 = vld [vmem:[%s8638_s1 + $0xa0] sm:$0xff]  ;;  %v6465_v29 = vld [vmem:[%s8638_s1 + $0xd8] sm:$0xff] }
  0x15   : > { %6532 = vmatpush.bf16.msra.mxu1 %v6427_v2  ;;  %6533 = vmatpush.bf16.msra.mxu2 %v6427_v2  ;;  %v6466_v25 = vld [vmem:[%s8638_s1 + $0xe0] sm:$0xff]  ;;  %v6415_v31 = vld [vmem:[%s6716_s12 + $0x6c] sm:$0xff]  ;;  %v6433_v34 = vld [vmem:[%s8638_s1 + $0x58] sm:$0xff] }
  0x16   : > { %6534 = vmatpush.bf16.msra.mxu3 %v6427_v2  ;;  %560 = vmatpush.bf16.msra.mxu0 %v6427_v2  ;;  %v6434_v26 = vld [vmem:[%s8638_s1 + $0x60] sm:$0xff]  ;;  %v6407_v33 = vld [vmem:[%s6716_s12 + $0xc] sm:$0xff]  ;;  %v6473_v35 = vld [vmem:[%s8638_s1 + $0x118] sm:$0xff] }
  0x17   : > { %v6474_v27 = vld [vmem:[%s8638_s1 + $0x120] sm:$0xff]  ;;  %v6440_v36 = vld [vmem:[%s8638_s1 + $0x90] sm:$0xff]  ;;  %v6439_v40 = vld [vmem:[%s8638_s1 + $0x88] sm:$0xff] }
  0x18   : > { %v6411_v30 = vld [vmem:[%s6716_s12 + $0x3c] sm:$0xff]  ;;  %v6464_v37 = vld [vmem:[%s8638_s1 + $0xd0] sm:$0xff]  ;;  %v6463_v41 = vld [vmem:[%s8638_s1 + $0xc8] sm:$0xff] }
  0x19   : > { %6535 = vmatpush.bf16.msra.mxu1 %v6426_v3  ;;  %6536 = vmatpush.bf16.msra.mxu2 %v6426_v3  ;;  %v6419_v32 = vld [vmem:[%s6716_s12 + $0x9c] sm:$0xff]  ;;  %v6432_v38 = vld [vmem:[%s8638_s1 + $0x50] sm:$0xff]  ;;  %v6431_v42 = vld [vmem:[%s8638_s1 + $0x48] sm:$0xff] }
  0x1a   : > { %6537 = vmatpush.bf16.msra.mxu3 %v6426_v3  ;;  %561 = vmatpush.bf16.msra.mxu0 %v6426_v3  ;;  %v6472_v39 = vld [vmem:[%s8638_s1 + $0x110] sm:$0xff]  ;;  %v6471_v43 = vld [vmem:[%s8638_s1 + $0x108] sm:$0xff]  ;;  %v6438_v44 = vld [vmem:[%s8638_s1 + $0x80] sm:$0xff] }
  0x1b   : > { %v6462_v45 = vld [vmem:[%s8638_s1 + $0xc0] sm:$0xff]  ;;  %v6412_v48 = vld [vmem:[%s6716_s12 + $0x48] sm:$0xff]  ;;  %v6416_v49 = vld [vmem:[%s6716_s12 + $0x78] sm:$0xff] }
  0x1c   : > { %v6430_v46 = vld [vmem:[%s8638_s1 + $0x40] sm:$0xff]  ;;  %v6420_v50 = vld [vmem:[%s6716_s12 + $0xa8] sm:$0xff]  ;;  %v6408_v51 = vld [vmem:[%s6716_s12 + $0x18] sm:$0xff] }
  0x1d   : > { %6538 = vmatpush.bf16.msra.mxu1 %v6425_v4  ;;  %6539 = vmatpush.bf16.msra.mxu2 %v6425_v4  ;;  %v6470_v47 = vld [vmem:[%s8638_s1 + $0x100] sm:$0xff]  ;;  %v5828_v54 = vld [vmem:[%s6716_s12 + $0xc] sm:$0xf]  ;;  %v6509_v55 = vld [vmem:[%s8638_s1 + $0x1b8] sm:$0xff] }
  0x1e   : > { %6540 = vmatpush.bf16.msra.mxu3 %v6425_v4  ;;  %562 = vmatpush.bf16.msra.mxu0 %v6425_v4  ;;  %v679_v52 = vld [vmem:[%s6716_s12] sm:$0xf]  ;;  %v6828_v53 = vld [vmem:[%s6716_s12 + $0x4] sm:$0xf]  ;;  %v5829_v56 = vld [vmem:[%s6716_s12 + $0x10] sm:$0xf] }
  0x1f   : > { %v6517_v57 = vld [vmem:[%s8638_s1 + $0x1f8] sm:$0xff]  ;;  %v748_v60 = vshrl.u32 %v679_v52, 16  ;;  %v751_v61 = vshll.u32 %v679_v52, 16  ;;  %v757_v62 = vshll.u32 %v6828_v53, 16  ;;  %v761_v63 = vshrl.u32 %v6828_v53, 16  ;;  %vm6855_vm4 = vmor %vm744_vm0, %vm745_vm1 }
  0x20   : > { %v6485_v58 = vld [vmem:[%s8638_s1 + $0x178] sm:$0xff]  ;;  %v2174_v0 = vshrl.u32 %v5828_v54, 16  ;;  %v2177_v1 = vshll.u32 %v5828_v54, 16  ;;  %v2183_v2 = vshll.u32 %v5829_v56, 16  ;;  %v2187_v3 = vshrl.u32 %v5829_v56, 16  ;;  %vm6860_vm5 = vmor %vm1445_vm2, %vm1446_vm3 }
  0x21   : > { %6541 = vmatpush.bf16.msra.mxu1 %v6424_v5  ;;  %6542 = vmatpush.bf16.msra.mxu2 %v6424_v5  ;;  %v6525_v59 = vld [vmem:[%s8638_s1 + $0x238] sm:$0xff]  ;;  %v681_v4 = vld [vmem:[%s6716_s12 + $0x8] sm:$0x1]  ;;  %vm8092_vm9 = vmand %vm5220_vm6, %vm5221_vm7 }
  0x22   : > { %6543 = vmatpush.bf16.msra.mxu3 %v6424_v5  ;;  %563 = vmatpush.bf16.msra.mxu0 %v6424_v5  ;;  %v750_v5 = vrot.slane %v748_v60, 4  ;;  %vm8147_vm12 = vmor %vm4896_vm8, %vm4897_vm10 }
  0x23   : > { %vm8187_vm13 = vmand %vm5227_vm11, %vm4896_vm8 }
  0x25   : > { %6544 = vmatpush.bf16.msra.mxu1 %v6423_v6  ;;  %6545 = vmatpush.bf16.msra.mxu2 %v6423_v6 }
  0x26   : > { %6546 = vmatpush.bf16.msra.mxu3 %v6423_v6  ;;  %564 = vmatpush.bf16.msra.mxu0 %v6423_v6  ;;  %v753_v6 = vrot.slane %v751_v61, 5 }
  0x29   : > { %6547 = vmatpush.bf16.msra.mxu1 %v6422_v7  ;;  %6548 = vmatpush.bf16.msra.mxu2 %v6422_v7 }
  0x2a   : > { %6549 = vmatpush.bf16.msra.mxu3 %v6422_v7  ;;  %565 = vmatpush.bf16.msra.mxu0 %v6422_v7  ;;  %v759_v7 = vrot.slane %v757_v62, 5 }
  0x2c   : > { %586 = vmatmul.bf16.vlgmr.msra.gmra.mxu1 %v6410_v10  ;;  %606 = vmatmul.bf16.vlgmr.msra.gmra.mxu2 %v6414_v11  ;;  %v2179_v10 = vrot.slane %v2177_v1, 5  ;;  %v2185_v11 = vrot.slane %v2183_v2, 5 }
  0x2d   : > { %1672 = vmatpush.bf16.msrb.mxu2 %v6445_v8  ;;  %626 = vmatmul.bf16.vlgmr.msra.gmra.mxu3 %v6418_v12  ;;  %v763_v8 = vrot.slane %v761_v63, 4  ;;  %v2189_v12 = vrot.slane %v2187_v3, 4 }
  0x2e   : > { %1987 = vmatpush.bf16.msrb.mxu3 %v6469_v9  ;;  %566 = vmatmul.bf16.vlgmr.msra.gmra.mxu0 %v6406_v13  ;;  %v2176_v9 = vrot.slane %v2174_v0, 4  ;;  %v5830_v13 = vld [vmem:[%s6716_s12 + $0x14] sm:$0x1] }
  0x2f   : > { %1243 = vmatpush.bf16.msrb.mxu1 %v6437_v14  ;;  %2669 = vmatpush.bf16.msrb.mxu0 %v6477_v15  ;;  %v767_v14 = vshll.u32 %v681_v4, 16  ;;  %v6413_v15 = vld [vmem:[%s6716_s12 + $0x54] sm:$0xff] }
  0x31   : > { %1673 = vmatpush.bf16.msrb.mxu2 %v6444_v16  ;;  %v754_v16 = vor.u32 %v753_v6, %v750_v5 }
  0x32   : > { %1988 = vmatpush.bf16.msrb.mxu3 %v6468_v17  ;;  %v764_v17 = vor.u32 %v763_v8, %v759_v7  ;;  %v5833_v8 = vld [vmem:[%s6716_s12 + $0x20] sm:$0x1] }
  0x33   : > { %1244 = vmatpush.bf16.msrb.mxu1 %v6436_v18  ;;  %2670 = vmatpush.bf16.msrb.mxu0 %v6476_v19  ;;  %v1450_v18 = vrot.slane %v6828_v53, 5  ;;  %v6417_v19 = vld [vmem:[%s6716_s12 + $0x84] sm:$0xff] }
  0x35   : > { %1674 = vmatpush.bf16.msrb.mxu2 %v6443_v20  ;;  %v1364_v20 = vld [vmem:[%s6716_s12] sm:$0xe] }
  0x36   : > { %1989 = vmatpush.bf16.msrb.mxu3 %v6467_v21  ;;  %v2180_v21 = vor.u32 %v2179_v10, %v2176_v9 }
  0x37   : > { %1245 = vmatpush.bf16.msrb.mxu1 %v6435_v22  ;;  %2671 = vmatpush.bf16.msrb.mxu0 %v6475_v23  ;;  %v2190_v22 = vor.u32 %v2189_v12, %v2185_v11  ;;  %v2193_v23 = vshll.u32 %v5830_v13, 16  ;;  %v1365_v12 = vld [vmem:[%s6716_s12 + $0xc] sm:$0xe] }
  0x39   : > { %1675 = vmatpush.bf16.msrb.mxu2 %v6442_v24  ;;  %v6421_v24 = vld [vmem:[%s6716_s12 + $0xb4] sm:$0xff] }
  0x3a   : > { %1990 = vmatpush.bf16.msrb.mxu3 %v6466_v25  ;;  %v6409_v25 = vld [vmem:[%s6716_s12 + $0x24] sm:$0xff] }
  0x3b   : > { %1246 = vmatpush.bf16.msrb.mxu1 %v6434_v26  ;;  %2672 = vmatpush.bf16.msrb.mxu0 %v6474_v27  ;;  %v769_v26 = vrot.slane %v767_v14, 5  ;;  %v6446_v14 = vld [vmem:[%s6716_s12 + $0xc] sm:$0xff] }
  0x3c   : > { %591 = vmatmul.bf16.gmra.mxu1 %v6411_v30  ;;  %611 = vmatmul.bf16.gmra.mxu2 %v6415_v31  ;;  %v5636_v30 = vrot.slane %v1364_v20, 9  ;;  %v1452_v31 = vrot.slane %v1450_v18, 4 }
  0x3d   : > { %1676 = vmatpush.bf16.msrb.mxu2 %v6441_v28  ;;  %631 = vmatmul.bf16.gmra.mxu3 %v6419_v32  ;;  %v755_v28 = vrot.slane %v754_v16, 4  ;;  %v682_v32 = vld [vmem:[%s6716_s12 + $0xc] sm:$0xf] }
  0x3e   : > { %1991 = vmatpush.bf16.msrb.mxu3 %v6465_v29  ;;  %571 = vmatmul.bf16.gmra.mxu0 %v6407_v33  ;;  %v765_v29 = vrot.slane %v764_v17, 4 }
  0x3f   : > { %1247 = vmatpush.bf16.msrb.mxu1 %v6433_v34  ;;  %2673 = vmatpush.bf16.msrb.mxu0 %v6473_v35  ;;  %v1453_v34 = vrot.slane %v681_v4, 5  ;;  %v2181_v35 = vrot.slane %v2180_v21, 4 }
  0x41   : > { %1677 = vmatpush.bf16.msrb.mxu2 %v6440_v36  ;;  %v2191_v36 = vrot.slane %v2190_v22, 4  ;;  %v5637_v22 = vrot.slane %v1365_v12, 9 }
  0x42   : > { %1992 = vmatpush.bf16.msrb.mxu3 %v6464_v37  ;;  %v2195_v37 = vrot.slane %v2193_v23, 5  ;;  %v685_v23 = vld [vmem:[%s6716_s12 + $0x18] sm:$0xf] }
  0x43   : > { %1248 = vmatpush.bf16.msrb.mxu1 %v6432_v38  ;;  %2674 = vmatpush.bf16.msrb.mxu0 %v6472_v39  ;;  %v6865_v38 = vld [vmem:[%s6716_s12 + $0x10] sm:$0xf]  ;;  %v772_v39 = vshrl.u32 %v682_v32, 16 }
  0x44   : > { %v1457_v13 = vrot.slane %v6865_v38, 5 }
  0x45   : > { %1678 = vmatpush.bf16.msrb.mxu2 %v6439_v40  ;;  %v775_v40 = vshll.u32 %v682_v32, 16 }
  0x46   : > { %1993 = vmatpush.bf16.msrb.mxu3 %v6463_v41  ;;  %v5831_v41 = vld [vmem:[%s6716_s12 + $0x18] sm:$0xf] }
  0x47   : > { %1249 = vmatpush.bf16.msrb.mxu1 %v6431_v42  ;;  %2675 = vmatpush.bf16.msrb.mxu0 %v6471_v43  ;;  %v5832_v42 = vld [vmem:[%s6716_s12 + $0x1c] sm:$0xf]  ;;  %v760_v43 = vsel %vm6855_vm4, %v755_v28, %v759_v7  ;;  %v2201_v52 = vshll.u32 %v5831_v41, 16  ;;  %v777_v56 = vrot.slane %v775_v40, 5  ;;  %v5834_v28 = vld [vmem:[%s6716_s12 + $0x24] sm:$0xf] }
  0x48   : > { %v2207_v53 = vshll.u32 %v5832_v42, 16  ;;  %v2211_v54 = vshrl.u32 %v5832_v42, 16  ;;  %v2222_v42 = vshrl.u32 %v5834_v28, 16 }
  0x49   : > { %1679 = vmatpush.bf16.msrb.mxu2 %v6438_v44  ;;  %v1451_v44 = vsel %vm6860_vm5, %v5636_v30, %v1450_v18  ;;  %v2203_v3 = vrot.slane %v2201_v52, 5  ;;  %v2217_v18 = vshll.u32 %v5833_v8, 16 }
  0x4a   : > { %1994 = vmatpush.bf16.msrb.mxu3 %v6462_v45  ;;  %v781_v45 = vshll.u32 %v6865_v38, 16  ;;  %v6886_v4 = vrot.slane %v2207_v53, 5  ;;  %v2213_v5 = vrot.slane %v2211_v54, 4 }
  0x4b   : > { %1250 = vmatpush.bf16.msrb.mxu1 %v6430_v46  ;;  %2676 = vmatpush.bf16.msrb.mxu0 %v6470_v47  ;;  %v785_v46 = vshrl.u32 %v6865_v38, 16  ;;  %v770_v47 = vsel %vm6855_vm4, %v765_v29, %v769_v26  ;;  %v5835_v29 = vld [vmem:[%s6716_s12 + $0x28] sm:$0xf]  ;;  %v2219_v32 = vrot.slane %v2217_v18, 5  ;;  %v799_v38 = vshll.u32 %v685_v23, 16 }
  0x4c   : > { %596 = vmatmul.bf16.gmra.mxu1 %v6412_v48  ;;  %616 = vmatmul.bf16.gmra.mxu2 %v6416_v49  ;;  %v1454_v48 = vsel %vm6860_vm5, %v1452_v31, %v1453_v34  ;;  %v2186_v49 = vsel %vm6855_vm4, %v2181_v35, %v2185_v11  ;;  %v6884_v60 = vrot.slane %v781_v45, 5  ;;  %v1132_v62 = vunpack.c.l.b16 %v770_v47  ;;  %v6508_v34 = vld [vmem:[%s8638_s1 + $0x1b0] sm:$0xff] }
  0x4d   : > { %636 = vmatmul.bf16.gmra.mxu3 %v6420_v50  ;;  %3410 = vmatpush.bf16.msra.mxu2 %v6509_v55  ;;  %v2196_v50 = vsel %vm6855_vm4, %v2191_v36, %v2195_v37  ;;  %v774_v55 = vrot.slane %v772_v39, 4  ;;  %v787_v61 = vrot.slane %v785_v46, 4  ;;  %v1561_v63 = vunpack.c.l.b16 %v1454_v48  ;;  %v6516_v35 = vld [vmem:[%s8638_s1 + $0x1f0] sm:$0xff] }
  0x4e   : > { %576 = vmatmul.bf16.gmra.mxu0 %v6408_v51  ;;  %4092 = vmatpush.bf16.msra.mxu3 %v6517_v57  ;;  %v2198_v51 = vshrl.u32 %v5831_v41, 16  ;;  %v1131_v57 = vunpack.c.l.b16 %v760_v43  ;;  %v2557_v0 = vunpack.c.l.b16 %v2186_v49  ;;  %v2558_v1 = vunpack.c.l.b16 %v2196_v50  ;;  %v6484_v36 = vld [vmem:[%s8638_s1 + $0x170] sm:$0xff] }
  0x4f   : > { %3095 = vmatpush.bf16.msra.mxu1 %v6485_v58  ;;  %4518 = vmatpush.bf16.msra.mxu0 %v6525_v59  ;;  %v1560_v58 = vunpack.c.l.b16 %v1451_v44  ;;  %v684_v59 = vld [vmem:[%s6716_s12 + $0x14] sm:$0x1]  ;;  %v778_v6 = vor.u32 %v777_v56, %v774_v55  ;;  %v788_v9 = vor.u32 %v787_v61, %v6884_v60  ;;  %v2214_v17 = vor.u32 %v2213_v5, %v6886_v4 }
  0x50   : > { %v2200_v2 = vrot.slane %v2198_v51, 4  ;;  %v791_v7 = vshll.u32 %v684_v59, 16  ;;  %v1163_v10 = vpack.c.b16 %v1132_v62, %v1131_v57  ;;  %v1460_v26 = vrot.slane %v684_v59, 5  ;;  %v6524_v41 = vld [vmem:[%s8638_s1 + $0x230] sm:$0xff] }
  0x51   : > { %v1592_v11 = vpack.c.b16 %v1561_v63, %v1560_v58  ;;  %v789_v21 = vrot.slane %v788_v9, 4  ;;  %v2215_v31 = vrot.slane %v2214_v17, 4  ;;  %v796_v37 = vshrl.u32 %v685_v23, 16  ;;  %3411 = vmatpush.bf16.msra.mxu2 %v6508_v34  ;;  %v687_v58 = vld [vmem:[%s6716_s12 + $0x20] sm:$0x1] }
  0x52   : > { %v2204_v16 = vor.u32 %v2203_v3, %v2200_v2  ;;  %v793_v20 = vrot.slane %v791_v7, 5  ;;  %v2225_v43 = vshll.u32 %v5834_v28, 16  ;;  %4093 = vmatpush.bf16.msra.mxu3 %v6516_v35  ;;  %v2231_v46 = vshll.u32 %v5835_v29, 16  ;;  %v5836_v3 = vld [vmem:[%s6716_s12 + $0x2c] sm:$0x1] }
  0x53   : > { %v2235_v47 = vshrl.u32 %v5835_v29, 16  ;;  %3096 = vmatpush.bf16.msra.mxu1 %v6484_v36  ;;  %4519 = vmatpush.bf16.msra.mxu0 %v6524_v41  ;;  %v1458_v48 = vsel %vm6860_vm5, %v5637_v22, %v1457_v13  ;;  %v2220_v51 = vsel %vm6855_vm4, %v2215_v31, %v2219_v32  ;;  %v798_v52 = vrot.slane %v796_v37, 4  ;;  %v5837_v32 = vld [vmem:[%s6716_s12 + $0x30] sm:$0xf] }
  0x54   : > { %v2205_v30 = vrot.slane %v2204_v16, 4  ;;  %v794_v45 = vsel %vm6855_vm4, %v789_v21, %v793_v20  ;;  %v801_v53 = vrot.slane %v799_v38, 5  ;;  %v2224_v59 = vrot.slane %v2222_v42, 4  ;;  %v688_v16 = vld [vmem:[%s6716_s12 + $0x24] sm:$0xf] }
  0x55   : > { %v1134_v57 = vunpack.c.l.b16 %v794_v45  ;;  %v1562_v61 = vunpack.c.l.b16 %v1458_v48  ;;  %v2233_v63 = vrot.slane %v2231_v46, 5  ;;  %v2560_v2 = vunpack.c.l.b16 %v2220_v51  ;;  %v6935_v20 = vld [vmem:[%s6716_s12 + $0x28] sm:$0xf]  ;;  %v5838_v38 = vld [vmem:[%s6716_s12 + $0x34] sm:$0xf] }
  0x56   : > { %v2210_v50 = vsel %vm6855_vm4, %v2205_v30, %v6886_v4  ;;  %v802_v4 = vor.u32 %v801_v53, %v798_v52  ;;  %v1467_v23 = vrot.slane %v687_v58, 5  ;;  %v820_v28 = vshrl.u32 %v688_v16, 16 }
  0x57   : > { %v823_v29 = vshll.u32 %v688_v16, 16  ;;  %v829_v30 = vshll.u32 %v6935_v20, 16  ;;  %v833_v31 = vshrl.u32 %v6935_v20, 16  ;;  %v2246_v46 = vshrl.u32 %v5837_v32, 16  ;;  %v6966_v16 = vld [vmem:[%s6716_s12 + $0x34] sm:$0xf] }
  0x58   : > { %v803_v17 = vrot.slane %v802_v4, 4  ;;  %v822_v41 = vrot.slane %v820_v28, 4  ;;  %v2255_v48 = vshll.u32 %v5838_v38, 16  ;;  %v1367_v4 = vld [vmem:[%s6716_s12 + $0x24] sm:$0xe] }
  0x59   : > { %v825_v42 = vrot.slane %v823_v29, 5  ;;  %v835_v45 = vrot.slane %v833_v31, 4  ;;  %v853_v31 = vshll.u32 %v6966_v16, 16 }
  0x5c   : > { %601 = vmatmul.bf16.gmra.mxu1 %v6413_v15  ;;  %621 = vmatmul.bf16.gmra.mxu2 %v6417_v19  ;;  %v2589_v15 = vpack.c.b16 %v2558_v1, %v2557_v0  ;;  %v779_v19 = vrot.slane %v778_v6, 4  ;;  %v2237_v0 = vrot.slane %v2235_v47, 4  ;;  %v2559_v1 = vunpack.c.l.b16 %v2210_v50 }
  0x5d   : > { %641 = vmatmul.bf16.gmra.mxu3 %v6421_v24  ;;  %v6896_v24 = vld [vmem:[%s6716_s12 + $0x1c] sm:$0xf]  ;;  %v815_v6 = vshll.u32 %v687_v58, 16  ;;  %v2249_v47 = vshll.u32 %v5837_v32, 16  ;;  %v857_v32 = vshrl.u32 %v6966_v16, 16 }
  0x5e   : > { %581 = vmatmul.bf16.gmra.mxu0 %v6409_v25  ;;  %v1459_v25 = vrot.slane %v1457_v13, 4  ;;  %v805_v39 = vshll.u32 %v6896_v24, 16  ;;  %v809_v40 = vshrl.u32 %v6896_v24, 16  ;;  %v784_v44 = vsel %vm6855_vm4, %v779_v19, %v6884_v60 }
  0x5f   : > { %v1133_v56 = vunpack.c.l.b16 %v784_v44  ;;  %v2227_v60 = vrot.slane %v2225_v43, 5  ;;  %v1464_v7 = vrot.slane %v6896_v24, 5  ;;  %v2238_v12 = vor.u32 %v2237_v0, %v2233_v63  ;;  %v690_v43 = vld [vmem:[%s6716_s12 + $0x2c] sm:$0x1]  ;;  %v5839_v0 = vld [vmem:[%s6716_s12 + $0x38] sm:$0x1] }
  0x60   : > { %v1461_v49 = vsel %vm6860_vm5, %v1459_v25, %v1460_v26  ;;  %v807_v54 = vrot.slane %v805_v39, 5  ;;  %v811_v55 = vrot.slane %v809_v40, 4  ;;  %v2241_v13 = vshll.u32 %v5836_v3, 16 }
  0x61   : > { %v1563_v62 = vunpack.c.l.b16 %v1461_v49  ;;  %v2228_v8 = vor.u32 %v2227_v60, %v2224_v59  ;;  %v1164_v9 = vpack.c.b16 %v1134_v57, %v1133_v56  ;;  %v817_v19 = vrot.slane %v815_v6, 5 }
  0x62   : > { %v812_v5 = vor.u32 %v811_v55, %v807_v54  ;;  %v1466_v22 = vrot.slane %v1464_v7, 4  ;;  %v2239_v24 = vrot.slane %v2238_v12, 4  ;;  %v2243_v26 = vrot.slane %v2241_v13, 5 }
  0x63   : > { %v2229_v25 = vrot.slane %v2228_v8, 4  ;;  %v808_v34 = vsel %vm6855_vm4, %v803_v17, %v807_v54  ;;  %v6954_v44 = vrot.slane %v829_v30, 5  ;;  %v2259_v49 = vshrl.u32 %v5838_v38, 16  ;;  %v5840_v17 = vld [vmem:[%s6716_s12 + $0x3c] sm:$0xf]  ;;  %v6483_v38 = vld [vmem:[%s8638_s1 + $0x168] sm:$0xff] }
  0x64   : > { %v813_v18 = vrot.slane %v812_v5, 4  ;;  %v1468_v37 = vsel %vm6860_vm5, %v1466_v22, %v1467_v23  ;;  %v2244_v40 = vsel %vm6855_vm4, %v2239_v24, %v2243_v26  ;;  %v1135_v50 = vunpack.c.l.b16 %v808_v34  ;;  %v6448_v5 = vld [vmem:[%s6716_s12 + $0x24] sm:$0xff]  ;;  %v5841_v22 = vld [vmem:[%s6716_s12 + $0x40] sm:$0xf]  ;;  %3097 = vmatpush.bf16.msra.mxu1 %v6483_v38 }
  0x65   : > { %v2234_v39 = vsel %vm6855_vm4, %v2229_v25, %v2233_v63  ;;  %v1565_v53 = vunpack.c.l.b16 %v1468_v37  ;;  %v2562_v55 = vunpack.c.l.b16 %v2244_v40  ;;  %v839_v56 = vshll.u32 %v690_v43, 16  ;;  %v6515_v23 = vld [vmem:[%s8638_s1 + $0x1e8] sm:$0xff] }
  0x66   : > { %v818_v35 = vsel %vm6855_vm4, %v813_v18, %v817_v19  ;;  %v2561_v54 = vunpack.c.l.b16 %v2234_v39  ;;  %v826_v57 = vor.u32 %v825_v42, %v822_v41  ;;  %v836_v58 = vor.u32 %v835_v45, %v6954_v44  ;;  %4094 = vmatpush.bf16.msra.mxu3 %v6515_v23  ;;  %v6523_v45 = vld [vmem:[%s8638_s1 + $0x228] sm:$0xff] }
  0x67   : > { %v1136_v51 = vunpack.c.l.b16 %v818_v35  ;;  %v2248_v59 = vrot.slane %v2246_v46, 4  ;;  %v2251_v60 = vrot.slane %v2249_v47, 5  ;;  %v1471_v63 = vrot.slane %v6935_v20, 5  ;;  %4520 = vmatpush.bf16.msra.mxu0 %v6523_v45  ;;  %v5843_v23 = vld [vmem:[%s6716_s12 + $0x48] sm:$0xf] }
  0x68   : > { %v2591_v3 = vpack.c.b16 %v2562_v55, %v2561_v54  ;;  %v827_v6 = vrot.slane %v826_v57, 4  ;;  %v841_v8 = vrot.slane %v839_v56, 5  ;;  %v5639_v12 = vrot.slane %v1367_v4, 9  ;;  %v5842_v57 = vld [vmem:[%s6716_s12 + $0x44] sm:$0x1]  ;;  %v6449_v4 = vld [vmem:[%s6716_s12 + $0x30] sm:$0xff] }
  0x69   : > { %v1473_v13 = vrot.slane %v1471_v63, 4  ;;  %v2270_v34 = vshrl.u32 %v5840_v17, 16  ;;  %v2273_v35 = vshll.u32 %v5840_v17, 16  ;;  %v2283_v37 = vshrl.u32 %v5841_v22, 16 }
  0x6a   : > { %v832_v18 = vsel %vm6855_vm4, %v827_v6, %v6954_v44  ;;  %v1472_v29 = vsel %vm6860_vm5, %v5639_v12, %v1471_v63 }
  0x6b   : > { %v1137_v39 = vunpack.c.l.b16 %v832_v18  ;;  %v1566_v46 = vunpack.c.l.b16 %v1472_v29  ;;  %v2285_v54 = vrot.slane %v2283_v37, 4 }
  0x6c   : > { %1251 = vmatmul.bf16.vlgmr.msrb.gmra.mxu1 %v1163_v10  ;;  %1680 = vmatmul.bf16.vlgmr.msrb.gmra.mxu2 %v1592_v11  ;;  %v1593_v10 = vpack.c.b16 %v1563_v62, %v1562_v61  ;;  %v1366_v11 = vld [vmem:[%s6716_s12 + $0x18] sm:$0xe]  ;;  %v6957_v61 = vrot.slane %v2255_v48, 5  ;;  %v2261_v62 = vrot.slane %v2259_v49, 4  ;;  %v855_v48 = vrot.slane %v853_v31, 5 }
  0x6d   : > { %1995 = vmatmul.bf16.vlgmr.msrb.gmra.mxu3 %v6446_v14  ;;  %v6447_v14 = vld [vmem:[%s6716_s12 + $0x18] sm:$0xff]  ;;  %v5638_v21 = vrot.slane %v1366_v11, 9  ;;  %v2265_v11 = vshll.u32 %v5839_v0, 16  ;;  %v859_v49 = vrot.slane %v857_v32, 4  ;;  %v1368_v0 = vld [vmem:[%s6716_s12 + $0x30] sm:$0xe] }
  0x6e   : > { %2677 = vmatmul.bf16.vlgmr.msrb.gmra.mxu0 %v2589_v15  ;;  %v2590_v15 = vpack.c.b16 %v2560_v2, %v2559_v1  ;;  %v1165_v1 = vpack.c.b16 %v1136_v51, %v1135_v50  ;;  %v693_v50 = vld [vmem:[%s6716_s12 + $0x38] sm:$0x1]  ;;  %v2272_v51 = vrot.slane %v2270_v34, 4 }
  0x6f   : > { %v1465_v36 = vsel %vm6860_vm5, %v5638_v21, %v1464_v7  ;;  %v837_v7 = vrot.slane %v836_v58, 4  ;;  %v6507_v21 = vld [vmem:[%s8638_s1 + $0x1a8] sm:$0xff]  ;;  %v2267_v24 = vrot.slane %v2265_v11, 5  ;;  %v5640_v11 = vrot.slane %v1368_v0, 9 }
  0x70   : > { %v1564_v52 = vunpack.c.l.b16 %v1465_v36  ;;  %3412 = vmatpush.bf16.msra.mxu2 %v6507_v21  ;;  %v2279_v36 = vshll.u32 %v5841_v22, 16 }
  0x71   : > { %v842_v19 = vsel %vm6855_vm4, %v837_v7, %v841_v8  ;;  %v694_v7 = vld [vmem:[%s6716_s12 + $0x3c] sm:$0xf]  ;;  %v7005_v8 = vld [vmem:[%s6716_s12 + $0x40] sm:$0xf] }
  0x72   : > { %v1594_v2 = vpack.c.b16 %v1565_v53, %v1564_v52  ;;  %v1138_v40 = vunpack.c.l.b16 %v842_v19  ;;  %v2275_v52 = vrot.slane %v2273_v35, 5  ;;  %v2281_v53 = vrot.slane %v2279_v36, 5 }
  0x73   : > { %v868_v17 = vshrl.u32 %v694_v7, 16  ;;  %v871_v18 = vshll.u32 %v694_v7, 16  ;;  %v877_v19 = vshll.u32 %v7005_v8, 16  ;;  %v2294_v35 = vshrl.u32 %v5843_v23, 16  ;;  %v697_v7 = vld [vmem:[%s6716_s12 + $0x48] sm:$0xf] }
  0x74   : > { %v2297_v36 = vshll.u32 %v5843_v23, 16  ;;  %v895_v23 = vshll.u32 %v697_v7, 16 }
  0x75   : > { %v873_v31 = vrot.slane %v871_v18, 5  ;;  %v7023_v32 = vrot.slane %v877_v19, 5 }
  0x7c   : > { %1256 = vmatmul.bf16.gmra.mxu1 %v1164_v9  ;;  %1685 = vmatmul.bf16.gmra.mxu2 %v1593_v10  ;;  %v2252_v9 = vor.u32 %v2251_v60, %v2248_v59  ;;  %v2262_v10 = vor.u32 %v2261_v62, %v6957_v61  ;;  %v1166_v59 = vpack.c.b16 %v1138_v40, %v1137_v39  ;;  %v1478_v62 = vrot.slane %v6966_v16, 5 }
  0x7d   : > { %2000 = vmatmul.bf16.gmra.mxu3 %v6447_v14  ;;  %v1474_v14 = vrot.slane %v690_v43, 5  ;;  %v860_v60 = vor.u32 %v859_v49, %v855_v48  ;;  %v2299_v49 = vrot.slane %v2297_v36, 5 }
  0x7e   : > { %2682 = vmatmul.bf16.gmra.mxu0 %v2590_v15  ;;  %v691_v15 = vld [vmem:[%s6716_s12 + $0x30] sm:$0xf]  ;;  %v2253_v20 = vrot.slane %v2252_v9, 4  ;;  %v2263_v25 = vrot.slane %v2262_v10, 4  ;;  %v1480_v12 = vrot.slane %v1478_v62, 4 }
  0x7f   : > { %v844_v26 = vshrl.u32 %v691_v15, 16  ;;  %v847_v28 = vshll.u32 %v691_v15, 16  ;;  %v1475_v30 = vsel %vm6860_vm5, %v1473_v13, %v1474_v14  ;;  %v861_v9 = vrot.slane %v860_v60, 4 }
  0x80   : > { %v2258_v41 = vsel %vm6855_vm4, %v2253_v20, %v6957_v61  ;;  %v2268_v42 = vsel %vm6855_vm4, %v2263_v25, %v2267_v24  ;;  %v1567_v47 = vunpack.c.l.b16 %v1475_v30  ;;  %v863_v61 = vshll.u32 %v693_v50, 16  ;;  %v5844_v25 = vld [vmem:[%s6716_s12 + $0x4c] sm:$0xf] }
  0x81   : > { %v846_v43 = vrot.slane %v844_v26, 4  ;;  %v849_v44 = vrot.slane %v847_v28, 5  ;;  %v2563_v55 = vunpack.c.l.b16 %v2258_v41  ;;  %v2564_v56 = vunpack.c.l.b16 %v2268_v42 }
  0x82   : > { %v1595_v63 = vpack.c.b16 %v1567_v47, %v1566_v46  ;;  %v865_v10 = vrot.slane %v863_v61, 5  ;;  %v1481_v13 = vrot.slane %v693_v50, 5  ;;  %v881_v20 = vshrl.u32 %v7005_v8, 16 }
  0x83   : > { %v850_v58 = vor.u32 %v849_v44, %v846_v43  ;;  %v1479_v24 = vsel %vm6860_vm5, %v5640_v11, %v1478_v62  ;;  %v870_v30 = vrot.slane %v868_v17, 4  ;;  %v2303_v37 = vshll.u32 %v5844_v25, 16  ;;  %v696_v43 = vld [vmem:[%s6716_s12 + $0x44] sm:$0x1] }
  0x84   : > { %v866_v22 = vsel %vm6855_vm4, %v861_v9, %v865_v10  ;;  %v1482_v26 = vsel %vm6860_vm5, %v1480_v12, %v1481_v13  ;;  %v883_v34 = vrot.slane %v881_v20, 4  ;;  %v2307_v38 = vshrl.u32 %v5844_v25, 16  ;;  %v6506_v9 = vld [vmem:[%s8638_s1 + $0x1a0] sm:$0xff]  ;;  %v5847_v20 = vld [vmem:[%s6716_s12 + $0x58] sm:$0xf] }
  0x85   : > { %v851_v6 = vrot.slane %v850_v58, 4  ;;  %v1140_v40 = vunpack.c.l.b16 %v866_v22  ;;  %v1568_v41 = vunpack.c.l.b16 %v1479_v24  ;;  %v1569_v42 = vunpack.c.l.b16 %v1482_v26  ;;  %v6514_v10 = vld [vmem:[%s8638_s1 + $0x1e0] sm:$0xff]  ;;  %3413 = vmatpush.bf16.msra.mxu2 %v6506_v9  ;;  %v700_v9 = vld [vmem:[%s6716_s12 + $0x54] sm:$0xf] }
  0x86   : > { %v874_v46 = vor.u32 %v873_v31, %v870_v30  ;;  %v884_v47 = vor.u32 %v883_v34, %v7023_v32  ;;  %v7027_v50 = vrot.slane %v2303_v37, 5  ;;  %4095 = vmatpush.bf16.msra.mxu3 %v6514_v10  ;;  %v892_v22 = vshrl.u32 %v697_v7, 16  ;;  %v6482_v26 = vld [vmem:[%s8638_s1 + $0x160] sm:$0xff] }
  0x87   : > { %v856_v21 = vsel %vm6855_vm4, %v851_v6, %v855_v48  ;;  %v2296_v48 = vrot.slane %v2294_v35, 4  ;;  %v1488_v6 = vrot.slane %v696_v43, 5  ;;  %v2327_v35 = vshll.u32 %v5847_v20, 16  ;;  %3098 = vmatpush.bf16.msra.mxu1 %v6482_v26  ;;  %v6522_v37 = vld [vmem:[%s8638_s1 + $0x220] sm:$0xff] }
  0x88   : > { %v1139_v39 = vunpack.c.l.b16 %v856_v21  ;;  %v875_v61 = vrot.slane %v874_v46, 4  ;;  %v2331_v36 = vshrl.u32 %v5847_v20, 16  ;;  %4521 = vmatpush.bf16.msra.mxu0 %v6522_v37 }
  0x89   : > { %v2300_v0 = vor.u32 %v2299_v49, %v2296_v48  ;;  %v699_v48 = vld [vmem:[%s6716_s12 + $0x50] sm:$0x1] }
  0x8a   : > { %v880_v11 = vsel %vm6855_vm4, %v875_v61, %v7023_v32  ;;  %v911_v61 = vshll.u32 %v699_v48, 16 }
  0x8b   : > { %v2301_v12 = vrot.slane %v2300_v0, 4  ;;  %v6451_v0 = vld [vmem:[%s6716_s12 + $0x48] sm:$0xff] }
  0x8c   : > { %1261 = vmatmul.bf16.gmra.mxu1 %v1165_v1  ;;  %1690 = vmatmul.bf16.gmra.mxu2 %v1594_v2  ;;  %v2276_v1 = vor.u32 %v2275_v52, %v2272_v51  ;;  %v2286_v2 = vor.u32 %v2285_v54, %v2281_v53  ;;  %v2309_v51 = vrot.slane %v2307_v38, 4  ;;  %v887_v52 = vshll.u32 %v696_v43, 16  ;;  %v5845_v54 = vld [vmem:[%s6716_s12 + $0x50] sm:$0x1] }
  0x8d   : > { %2005 = vmatmul.bf16.gmra.mxu3 %v6448_v5  ;;  %v2592_v5 = vpack.c.b16 %v2564_v56, %v2563_v55  ;;  %v1167_v55 = vpack.c.b16 %v1140_v40, %v1139_v39  ;;  %v1596_v56 = vpack.c.b16 %v1569_v42, %v1568_v41  ;;  %v2306_v32 = vsel %vm6855_vm4, %v2301_v12, %v7027_v50 }
  0x8e   : > { %2687 = vmatmul.bf16.gmra.mxu0 %v2591_v3  ;;  %v2289_v3 = vshll.u32 %v5842_v57, 16  ;;  %v2277_v14 = vrot.slane %v2276_v1, 4  ;;  %v2287_v15 = vrot.slane %v2286_v2, 4  ;;  %v1369_v57 = vld [vmem:[%s6716_s12 + $0x3c] sm:$0xe]  ;;  %v2310_v1 = vor.u32 %v2309_v51, %v7027_v50 }
  0x8f   : > { %v2313_v2 = vshll.u32 %v5845_v54, 16  ;;  %v1141_v38 = vunpack.c.l.b16 %v880_v11  ;;  %v894_v42 = vrot.slane %v892_v22, 4  ;;  %v897_v43 = vrot.slane %v895_v23, 5 }
  0x90   : > { %v2291_v16 = vrot.slane %v2289_v3, 5  ;;  %v2282_v28 = vsel %vm6855_vm4, %v2277_v14, %v2281_v53  ;;  %v1485_v53 = vrot.slane %v7005_v8, 5  ;;  %v889_v3 = vrot.slane %v887_v52, 5  ;;  %v7040_v8 = vld [vmem:[%s6716_s12 + $0x4c] sm:$0xf] }
  0x91   : > { %v2565_v44 = vunpack.c.l.b16 %v2282_v28  ;;  %v2311_v13 = vrot.slane %v2310_v1, 4  ;;  %v2315_v14 = vrot.slane %v2313_v2, 5  ;;  %v901_v25 = vshll.u32 %v7040_v8, 16 }
  0x92   : > { %v2292_v29 = vsel %vm6855_vm4, %v2287_v15, %v2291_v16  ;;  %v5846_v15 = vld [vmem:[%s6716_s12 + $0x54] sm:$0xf]  ;;  %v905_v24 = vshrl.u32 %v7040_v8, 16  ;;  %v2567_v46 = vunpack.c.l.b16 %v2306_v32  ;;  %v7083_v51 = vrot.slane %v2327_v35, 5 }
  0x93   : > { %v2566_v45 = vunpack.c.l.b16 %v2292_v29  ;;  %v2318_v29 = vshrl.u32 %v5846_v15, 16  ;;  %v2321_v30 = vshll.u32 %v5846_v15, 16  ;;  %v2316_v34 = vsel %vm6855_vm4, %v2311_v13, %v2315_v14  ;;  %v7101_v13 = vld [vmem:[%s6716_s12 + $0x58] sm:$0xf] }
  0x94   : > { %v2333_v52 = vrot.slane %v2331_v36, 4  ;;  %v1492_v2 = vrot.slane %v7040_v8, 5  ;;  %v913_v12 = vrot.slane %v911_v61, 5  ;;  %v1495_v15 = vrot.slane %v699_v48, 5 }
  0x95   : > { %v2593_v60 = vpack.c.b16 %v2566_v45, %v2565_v44  ;;  %v7080_v44 = vrot.slane %v901_v25, 5  ;;  %v907_v45 = vrot.slane %v905_v24, 4  ;;  %v2320_v49 = vrot.slane %v2318_v29, 4  ;;  %v5850_v25 = vld [vmem:[%s6716_s12 + $0x64] sm:$0xf] }
  0x96   : > { %v2323_v50 = vrot.slane %v2321_v30, 5  ;;  %v1494_v14 = vrot.slane %v1492_v2, 4  ;;  %v916_v22 = vshrl.u32 %v700_v9, 16  ;;  %v919_v23 = vshll.u32 %v700_v9, 16 }
  0x97   : > { %v925_v26 = vshll.u32 %v7101_v13, 16  ;;  %v929_v29 = vshrl.u32 %v7101_v13, 16 }
  0x9c   : > { %1266 = vmatmul.bf16.gmra.mxu1 %v1166_v59  ;;  %1695 = vmatmul.bf16.gmra.mxu2 %v1595_v63  ;;  %v6450_v59 = vld [vmem:[%s6716_s12 + $0x3c] sm:$0xff]  ;;  %v885_v63 = vrot.slane %v884_v47, 4  ;;  %v2568_v47 = vunpack.c.l.b16 %v2316_v34 }
  0x9d   : > { %2010 = vmatmul.bf16.gmra.mxu3 %v6449_v4  ;;  %v5641_v4 = vrot.slane %v1369_v57, 9 }
  0x9e   : > { %2692 = vmatmul.bf16.gmra.mxu0 %v2592_v5  ;;  %v1487_v5 = vrot.slane %v1485_v53, 4  ;;  %v890_v17 = vsel %vm6855_vm4, %v885_v63, %v889_v3  ;;  %v2594_v1 = vpack.c.b16 %v2568_v47, %v2567_v46  ;;  %v2324_v3 = vor.u32 %v2323_v50, %v2320_v49 }
  0x9f   : > { %v1486_v18 = vsel %vm6860_vm5, %v5641_v4, %v1485_v53  ;;  %v1142_v39 = vunpack.c.l.b16 %v890_v17  ;;  %v921_v46 = vrot.slane %v919_v23, 5  ;;  %v7129_v49 = vrot.slane %v925_v26, 5  ;;  %v703_v26 = vld [vmem:[%s6716_s12 + $0x60] sm:$0xf] }
  0xa0   : > { %v1489_v19 = vsel %vm6860_vm5, %v1487_v5, %v1488_v6  ;;  %v1570_v40 = vunpack.c.l.b16 %v1486_v18  ;;  %v1370_v5 = vld [vmem:[%s6716_s12 + $0x48] sm:$0xe]  ;;  %v2334_v6 = vor.u32 %v2333_v52, %v7083_v51  ;;  %v2325_v17 = vrot.slane %v2324_v3, 4  ;;  %v5849_v18 = vld [vmem:[%s6716_s12 + $0x60] sm:$0xf] }
  0xa1   : > { %v1571_v41 = vunpack.c.l.b16 %v1489_v19  ;;  %v1168_v54 = vpack.c.b16 %v1142_v39, %v1141_v38  ;;  %v5642_v8 = vrot.slane %v1370_v5, 9  ;;  %v2342_v35 = vshrl.u32 %v5849_v18, 16 }
  0xa2   : > { %v2335_v19 = vrot.slane %v2334_v6, 4  ;;  %v2345_v36 = vshll.u32 %v5849_v18, 16  ;;  %v1496_v39 = vsel %vm6860_vm5, %v1494_v14, %v1495_v15  ;;  %v931_v50 = vrot.slane %v929_v29, 4  ;;  %v6452_v14 = vld [vmem:[%s6716_s12 + $0x54] sm:$0xff]  ;;  %v7150_v29 = vld [vmem:[%s6716_s12 + $0x64] sm:$0xf] }
  0xa3   : > { %v1597_v57 = vpack.c.b16 %v1571_v41, %v1570_v40  ;;  %v1493_v38 = vsel %vm6860_vm5, %v5642_v8, %v1492_v2  ;;  %v2351_v40 = vshll.u32 %v5850_v25, 16  ;;  %v2355_v41 = vshrl.u32 %v5850_v25, 16  ;;  %v5851_v2 = vld [vmem:[%s6716_s12 + $0x68] sm:$0x1] }
  0xa4   : > { %v1572_v52 = vunpack.c.l.b16 %v1493_v38  ;;  %v932_v5 = vor.u32 %v931_v50, %v7129_v49 }
  0xa6   : > { %v933_v23 = vrot.slane %v932_v5, 4 }
  0xa9   : > { %v7032_v58 = vpop.f32.mrf.mxu1 }
  0xab   : > { %v7035_v62 = vpop.f32.mrf.mxu0 }
  0xac   : > { %1271 = vmatmul.bf16.gmra.mxu1 %v1167_v55  ;;  %1700 = vmatmul.bf16.gmra.mxu2 %v1596_v56  ;;  %v5848_v55 = vld [vmem:[%s6716_s12 + $0x5c] sm:$0x1] }
  0xad   : > { %2015 = vmatmul.bf16.gmra.mxu3 %v6450_v59  ;;  %v898_v59 = vor.u32 %v897_v43, %v894_v42  ;;  %v2337_v7 = vshll.u32 %v5848_v55, 16  ;;  %v2330_v43 = vsel %vm6855_vm4, %v2325_v17, %v7083_v51  ;;  %v702_v55 = vld [vmem:[%s6716_s12 + $0x5c] sm:$0x1]  ;;  %v7132_v51 = vrot.slane %v2351_v40, 5  ;;  %v1371_v17 = vld [vmem:[%s6716_s12 + $0x54] sm:$0xe] }
  0xae   : > { %2697 = vmatmul.bf16.gmra.mxu0 %v2593_v60  ;;  %v908_v60 = vor.u32 %v907_v45, %v7080_v44  ;;  %v918_v45 = vrot.slane %v916_v22, 4  ;;  %v935_v6 = vshll.u32 %v702_v55, 16  ;;  %v5852_v40 = vld [vmem:[%s6716_s12 + $0x6c] sm:$0xf] }
  0xaf   : > { %v7052_v16 = vpop.f32.mrf.mxu2  ;;  %v899_v10 = vrot.slane %v898_v59, 4  ;;  %v2339_v20 = vrot.slane %v2337_v7, 5  ;;  %v2347_v59 = vrot.slane %v2345_v36, 5 }
  0xb0   : > { %v7061_v21 = vpop.f32.mrf.mxu3  ;;  %v909_v11 = vrot.slane %v908_v60, 4  ;;  %v2569_v60 = vunpack.c.l.b16 %v2330_v43  ;;  %v937_v25 = vrot.slane %v935_v6, 5  ;;  %v940_v43 = vshrl.u32 %v703_v26, 16 }
  0xb1   : > { %v7068_v28 = vpop.f32.mrf.mxu1  ;;  %v904_v32 = vsel %vm6855_vm4, %v899_v10, %v7080_v44  ;;  %v2340_v44 = vsel %vm6855_vm4, %v2335_v19, %v2339_v20  ;;  %v2361_v19 = vshll.u32 %v5851_v2, 16 }
  0xb2   : > { %v914_v34 = vsel %vm6855_vm4, %v909_v11, %v913_v12  ;;  %v1143_v47 = vunpack.c.l.b16 %v904_v32  ;;  %v2570_v61 = vunpack.c.l.b16 %v2340_v44  ;;  %v1499_v11 = vrot.slane %v7101_v13, 5 }
  0xb3   : > { %v7070_v31 = vpop.f32.mrf.mxu0  ;;  %v1144_v48 = vunpack.c.l.b16 %v914_v34  ;;  %v5643_v13 = vrot.slane %v1371_v17, 9  ;;  %v1502_v34 = vrot.slane %v702_v55, 5  ;;  %v2363_v38 = vrot.slane %v2361_v19, 5  ;;  %v705_v17 = vld [vmem:[%s6716_s12 + $0x68] sm:$0x1] }
  0xb4   : > { %v2595_v15 = vpack.c.b16 %v2570_v61, %v2569_v60  ;;  %v1501_v32 = vrot.slane %v1499_v11, 4  ;;  %v943_v44 = vshll.u32 %v703_v26, 16  ;;  %v2369_v60 = vshll.u32 %v5852_v40, 16 }
  0xb5   : > { %v1169_v9 = vpack.c.b16 %v1144_v48, %v1143_v47  ;;  %v5853_v47 = vld [vmem:[%s6716_s12 + $0x70] sm:$0xf]  ;;  %v1500_v55 = vsel %vm6860_vm5, %v5643_v13, %v1499_v11  ;;  %v942_v6 = vrot.slane %v940_v43, 4 }
  0xb6   : > { %v2379_v2 = vshrl.u32 %v5853_v47, 16 }
  0xb7   : > { %v7085_v53 = vpop.f32.mrf.mxu2 }
  0xb8   : > { %v7088_v56 = vpop.f32.mrf.mxu3 }
  0xb9   : > { %v7091_v63 = vpop.f32.mrf.mxu1 }
  0xbb   : > { %v7095_v4 = vpop.f32.mrf.mxu0 }
  0xbc   : > { %1276 = vmatmul.bf16.gmra.mxu1 %v1168_v54  ;;  %1705 = vmatmul.bf16.gmra.mxu2 %v1597_v57  ;;  %v1573_v54 = vunpack.c.l.b16 %v1496_v39  ;;  %v2344_v57 = vrot.slane %v2342_v35, 4  ;;  %v6505_v39 = vld [vmem:[%s8638_s1 + $0x198] sm:$0xff] }
  0xbd   : > { %2020 = vmatmul.bf16.gmra.mxu3 %v6451_v0  ;;  %v2357_v0 = vrot.slane %v2355_v41, 4  ;;  %v6513_v41 = vld [vmem:[%s8638_s1 + $0x1d8] sm:$0xff]  ;;  %3414 = vmatpush.bf16.msra.mxu2 %v6505_v39 }
  0xbe   : > { %2702 = vmatmul.bf16.gmra.mxu0 %v2594_v1  ;;  %v922_v1 = vor.u32 %v921_v46, %v918_v45  ;;  %v1598_v10 = vpack.c.b16 %v1573_v54, %v1572_v52  ;;  %v2348_v12 = vor.u32 %v2347_v59, %v2344_v57  ;;  %v949_v45 = vshll.u32 %v7150_v29, 16  ;;  %4096 = vmatpush.bf16.msra.mxu3 %v6513_v41 }
  0xbf   : > { %v7105_v24 = vpop.f32.mrf.mxu2  ;;  %v2358_v18 = vor.u32 %v2357_v0, %v7132_v51  ;;  %v953_v46 = vshrl.u32 %v7150_v29, 16  ;;  %v938_v52 = vsel %vm6855_vm4, %v933_v23, %v937_v25  ;;  %v1503_v57 = vsel %vm6860_vm5, %v1501_v32, %v1502_v34 }
  0xc0   : > { %v7109_v30 = vpop.f32.mrf.mxu3  ;;  %v923_v22 = vrot.slane %v922_v1, 4  ;;  %v2349_v35 = vrot.slane %v2348_v12, 4  ;;  %v2366_v59 = vshrl.u32 %v5852_v40, 16  ;;  %v2375_v1 = vshll.u32 %v5853_v47, 16  ;;  %v6481_v12 = vld [vmem:[%s8638_s1 + $0x158] sm:$0xff] }
  0xc1   : > { %v7116_v37 = vpop.f32.mrf.mxu1  ;;  %v2359_v36 = vrot.slane %v2358_v18, 4  ;;  %v955_v11 = vrot.slane %v953_v46, 4  ;;  %v1574_v18 = vunpack.c.l.b16 %v1500_v55  ;;  %v1575_v19 = vunpack.c.l.b16 %v1503_v57  ;;  %3099 = vmatpush.bf16.msra.mxu1 %v6481_v12  ;;  %v1372_v40 = vld [vmem:[%s6716_s12 + $0x60] sm:$0xe] }
  0xc2   : > { %v928_v50 = vsel %vm6855_vm4, %v923_v22, %v7129_v49  ;;  %v2354_v49 = vsel %vm6855_vm4, %v2349_v35, %v7132_v51  ;;  %v6521_v51 = vld [vmem:[%s8638_s1 + $0x218] sm:$0xff]  ;;  %v2368_v22 = vrot.slane %v2366_v59, 4  ;;  %v2371_v23 = vrot.slane %v2369_v60, 5 }
  0xc3   : > { %v7122_v42 = vpop.f32.mrf.mxu0  ;;  %v2364_v0 = vsel %vm6855_vm4, %v2359_v36, %v2363_v38  ;;  %4522 = vmatpush.bf16.msra.mxu0 %v6521_v51  ;;  %v2571_v25 = vunpack.c.l.b16 %v2354_v49  ;;  %v7193_v13 = vrot.slane %v2375_v1, 5  ;;  %v2381_v32 = vrot.slane %v2379_v2, 4  ;;  %v5854_v38 = vld [vmem:[%s6716_s12 + $0x74] sm:$0x1] }
  0xc4   : > { %v2572_v26 = vunpack.c.l.b16 %v2364_v0  ;;  %v959_v36 = vshll.u32 %v705_v17, 16  ;;  %v1506_v41 = vrot.slane %v7150_v29, 5  ;;  %v2372_v46 = vor.u32 %v2371_v23, %v2368_v22 }
  0xc5   : > { %v2382_v55 = vor.u32 %v2381_v32, %v7193_v13  ;;  %v2385_v57 = vshll.u32 %v5854_v38, 16  ;;  %v5644_v0 = vrot.slane %v1372_v40, 9  ;;  %v1509_v2 = vrot.slane %v705_v17, 5 }
  0xc6   : > { %v961_v49 = vrot.slane %v959_v36, 5  ;;  %v1508_v1 = vrot.slane %v1506_v41, 4 }
  0xc7   : > { %v7135_v3 = vpop.f32.mrf.mxu2  ;;  %v2383_v12 = vrot.slane %v2382_v55, 4  ;;  %v2387_v51 = vrot.slane %v2385_v57, 5  ;;  %v1507_v32 = vsel %vm6860_vm5, %v5644_v0, %v1506_v41 }
  0xc8   : > { %v7138_v7 = vpop.f32.mrf.mxu3 }
  0xc9   : > { %8646 = vst [vmem:[#allocation3_spill] sm:$0xff] %v7138_v7  ;;  %v7141_v8 = vpop.f32.mrf.mxu1 }
  0xcb   : > { %v7146_v20 = vpop.f32.mrf.mxu0 }
  0xcc   : > { %1281 = vmatmul.bf16.gmra.mxu1 %v1169_v9  ;;  %1710 = vmatmul.bf16.gmra.mxu2 %v1598_v10  ;;  %v945_v9 = vrot.slane %v943_v44, 5  ;;  %v7184_v10 = vrot.slane %v949_v45, 5  ;;  %v1599_v45 = vpack.c.b16 %v1575_v19, %v1574_v18 }
  0xcd   : > { %2025 = vmatmul.bf16.gmra.mxu3 %v6452_v14  ;;  %v1145_v14 = vunpack.c.l.b16 %v928_v50  ;;  %v6453_v50 = vld [vmem:[%s6716_s12 + $0x60] sm:$0xff] }
  0xce   : > { %2707 = vmatmul.bf16.gmra.mxu0 %v2595_v15  ;;  %v1146_v15 = vunpack.c.l.b16 %v938_v52  ;;  %v946_v34 = vor.u32 %v945_v9, %v942_v6  ;;  %v956_v35 = vor.u32 %v955_v11, %v7184_v10  ;;  %v2596_v52 = vpack.c.b16 %v2572_v26, %v2571_v25  ;;  %v706_v6 = vld [vmem:[%s6716_s12 + $0x6c] sm:$0xf]  ;;  %v7211_v9 = vld [vmem:[%s6716_s12 + $0x70] sm:$0xf] }
  0xcf   : > { %v7162_v48 = vpop.f32.mrf.mxu2  ;;  %v2373_v11 = vrot.slane %v2372_v46, 4  ;;  %v964_v18 = vshrl.u32 %v706_v6, 16  ;;  %v967_v19 = vshll.u32 %v706_v6, 16  ;;  %v973_v22 = vshll.u32 %v7211_v9, 16 }
  0xd0   : > { %v7169_v54 = vpop.f32.mrf.mxu3  ;;  %v1170_v44 = vpack.c.b16 %v1146_v15, %v1145_v14  ;;  %v947_v60 = vrot.slane %v946_v34, 4  ;;  %v957_v29 = vrot.slane %v956_v35, 4  ;;  %v5855_v14 = vld [vmem:[%s6716_s12 + $0x78] sm:$0xf]  ;;  %v5856_v15 = vld [vmem:[%s6716_s12 + $0x7c] sm:$0xf]  ;;  %v1510_v34 = vsel %vm6860_vm5, %v1508_v1, %v1509_v2 }
  0xd1   : > { %8647 = vst [vmem:[#allocation4_spill] sm:$0xff] %v7169_v54  ;;  %v7175_v61 = vpop.f32.mrf.mxu1  ;;  %v977_v23 = vshrl.u32 %v7211_v9, 16  ;;  %v2390_v36 = vshrl.u32 %v5855_v14, 16  ;;  %v2393_v38 = vshll.u32 %v5855_v14, 16  ;;  %v2399_v40 = vshll.u32 %v5856_v15, 16 }
  0xd2   : > { %v952_v17 = vsel %vm6855_vm4, %v947_v60, %v7184_v10  ;;  %v962_v26 = vsel %vm6855_vm4, %v957_v29, %v961_v49  ;;  %v2378_v10 = vsel %vm6855_vm4, %v2373_v11, %v7193_v13  ;;  %v2388_v46 = vsel %vm6855_vm4, %v2383_v12, %v2387_v51  ;;  %v708_v1 = vld [vmem:[%s6716_s12 + $0x74] sm:$0x1]  ;;  %v5857_v14 = vld [vmem:[%s6716_s12 + $0x80] sm:$0x1] }
  0xd3   : > { %v7182_v5 = vpop.f32.mrf.mxu0  ;;  %v7239_v55 = vrot.slane %v973_v22, 5  ;;  %v979_v57 = vrot.slane %v977_v23, 4  ;;  %v1147_v60 = vunpack.c.l.b16 %v952_v17  ;;  %v1148_v29 = vunpack.c.l.b16 %v962_v26 }
  0xd4   : > { %v1576_v49 = vunpack.c.l.b16 %v1507_v32  ;;  %v1577_v0 = vunpack.c.l.b16 %v1510_v34  ;;  %v2392_v2 = vrot.slane %v2390_v36, 4  ;;  %v2395_v6 = vrot.slane %v2393_v38, 5  ;;  %v1373_v34 = vld [vmem:[%s6716_s12 + $0x6c] sm:$0xe] }
  0xd5   : > { %v7242_v13 = vrot.slane %v2399_v40, 5  ;;  %v2573_v12 = vunpack.c.l.b16 %v2378_v10  ;;  %v2574_v51 = vunpack.c.l.b16 %v2388_v46  ;;  %v1171_v22 = vpack.c.b16 %v1148_v29, %v1147_v60  ;;  %v6454_v10 = vld [vmem:[%s6716_s12 + $0x6c] sm:$0xff] }
  0xd6   : > { %v983_v23 = vshll.u32 %v708_v1, 16  ;;  %v1513_v17 = vrot.slane %v7211_v9, 5  ;;  %v1600_v32 = vpack.c.b16 %v1577_v0, %v1576_v49  ;;  %v2396_v36 = vor.u32 %v2395_v6, %v2392_v2  ;;  %v709_v9 = vld [vmem:[%s6716_s12 + $0x78] sm:$0xf]  ;;  %v7259_v2 = vld [vmem:[%s6716_s12 + $0x7c] sm:$0xf] }
  0xd7   : > { %v7197_v39 = vpop.f32.mrf.mxu2  ;;  %v2409_v40 = vshll.u32 %v5857_v14, 16  ;;  %v2597_v46 = vpack.c.b16 %v2574_v51, %v2573_v12  ;;  %v5645_v49 = vrot.slane %v1373_v34, 9  ;;  %v5858_v51 = vld [vmem:[%s6716_s12 + $0x84] sm:$0xf]  ;;  %v991_v14 = vshll.u32 %v709_v9, 16 }
  0xd8   : > { %v7201_v43 = vpop.f32.mrf.mxu3  ;;  %v985_v29 = vrot.slane %v983_v23, 5  ;;  %v1515_v0 = vrot.slane %v1513_v17, 4  ;;  %v2397_v6 = vrot.slane %v2396_v36, 4  ;;  %v997_v23 = vshll.u32 %v7259_v2, 16 }
  0xd9   : > { %8648 = vst [vmem:[#allocation5_spill] sm:$0xff] %v7201_v43  ;;  %v7203_v47 = vpop.f32.mrf.mxu1  ;;  %v2411_v12 = vrot.slane %v2409_v40, 5 }
  0xdb   : > { %v7207_v59 = vpop.f32.mrf.mxu0 }
  0xdc   : > { %1286 = vmatmul.bf16.gmra.mxu1 %v1170_v44  ;;  %1715 = vmatmul.bf16.gmra.mxu2 %v1599_v45  ;;  %v2403_v44 = vshrl.u32 %v5856_v15, 16 }
  0xdd   : > { %2030 = vmatmul.bf16.gmra.mxu3 %v6453_v50  ;;  %v966_v50 = vrot.slane %v964_v18, 4  ;;  %v980_v18 = vor.u32 %v979_v57, %v7239_v55 }
  0xde   : > { %2712 = vmatmul.bf16.gmra.mxu0 %v2596_v52  ;;  %v969_v52 = vrot.slane %v967_v19, 5  ;;  %v2405_v11 = vrot.slane %v2403_v44, 4 }
  0xdf   : > { %v7217_v25 = vpop.f32.mrf.mxu2  ;;  %v981_v60 = vrot.slane %v980_v18, 4  ;;  %v5859_v18 = vld [vmem:[%s6716_s12 + $0x88] sm:$0xf] }
  0xe0   : > { %v7228_v35 = vpop.f32.mrf.mxu3  ;;  %v970_v15 = vor.u32 %v969_v52, %v966_v50  ;;  %v2406_v38 = vor.u32 %v2405_v11, %v7242_v13 }
  0xe1   : > { %8649 = vst [vmem:[#allocation6_spill] sm:$0xff] %v7228_v35  ;;  %v7230_v45 = vpop.f32.mrf.mxu1  ;;  %v986_v36 = vsel %vm6855_vm4, %v981_v60, %v985_v29  ;;  %v2402_v60 = vsel %vm6855_vm4, %v2397_v6, %v7242_v13  ;;  %v6520_v13 = vld [vmem:[%s8638_s1 + $0x210] sm:$0xff] }
  0xe2   : > { %v971_v57 = vrot.slane %v970_v15, 4  ;;  %v2407_v11 = vrot.slane %v2406_v38, 4  ;;  %v6504_v15 = vld [vmem:[%s8638_s1 + $0x190] sm:$0xff]  ;;  %v1514_v38 = vsel %vm6860_vm5, %v5645_v49, %v1513_v17  ;;  %v993_v49 = vrot.slane %v991_v14, 5  ;;  %v7295_v14 = vld [vmem:[%s6716_s12 + $0x80] sm:$0x1]  ;;  %4523 = vmatpush.bf16.msra.mxu0 %v6520_v13 }
  0xe3   : > { %v7237_v41 = vpop.f32.mrf.mxu0  ;;  %3415 = vmatpush.bf16.msra.mxu2 %v6504_v15 }
  0xe4   : > { %v2412_v17 = vsel %vm6855_vm4, %v2407_v11, %v2411_v12  ;;  %v1150_v11 = vunpack.c.l.b16 %v986_v36  ;;  %v1578_v12 = vunpack.c.l.b16 %v1514_v38  ;;  %v1007_v36 = vshll.u32 %v7295_v14, 16  ;;  %v5860_v38 = vld [vmem:[%s6716_s12 + $0x8c] sm:$0x1] }
  0xe5   : > { %v2433_v43 = vshll.u32 %v5860_v38, 16 }
  0xe7   : > { %v7246_v19 = vpop.f32.mrf.mxu2 }
  0xe8   : > { %v7249_v26 = vpop.f32.mrf.mxu3 }
  0xe9   : > { %8650 = vst [vmem:[#allocation7_spill] sm:$0xff] %v7249_v26  ;;  %v1252_v44 = vpop.f32.mrf.mxu1  ;;  %v1516_v26 = vrot.slane %v708_v1, 5  ;;  %v6512_v1 = vld [vmem:[%s8638_s1 + $0x1d0] sm:$0xff] }
  0xea   : > { %v1332_v50 = vadd.f32 %v1252_v44, %v7035_v62  ;;  %v988_v62 = vshrl.u32 %v709_v9, 16  ;;  %v2414_v44 = vshrl.u32 %v5858_v51, 16  ;;  %4097 = vmatpush.bf16.msra.mxu3 %v6512_v1  ;;  %v2427_v9 = vshrl.u32 %v5859_v18, 16 }
  0xeb   : > { %v7255_v52 = vpop.f32.mrf.mxu0  ;;  %v1517_v40 = vsel %vm6860_vm5, %v1515_v0, %v1516_v26 }
  0xec   : > { %1291 = vmatmul.bf16.gmra.mxu1 %v1171_v22  ;;  %1720 = vmatmul.bf16.gmra.mxu2 %v1600_v32  ;;  %v976_v22 = vsel %vm6855_vm4, %v971_v57, %v7239_v55  ;;  %v1001_v32 = vshrl.u32 %v7259_v2, 16  ;;  %v2417_v55 = vshll.u32 %v5858_v51, 16  ;;  %v2423_v57 = vshll.u32 %v5859_v18, 16  ;;  %v6480_v18 = vld [vmem:[%s8638_s1 + $0x150] sm:$0xff] }
  0xed   : > { %2035 = vmatmul.bf16.gmra.mxu3 %v6454_v10  ;;  %v990_v29 = vrot.slane %v988_v62, 4  ;;  %v1149_v6 = vunpack.c.l.b16 %v976_v22  ;;  %v1579_v62 = vunpack.c.l.b16 %v1517_v40  ;;  %3100 = vmatpush.bf16.msra.mxu1 %v6480_v18  ;;  %v1374_v18 = vld [vmem:[%s6716_s12 + $0x78] sm:$0xe] }
  0xee   : > { %2717 = vmatmul.bf16.gmra.mxu0 %v2597_v46  ;;  %v1003_v51 = vrot.slane %v1001_v32, 4  ;;  %v7297_v1 = vrot.slane %v2423_v57, 5  ;;  %v2575_v32 = vunpack.c.l.b16 %v2402_v60 }
  0xef   : > { %v1681_v34 = vpop.f32.mrf.mxu2 }
  0xf0   : > { %v1761_v10 = vadd.f32 %v1681_v34, %v1332_v50  ;;  %v1996_v46 = vpop.f32.mrf.mxu3  ;;  %v7286_v50 = vrot.slane %v997_v23, 5  ;;  %v2429_v23 = vrot.slane %v2427_v9, 4  ;;  %v2576_v34 = vunpack.c.l.b16 %v2412_v17 }
  0xf1   : > { %v1254_v35 = vpop.f32.mrf.mxu1  ;;  %v1601_v9 = vpack.c.b16 %v1579_v62, %v1578_v12  ;;  %v7311_v12 = vld [vmem:[%s6716_s12 + $0x88] sm:$0xf]  ;;  %v5646_v62 = vrot.slane %v1374_v18, 9 }
  0xf2   : > { %v2076_v26 = vadd.f32 %v1996_v46, %v1761_v10  ;;  %v1333_v0 = vadd.f32 %v1254_v35, %v7070_v31  ;;  %v2416_v31 = vrot.slane %v2414_v44, 4  ;;  %v2419_v35 = vrot.slane %v2417_v55, 5 }
  0xf3   : > { %v2680_v15 = vpop.f32.mrf.mxu0  ;;  %v994_v10 = vor.u32 %v993_v49, %v990_v29  ;;  %v1004_v22 = vor.u32 %v1003_v51, %v7286_v50  ;;  %v1172_v46 = vpack.c.b16 %v1150_v11, %v1149_v6  ;;  %v1520_v44 = vrot.slane %v7259_v2, 5  ;;  %v6455_v29 = vld [vmem:[%s6716_s12 + $0x78] sm:$0xff] }
  0xf4   : > { %v2420_v13 = vor.u32 %v2419_v35, %v2416_v31  ;;  %v2430_v60 = vor.u32 %v2429_v23, %v7297_v1  ;;  %v2598_v49 = vpack.c.b16 %v2576_v34, %v2575_v32  ;;  %v1009_v11 = vrot.slane %v1007_v36, 5  ;;  %v5861_v34 = vld [vmem:[%s6716_s12 + $0x90] sm:$0xf] }
  0xf5   : > { %v995_v51 = vrot.slane %v994_v10, 4  ;;  %v1522_v31 = vrot.slane %v1520_v44, 4  ;;  %v1523_v35 = vrot.slane %v7295_v14, 5  ;;  %v5862_v10 = vld [vmem:[%s6716_s12 + $0x94] sm:$0xf]  ;;  %v7317_v38 = vadd.f32 %v7255_v52, %v2076_v26 }
  0xf6   : > { %v2421_v23 = vrot.slane %v2420_v13, 4  ;;  %v2431_v32 = vrot.slane %v2430_v60, 4  ;;  %v2438_v26 = vshrl.u32 %v5861_v34, 16  ;;  %v2451_v18 = vshrl.u32 %v5862_v10, 16 }
  0xf7   : > { %v1683_v40 = vpop.f32.mrf.mxu2  ;;  %8651 = vst [vmem:[#allocation8_spill] sm:$0xff] %v7317_v38  ;;  %v1000_v14 = vsel %vm6855_vm4, %v995_v51, %v7286_v50  ;;  %v1521_v60 = vsel %vm6860_vm5, %v5646_v62, %v1520_v44  ;;  %v1524_v50 = vsel %vm6860_vm5, %v1522_v31, %v1523_v35  ;;  %v714_v62 = vld [vmem:[%s6716_s12 + $0x8c] sm:$0x1]  ;;  %v1527_v31 = vrot.slane %v7311_v12, 5  ;;  %v1375_v35 = vld [vmem:[%s6716_s12 + $0x84] sm:$0xe] }
  0xf8   : > { %v1762_v55 = vadd.f32 %v1683_v40, %v1333_v0  ;;  %v1998_v57 = vpop.f32.mrf.mxu3  ;;  %v1005_v0 = vrot.slane %v1004_v22, 4  ;;  %v712_v40 = vld [vmem:[%s6716_s12 + $0x84] sm:$0xf]  ;;  %v2435_v22 = vrot.slane %v2433_v43, 5  ;;  %v715_v38 = vld [vmem:[%s6716_s12 + $0x90] sm:$0xf] }
  0xf9   : > { %v1257_v17 = vpop.f32.mrf.mxu1  ;;  %v1012_v36 = vshrl.u32 %v712_v40, 16 }
  0xfa   : > { %v2077_v54 = vadd.f32 %v1998_v57, %v1762_v55  ;;  %v1334_v6 = vadd.f32 %v1257_v17, %v7095_v4  ;;  %v1015_v55 = vshll.u32 %v712_v40, 16  ;;  %v1021_v57 = vshll.u32 %v7311_v12, 16 }
  0xfb   : > { %v7307_v2 = vpop.f32.mrf.mxu0  ;;  %v2426_v17 = vsel %vm6855_vm4, %v2421_v23, %v7297_v1  ;;  %v1014_v51 = vrot.slane %v1012_v36, 4  ;;  %v1580_v36 = vunpack.c.l.b16 %v1521_v60 }
  0xfc   : > { %1296 = vmatmul.bf16.gmra.mxu1 %v1172_v46  ;;  %1725 = vmatmul.bf16.gmra.mxu2 %v1601_v9  ;;  %v7319_v4 = vadd.f32 %v2680_v15, %v2077_v54  ;;  %v1010_v46 = vsel %vm6855_vm4, %v1005_v0, %v1009_v11  ;;  %v1025_v9 = vshrl.u32 %v7311_v12, 16  ;;  %v2441_v54 = vshll.u32 %v5861_v34, 16 }
  0xfd   : > { %2040 = vmatmul.bf16.gmra.mxu3 %v6455_v29  ;;  %v2447_v15 = vshll.u32 %v5862_v10, 16  ;;  %v1017_v0 = vrot.slane %v1015_v55, 5  ;;  %v7337_v11 = vrot.slane %v1021_v57, 5  ;;  %v2440_v10 = vrot.slane %v2438_v26, 4  ;;  %v5863_v57 = vld [vmem:[%s6716_s12 + $0x98] sm:$0x1] }
  0xfe   : > { %8652 = vst [vmem:[#allocation9_spill] sm:$0xff] %v7319_v4  ;;  %2722 = vmatmul.bf16.gmra.mxu0 %v2598_v49  ;;  %v2436_v49 = vsel %vm6855_vm4, %v2431_v32, %v2435_v22  ;;  %v1027_v34 = vrot.slane %v1025_v9, 4  ;;  %v2443_v1 = vrot.slane %v2441_v54, 5  ;;  %v1151_v32 = vunpack.c.l.b16 %v1000_v14 }
  0xff   : > { %v1686_v52 = vpop.f32.mrf.mxu2  ;;  %v7343_v23 = vrot.slane %v2447_v15, 5  ;;  %v1152_v22 = vunpack.c.l.b16 %v1010_v46  ;;  %v1581_v55 = vunpack.c.l.b16 %v1524_v50  ;;  %v2577_v4 = vunpack.c.l.b16 %v2426_v17 }
 0x100   : > { %v1763_v43 = vadd.f32 %v1686_v52, %v1334_v6  ;;  %v2001_v13 = vpop.f32.mrf.mxu3  ;;  %v2453_v52 = vrot.slane %v2451_v18, 4  ;;  %v1028_v9 = vor.u32 %v1027_v34, %v7337_v11  ;;  %v1529_v12 = vrot.slane %v1527_v31, 4 }
 0x101   : > { %v1259_v29 = vpop.f32.mrf.mxu1  ;;  %v1530_v54 = vrot.slane %v714_v62, 5  ;;  %v2444_v15 = vor.u32 %v2443_v1, %v2440_v10  ;;  %v2457_v14 = vshll.u32 %v5863_v57, 16  ;;  %v1173_v50 = vpack.c.b16 %v1152_v22, %v1151_v32  ;;  %v5864_v32 = vld [vmem:[%s6716_s12 + $0x9c] sm:$0xf]  ;;  %v5865_v57 = vld [vmem:[%s6716_s12 + $0xa0] sm:$0xf] }
 0x102   : > { %v2078_v6 = vadd.f32 %v2001_v13, %v1763_v43  ;;  %v1335_v40 = vadd.f32 %v1259_v29, %v7122_v42  ;;  %v2578_v43 = vunpack.c.l.b16 %v2436_v49  ;;  %v1018_v42 = vor.u32 %v1017_v0, %v1014_v51  ;;  %v6456_v51 = vld [vmem:[%s6716_s12 + $0x84] sm:$0xff] }
 0x103   : > { %v2685_v44 = vpop.f32.mrf.mxu0  ;;  %v1031_v13 = vshll.u32 %v714_v62, 16  ;;  %v5647_v29 = vrot.slane %v1375_v35, 9  ;;  %v2454_v18 = vor.u32 %v2453_v52, %v7343_v23  ;;  %v1602_v17 = vpack.c.b16 %v1581_v55, %v1580_v36  ;;  %v7358_v52 = vld [vmem:[%s6716_s12 + $0x94] sm:$0xf] }
 0x104   : > { %v2599_v0 = vpack.c.b16 %v2578_v43, %v2577_v4  ;;  %v1019_v34 = vrot.slane %v1018_v42, 4  ;;  %v1029_v1 = vrot.slane %v1028_v9, 4  ;;  %v7363_v22 = vsel %vm6860_vm5, %v1529_v12, %v1530_v54 }
 0x105   : > { %v1033_v35 = vrot.slane %v1031_v13, 5  ;;  %v2445_v4 = vrot.slane %v2444_v15, 4  ;;  %v2455_v36 = vrot.slane %v2454_v18, 4  ;;  %v2459_v55 = vrot.slane %v2457_v14, 5 }
 0x106   : > { %v1039_v43 = vshll.u32 %v715_v38, 16  ;;  %v7367_v42 = vadd.f32 %v7307_v2, %v2078_v6  ;;  %v1045_v13 = vshll.u32 %v7358_v52, 16  ;;  %v1049_v9 = vshrl.u32 %v7358_v52, 16 }
 0x107   : > { %v1688_v26 = vpop.f32.mrf.mxu2  ;;  %v2462_v12 = vshrl.u32 %v5864_v32, 16  ;;  %v2471_v2 = vshll.u32 %v5865_v57, 16  ;;  %v2475_v6 = vshrl.u32 %v5865_v57, 16  ;;  %v1034_v54 = vsel %vm6855_vm4, %v1029_v1, %v1033_v35 }
 0x108   : > { %v1764_v46 = vadd.f32 %v1688_v26, %v1335_v40  ;;  %v2003_v60 = vpop.f32.mrf.mxu3  ;;  %v7355_v40 = vsel %vm6860_vm5, %v5647_v29, %v1527_v31  ;;  %v6503_v29 = vld [vmem:[%s8638_s1 + $0x188] sm:$0xff]  ;;  %v2465_v26 = vshll.u32 %v5864_v32, 16  ;;  %v1583_v18 = vunpack.c.l.b16 %v7363_v22 }
 0x109   : > { %v1262_v49 = vpop.f32.mrf.mxu1  ;;  %v1582_v15 = vunpack.c.l.b16 %v7355_v40  ;;  %v2450_v14 = vsel %vm6855_vm4, %v2445_v4, %v7343_v23  ;;  %3416 = vmatpush.bf16.msra.mxu2 %v6503_v29  ;;  %v2464_v35 = vrot.slane %v2462_v12, 4  ;;  %v2477_v22 = vrot.slane %v2475_v6, 4  ;;  %v6479_v4 = vld [vmem:[%s8638_s1 + $0x148] sm:$0xff] }
 0x10a   : > { %v2079_v7 = vadd.f32 %v2003_v60, %v1764_v46  ;;  %v1336_v62 = vadd.f32 %v1262_v49, %v7146_v20  ;;  %v1036_v20 = vshrl.u32 %v715_v38, 16  ;;  %v6511_v38 = vld [vmem:[%s8638_s1 + $0x1c8] sm:$0xff]  ;;  %v2467_v1 = vrot.slane %v2465_v26, 5  ;;  %3101 = vmatpush.bf16.msra.mxu1 %v6479_v4  ;;  %v1376_v26 = vld [vmem:[%s6716_s12 + $0x90] sm:$0xe] }
 0x10b   : > { %v7351_v10 = vpop.f32.mrf.mxu0  ;;  %4098 = vmatpush.bf16.msra.mxu3 %v6511_v38  ;;  %v1154_v57 = vunpack.c.l.b16 %v1034_v54  ;;  %v1603_v54 = vpack.c.b16 %v1583_v18, %v1582_v15 }
 0x10c   : > { %1301 = vmatmul.bf16.gmra.mxu1 %v1173_v50  ;;  %1730 = vmatmul.bf16.gmra.mxu2 %v1602_v17  ;;  %v7369_v31 = vadd.f32 %v2685_v44, %v2079_v7  ;;  %v1024_v7 = vsel %vm6855_vm4, %v1019_v34, %v7337_v11  ;;  %v2460_v11 = vsel %vm6855_vm4, %v2455_v36, %v2459_v55  ;;  %v1038_v50 = vrot.slane %v1036_v20, 4  ;;  %v6519_v36 = vld [vmem:[%s8638_s1 + $0x208] sm:$0xff] }
 0x10d   : > { %2045 = vmatmul.bf16.gmra.mxu3 %v6456_v51  ;;  %v1041_v17 = vrot.slane %v1039_v43, 5  ;;  %v717_v51 = vld [vmem:[%s6716_s12 + $0x98] sm:$0x1]  ;;  %v1051_v34 = vrot.slane %v1049_v9, 4  ;;  %v1153_v55 = vunpack.c.l.b16 %v1024_v7  ;;  %v2579_v20 = vunpack.c.l.b16 %v2450_v14  ;;  %4524 = vmatpush.bf16.msra.mxu0 %v6519_v36 }
 0x10e   : > { %2727 = vmatmul.bf16.gmra.mxu0 %v2599_v0  ;;  %v7392_v0 = vrot.slane %v1045_v13, 5  ;;  %v2580_v43 = vunpack.c.l.b16 %v2460_v11  ;;  %v5866_v13 = vld [vmem:[%s6716_s12 + $0xa4] sm:$0x1]  ;;  %v1055_v9 = vshll.u32 %v717_v51, 16  ;;  %v2468_v38 = vor.u32 %v2467_v1, %v2464_v35 }
 0x10f   : > { %v1691_v44 = vpop.f32.mrf.mxu2  ;;  %v1042_v29 = vor.u32 %v1041_v17, %v1038_v50  ;;  %v2481_v6 = vshll.u32 %v5866_v13, 16  ;;  %v1174_v7 = vpack.c.b16 %v1154_v57, %v1153_v55  ;;  %v6457_v17 = vld [vmem:[%s6716_s12 + $0x90] sm:$0xff]  ;;  %v1537_v35 = vrot.slane %v717_v51, 5  ;;  %v718_v55 = vld [vmem:[%s6716_s12 + $0x9c] sm:$0xf] }
 0x110   : > { %v1765_v46 = vadd.f32 %v1691_v44, %v1336_v62  ;;  %v2006_v60 = vpop.f32.mrf.mxu3  ;;  %v7395_v62 = vrot.slane %v2471_v2, 5  ;;  %v1052_v12 = vor.u32 %v1051_v34, %v7392_v0  ;;  %v2600_v14 = vpack.c.b16 %v2580_v43, %v2579_v20  ;;  %v7414_v57 = vld [vmem:[%s6716_s12 + $0xa0] sm:$0xf]  ;;  %v5867_v20 = vld [vmem:[%s6716_s12 + $0xa8] sm:$0xf] }
 0x111   : > { %v1264_v49 = vpop.f32.mrf.mxu1  ;;  %v1057_v11 = vrot.slane %v1055_v9, 5  ;;  %v1043_v34 = vrot.slane %v1042_v29, 4  ;;  %v2469_v1 = vrot.slane %v2468_v38, 4  ;;  %v5868_v29 = vld [vmem:[%s6716_s12 + $0xac] sm:$0xf]  ;;  %v1069_v38 = vshll.u32 %v7414_v57, 16 }
 0x112   : > { %v2080_v40 = vadd.f32 %v2006_v60, %v1765_v46  ;;  %v1337_v23 = vadd.f32 %v1264_v49, %v7182_v5  ;;  %v1534_v5 = vrot.slane %v7358_v52, 5  ;;  %v2478_v2 = vor.u32 %v2477_v22, %v7395_v62 }
 0x113   : > { %v2690_v32 = vpop.f32.mrf.mxu0  ;;  %v5648_v52 = vrot.slane %v1376_v26, 9  ;;  %v1053_v4 = vrot.slane %v1052_v12, 4 }
 0x114   : > { %v1536_v49 = vrot.slane %v1534_v5, 4  ;;  %v2479_v18 = vrot.slane %v2478_v2, 4  ;;  %v7418_v43 = vadd.f32 %v7351_v10, %v2080_v40  ;;  %v2474_v10 = vsel %vm6855_vm4, %v2469_v1, %v7395_v62 }
 0x115   : > { %v1535_v51 = vsel %vm6860_vm5, %v5648_v52, %v1534_v5  ;;  %v1058_v12 = vsel %vm6855_vm4, %v1053_v4, %v1057_v11  ;;  %v1073_v5 = vshrl.u32 %v7414_v57, 16  ;;  %v2486_v2 = vshrl.u32 %v5867_v20, 16 }
 0x116   : > { %v1538_v9 = vsel %vm6860_vm5, %v1536_v49, %v1537_v35  ;;  %v1156_v62 = vunpack.c.l.b16 %v1058_v12  ;;  %v1584_v11 = vunpack.c.l.b16 %v1535_v51  ;;  %v1541_v51 = vrot.slane %v7414_v57, 5 }
 0x117   : > { %v1693_v44 = vpop.f32.mrf.mxu2  ;;  %v1585_v52 = vunpack.c.l.b16 %v1538_v9 }
 0x118   : > { %v1766_v46 = vadd.f32 %v1693_v44, %v1337_v23  ;;  %v2008_v60 = vpop.f32.mrf.mxu3  ;;  %v2483_v23 = vrot.slane %v2481_v6, 5 }
 0x119   : > { %v1267_v50 = vpop.f32.mrf.mxu1  ;;  %v1604_v9 = vpack.c.b16 %v1585_v52, %v1584_v11  ;;  %v721_v11 = vld [vmem:[%s6716_s12 + $0xa8] sm:$0xf] }
 0x11a   : > { %v2081_v22 = vadd.f32 %v2008_v60, %v1766_v46  ;;  %v1338_v36 = vadd.f32 %v1267_v50, %v7207_v59  ;;  %v1048_v59 = vsel %vm6855_vm4, %v1043_v34, %v7392_v0  ;;  %v2484_v40 = vsel %vm6855_vm4, %v2479_v18, %v2483_v23  ;;  %v720_v18 = vld [vmem:[%s6716_s12 + $0xa4] sm:$0x1] }
 0x11b   : > { %v7410_v15 = vpop.f32.mrf.mxu0  ;;  %v1063_v0 = vshll.u32 %v718_v55, 16  ;;  %v1155_v60 = vunpack.c.l.b16 %v1048_v59  ;;  %v2581_v34 = vunpack.c.l.b16 %v2474_v10  ;;  %v2582_v4 = vunpack.c.l.b16 %v2484_v40 }
 0x11c   : > { %1306 = vmatmul.bf16.gmra.mxu1 %v1174_v7  ;;  %1735 = vmatmul.bf16.gmra.mxu2 %v1603_v54  ;;  %v7420_v13 = vadd.f32 %v2690_v32, %v2081_v22  ;;  %v1060_v32 = vshrl.u32 %v718_v55, 16  ;;  %v2489_v7 = vshll.u32 %v5867_v20, 16  ;;  %v2495_v54 = vshll.u32 %v5868_v29, 16 }
 0x11d   : > { %2050 = vmatmul.bf16.gmra.mxu3 %v6457_v17  ;;  %v1065_v1 = vrot.slane %v1063_v0, 5  ;;  %v7440_v22 = vrot.slane %v1069_v38, 5  ;;  %v2488_v23 = vrot.slane %v2486_v2, 4  ;;  %v1175_v10 = vpack.c.b16 %v1156_v62, %v1155_v60 }
 0x11e   : > { %2732 = vmatmul.bf16.gmra.mxu0 %v2600_v14  ;;  %v2499_v14 = vshrl.u32 %v5868_v29, 16  ;;  %v1062_v35 = vrot.slane %v1060_v32, 4  ;;  %v2491_v55 = vrot.slane %v2489_v7, 5  ;;  %v7443_v20 = vrot.slane %v2495_v54, 5  ;;  %v5869_v29 = vld [vmem:[%s6716_s12 + $0xb0] sm:$0x1] }
 0x11f   : > { %v1696_v26 = vpop.f32.mrf.mxu2  ;;  %v6458_v7 = vld [vmem:[%s6716_s12 + $0x9c] sm:$0xff]  ;;  %v1543_v54 = vrot.slane %v1541_v51, 4 }
 0x120   : > { %v1767_v6 = vadd.f32 %v1696_v26, %v1338_v36  ;;  %v2011_v44 = vpop.f32.mrf.mxu3  ;;  %v1075_v36 = vrot.slane %v1073_v5, 4  ;;  %v2501_v59 = vrot.slane %v2499_v14, 4  ;;  %v1066_v40 = vor.u32 %v1065_v1, %v1062_v35  ;;  %v7455_v1 = vld [vmem:[%s6716_s12 + $0xac] sm:$0xf] }
 0x121   : > { %v1269_v46 = vpop.f32.mrf.mxu1  ;;  %v1079_v26 = vshll.u32 %v720_v18, 16  ;;  %v2601_v5 = vpack.c.b16 %v2582_v4, %v2581_v34  ;;  %v2492_v2 = vor.u32 %v2491_v55, %v2488_v23  ;;  %v1544_v14 = vrot.slane %v720_v18, 5 }
 0x122   : > { %v2082_v49 = vadd.f32 %v2011_v44, %v1767_v6  ;;  %v1339_v50 = vadd.f32 %v1269_v46, %v7237_v41  ;;  %v1377_v41 = vld [vmem:[%s6716_s12 + $0x9c] sm:$0xe]  ;;  %v1076_v32 = vor.u32 %v1075_v36, %v7440_v22  ;;  %v2502_v6 = vor.u32 %v2501_v59, %v7443_v20  ;;  %v5870_v36 = vld [vmem:[%s6716_s12 + $0xb4] sm:$0xf] }
 0x123   : > { %v2695_v17 = vpop.f32.mrf.mxu0  ;;  %v5649_v57 = vrot.slane %v1377_v41, 9  ;;  %v2505_v46 = vshll.u32 %v5869_v29, 16  ;;  %v1067_v52 = vrot.slane %v1066_v40, 4  ;;  %v2493_v34 = vrot.slane %v2492_v2, 4 }
 0x124   : > { %v1077_v35 = vrot.slane %v1076_v32, 4  ;;  %v2503_v4 = vrot.slane %v2502_v6, 4  ;;  %v7459_v23 = vadd.f32 %v7410_v15, %v2082_v49  ;;  %v1545_v59 = vsel %vm6860_vm5, %v1543_v54, %v1544_v14  ;;  %v6510_v15 = vld [vmem:[%s8638_s1 + $0x1c0] sm:$0xff] }
 0x125   : > { %v1542_v55 = vsel %vm6860_vm5, %v5649_v57, %v1541_v51  ;;  %v2507_v41 = vrot.slane %v2505_v46, 5  ;;  %v1084_v29 = vshrl.u32 %v721_v11, 16  ;;  %v1097_v51 = vshrl.u32 %v7455_v1, 16  ;;  %4099 = vmatpush.bf16.msra.mxu3 %v6510_v15 }
 0x126   : > { %v1072_v32 = vsel %vm6855_vm4, %v1067_v52, %v7440_v22  ;;  %v1587_v57 = vunpack.c.l.b16 %v1545_v59  ;;  %v2498_v54 = vsel %vm6855_vm4, %v2493_v34, %v7443_v20  ;;  %v6518_v20 = vld [vmem:[%s8638_s1 + $0x200] sm:$0xff]  ;;  %v723_v34 = vld [vmem:[%s6716_s12 + $0xb0] sm:$0x1] }
 0x127   : > { %v1698_v12 = vpop.f32.mrf.mxu2  ;;  %v2508_v22 = vsel %vm6855_vm4, %v2503_v4, %v2507_v41  ;;  %v1086_v14 = vrot.slane %v1084_v29, 4  ;;  %v1157_v59 = vunpack.c.l.b16 %v1072_v32  ;;  %v1378_v29 = vld [vmem:[%s6716_s12 + $0xa8] sm:$0xe]  ;;  %4525 = vmatpush.bf16.msra.mxu0 %v6518_v20 }
 0x128   : > { %v1768_v0 = vadd.f32 %v1698_v12, %v1339_v50  ;;  %v2013_v38 = vpop.f32.mrf.mxu3  ;;  %v1081_v50 = vrot.slane %v1079_v26, 5  ;;  %v5871_v12 = vld [vmem:[%s6716_s12 + $0xb8] sm:$0xf]  ;;  %v5650_v32 = vrot.slane %v1378_v29, 9 }
 0x129   : > { %v1272_v44 = vpop.f32.mrf.mxu1  ;;  %v2519_v6 = vshll.u32 %v5871_v12, 16 }
 0x12a   : > { %v2083_v60 = vadd.f32 %v2013_v38, %v1768_v0  ;;  %v1340_v49 = vadd.f32 %v1272_v44, %v7032_v58  ;;  %v1082_v26 = vsel %vm6855_vm4, %v1077_v35, %v1081_v50  ;;  %v2510_v0 = vshrl.u32 %v5870_v36, 16  ;;  %v6478_v50 = vld [vmem:[%s8638_s1 + $0x140] sm:$0xff] }
 0x12b   : > { %v7451_v62 = vpop.f32.mrf.mxu0  ;;  %v2513_v38 = vshll.u32 %v5870_v36, 16  ;;  %v1586_v58 = vunpack.c.l.b16 %v1542_v55  ;;  %v2523_v44 = vshrl.u32 %v5871_v12, 16  ;;  %v1099_v35 = vrot.slane %v1097_v51, 4  ;;  %3102 = vmatpush.bf16.msra.mxu1 %v6478_v50 }
 0x12c   : > { %1311 = vmatmul.bf16.gmra.mxu1 %v1175_v10  ;;  %1740 = vmatmul.bf16.gmra.mxu2 %v1604_v9  ;;  %v7461_v18 = vadd.f32 %v2695_v17, %v2083_v60  ;;  %v6502_v9 = vld [vmem:[%s8638_s1 + $0x180] sm:$0xff]  ;;  %v1087_v17 = vshll.u32 %v721_v11, 16  ;;  %v1093_v10 = vshll.u32 %v7455_v1, 16  ;;  %v1548_v36 = vrot.slane %v7455_v1, 5 }
 0x12d   : > { %2055 = vmatmul.bf16.gmra.mxu3 %v6458_v7  ;;  %3417 = vmatpush.bf16.msra.mxu2 %v6502_v9  ;;  %v2512_v4 = vrot.slane %v2510_v0, 4  ;;  %v2515_v55 = vrot.slane %v2513_v38, 5  ;;  %v1158_v41 = vunpack.c.l.b16 %v1082_v26  ;;  %v7498_v9 = vrot.slane %v2519_v6, 5 }
 0x12e   : > { %8653 = vst [vmem:[#allocation10_spill] sm:$0xff] %v7461_v18  ;;  %2737 = vmatmul.bf16.gmra.mxu0 %v2601_v5  ;;  %v1089_v11 = vrot.slane %v1087_v17, 5  ;;  %v7487_v52 = vrot.slane %v1093_v10, 5  ;;  %v2525_v12 = vrot.slane %v2523_v44, 4  ;;  %v1605_v15 = vpack.c.b16 %v1587_v57, %v1586_v58  ;;  %v5872_v10 = vld [vmem:[%s6716_s12 + $0xbc] sm:$0x1] }
 0x12f   : > { %v1701_v40 = vpop.f32.mrf.mxu2  ;;  %v2584_v17 = vunpack.c.l.b16 %v2508_v22  ;;  %v1103_v0 = vshll.u32 %v723_v34, 16  ;;  %v1550_v26 = vrot.slane %v1548_v36, 4  ;;  %v1176_v50 = vpack.c.b16 %v1158_v41, %v1157_v59  ;;  %v6459_v22 = vld [vmem:[%s6716_s12 + $0xa8] sm:$0xff] }
 0x130   : > { %v1769_v5 = vadd.f32 %v1701_v40, %v1340_v49  ;;  %v2016_v2 = vpop.f32.mrf.mxu3  ;;  %v2583_v49 = vunpack.c.l.b16 %v2498_v54  ;;  %v1090_v40 = vor.u32 %v1089_v11, %v1086_v14  ;;  %v1100_v1 = vor.u32 %v1099_v35, %v7487_v52 }
 0x131   : > { %v1274_v7 = vpop.f32.mrf.mxu1  ;;  %v2526_v58 = vor.u32 %v2525_v12, %v7498_v9  ;;  %v2529_v57 = vshll.u32 %v5872_v10, 16  ;;  %v1105_v14 = vrot.slane %v1103_v0, 5  ;;  %v1549_v35 = vsel %vm6860_vm5, %v5650_v32, %v1548_v36  ;;  %v724_v12 = vld [vmem:[%s6716_s12 + $0xb4] sm:$0xf]  ;;  %v6578_v36 = vld [vmem:[%s6716_s12 + $0x10] sm:$0xf] }
 0x132   : > { %v2084_v46 = vadd.f32 %v2016_v2, %v1769_v5  ;;  %v1341_v51 = vadd.f32 %v1274_v7, %v7068_v28  ;;  %v1551_v5 = vrot.slane %v723_v34, 5  ;;  %v2516_v2 = vor.u32 %v2515_v55, %v2512_v4 }
 0x133   : > { %v2700_v60 = vpop.f32.mrf.mxu0  ;;  %v2602_v20 = vpack.c.b16 %v2584_v17, %v2583_v49  ;;  %v1091_v7 = vrot.slane %v1090_v40, 4  ;;  %v1101_v11 = vrot.slane %v1100_v1, 4  ;;  %v2527_v55 = vrot.slane %v2526_v58, 4  ;;  %v6579_v17 = vld [vmem:[%s6716_s12 + $0x14] sm:$0x1] }
 0x134   : > { %v1552_v34 = vsel %vm6860_vm5, %v1550_v26, %v1551_v5  ;;  %v2517_v4 = vrot.slane %v2516_v2, 4  ;;  %v2531_v59 = vrot.slane %v2529_v57, 5  ;;  %v7510_v41 = vadd.f32 %v7451_v62, %v2084_v46  ;;  %v7522_v40 = vld [vmem:[%s6716_s12 + $0xb8] sm:$0xf]  ;;  %v5873_v62 = vld [vmem:[%s6716_s12 + $0xc0] sm:$0xf] }
 0x135   : > { %v2873_v49 = vrot.slane %v6578_v36, 5  ;;  %v2876_v10 = vrot.slane %v6579_v17, 5  ;;  %v1589_v1 = vunpack.c.l.b16 %v1552_v34  ;;  %v1111_v5 = vshll.u32 %v724_v12, 16 }
 0x136   : > { %v2522_v0 = vsel %vm6855_vm4, %v2517_v4, %v7498_v9  ;;  %v2532_v26 = vsel %vm6855_vm4, %v2527_v55, %v2531_v59  ;;  %v2537_v58 = vshll.u32 %v5873_v62, 16  ;;  %v7536_v4 = vld [vmem:[%s6716_s12 + $0xbc] sm:$0x1] }
 0x137   : > { %v1703_v38 = vpop.f32.mrf.mxu2  ;;  %v2875_v57 = vrot.slane %v2873_v49, 4  ;;  %v1113_v59 = vrot.slane %v1111_v5, 5 }
 0x138   : > { %v1770_v6 = vadd.f32 %v1703_v38, %v1341_v51  ;;  %v2018_v44 = vpop.f32.mrf.mxu3  ;;  %v5874_v38 = vld [vmem:[%s6716_s12 + $0xc4] sm:$0xf] }
 0x139   : > { %v1277_v54 = vpop.f32.mrf.mxu1  ;;  %v2543_v9 = vshll.u32 %v5874_v38, 16 }
 0x13a   : > { %v2085_v18 = vadd.f32 %v2018_v44, %v1770_v6  ;;  %v1342_v51 = vadd.f32 %v1277_v54, %v7091_v63  ;;  %v1117_v6 = vshll.u32 %v7522_v40, 16  ;;  %v1121_v44 = vshrl.u32 %v7522_v40, 16 }
 0x13b   : > { %v2703_v28 = vpop.f32.mrf.mxu0 }
 0x13c   : > { %1316 = vmatmul.bf16.gmra.mxu1 %v1176_v50  ;;  %1745 = vmatmul.bf16.gmra.mxu2 %v1605_v15  ;;  %v7512_v29 = vadd.f32 %v2700_v60, %v2085_v18  ;;  %v1096_v15 = vsel %vm6855_vm4, %v1091_v7, %v7487_v52  ;;  %v1106_v18 = vsel %vm6855_vm4, %v1101_v11, %v1105_v14  ;;  %v1588_v60 = vunpack.c.l.b16 %v1549_v35 }
 0x13d   : > { %2060 = vmatmul.bf16.gmra.mxu3 %v6459_v22  ;;  %v1108_v52 = vshrl.u32 %v724_v12, 16  ;;  %v2534_v50 = vshrl.u32 %v5873_v62, 16  ;;  %v1159_v7 = vunpack.c.l.b16 %v1096_v15  ;;  %v1160_v14 = vunpack.c.l.b16 %v1106_v18  ;;  %v1379_v15 = vld [vmem:[%s6716_s12 + $0xb4] sm:$0xe] }
 0x13e   : > { %2742 = vmatmul.bf16.gmra.mxu0 %v2602_v20  ;;  %v2547_v20 = vshrl.u32 %v5874_v38, 16  ;;  %v2585_v11 = vunpack.c.l.b16 %v2522_v0  ;;  %v2586_v35 = vunpack.c.l.b16 %v2532_v26  ;;  %v1606_v34 = vpack.c.b16 %v1589_v1, %v1588_v60 }
 0x13f   : > { %v1706_v46 = vpop.f32.mrf.mxu2  ;;  %v1110_v55 = vrot.slane %v1108_v52, 4  ;;  %v7540_v36 = vrot.slane %v1117_v6, 5  ;;  %v1123_v17 = vrot.slane %v1121_v44, 4  ;;  %v2539_v62 = vrot.slane %v2537_v58, 5  ;;  %v5875_v52 = vld [vmem:[%s6716_s12 + $0xc8] sm:$0x1] }
 0x140   : > { %v1771_v32 = vadd.f32 %v1706_v46, %v1342_v51  ;;  %v2021_v63 = vpop.f32.mrf.mxu3  ;;  %v2536_v51 = vrot.slane %v2534_v50, 4  ;;  %v5924_v46 = vld [vmem:[%s6716_s12 + $0xc] sm:$0xe]  ;;  %v7545_v18 = vrot.slane %v2543_v9, 5  ;;  %v2549_v60 = vrot.slane %v2547_v20, 4  ;;  %v6460_v58 = vld [vmem:[%s6716_s12 + $0xb4] sm:$0xff] }
 0x141   : > { %v1279_v2 = vpop.f32.mrf.mxu1  ;;  %v5956_v1 = vrot.slane %v5924_v46, 9  ;;  %v1555_v26 = vrot.slane %v7522_v40, 5  ;;  %v1114_v44 = vor.u32 %v1113_v59, %v1110_v55  ;;  %v5651_v9 = vrot.slane %v1379_v15, 9  ;;  %v7561_v46 = vld [vmem:[%s6716_s12 + $0x1c] sm:$0xf] }
 0x142   : > { %v2086_v54 = vadd.f32 %v2021_v63, %v1771_v32  ;;  %v1343_v38 = vadd.f32 %v1279_v2, %v7116_v37  ;;  %v1177_v32 = vpack.c.b16 %v1160_v14, %v1159_v7  ;;  %v2603_v63 = vpack.c.b16 %v2586_v35, %v2585_v11 }
 0x143   : > { %v2705_v22 = vpop.f32.mrf.mxu0  ;;  %v2874_v37 = vsel %vm6860_vm5, %v5956_v1, %v2873_v49  ;;  %v2877_v2 = vsel %vm6860_vm5, %v2875_v57, %v2876_v10  ;;  %v2540_v11 = vor.u32 %v2539_v62, %v2536_v51  ;;  %v2550_v35 = vor.u32 %v2549_v60, %v7545_v18  ;;  %v6148_v57 = vld [vmem:[%s6716_s12 + $0x18] sm:$0xf] }
 0x144   : > { %v7538_v12 = vadd.f32 %v2703_v28, %v2086_v54  ;;  %v1127_v28 = vshll.u32 %v7536_v4, 16  ;;  %v1124_v54 = vor.u32 %v1123_v17, %v7540_v36  ;;  %v2983_v20 = vunpack.c.l.b16 %v2874_v37 }
 0x145   : > { %v2984_v7 = vunpack.c.l.b16 %v2877_v2  ;;  %v2553_v55 = vshll.u32 %v5875_v52, 16  ;;  %v1557_v10 = vrot.slane %v1555_v26, 4  ;;  %v1115_v17 = vrot.slane %v1114_v44, 4 }
 0x146   : > { %v1129_v49 = vrot.slane %v1127_v28, 5  ;;  %v1125_v15 = vrot.slane %v1124_v54, 4  ;;  %v1556_v51 = vsel %vm6860_vm5, %v5651_v9, %v1555_v26  ;;  %v1558_v62 = vrot.slane %v7536_v4, 5 }
 0x147   : > { %v1708_v0 = vpop.f32.mrf.mxu2  ;;  %v7557_v59 = vpack.c.b16 %v2984_v7, %v2983_v20  ;;  %v2541_v1 = vrot.slane %v2540_v11, 4  ;;  %v3597_v28 = vshrl.u32 %v6148_v57, 16  ;;  %v3600_v52 = vshll.u32 %v6148_v57, 16 }
 0x148   : > { %v1772_v5 = vadd.f32 %v1708_v0, %v1343_v38  ;;  %v2023_v6 = vpop.f32.mrf.mxu3  ;;  %v2555_v0 = vrot.slane %v2553_v55, 5  ;;  %v1120_v4 = vsel %vm6855_vm4, %v1115_v17, %v7540_v36  ;;  %v1559_v26 = vsel %vm6860_vm5, %v1557_v10, %v1558_v62  ;;  %v6150_v55 = vld [vmem:[%s6716_s12 + $0x20] sm:$0x1] }
 0x149   : > { %v1282_v50 = vpop.f32.mrf.mxu1  ;;  %v3599_v9 = vrot.slane %v3597_v28, 4  ;;  %v3602_v20 = vrot.slane %v3600_v52, 5  ;;  %v3616_v62 = vshll.u32 %v6150_v55, 16  ;;  %v6461_v52 = vld [vmem:[%s6716_s12 + $0xc0] sm:$0xff] }
 0x14a   : > { %v2087_v40 = vadd.f32 %v2023_v6, %v1772_v5  ;;  %v1344_v60 = vadd.f32 %v1282_v50, %v7141_v8  ;;  %v3610_v5 = vshrl.u32 %v7561_v46, 16  ;;  %v1130_v8 = vsel %vm6855_vm4, %v1125_v15, %v1129_v49 }
 0x14b   : > { %v2708_v14 = vpop.f32.mrf.mxu0  ;;  %v1590_v50 = vunpack.c.l.b16 %v1556_v51  ;;  %v1162_v11 = vunpack.c.l.b16 %v1130_v8  ;;  %v3603_v15 = vor.u32 %v3602_v20, %v3599_v9 }
 0x14c   : > { %1321 = vmatmul.bf16.gmra.mxu1 %v1177_v32  ;;  %1750 = vmatmul.bf16.gmra.mxu2 %v1606_v34  ;;  %v7563_v38 = vadd.f32 %v2705_v22, %v2087_v40  ;;  %v2551_v34 = vrot.slane %v2550_v35, 4  ;;  %v3606_v22 = vshll.u32 %v7561_v46, 16  ;;  %v3612_v36 = vrot.slane %v3610_v5, 4 }
 0x14d   : > { %2065 = vmatmul.bf16.gmra.mxu3 %v6460_v58  ;;  %v2546_v58 = vsel %vm6855_vm4, %v2541_v1, %v7545_v18  ;;  %v1161_v40 = vunpack.c.l.b16 %v1120_v4  ;;  %v1591_v35 = vunpack.c.l.b16 %v1559_v26  ;;  %v4299_v26 = vrot.slane %v6150_v55, 5 }
 0x14e   : > { %2747 = vmatmul.bf16.gmra.mxu0 %v2603_v63  ;;  %v2556_v54 = vsel %vm6855_vm4, %v2551_v34, %v2555_v0  ;;  %v3608_v7 = vrot.slane %v3606_v22, 5  ;;  %v2587_v10 = vunpack.c.l.b16 %v2546_v58  ;;  %v7595_v58 = vld [vmem:[%s6716_s12 + $0x28] sm:$0xf] }
 0x14f   : > { %v1711_v32 = vpop.f32.mrf.mxu2  ;;  %v2588_v57 = vunpack.c.l.b16 %v2556_v54  ;;  %v1178_v34 = vpack.c.b16 %v1162_v11, %v1161_v40  ;;  %v1607_v0 = vpack.c.b16 %v1591_v35, %v1590_v50  ;;  %v6151_v50 = vld [vmem:[%s6716_s12 + $0x24] sm:$0xf] }
 0x150   : > { %v1773_v63 = vadd.f32 %v1711_v32, %v1344_v60  ;;  %v2026_v6 = vpop.f32.mrf.mxu3  ;;  %v3613_v51 = vor.u32 %v3612_v36, %v3608_v7  ;;  %v4296_v32 = vrot.slane %v7561_v46, 5  ;;  %v3624_v55 = vshll.u32 %v6151_v50, 16 }
 0x151   : > { %v1284_v44 = vpop.f32.mrf.mxu1  ;;  %v2604_v22 = vpack.c.b16 %v2588_v57, %v2587_v10  ;;  %v3630_v10 = vshll.u32 %v7595_v58, 16  ;;  %v3634_v57 = vshrl.u32 %v7595_v58, 16 }
 0x152   : > { %v2088_v37 = vadd.f32 %v2026_v6, %v1773_v63  ;;  %v1345_v17 = vadd.f32 %v1284_v44, %v7175_v61  ;;  %v3604_v6 = vrot.slane %v3603_v15, 4  ;;  %v3614_v61 = vrot.slane %v3613_v51, 4 }
 0x153   : > { %v2710_v2 = vpop.f32.mrf.mxu0  ;;  %v3618_v44 = vrot.slane %v3616_v62, 5  ;;  %v4298_v8 = vrot.slane %v4296_v32, 4 }
 0x154   : > { %v7584_v49 = vadd.f32 %v2708_v14, %v2088_v37  ;;  %v6244_v14 = vld [vmem:[%s6716_s12 + $0x18] sm:$0xe]  ;;  %v3609_v9 = vsel %vm6855_vm4, %v3604_v6, %v3608_v7 }
 0x155   : > { %v6276_v4 = vrot.slane %v6244_v14, 9  ;;  %v3619_v40 = vsel %vm6855_vm4, %v3614_v61, %v3618_v44  ;;  %v4300_v11 = vsel %vm6860_vm5, %v4298_v8, %v4299_v26  ;;  %v6486_v6 = vld [vmem:[%s6716_s12 + $0x18] sm:$0xff] }
 0x156   : > { %v3981_v15 = vunpack.c.l.b16 %v3619_v40  ;;  %v4407_v62 = vunpack.c.l.b16 %v4300_v11  ;;  %v6580_v44 = vld [vmem:[%s6716_s12 + $0x1c] sm:$0xf]  ;;  %v5925_v26 = vld [vmem:[%s6716_s12 + $0x18] sm:$0xe]  ;;  %v6154_v11 = vld [vmem:[%s6716_s12 + $0x30] sm:$0xf] }
 0x157   : > { %v1713_v18 = vpop.f32.mrf.mxu2  ;;  %v5957_v40 = vrot.slane %v5925_v26, 9 }
 0x158   : > { %v1774_v60 = vadd.f32 %v1713_v18, %v1345_v17  ;;  %v2028_v1 = vpop.f32.mrf.mxu3  ;;  %v3980_v18 = vunpack.c.l.b16 %v3609_v9 }
 0x159   : > { %v1287_v28 = vpop.f32.mrf.mxu1 }
 0x15a   : > { %v2089_v5 = vadd.f32 %v2028_v1, %v1774_v60  ;;  %v1346_v46 = vadd.f32 %v1287_v28, %v7203_v47  ;;  %v3621_v47 = vshrl.u32 %v6151_v50, 16  ;;  %v4012_v61 = vpack.c.b16 %v3981_v15, %v3980_v18 }
 0x15b   : > { %v2713_v63 = vpop.f32.mrf.mxu0 }
 0x15c   : > { %1326 = vmatmul.bf16.gmra.mxu1 %v1178_v34  ;;  %1755 = vmatmul.bf16.gmra.mxu2 %v1607_v0  ;;  %v7590_v37 = vadd.f32 %v2710_v2, %v2089_v5  ;;  %v4297_v2 = vsel %vm6860_vm5, %v6276_v4, %v4296_v32  ;;  %v3623_v1 = vrot.slane %v3621_v47, 4  ;;  %v3626_v34 = vrot.slane %v3624_v55, 5  ;;  %v6581_v55 = vld [vmem:[%s6716_s12 + $0x20] sm:$0x1] }
 0x15d   : > { %2070 = vmatmul.bf16.gmra.mxu3 %v6461_v52  ;;  %v4406_v51 = vunpack.c.l.b16 %v4297_v2  ;;  %v7609_v0 = vrot.slane %v3630_v10, 5  ;;  %v3636_v32 = vrot.slane %v3634_v57, 4  ;;  %v6153_v52 = vld [vmem:[%s6716_s12 + $0x2c] sm:$0x1]  ;;  %v2880_v4 = vrot.slane %v6580_v44, 5 }
 0x15e   : > { %2752 = vmatmul.bf16.gmra.mxu0 %v2604_v22  ;;  %v2883_v10 = vrot.slane %v6581_v55, 5 }
 0x15f   : > { %v1716_v54 = vpop.f32.mrf.mxu2  ;;  %v4438_v8 = vpack.c.b16 %v4407_v62, %v4406_v51  ;;  %v3637_v50 = vor.u32 %v3636_v32, %v7609_v0  ;;  %v2882_v2 = vrot.slane %v2880_v4, 4 }
 0x160   : > { %v1775_v20 = vadd.f32 %v1716_v54, %v1346_v46  ;;  %v2031_v36 = vpop.f32.mrf.mxu3  ;;  %v3627_v46 = vor.u32 %v3626_v34, %v3623_v1  ;;  %v3640_v54 = vshll.u32 %v6153_v52, 16  ;;  %v3645_v1 = vshrl.u32 %v6154_v11, 16 }
 0x161   : > { %v1289_v35 = vpop.f32.mrf.mxu1  ;;  %v3648_v34 = vshll.u32 %v6154_v11, 16 }
 0x162   : > { %v2090_v7 = vadd.f32 %v2031_v36, %v1775_v20  ;;  %v1347_v28 = vadd.f32 %v1289_v35, %v7230_v45  ;;  %v4303_v20 = vrot.slane %v7595_v58, 5  ;;  %v6245_v36 = vld [vmem:[%s6716_s12 + $0x24] sm:$0xe]  ;;  %v7622_v35 = vld [vmem:[%s6716_s12 + $0x34] sm:$0xf]  ;;  %v3628_v57 = vrot.slane %v3627_v46, 4 }
 0x163   : > { %v2715_v17 = vpop.f32.mrf.mxu0  ;;  %v3642_v18 = vrot.slane %v3640_v54, 5  ;;  %v6277_v15 = vrot.slane %v6245_v36, 9  ;;  %v3654_v32 = vshll.u32 %v7622_v35, 16  ;;  %v3650_v26 = vrot.slane %v3648_v34, 5 }
 0x164   : > { %v7607_v60 = vadd.f32 %v2713_v63, %v2090_v7  ;;  %v3638_v7 = vrot.slane %v3637_v50, 4  ;;  %v4305_v51 = vrot.slane %v4303_v20, 4  ;;  %v4310_v34 = vrot.slane %v7622_v35, 5 }
 0x165   : > { %v7643_v46 = vrot.slane %v3654_v32, 5 }
 0x166   : > { %v3643_v44 = vsel %vm6855_vm4, %v3638_v7, %v3642_v18  ;;  %v5926_v18 = vld [vmem:[%s6716_s12 + $0x24] sm:$0xe] }
 0x167   : > { %v1718_v22 = vpop.f32.mrf.mxu2 }
 0x168   : > { %v1776_v14 = vadd.f32 %v1718_v22, %v1347_v28  ;;  %v2033_v5 = vpop.f32.mrf.mxu3 }
 0x169   : > { %v1292_v63 = vpop.f32.mrf.mxu1 }
 0x16a   : > { %v2091_v45 = vadd.f32 %v2033_v5, %v1776_v14  ;;  %v1348_v58 = vadd.f32 %v1292_v63, %v7052_v16  ;;  %v2881_v5 = vsel %vm6860_vm5, %v5957_v40, %v2880_v4  ;;  %v2884_v16 = vsel %vm6860_vm5, %v2882_v2, %v2883_v10  ;;  %v6582_v10 = vld [vmem:[%s6716_s12 + $0x28] sm:$0xf] }
 0x16b   : > { %v2718_v9 = vpop.f32.mrf.mxu0  ;;  %v4304_v63 = vsel %vm6860_vm5, %v6277_v15, %v4303_v20  ;;  %v3647_v4 = vrot.slane %v3645_v1, 4  ;;  %v2985_v54 = vunpack.c.l.b16 %v2881_v5  ;;  %v3983_v2 = vunpack.c.l.b16 %v3643_v44  ;;  %v6487_v1 = vld [vmem:[%s6716_s12 + $0x24] sm:$0xff] }
 0x16c   : > { %3103 = vmatmul.bf16.vlgmr.msra.gmra.mxu1 %v7557_v59  ;;  %3418 = vmatmul.bf16.vlgmr.msra.gmra.mxu2 %v6486_v6  ;;  %v7624_v47 = vadd.f32 %v2715_v17, %v2091_v45  ;;  %v4306_v59 = vrot.slane %v6153_v52, 5  ;;  %v3658_v17 = vshrl.u32 %v7622_v35, 16  ;;  %v3633_v52 = vsel %vm6855_vm4, %v3628_v57, %v7609_v0  ;;  %v6156_v45 = vld [vmem:[%s6716_s12 + $0x38] sm:$0x1] }
 0x16d   : > { %4100 = vmatmul.bf16.vlgmr.msra.gmra.mxu3 %v4012_v61  ;;  %v2986_v0 = vunpack.c.l.b16 %v2884_v16  ;;  %v3982_v40 = vunpack.c.l.b16 %v3633_v52  ;;  %v4408_v11 = vunpack.c.l.b16 %v4304_v63  ;;  %v2887_v57 = vrot.slane %v6582_v10, 5  ;;  %v6583_v52 = vld [vmem:[%s6716_s12 + $0x2c] sm:$0x1] }
 0x16e   : > { %4526 = vmatmul.bf16.vlgmr.msra.gmra.mxu0 %v4438_v8  ;;  %v4307_v8 = vsel %vm6860_vm5, %v4305_v51, %v4306_v59  ;;  %v3660_v50 = vrot.slane %v3658_v17, 4  ;;  %v3664_v51 = vshll.u32 %v6156_v45, 16  ;;  %v5958_v5 = vrot.slane %v5926_v18, 9 }
 0x16f   : > { %v1721_v62 = vpop.f32.mrf.mxu2  ;;  %v4409_v55 = vunpack.c.l.b16 %v4307_v8  ;;  %v4013_v17 = vpack.c.b16 %v3983_v2, %v3982_v40  ;;  %v2889_v16 = vrot.slane %v2887_v57, 4  ;;  %v4313_v35 = vrot.slane %v6156_v45, 5  ;;  %v7661_v40 = vld [vmem:[%s6716_s12 + $0x40] sm:$0xf] }
 0x170   : > { %v1777_v28 = vadd.f32 %v1721_v62, %v1348_v58  ;;  %v2036_v22 = vpop.f32.mrf.mxu3  ;;  %v3651_v58 = vor.u32 %v3650_v26, %v3647_v4  ;;  %v3661_v15 = vor.u32 %v3660_v50, %v7643_v46  ;;  %v3016_v62 = vpack.c.b16 %v2986_v0, %v2985_v54  ;;  %v6157_v0 = vld [vmem:[%s6716_s12 + $0x3c] sm:$0xf] }
 0x171   : > { %v1294_v14 = vpop.f32.mrf.mxu1  ;;  %v3666_v8 = vrot.slane %v3664_v51, 5  ;;  %v4312_v26 = vrot.slane %v4310_v34, 4  ;;  %v3682_v51 = vshrl.u32 %v7661_v40, 16 }
 0x172   : > { %v2092_v6 = vadd.f32 %v2036_v22, %v1777_v28  ;;  %v1349_v20 = vadd.f32 %v1294_v14, %v7085_v53  ;;  %v4439_v28 = vpack.c.b16 %v4409_v55, %v4408_v11  ;;  %v6246_v53 = vld [vmem:[%s6716_s12 + $0x30] sm:$0xe]  ;;  %v3652_v44 = vrot.slane %v3651_v58, 4 }
 0x173   : > { %v2720_v61 = vpop.f32.mrf.mxu0  ;;  %v3662_v63 = vrot.slane %v3661_v15, 4  ;;  %v6278_v4 = vrot.slane %v6246_v53, 9  ;;  %v2888_v11 = vsel %vm6860_vm5, %v5958_v5, %v2887_v57  ;;  %v3669_v57 = vshrl.u32 %v6157_v0, 16 }
 0x174   : > { %v7646_v36 = vadd.f32 %v2718_v9, %v2092_v6  ;;  %v2890_v6 = vrot.slane %v6583_v52, 5  ;;  %v3657_v45 = vsel %vm6855_vm4, %v3652_v44, %v7643_v46  ;;  %v3672_v58 = vshll.u32 %v6157_v0, 16 }
 0x175   : > { %v3667_v10 = vsel %vm6855_vm4, %v3662_v63, %v3666_v8  ;;  %v3678_v15 = vshll.u32 %v7661_v40, 16  ;;  %v3671_v53 = vrot.slane %v3669_v57, 4  ;;  %v6160_v57 = vld [vmem:[%s6716_s12 + $0x48] sm:$0xf] }
 0x176   : > { %v2891_v55 = vsel %vm6860_vm5, %v2889_v16, %v2890_v6  ;;  %v3684_v16 = vrot.slane %v3682_v51, 4  ;;  %v6159_v6 = vld [vmem:[%s6716_s12 + $0x44] sm:$0x1]  ;;  %v6585_v51 = vld [vmem:[%s6716_s12 + $0x38] sm:$0x1] }
 0x177   : > { %v1723_v7 = vpop.f32.mrf.mxu2  ;;  %v7680_v5 = vrot.slane %v3678_v15, 5 }
 0x178   : > { %v1778_v59 = vadd.f32 %v1723_v7, %v1349_v20  ;;  %v2038_v9 = vpop.f32.mrf.mxu3  ;;  %v4314_v7 = vsel %vm6860_vm5, %v4312_v26, %v4313_v35  ;;  %v6488_v26 = vld [vmem:[%s6716_s12 + $0x30] sm:$0xff] }
 0x179   : > { %v1297_v32 = vpop.f32.mrf.mxu1 }
 0x17a   : > { %v2093_v22 = vadd.f32 %v2038_v9, %v1778_v59  ;;  %v1350_v54 = vadd.f32 %v1297_v32, %v7105_v24  ;;  %v4311_v24 = vsel %vm6860_vm5, %v6278_v4, %v4310_v34  ;;  %v2987_v9 = vunpack.c.l.b16 %v2888_v11  ;;  %v5927_v11 = vld [vmem:[%s6716_s12 + $0x30] sm:$0xe] }
 0x17b   : > { %v2723_v14 = vpop.f32.mrf.mxu0  ;;  %v3985_v32 = vunpack.c.l.b16 %v3667_v10  ;;  %v4410_v34 = vunpack.c.l.b16 %v4311_v24  ;;  %v4317_v10 = vrot.slane %v7661_v40, 5  ;;  %v6247_v24 = vld [vmem:[%s6716_s12 + $0x3c] sm:$0xe] }
 0x17c   : > { %3108 = vmatmul.bf16.gmra.mxu1 %v3016_v62  ;;  %3423 = vmatmul.bf16.gmra.mxu2 %v6487_v1  ;;  %v7656_v50 = vadd.f32 %v2720_v61, %v2093_v22  ;;  %v2988_v62 = vunpack.c.l.b16 %v2891_v55  ;;  %v3984_v1 = vunpack.c.l.b16 %v3657_v45  ;;  %v3674_v22 = vrot.slane %v3672_v58, 5  ;;  %v7692_v58 = vld [vmem:[%s6716_s12 + $0x4c] sm:$0xf] }
 0x17d   : > { %4105 = vmatmul.bf16.gmra.mxu3 %v4013_v17  ;;  %v4411_v17 = vunpack.c.l.b16 %v4314_v7  ;;  %v3685_v45 = vor.u32 %v3684_v16, %v7680_v5  ;;  %v5959_v7 = vrot.slane %v5927_v11, 9  ;;  %v6279_v40 = vrot.slane %v6247_v24, 9 }
 0x17e   : > { %4531 = vmatmul.bf16.gmra.mxu0 %v4439_v28  ;;  %v3017_v4 = vpack.c.b16 %v2988_v62, %v2987_v9  ;;  %v4014_v35 = vpack.c.b16 %v3985_v32, %v3984_v1  ;;  %v3675_v55 = vor.u32 %v3674_v22, %v3671_v53  ;;  %v3693_v22 = vshrl.u32 %v6160_v57, 16 }
 0x17f   : > { %v1726_v2 = vpop.f32.mrf.mxu2  ;;  %v3686_v62 = vrot.slane %v3685_v45, 4  ;;  %v3696_v16 = vshll.u32 %v6160_v57, 16 }
 0x180   : > { %v1779_v61 = vadd.f32 %v1726_v2, %v1350_v54  ;;  %v2041_v20 = vpop.f32.mrf.mxu3  ;;  %v6584_v54 = vld [vmem:[%s6716_s12 + $0x34] sm:$0xf]  ;;  %v4440_v2 = vpack.c.b16 %v4411_v17, %v4410_v34  ;;  %v3676_v9 = vrot.slane %v3675_v55, 4  ;;  %v4319_v34 = vrot.slane %v4317_v10, 4 }
 0x181   : > { %v1299_v18 = vpop.f32.mrf.mxu1  ;;  %v4320_v17 = vrot.slane %v6159_v6, 5  ;;  %v3698_v11 = vrot.slane %v3696_v16, 5  ;;  %v4324_v16 = vrot.slane %v7692_v58, 5 }
 0x182   : > { %v2094_v46 = vadd.f32 %v2041_v20, %v1779_v61  ;;  %v1351_v52 = vadd.f32 %v1299_v18, %v7135_v3  ;;  %v3688_v3 = vshll.u32 %v6159_v6, 16  ;;  %v3681_v6 = vsel %vm6855_vm4, %v3676_v9, %v7680_v5 }
 0x183   : > { %v2725_v59 = vpop.f32.mrf.mxu0 }
 0x184   : > { %v7678_v28 = vadd.f32 %v2723_v14, %v2094_v46  ;;  %v2894_v14 = vrot.slane %v6584_v54, 5  ;;  %v2897_v46 = vrot.slane %v6585_v51, 5  ;;  %v3690_v1 = vrot.slane %v3688_v3, 5 }
 0x186   : > { %v2896_v18 = vrot.slane %v2894_v14, 4  ;;  %v3691_v54 = vsel %vm6855_vm4, %v3686_v62, %v3690_v1  ;;  %v5928_v1 = vld [vmem:[%s6716_s12 + $0x3c] sm:$0xe] }
 0x187   : > { %v1728_v44 = vpop.f32.mrf.mxu2 }
 0x188   : > { %v1780_v63 = vadd.f32 %v1728_v44, %v1351_v52  ;;  %v2043_v8 = vpop.f32.mrf.mxu3  ;;  %v3702_v52 = vshll.u32 %v7692_v58, 16 }
 0x189   : > { %v1302_v0 = vpop.f32.mrf.mxu1 }
 0x18a   : > { %v2095_v61 = vadd.f32 %v2043_v8, %v1780_v63  ;;  %v1352_v32 = vadd.f32 %v1302_v0, %v7162_v48  ;;  %v2898_v48 = vsel %vm6860_vm5, %v2896_v18, %v2897_v46  ;;  %v4318_v0 = vsel %vm6860_vm5, %v6279_v40, %v4317_v10  ;;  %v6586_v46 = vld [vmem:[%s6716_s12 + $0x40] sm:$0xf] }
 0x18b   : > { %v2728_v20 = vpop.f32.mrf.mxu0  ;;  %v7713_v55 = vrot.slane %v3702_v52, 5  ;;  %v2990_v5 = vunpack.c.l.b16 %v2898_v48  ;;  %v3987_v18 = vunpack.c.l.b16 %v3691_v54  ;;  %v4412_v57 = vunpack.c.l.b16 %v4318_v0 }
 0x18c   : > { %3113 = vmatmul.bf16.gmra.mxu1 %v3017_v4  ;;  %3428 = vmatmul.bf16.gmra.mxu2 %v6488_v26  ;;  %v7694_v15 = vadd.f32 %v2725_v59, %v2095_v61  ;;  %v3706_v59 = vshrl.u32 %v7692_v58, 16  ;;  %v2895_v4 = vsel %vm6860_vm5, %v5959_v7, %v2894_v14  ;;  %v3695_v14 = vrot.slane %v3693_v22, 4  ;;  %v6162_v61 = vld [vmem:[%s6716_s12 + $0x50] sm:$0x1]  ;;  %v6489_v22 = vld [vmem:[%s6716_s12 + $0x3c] sm:$0xff] }
 0x18d   : > { %4110 = vmatmul.bf16.gmra.mxu3 %v4014_v35  ;;  %v2989_v3 = vunpack.c.l.b16 %v2895_v4  ;;  %v3986_v7 = vunpack.c.l.b16 %v3681_v6  ;;  %v2901_v9 = vrot.slane %v6586_v46, 5  ;;  %v5960_v4 = vrot.slane %v5928_v1, 9  ;;  %v6587_v6 = vld [vmem:[%s6716_s12 + $0x44] sm:$0x1] }
 0x18e   : > { %4536 = vmatmul.bf16.gmra.mxu0 %v4440_v2  ;;  %v4321_v2 = vsel %vm6860_vm5, %v4319_v34, %v4320_v17  ;;  %v3708_v45 = vrot.slane %v3706_v59, 4  ;;  %v3712_v34 = vshll.u32 %v6162_v61, 16  ;;  %v4327_v58 = vrot.slane %v6162_v61, 5 }
 0x18f   : > { %v1731_v53 = vpop.f32.mrf.mxu2  ;;  %v4413_v51 = vunpack.c.l.b16 %v4321_v2  ;;  %v4015_v59 = vpack.c.b16 %v3987_v18, %v3986_v7  ;;  %v2903_v48 = vrot.slane %v2901_v9, 4  ;;  %v7731_v7 = vld [vmem:[%s6716_s12 + $0x58] sm:$0xf] }
 0x190   : > { %v1781_v44 = vadd.f32 %v1731_v53, %v1352_v32  ;;  %v2046_v63 = vpop.f32.mrf.mxu3  ;;  %v3699_v32 = vor.u32 %v3698_v11, %v3695_v14  ;;  %v3709_v40 = vor.u32 %v3708_v45, %v7713_v55  ;;  %v3018_v53 = vpack.c.b16 %v2990_v5, %v2989_v3  ;;  %v6163_v5 = vld [vmem:[%s6716_s12 + $0x54] sm:$0xf] }
 0x191   : > { %v1304_v8 = vpop.f32.mrf.mxu1  ;;  %v3714_v2 = vrot.slane %v3712_v34, 5  ;;  %v4326_v11 = vrot.slane %v4324_v16, 4  ;;  %v3730_v34 = vshrl.u32 %v7731_v7, 16 }
 0x192   : > { %v2096_v26 = vadd.f32 %v2046_v63, %v1781_v44  ;;  %v1353_v10 = vadd.f32 %v1304_v8, %v7197_v39  ;;  %v4441_v44 = vpack.c.b16 %v4413_v51, %v4412_v57  ;;  %v6248_v39 = vld [vmem:[%s6716_s12 + $0x48] sm:$0xe]  ;;  %v3700_v54 = vrot.slane %v3699_v32, 4 }
 0x193   : > { %v2730_v35 = vpop.f32.mrf.mxu0  ;;  %v3710_v0 = vrot.slane %v3709_v40, 4  ;;  %v6280_v14 = vrot.slane %v6248_v39, 9  ;;  %v2902_v57 = vsel %vm6860_vm5, %v5960_v4, %v2901_v9  ;;  %v3717_v9 = vshrl.u32 %v6163_v5, 16 }
 0x194   : > { %v7716_v24 = vadd.f32 %v2728_v20, %v2096_v26  ;;  %v2904_v26 = vrot.slane %v6587_v6, 5  ;;  %v3705_v61 = vsel %vm6855_vm4, %v3700_v54, %v7713_v55  ;;  %v3720_v32 = vshll.u32 %v6163_v5, 16 }
 0x195   : > { %v3715_v46 = vsel %vm6855_vm4, %v3710_v0, %v3714_v2  ;;  %v3726_v40 = vshll.u32 %v7731_v7, 16  ;;  %v3719_v39 = vrot.slane %v3717_v9, 4  ;;  %v6166_v9 = vld [vmem:[%s6716_s12 + $0x60] sm:$0xf] }
 0x196   : > { %v2905_v51 = vsel %vm6860_vm5, %v2903_v48, %v2904_v26  ;;  %v3732_v48 = vrot.slane %v3730_v34, 4  ;;  %v6165_v26 = vld [vmem:[%s6716_s12 + $0x5c] sm:$0x1]  ;;  %v6589_v34 = vld [vmem:[%s6716_s12 + $0x50] sm:$0x1] }
 0x197   : > { %v1733_v62 = vpop.f32.mrf.mxu2  ;;  %v7750_v4 = vrot.slane %v3726_v40, 5 }
 0x198   : > { %v1782_v17 = vadd.f32 %v1733_v62, %v1353_v10  ;;  %v2048_v20 = vpop.f32.mrf.mxu3  ;;  %v4328_v62 = vsel %vm6860_vm5, %v4326_v11, %v4327_v58  ;;  %v6490_v11 = vld [vmem:[%s6716_s12 + $0x48] sm:$0xff] }
 0x199   : > { %v1307_v52 = vpop.f32.mrf.mxu1 }
 0x19a   : > { %v2097_v63 = vadd.f32 %v2048_v20, %v1782_v17  ;;  %v1354_v3 = vadd.f32 %v1307_v52, %v7217_v25  ;;  %v4325_v25 = vsel %vm6860_vm5, %v6280_v14, %v4324_v16  ;;  %v2991_v20 = vunpack.c.l.b16 %v2902_v57  ;;  %v5929_v57 = vld [vmem:[%s6716_s12 + $0x48] sm:$0xe] }
 0x19b   : > { %v2733_v8 = vpop.f32.mrf.mxu0  ;;  %v3989_v52 = vunpack.c.l.b16 %v3715_v46  ;;  %v4414_v16 = vunpack.c.l.b16 %v4325_v25  ;;  %v4331_v46 = vrot.slane %v7731_v7, 5  ;;  %v6249_v25 = vld [vmem:[%s6716_s12 + $0x54] sm:$0xe] }
 0x19c   : > { %3118 = vmatmul.bf16.gmra.mxu1 %v3018_v53  ;;  %3433 = vmatmul.bf16.gmra.mxu2 %v6489_v22  ;;  %v7726_v45 = vadd.f32 %v2730_v35, %v2097_v63  ;;  %v2992_v53 = vunpack.c.l.b16 %v2905_v51  ;;  %v3988_v22 = vunpack.c.l.b16 %v3705_v61  ;;  %v3722_v63 = vrot.slane %v3720_v32, 5  ;;  %v7762_v32 = vld [vmem:[%s6716_s12 + $0x64] sm:$0xf] }
 0x19d   : > { %4115 = vmatmul.bf16.gmra.mxu3 %v4015_v59  ;;  %v4415_v59 = vunpack.c.l.b16 %v4328_v62  ;;  %v3733_v61 = vor.u32 %v3732_v48, %v7750_v4  ;;  %v5961_v62 = vrot.slane %v5929_v57, 9  ;;  %v6281_v7 = vrot.slane %v6249_v25, 9 }
 0x19e   : > { %4541 = vmatmul.bf16.gmra.mxu0 %v4441_v44  ;;  %v3019_v14 = vpack.c.b16 %v2992_v53, %v2991_v20  ;;  %v4016_v58 = vpack.c.b16 %v3989_v52, %v3988_v22  ;;  %v3723_v51 = vor.u32 %v3722_v63, %v3719_v39  ;;  %v3741_v63 = vshrl.u32 %v6166_v9, 16 }
 0x19f   : > { %v1736_v18 = vpop.f32.mrf.mxu2  ;;  %v3734_v53 = vrot.slane %v3733_v61, 4  ;;  %v3744_v48 = vshll.u32 %v6166_v9, 16 }
 0x1a0   : > { %v1783_v35 = vadd.f32 %v1736_v18, %v1354_v3  ;;  %v2051_v10 = vpop.f32.mrf.mxu3  ;;  %v6588_v3 = vld [vmem:[%s6716_s12 + $0x4c] sm:$0xf]  ;;  %v4442_v18 = vpack.c.b16 %v4415_v59, %v4414_v16  ;;  %v3724_v20 = vrot.slane %v3723_v51, 4  ;;  %v4333_v16 = vrot.slane %v4331_v46, 4 }
 0x1a1   : > { %v1309_v1 = vpop.f32.mrf.mxu1  ;;  %v4334_v59 = vrot.slane %v6165_v26, 5  ;;  %v3746_v57 = vrot.slane %v3744_v48, 5  ;;  %v4338_v48 = vrot.slane %v7762_v32, 5 }
 0x1a2   : > { %v2098_v55 = vadd.f32 %v2051_v10, %v1783_v35  ;;  %v1355_v6 = vadd.f32 %v1309_v1, %v7246_v19  ;;  %v3736_v19 = vshll.u32 %v6165_v26, 16  ;;  %v3729_v26 = vsel %vm6855_vm4, %v3724_v20, %v7750_v4 }
 0x1a3   : > { %v2735_v17 = vpop.f32.mrf.mxu0 }
 0x1a4   : > { %v7748_v44 = vadd.f32 %v2733_v8, %v2098_v55  ;;  %v2908_v8 = vrot.slane %v6588_v3, 5  ;;  %v2911_v55 = vrot.slane %v6589_v34, 5  ;;  %v3738_v22 = vrot.slane %v3736_v19, 5 }
 0x1a6   : > { %v2910_v1 = vrot.slane %v2908_v8, 4  ;;  %v3739_v3 = vsel %vm6855_vm4, %v3734_v53, %v3738_v22  ;;  %v5930_v22 = vld [vmem:[%s6716_s12 + $0x54] sm:$0xe] }
 0x1a7   : > { %v1738_v54 = vpop.f32.mrf.mxu2 }
 0x1a8   : > { %v1784_v0 = vadd.f32 %v1738_v54, %v1355_v6  ;;  %v2053_v2 = vpop.f32.mrf.mxu3  ;;  %v3750_v6 = vshll.u32 %v7762_v32, 16 }
 0x1a9   : > { %v1312_v5 = vpop.f32.mrf.mxu1 }
 0x1aa   : > { %v2099_v35 = vadd.f32 %v2053_v2, %v1784_v0  ;;  %v1356_v52 = vadd.f32 %v1312_v5, %v7061_v21  ;;  %v2912_v21 = vsel %vm6860_vm5, %v2910_v1, %v2911_v55  ;;  %v4332_v5 = vsel %vm6860_vm5, %v6281_v7, %v4331_v46  ;;  %v6590_v55 = vld [vmem:[%s6716_s12 + $0x58] sm:$0xf] }
 0x1ab   : > { %v2738_v10 = vpop.f32.mrf.mxu0  ;;  %v7783_v51 = vrot.slane %v3750_v6, 5  ;;  %v2994_v4 = vunpack.c.l.b16 %v2912_v21  ;;  %v3991_v1 = vunpack.c.l.b16 %v3739_v3  ;;  %v4416_v9 = vunpack.c.l.b16 %v4332_v5 }
 0x1ac   : > { %3123 = vmatmul.bf16.gmra.mxu1 %v3019_v14  ;;  %3438 = vmatmul.bf16.gmra.mxu2 %v6490_v11  ;;  %v7764_v40 = vadd.f32 %v2735_v17, %v2099_v35  ;;  %v3754_v17 = vshrl.u32 %v7762_v32, 16  ;;  %v2909_v14 = vsel %vm6860_vm5, %v5961_v62, %v2908_v8  ;;  %v3743_v8 = vrot.slane %v3741_v63, 4  ;;  %v6168_v35 = vld [vmem:[%s6716_s12 + $0x68] sm:$0x1]  ;;  %v6491_v63 = vld [vmem:[%s6716_s12 + $0x54] sm:$0xff] }
 0x1ad   : > { %4120 = vmatmul.bf16.gmra.mxu3 %v4016_v58  ;;  %v2993_v19 = vunpack.c.l.b16 %v2909_v14  ;;  %v3990_v62 = vunpack.c.l.b16 %v3729_v26  ;;  %v2915_v20 = vrot.slane %v6590_v55, 5  ;;  %v5962_v14 = vrot.slane %v5930_v22, 9  ;;  %v6591_v26 = vld [vmem:[%s6716_s12 + $0x5c] sm:$0x1] }
 0x1ae   : > { %4546 = vmatmul.bf16.gmra.mxu0 %v4442_v18  ;;  %v4335_v18 = vsel %vm6860_vm5, %v4333_v16, %v4334_v59  ;;  %v3756_v61 = vrot.slane %v3754_v17, 4  ;;  %v3760_v16 = vshll.u32 %v6168_v35, 16  ;;  %v4341_v32 = vrot.slane %v6168_v35, 5 }
 0x1af   : > { %v1741_v39 = vpop.f32.mrf.mxu2  ;;  %v4417_v34 = vunpack.c.l.b16 %v4335_v18  ;;  %v4017_v17 = vpack.c.b16 %v3991_v1, %v3990_v62  ;;  %v2917_v21 = vrot.slane %v2915_v20, 4  ;;  %v7801_v62 = vld [vmem:[%s6716_s12 + $0x70] sm:$0xf] }
 0x1b0   : > { %v1785_v54 = vadd.f32 %v1741_v39, %v1356_v52  ;;  %v2056_v0 = vpop.f32.mrf.mxu3  ;;  %v3747_v52 = vor.u32 %v3746_v57, %v3743_v8  ;;  %v3757_v7 = vor.u32 %v3756_v61, %v7783_v51  ;;  %v3020_v39 = vpack.c.b16 %v2994_v4, %v2993_v19  ;;  %v6169_v4 = vld [vmem:[%s6716_s12 + $0x6c] sm:$0xf] }
 0x1b1   : > { %v1314_v2 = vpop.f32.mrf.mxu1  ;;  %v3762_v18 = vrot.slane %v3760_v16, 5  ;;  %v4340_v57 = vrot.slane %v4338_v48, 4  ;;  %v3778_v16 = vshrl.u32 %v7801_v62, 16 }
 0x1b2   : > { %v2100_v11 = vadd.f32 %v2056_v0, %v1785_v54  ;;  %v1357_v46 = vadd.f32 %v1314_v2, %v7088_v56  ;;  %v4443_v54 = vpack.c.b16 %v4417_v34, %v4416_v9  ;;  %v6250_v56 = vld [vmem:[%s6716_s12 + $0x60] sm:$0xe]  ;;  %v3748_v3 = vrot.slane %v3747_v52, 4 }
 0x1b3   : > { %v2740_v58 = vpop.f32.mrf.mxu0  ;;  %v3758_v5 = vrot.slane %v3757_v7, 4  ;;  %v6282_v8 = vrot.slane %v6250_v56, 9  ;;  %v2916_v9 = vsel %vm6860_vm5, %v5962_v14, %v2915_v20  ;;  %v3765_v20 = vshrl.u32 %v6169_v4, 16 }
 0x1b4   : > { %v7786_v25 = vadd.f32 %v2738_v10, %v2100_v11  ;;  %v2918_v11 = vrot.slane %v6591_v26, 5  ;;  %v3753_v35 = vsel %vm6855_vm4, %v3748_v3, %v7783_v51  ;;  %v3768_v52 = vshll.u32 %v6169_v4, 16  ;;  %v8654_v26 = vld [vmem:[#allocation3_spill] sm:$0xff]  ;;  %v6171_v3 = vld [vmem:[%s6716_s12 + $0x74] sm:$0x1] }
 0x1b5   : > { %v3763_v55 = vsel %vm6855_vm4, %v3758_v5, %v3762_v18  ;;  %v3774_v7 = vshll.u32 %v7801_v62, 16  ;;  %v3767_v56 = vrot.slane %v3765_v20, 4  ;;  %v6592_v18 = vld [vmem:[%s6716_s12 + $0x64] sm:$0xf] }
 0x1b6   : > { %v2919_v34 = vsel %vm6860_vm5, %v2917_v21, %v2918_v11  ;;  %v3780_v21 = vrot.slane %v3778_v16, 4  ;;  %v6492_v4 = vld [vmem:[%s6716_s12 + $0x60] sm:$0xff]  ;;  %v6251_v16 = vld [vmem:[%s6716_s12 + $0x6c] sm:$0xe] }
 0x1b7   : > { %v1743_v53 = vpop.f32.mrf.mxu2  ;;  %v7820_v14 = vrot.slane %v3774_v7, 5 }
 0x1b8   : > { %v1786_v59 = vadd.f32 %v1743_v53, %v1357_v46  ;;  %v2058_v10 = vpop.f32.mrf.mxu3  ;;  %v4342_v53 = vsel %vm6860_vm5, %v4340_v57, %v4341_v32 }
 0x1b9   : > { %v1317_v6 = vpop.f32.mrf.mxu1 }
 0x1ba   : > { %v2101_v0 = vadd.f32 %v2058_v10, %v1786_v59  ;;  %v1358_v19 = vadd.f32 %v1317_v6, %v7109_v30  ;;  %v4339_v30 = vsel %vm6860_vm5, %v6282_v8, %v4338_v48  ;;  %v2995_v10 = vunpack.c.l.b16 %v2916_v9 }
 0x1bb   : > { %v2743_v2 = vpop.f32.mrf.mxu0  ;;  %v3993_v6 = vunpack.c.l.b16 %v3763_v55  ;;  %v4418_v48 = vunpack.c.l.b16 %v4339_v30  ;;  %v2922_v8 = vrot.slane %v6592_v18, 5 }
 0x1bc   : > { %3128 = vmatmul.bf16.gmra.mxu1 %v3020_v39  ;;  %3443 = vmatmul.bf16.gmra.mxu2 %v6491_v63  ;;  %v7796_v61 = vadd.f32 %v2740_v58, %v2101_v0  ;;  %v2996_v39 = vunpack.c.l.b16 %v2919_v34  ;;  %v3992_v63 = vunpack.c.l.b16 %v3753_v35  ;;  %v3770_v0 = vrot.slane %v3768_v52, 5  ;;  %v6593_v52 = vld [vmem:[%s6716_s12 + $0x68] sm:$0x1] }
 0x1bd   : > { %4125 = vmatmul.bf16.gmra.mxu3 %v4017_v17  ;;  %v4419_v17 = vunpack.c.l.b16 %v4342_v53  ;;  %v4345_v53 = vrot.slane %v7801_v62, 5  ;;  %v2924_v20 = vrot.slane %v2922_v8, 4  ;;  %v2925_v7 = vrot.slane %v6593_v52, 5 }
 0x1be   : > { %4551 = vmatmul.bf16.gmra.mxu0 %v4443_v54  ;;  %v3771_v35 = vor.u32 %v3770_v0, %v3767_v56  ;;  %v6283_v62 = vrot.slane %v6251_v16, 9 }
 0x1bf   : > { %v1746_v1 = vpop.f32.mrf.mxu2  ;;  %v4444_v34 = vpack.c.b16 %v4419_v17, %v4418_v48  ;;  %v7835_v48 = vld [vmem:[%s6716_s12 + $0x7c] sm:$0xf]  ;;  %v8656_v17 = vld [vmem:[#allocation4_spill] sm:$0xff]  ;;  %v4347_v0 = vrot.slane %v4345_v53, 4 }
 0x1c0   : > { %v1787_v58 = vadd.f32 %v1746_v1, %v1358_v19  ;;  %v2061_v46 = vpop.f32.mrf.mxu3  ;;  %v3021_v19 = vpack.c.b16 %v2996_v39, %v2995_v10  ;;  %v4018_v1 = vpack.c.b16 %v3993_v6, %v3992_v63  ;;  %v3772_v39 = vrot.slane %v3771_v35, 4 }
 0x1c1   : > { %v1319_v22 = vpop.f32.mrf.mxu1 }
 0x1c2   : > { %v2102_v51 = vadd.f32 %v2061_v46, %v1787_v58  ;;  %v1359_v11 = vadd.f32 %v1319_v22, %v8654_v26  ;;  %v3781_v58 = vor.u32 %v3780_v21, %v7820_v14  ;;  %v3784_v46 = vshll.u32 %v6171_v3, 16 }
 0x1c3   : > { %v2745_v59 = vpop.f32.mrf.mxu0  ;;  %v4348_v21 = vrot.slane %v6171_v3, 5  ;;  %v3777_v3 = vsel %vm6855_vm4, %v3772_v39, %v7820_v14  ;;  %v6174_v39 = vld [vmem:[%s6716_s12 + $0x80] sm:$0x1] }
 0x1c4   : > { %v7818_v54 = vadd.f32 %v2743_v2, %v2102_v51  ;;  %v5931_v2 = vld [vmem:[%s6716_s12 + $0x60] sm:$0xe]  ;;  %v6172_v51 = vld [vmem:[%s6716_s12 + $0x78] sm:$0xf]  ;;  %v3782_v63 = vrot.slane %v3781_v58, 4  ;;  %v3786_v6 = vrot.slane %v3784_v46, 5 }
 0x1c5   : > { %v5963_v22 = vrot.slane %v5931_v2, 9  ;;  %v4349_v35 = vsel %vm6860_vm5, %v4347_v0, %v4348_v21 }
 0x1c7   : > { %v1748_v5 = vpop.f32.mrf.mxu2 }
 0x1c8   : > { %v1788_v57 = vadd.f32 %v1748_v5, %v1359_v11  ;;  %v2063_v32 = vpop.f32.mrf.mxu3  ;;  %v2923_v11 = vsel %vm6860_vm5, %v5963_v22, %v2922_v8  ;;  %v3789_v5 = vshrl.u32 %v6172_v51, 16  ;;  %v3787_v8 = vsel %vm6855_vm4, %v3782_v63, %v3786_v6  ;;  %v8658_v63 = vld [vmem:[#allocation5_spill] sm:$0xff] }
 0x1c9   : > { %v1322_v9 = vpop.f32.mrf.mxu1  ;;  %v2997_v58 = vunpack.c.l.b16 %v2923_v11  ;;  %v3995_v16 = vunpack.c.l.b16 %v3787_v8  ;;  %v6493_v11 = vld [vmem:[%s6716_s12 + $0x6c] sm:$0xff] }
 0x1ca   : > { %v2103_v55 = vadd.f32 %v2063_v32, %v1788_v57  ;;  %v1360_v56 = vadd.f32 %v1322_v9, %v8656_v17  ;;  %v3792_v32 = vshll.u32 %v6172_v51, 16 }
 0x1cb   : > { %v2748_v30 = vpop.f32.mrf.mxu0 }
 0x1cc   : > { %3133 = vmatmul.bf16.gmra.mxu1 %v3021_v19  ;;  %3448 = vmatmul.bf16.gmra.mxu2 %v6492_v4  ;;  %v7832_v10 = vadd.f32 %v2745_v59, %v2103_v55  ;;  %v2926_v59 = vsel %vm6860_vm5, %v2924_v20, %v2925_v7  ;;  %v3798_v19 = vshll.u32 %v7835_v48, 16  ;;  %v3802_v4 = vshrl.u32 %v7835_v48, 16 }
 0x1cd   : > { %4130 = vmatmul.bf16.gmra.mxu3 %v4018_v1  ;;  %v2998_v46 = vunpack.c.l.b16 %v2926_v59  ;;  %v3791_v55 = vrot.slane %v3789_v5, 4  ;;  %v3794_v22 = vrot.slane %v3792_v32, 5  ;;  %v3994_v7 = vunpack.c.l.b16 %v3777_v3 }
 0x1ce   : > { %8655 = vst [vmem:[#allocation3_spill] sm:$0xff] %v7832_v10  ;;  %4556 = vmatmul.bf16.gmra.mxu0 %v4444_v34  ;;  %v4346_v34 = vsel %vm6860_vm5, %v6283_v62, %v4345_v53  ;;  %v7853_v20 = vrot.slane %v3798_v19, 5  ;;  %v3804_v14 = vrot.slane %v3802_v4, 4  ;;  %v4421_v53 = vunpack.c.l.b16 %v4349_v35  ;;  %v6594_v62 = vld [vmem:[%s6716_s12 + $0x70] sm:$0xf] }
 0x1cf   : > { %v1751_v26 = vpop.f32.mrf.mxu2  ;;  %v4420_v51 = vunpack.c.l.b16 %v4346_v34  ;;  %v2929_v0 = vrot.slane %v6594_v62, 5  ;;  %v3795_v59 = vor.u32 %v3794_v22, %v3791_v55  ;;  %v4019_v32 = vpack.c.b16 %v3995_v16, %v3994_v7  ;;  %v6252_v34 = vld [vmem:[%s6716_s12 + $0x78] sm:$0xe]  ;;  %v6175_v35 = vld [vmem:[%s6716_s12 + $0x84] sm:$0xf] }
 0x1d0   : > { %v1789_v18 = vadd.f32 %v1751_v26, %v1360_v56  ;;  %v2066_v57 = vpop.f32.mrf.mxu3  ;;  %v3022_v56 = vpack.c.b16 %v2998_v46, %v2997_v58  ;;  %v3805_v5 = vor.u32 %v3804_v14, %v7853_v20  ;;  %v4352_v4 = vrot.slane %v7835_v48, 5  ;;  %v7877_v22 = vld [vmem:[%s6716_s12 + $0x88] sm:$0xf] }
 0x1d1   : > { %v1324_v1 = vpop.f32.mrf.mxu1  ;;  %v4445_v19 = vpack.c.b16 %v4421_v53, %v4420_v51  ;;  %v2931_v46 = vrot.slane %v2929_v0, 4  ;;  %v6636_v55 = vmov 0   ;;  %v3796_v14 = vrot.slane %v3795_v59, 4 }
 0x1d2   : > { %v2104_v2 = vadd.f32 %v2066_v57, %v1789_v18  ;;  %v1361_v6 = vadd.f32 %v1324_v1, %v8658_v63  ;;  %v3808_v18 = vshll.u32 %v6174_v39, 16  ;;  %4813 = vst [vmem:[%s7868_s27 + $0xc] sm:$0xf] %v6636_v55  ;;  %v3806_v48 = vrot.slane %v3805_v5, 4 }
 0x1d3   : > { %v2750_v9 = vpop.f32.mrf.mxu0  ;;  %4810 = vst [vmem:[%s7868_s27] sm:$0xf] %v6636_v55  ;;  %v6284_v51 = vrot.slane %v6252_v34, 9  ;;  %v4354_v53 = vrot.slane %v4352_v4, 4  ;;  %v4355_v63 = vrot.slane %v6174_v39, 5  ;;  %v3816_v62 = vshll.u32 %v6175_v35, 16 }
 0x1d4   : > { %v7855_v52 = vadd.f32 %v2748_v30, %v2104_v2  ;;  %v5932_v30 = vld [vmem:[%s6716_s12 + $0x6c] sm:$0xe]  ;;  %v6595_v2 = vld [vmem:[%s6716_s12 + $0x74] sm:$0x1]  ;;  %v3810_v7 = vrot.slane %v3808_v18, 5  ;;  %v3801_v5 = vsel %vm6855_vm4, %v3796_v14, %v7853_v20 }
 0x1d5   : > { %v2932_v8 = vrot.slane %v6595_v2, 5  ;;  %v5964_v58 = vrot.slane %v5932_v30, 9  ;;  %4811 = vst [vmem:[%s7868_s27 + $0x4] sm:$0xf] %v6636_v55  ;;  %v7912_v2 = vld [vmem:[%s6716_s12 + $0x8c] sm:$0x1] }
 0x1d6   : > { %8657 = vst [vmem:[#allocation4_spill] sm:$0xff] %v7855_v52  ;;  %v3811_v18 = vsel %vm6855_vm4, %v3806_v48, %v3810_v7  ;;  %v6255_v52 = vld [vmem:[%s6716_s12 + $0x9c] sm:$0xe] }
 0x1d7   : > { %v1753_v17 = vpop.f32.mrf.mxu2  ;;  %4812 = vst [vmem:[%s7868_s27 + $0x8] sm:$0x1] %v6636_v55  ;;  %v2933_v59 = vsel %vm6860_vm5, %v2931_v46, %v2932_v8  ;;  %v3818_v8 = vrot.slane %v3816_v62, 5  ;;  %v3996_v46 = vunpack.c.l.b16 %v3801_v5  ;;  %v3997_v14 = vunpack.c.l.b16 %v3811_v18 }
 0x1d8   : > { %v1790_v21 = vadd.f32 %v1753_v17, %v1361_v6  ;;  %v2068_v26 = vpop.f32.mrf.mxu3  ;;  %v3813_v6 = vshrl.u32 %v6175_v35, 16  ;;  %v8660_v17 = vld [vmem:[#allocation6_spill] sm:$0xff]  ;;  %4814 = vst [vmem:[%s7868_s27 + $0x10] sm:$0xf] %v6636_v55  ;;  %v4359_v5 = vrot.slane %v7877_v22, 5 }
 0x1d9   : > { %v1327_v57 = vpop.f32.mrf.mxu1  ;;  %4815 = vst [vmem:[%s7868_s27 + $0x14] sm:$0x1] %v6636_v55 }
 0x1da   : > { %v2105_v1 = vadd.f32 %v2068_v26, %v1790_v21  ;;  %v3822_v21 = vshll.u32 %v7877_v22, 16  ;;  %4816 = vst [vmem:[%s7868_s27 + $0x18] sm:$0xf] %v6636_v55 }
 0x1db   : > { %v2753_v3 = vpop.f32.mrf.mxu0  ;;  %4817 = vst [vmem:[%s7868_s27 + $0x1c] sm:$0xf] %v6636_v55 }
 0x1dc   : > { %3138 = vmatmul.bf16.gmra.mxu1 %v3022_v56  ;;  %3453 = vmatmul.bf16.gmra.mxu2 %v6493_v11  ;;  %v7881_v16 = vadd.f32 %v2750_v9, %v2105_v1  ;;  %v1362_v56 = vadd.f32 %v1327_v57, %v8660_v17  ;;  %v3826_v9 = vshrl.u32 %v7877_v22, 16  ;;  %v2930_v11 = vsel %vm6860_vm5, %v5964_v58, %v2929_v0  ;;  %v6597_v22 = vld [vmem:[%s6716_s12 + $0x80] sm:$0x1] }
 0x1dd   : > { %4135 = vmatmul.bf16.gmra.mxu3 %v4019_v32  ;;  %v4353_v0 = vsel %vm6860_vm5, %v6284_v51, %v4352_v4  ;;  %v4356_v32 = vsel %vm6860_vm5, %v4354_v53, %v4355_v63  ;;  %v7914_v34 = vrot.slane %v3822_v21, 5  ;;  %v2999_v4 = vunpack.c.l.b16 %v2930_v11  ;;  %4818 = vst [vmem:[%s7868_s27 + $0x20] sm:$0x1] %v6636_v55  ;;  %v5933_v53 = vld [vmem:[%s6716_s12 + $0x78] sm:$0xe] }
 0x1de   : > { %8659 = vst [vmem:[#allocation5_spill] sm:$0xff] %v7881_v16  ;;  %4561 = vmatmul.bf16.gmra.mxu0 %v4445_v19  ;;  %v3815_v19 = vrot.slane %v3813_v6, 4  ;;  %v3828_v35 = vrot.slane %v3826_v9, 4  ;;  %v3000_v58 = vunpack.c.l.b16 %v2933_v59  ;;  %v4422_v7 = vunpack.c.l.b16 %v4353_v0  ;;  %v6596_v63 = vld [vmem:[%s6716_s12 + $0x7c] sm:$0xf] }
 0x1df   : > { %v1756_v26 = vpop.f32.mrf.mxu2  ;;  %v4423_v51 = vunpack.c.l.b16 %v4356_v32  ;;  %4819 = vst [vmem:[%s7868_s27 + $0x24] sm:$0xf] %v6636_v55  ;;  %v2936_v6 = vrot.slane %v6596_v63, 5  ;;  %v3832_v17 = vshll.u32 %v7912_v2, 16  ;;  %v6178_v9 = vld [vmem:[%s6716_s12 + $0x90] sm:$0xf] }
 0x1e0   : > { %v1791_v39 = vadd.f32 %v1756_v26, %v1362_v56  ;;  %v2071_v30 = vpop.f32.mrf.mxu3  ;;  %v8662_v56 = vld [vmem:[#allocation7_spill] sm:$0xff]  ;;  %4820 = vst [vmem:[%s7868_s27 + $0x28] sm:$0xf] %v6636_v55  ;;  %v3819_v21 = vor.u32 %v3818_v8, %v3815_v19  ;;  %v7933_v26 = vld [vmem:[%s6716_s12 + $0x94] sm:$0xf]  ;;  %v3837_v18 = vshrl.u32 %v6178_v9, 16 }
 0x1e1   : > { %v1329_v57 = vpop.f32.mrf.mxu1  ;;  %4821 = vst [vmem:[%s7868_s27 + $0x2c] sm:$0x1] %v6636_v55  ;;  %v6253_v59 = vld [vmem:[%s6716_s12 + $0x84] sm:$0xe]  ;;  %v6494_v32 = vld [vmem:[%s6716_s12 + $0x78] sm:$0xff]  ;;  %v3840_v19 = vshll.u32 %v6178_v9, 16 }
 0x1e2   : > { %v2106_v1 = vadd.f32 %v2071_v30, %v1791_v39  ;;  %v1363_v62 = vadd.f32 %v1329_v57, %v8662_v56  ;;  %v3023_v39 = vpack.c.b16 %v3000_v58, %v2999_v4  ;;  %v4020_v30 = vpack.c.b16 %v3997_v14, %v3996_v46  ;;  %4822 = vst [vmem:[%s7868_s27 + $0x30] sm:$0xf] %v6636_v55  ;;  %v8066_v16 = vld [vmem:[%s6716_s12 + $0xa4] sm:$0x1] }
 0x1e3   : > { %v7909_v20 = vpop.f32.mrf.mxu0  ;;  %v3850_v8 = vshrl.u32 %v7933_v26, 16  ;;  %v4446_v4 = vpack.c.b16 %v4423_v51, %v4422_v7  ;;  %4823 = vst [vmem:[%s7868_s27 + $0x34] sm:$0xf] %v6636_v55  ;;  %v5965_v58 = vrot.slane %v5933_v53, 9  ;;  %v2938_v46 = vrot.slane %v2936_v6, 4 }
 0x1e4   : > { %v7920_v48 = vadd.f32 %v2753_v3, %v2106_v1  ;;  %v3829_v3 = vor.u32 %v3828_v35, %v7914_v34  ;;  %v3846_v1 = vshll.u32 %v7933_v26, 16  ;;  %v2939_v14 = vrot.slane %v6597_v22, 5  ;;  %4824 = vst [vmem:[%s7868_s27 + $0x38] sm:$0x1] %v6636_v55 }
 0x1e5   : > { %4825 = vst [vmem:[%s7868_s27 + $0x3c] sm:$0xf] %v6636_v55  ;;  %v4361_v7 = vrot.slane %v4359_v5, 4  ;;  %v4362_v51 = vrot.slane %v7912_v2, 5  ;;  %v3839_v53 = vrot.slane %v3837_v18, 4  ;;  %v2937_v2 = vsel %vm6860_vm5, %v5965_v58, %v2936_v6 }
 0x1e6   : > { %8661 = vst [vmem:[#allocation6_spill] sm:$0xff] %v7920_v48  ;;  %v3830_v9 = vrot.slane %v3829_v3, 4  ;;  %v6285_v48 = vrot.slane %v6253_v59, 9  ;;  %v8664_v3 = vld [vmem:[#allocation8_spill] sm:$0xff]  ;;  %v2940_v59 = vsel %vm6860_vm5, %v2938_v46, %v2939_v14  ;;  %v7974_v18 = vld [vmem:[%s6716_s12 + $0x98] sm:$0x1]  ;;  %v3001_v58 = vunpack.c.l.b16 %v2937_v2 }
 0x1e7   : > { %v1758_v11 = vpop.f32.mrf.mxu2  ;;  %4826 = vst [vmem:[%s7868_s27 + $0x40] sm:$0xf] %v6636_v55  ;;  %v6599_v2 = vld [vmem:[%s6716_s12 + $0x8c] sm:$0x1] }
 0x1e8   : > { %v1792_v57 = vadd.f32 %v1758_v11, %v1363_v62  ;;  %v2073_v0 = vpop.f32.mrf.mxu3  ;;  %v3820_v62 = vrot.slane %v3819_v21, 4  ;;  %v3834_v11 = vrot.slane %v3832_v17, 5  ;;  %v3852_v21 = vrot.slane %v3850_v8, 4  ;;  %4827 = vst [vmem:[%s7868_s27 + $0x44] sm:$0x1] %v6636_v55 }
 0x1e9   : > { %v3104_v35 = vpop.f32.mrf.mxu1  ;;  %4828 = vst [vmem:[%s7868_s27 + $0x48] sm:$0xf] %v6636_v55  ;;  %v4360_v6 = vsel %vm6860_vm5, %v6285_v48, %v4359_v5  ;;  %v6598_v8 = vld [vmem:[%s6716_s12 + $0x88] sm:$0xf]  ;;  %v3002_v5 = vunpack.c.l.b16 %v2940_v59  ;;  %v8007_v59 = vld [vmem:[%s8640_s3] ss:$0 sm:$0xff] }
 0x1ea   : > { %v2107_v63 = vadd.f32 %v2073_v0, %v1792_v57  ;;  %v3842_v57 = vrot.slane %v3840_v19, 5  ;;  %v7954_v0 = vrot.slane %v3846_v1, 5  ;;  %4829 = vst [vmem:[%s7868_s27 + $0x4c] sm:$0xf] %v6636_v55  ;;  %v4363_v19 = vsel %vm6860_vm5, %v4361_v7, %v4362_v51  ;;  %v5934_v1 = vld [vmem:[%s6716_s12 + $0x84] sm:$0xe] }
 0x1eb   : > { %v4527_v56 = vpop.f32.mrf.mxu0  ;;  %4830 = vst [vmem:[%s7868_s27 + $0x50] sm:$0x1] %v6636_v55  ;;  %v4424_v51 = vunpack.c.l.b16 %v4360_v6 }
 0x1ec   : > { %3143 = vmatmul.bf16.gmra.mxu1 %v3023_v39  ;;  %3458 = vmatmul.bf16.gmra.mxu2 %v6494_v32  ;;  %v7957_v17 = vadd.f32 %v7909_v20, %v2107_v63  ;;  %v3184_v39 = vadd.f32 %v3104_v35, %v8664_v3  ;;  %v3825_v20 = vsel %vm6855_vm4, %v3820_v62, %v7914_v34  ;;  %v2943_v35 = vrot.slane %v6598_v8, 5 }
 0x1ed   : > { %4140 = vmatmul.bf16.gmra.mxu3 %v4020_v30  ;;  %v3835_v30 = vsel %vm6855_vm4, %v3830_v9, %v3834_v11  ;;  %v3843_v46 = vor.u32 %v3842_v57, %v3839_v53  ;;  %v3853_v22 = vor.u32 %v3852_v21, %v7954_v0  ;;  %4831 = vst [vmem:[%s7868_s27 + $0x54] sm:$0xf] %v6636_v55  ;;  %v7989_v14 = vunpack.c.l.b16 %v3825_v20  ;;  %v7997_v11 = vld [vmem:[%s8639_s2] ss:$0 sm:$0xff] }
 0x1ee   : > { %8663 = vst [vmem:[#allocation7_spill] sm:$0xff] %v7957_v17  ;;  %4566 = vmatmul.bf16.gmra.mxu0 %v4446_v4  ;;  %v7991_v63 = vunpack.c.l.b16 %v3835_v30  ;;  %v3856_v62 = vshll.u32 %v7974_v18, 16  ;;  %v4425_v53 = vunpack.c.l.b16 %v4363_v19  ;;  %v5966_v57 = vrot.slane %v5934_v1, 9 }
 0x1ef   : > { %v3419_v32 = vpop.f32.mrf.mxu2  ;;  %4832 = vst [vmem:[%s7868_s27 + $0x58] sm:$0xf] %v6636_v55  ;;  %v2945_v21 = vrot.slane %v2943_v35, 4  ;;  %v2946_v3 = vrot.slane %v6599_v2, 5  ;;  %v3844_v20 = vrot.slane %v3843_v46, 4  ;;  %v3854_v30 = vrot.slane %v3853_v22, 4 }
 0x1f0   : > { %v3499_v34 = vadd.f32 %v3419_v32, %v3184_v39  ;;  %v4101_v4 = vpop.f32.mrf.mxu3  ;;  %4833 = vst [vmem:[%s7868_s27 + $0x5c] sm:$0x1] %v6636_v55  ;;  %v3024_v32 = vpack.c.b16 %v3002_v5, %v3001_v58  ;;  %v4021_v6 = vpack.c.b16 %v7991_v63, %v7989_v14  ;;  %v3858_v19 = vrot.slane %v3856_v62, 5  ;;  %v6181_v22 = vld [vmem:[%s6716_s12 + $0x9c] sm:$0xf] }
 0x1f1   : > { %v3106_v48 = vpop.f32.mrf.mxu1  ;;  %4834 = vst [vmem:[%s7868_s27 + $0x60] sm:$0xf] %v6636_v55  ;;  %v4366_v1 = vrot.slane %v7933_v26, 5  ;;  %v4447_v46 = vpack.c.b16 %v4425_v53, %v4424_v51  ;;  %v8023_v58 = vsel %vm6860_vm5, %v5966_v57, %v2943_v35  ;;  %v8027_v5 = vld [vmem:[%s6716_s12 + $0xa0] sm:$0xf]  ;;  %v8033_v14 = vsel %vm6860_vm5, %v2945_v21, %v2946_v3  ;;  %v6495_v53 = vld [vmem:[%s6716_s12 + $0x84] sm:$0xff] }
 0x1f2   : > { %v4181_v9 = vadd.f32 %v4101_v4, %v3499_v34  ;;  %4835 = vst [vmem:[%s7868_s27 + $0x64] sm:$0xf] %v6636_v55  ;;  %v8665_v34 = vld [vmem:[#allocation9_spill] sm:$0xff]  ;;  %v3861_v63 = vshrl.u32 %v6181_v22, 16  ;;  %v3864_v62 = vshll.u32 %v6181_v22, 16  ;;  %v3849_v57 = vsel %vm6855_vm4, %v3844_v20, %v7954_v0 }
 0x1f3   : > { %v4529_v7 = vpop.f32.mrf.mxu0  ;;  %4836 = vst [vmem:[%s7868_s27 + $0x68] sm:$0x1] %v6636_v55  ;;  %v3185_v4 = vadd.f32 %v3106_v48, %v8665_v34  ;;  %v3870_v48 = vshll.u32 %v8027_v5, 16  ;;  %v3874_v21 = vshrl.u32 %v8027_v5, 16  ;;  %v3859_v3 = vsel %vm6855_vm4, %v3854_v30, %v3858_v19  ;;  %v6600_v19 = vld [vmem:[%s6716_s12 + $0x94] sm:$0xf] }
 0x1f4   : > { %v4607_v39 = vadd.f32 %v4527_v56, %v4181_v9  ;;  %v6254_v56 = vld [vmem:[%s6716_s12 + $0x90] sm:$0xe]  ;;  %4837 = vst [vmem:[%s7868_s27 + $0x6c] sm:$0xf] %v6636_v55  ;;  %v4369_v34 = vrot.slane %v7974_v18, 5  ;;  %v3863_v0 = vrot.slane %v3861_v63, 4  ;;  %v3003_v30 = vunpack.c.l.b16 %v8023_v58 }
 0x1f5   : > { %4838 = vst [vmem:[%s7868_s27 + $0x70] sm:$0xf] %v6636_v55  ;;  %v3866_v20 = vrot.slane %v3864_v62, 5  ;;  %v8057_v17 = vrot.slane %v3870_v48, 5  ;;  %v3876_v18 = vrot.slane %v3874_v21, 4  ;;  %v3004_v63 = vunpack.c.l.b16 %v8033_v14 }
 0x1f6   : > { %v4710_v8 = vmul.f32 %v7997_v11, %v4607_v39  ;;  %4839 = vst [vmem:[%s7868_s27 + $0x74] sm:$0x1] %v6636_v55  ;;  %v6286_v39 = vrot.slane %v6254_v56, 9  ;;  %v2950_v56 = vrot.slane %v6600_v19, 5  ;;  %v8062_v62 = vunpack.c.l.b16 %v3849_v57 }
 0x1f7   : > { %v3421_v26 = vpop.f32.mrf.mxu2  ;;  %4840 = vst [vmem:[%s7868_s27 + $0x78] sm:$0xf] %v6636_v55  ;;  %v8070_v58 = vunpack.c.l.b16 %v3859_v3  ;;  %v3877_v3 = vor.u32 %v3876_v18, %v8057_v17 }
 0x1f8   : > { %v4746_v9 = vadd.f32 %v8007_v59, %v4710_v8  ;;  %v3500_v35 = vadd.f32 %v3421_v26, %v3185_v4  ;;  %v4103_v51 = vpop.f32.mrf.mxu3  ;;  %v4368_v8 = vrot.slane %v4366_v1, 4  ;;  %4841 = vst [vmem:[%s7868_s27 + $0x7c] sm:$0xf] %v6636_v55  ;;  %v4367_v48 = vsel %vm6860_vm5, %v6286_v39, %v4366_v1 }
 0x1f9   : > { %v3109_v2 = vpop.f32.mrf.mxu1  ;;  %4842 = vst [vmem:[%s7868_s27 + $0x80] sm:$0x1] %v6636_v55  ;;  %v2952_v21 = vrot.slane %v2950_v56, 4  ;;  %v3880_v39 = vshll.u32 %v8066_v16, 16  ;;  %v4426_v18 = vunpack.c.l.b16 %v4367_v48  ;;  %v3025_v48 = vpack.c.b16 %v3004_v63, %v3003_v30 }
 0x1fa   : > { %v4778_v4 = vmax.f32 %v4746_v9, 0.0  ;;  %v4182_v22 = vadd.f32 %v4103_v51, %v3500_v35  ;;  %v5935_v51 = vld [vmem:[%s6716_s12 + $0x90] sm:$0xe]  ;;  %4843 = vst [vmem:[%s7868_s27 + $0x84] sm:$0xf] %v6636_v55  ;;  %v4022_v30 = vpack.c.b16 %v8070_v58, %v8062_v62 }
 0x1fb   : > { %v8051_v26 = vpop.f32.mrf.mxu0  ;;  %4844 = vst [vmem:[%s7868_s27 + $0x88] sm:$0xf] %v6636_v55 }
 0x1fc   : > { %v4864_v9 = vpack.c.bf16 %v4778_v4, %v4778_v4  ;;  %v4608_v35 = vadd.f32 %v4529_v7, %v4182_v22  ;;  %3148 = vmatmul.bf16.gmra.mxu1 %v3024_v32  ;;  %3463 = vmatmul.bf16.gmra.mxu2 %v6495_v53  ;;  %v4370_v7 = vsel %vm6860_vm5, %v4368_v8, %v4369_v34  ;;  %v5967_v32 = vrot.slane %v5935_v51, 9  ;;  %v6601_v4 = vld [vmem:[%s6716_s12 + $0x98] sm:$0x1] }
 0x1fd   : > { %4145 = vmatmul.bf16.gmra.mxu3 %v4021_v6  ;;  %v3186_v6 = vadd.f32 %v3109_v2, %v7367_v42  ;;  %4845 = vst [vmem:[%s7868_s27 + $0x8c] sm:$0x1] %v6636_v55  ;;  %v2953_v22 = vrot.slane %v6601_v4, 5  ;;  %v3878_v4 = vrot.slane %v3877_v3, 4  ;;  %v8214_v3 = vld [vmem:[%s6716_s12 + $0xb0] sm:$0x1] }
 0x1fe   : > { %4571 = vmatmul.bf16.gmra.mxu0 %v4447_v46  ;;  %v4900_v14 = vshrl.u32 %v4864_v9, 16  ;;  %v4711_v53 = vmul.f32 %v7997_v11, %v4608_v35  ;;  %v3867_v46 = vor.u32 %v3866_v20, %v3863_v0  ;;  %v4903_v57 = vshll.u32 %v4864_v9, 16  ;;  %4846 = vst [vmem:[%s7868_s27 + $0x90] sm:$0xf] %v6636_v55  ;;  %v6324_v20 = vld [vmem:[%s7868_s27 + $0xc] sm:$0xf] }
 0x1ff   : > { %v3424_v1 = vpop.f32.mrf.mxu2  ;;  %4847 = vst [vmem:[%s7868_s27 + $0x94] sm:$0xf] %v6636_v55  ;;  %v4427_v9 = vunpack.c.l.b16 %v4370_v7  ;;  %v8101_v35 = vsel %vm6860_vm5, %v5967_v32, %v2950_v56  ;;  %v3882_v7 = vrot.slane %v3880_v39, 5  ;;  %v4373_v39 = vrot.slane %v8027_v5, 5 }
 0x200   : > { %v8084_v8 = vrot.slane %v4900_v14, 7  ;;  %v4747_v34 = vadd.f32 %v8007_v59, %v4711_v53  ;;  %v3501_v42 = vadd.f32 %v3424_v1, %v3186_v6  ;;  %v4106_v2 = vpop.f32.mrf.mxu3  ;;  %4848 = vst [vmem:[%s7868_s27 + $0x98] sm:$0x1] %v6636_v55  ;;  %v3868_v1 = vrot.slane %v3867_v46, 4 }
 0x201   : > { %v3111_v19 = vpop.f32.mrf.mxu1  ;;  %4849 = vst [vmem:[%s7868_s27 + $0x9c] sm:$0xf] %v6636_v55  ;;  %v8116_v46 = vsel %vm6860_vm5, %v2952_v21, %v2953_v22  ;;  %v4448_v63 = vpack.c.b16 %v4427_v9, %v4426_v18  ;;  %v6287_v21 = vrot.slane %v6255_v52, 9  ;;  %v3883_v22 = vsel %vm6855_vm4, %v3878_v4, %v3882_v7 }
 0x202   : > { %v4905_v51 = vor.u32 %v4903_v57, %v8084_v8  ;;  %v4779_v14 = vmax.f32 %v4747_v34, 0.0  ;;  %v4183_v53 = vadd.f32 %v4106_v2, %v3501_v42  ;;  %4850 = vst [vmem:[%s7868_s27 + $0xa0] sm:$0xf] %v6636_v55  ;;  %v6184_v2 = vld [vmem:[%s6716_s12 + $0xa8] sm:$0xf]  ;;  %v3873_v5 = vsel %vm6855_vm4, %v3868_v1, %v8057_v17 }
 0x203   : > { %v4534_v6 = vpop.f32.mrf.mxu0  ;;  %4851 = vst [vmem:[%s7868_s27 + $0xa4] sm:$0x1] %v6636_v55  ;;  %v4375_v1 = vrot.slane %v4373_v39, 4  ;;  %v4376_v4 = vrot.slane %v8066_v16, 5  ;;  %v3888_v7 = vshll.u32 %v6184_v2, 16  ;;  %v8166_v16 = vunpack.c.l.b16 %v3873_v5 }
 0x204   : > { %v5224_v56 = vsel %vm8092_vm9, %v4905_v51, %v6324_v20  ;;  %v4865_v32 = vpack.c.bf16 %v4779_v14, %v4779_v14  ;;  %v4609_v57 = vadd.f32 %v8051_v26, %v4183_v53  ;;  %v3187_v26 = vadd.f32 %v3111_v19, %v7369_v31  ;;  %4852 = vst [vmem:[%s7868_s27 + $0xa8] sm:$0xf] %v6636_v55  ;;  %v6496_v51 = vld [vmem:[%s6716_s12 + $0x90] sm:$0xff] }
 0x205   : > { %6325 = vst [vmem:[%s7868_s27 + $0xc] sm:$0xf] %v5224_v56  ;;  %v3885_v20 = vshrl.u32 %v6184_v2, 16  ;;  %v4906_v14 = vrot.slane %v8084_v8, 4 }
 0x206   : > { %v4908_v34 = vshrl.u32 %v4865_v32, 16  ;;  %v4712_v42 = vmul.f32 %v7997_v11, %v4609_v57  ;;  %4853 = vst [vmem:[%s7868_s27 + $0xac] sm:$0xf] %v6636_v55  ;;  %v4911_v52 = vshll.u32 %v4865_v32, 16 }
 0x207   : > { %v3426_v62 = vpop.f32.mrf.mxu2  ;;  %4854 = vst [vmem:[%s7868_s27 + $0xb0] sm:$0x1] %v6636_v55 }
 0x208   : > { %v8138_v31 = vrot.slane %v4908_v34, 7  ;;  %v4748_v19 = vadd.f32 %v8007_v59, %v4712_v42  ;;  %v3502_v18 = vadd.f32 %v3426_v62, %v3187_v26  ;;  %v4108_v9 = vpop.f32.mrf.mxu3  ;;  %4855 = vst [vmem:[%s7868_s27 + $0xb4] sm:$0xf] %v6636_v55  ;;  %v8159_v34 = vsel %vm6860_vm5, %v6287_v21, %v4373_v39  ;;  %v8162_v42 = vld [vmem:[%s6716_s12 + $0xac] sm:$0xf] }
 0x209   : > { %v3114_v53 = vpop.f32.mrf.mxu1  ;;  %4856 = vst [vmem:[%s7868_s27 + $0xb8] sm:$0xf] %v6636_v55  ;;  %v6602_v26 = vld [vmem:[%s6716_s12 + $0xa0] sm:$0xf]  ;;  %v3887_v62 = vrot.slane %v3885_v20, 4  ;;  %v8173_v21 = vunpack.c.l.b16 %v3883_v22  ;;  %v4377_v20 = vsel %vm6860_vm5, %v4375_v1, %v4376_v4 }
 0x20a   : > { %v4913_v56 = vor.u32 %v4911_v52, %v8138_v31  ;;  %v4780_v8 = vmax.f32 %v4748_v19, 0.0  ;;  %v4184_v32 = vadd.f32 %v4108_v9, %v3502_v18  ;;  %v2957_v2 = vrot.slane %v6602_v26, 5  ;;  %4857 = vst [vmem:[%s7868_s27 + $0xbc] sm:$0x1] %v6636_v55  ;;  %v5936_v9 = vld [vmem:[%s6716_s12 + $0x9c] sm:$0xe] }
 0x20b   : > { %v8155_v57 = vpop.f32.mrf.mxu0  ;;  %v3890_v52 = vrot.slane %v3888_v7, 5  ;;  %4858 = vst [vmem:[%s7868_s27 + $0xc0] sm:$0xf] %v6636_v55  ;;  %v4915_v5 = vrot.slane %v8138_v31, 4  ;;  %v4428_v7 = vunpack.c.l.b16 %v8159_v34  ;;  %v3894_v26 = vshll.u32 %v8162_v42, 16 }
 0x20c   : > { %v4914_v19 = vsel %vm8147_vm12, %v4906_v14, %v4913_v56  ;;  %v4866_v18 = vpack.c.bf16 %v4780_v8, %v4780_v8  ;;  %v4610_v39 = vadd.f32 %v4534_v6, %v4184_v32  ;;  %3153 = vmatmul.bf16.gmra.mxu1 %v3025_v48  ;;  %3468 = vmatmul.bf16.gmra.mxu2 %v6496_v51  ;;  %v6327_v22 = vld [vmem:[%s7868_s27 + $0x14] sm:$0x1]  ;;  %v5968_v14 = vrot.slane %v5936_v9, 9 }
 0x20d   : > { %4859 = vst [vmem:[%s7868_s27 + $0xc4] sm:$0xf] %v6636_v55  ;;  %v3188_v51 = vadd.f32 %v3114_v53, %v7418_v43  ;;  %4150 = vmatmul.bf16.gmra.mxu3 %v4022_v30  ;;  %v2959_v56 = vrot.slane %v2957_v2, 4  ;;  %v3891_v8 = vor.u32 %v3890_v52, %v3887_v62  ;;  %v3898_v32 = vshrl.u32 %v8162_v42, 16  ;;  %v6603_v53 = vld [vmem:[%s6716_s12 + $0xa4] sm:$0x1] }
 0x20e   : > { %v4917_v31 = vshrl.u32 %v4866_v18, 16  ;;  %v4713_v48 = vmul.f32 %v7997_v11, %v4610_v39  ;;  %4576 = vmatmul.bf16.gmra.mxu0 %v4448_v63  ;;  %4860 = vst [vmem:[%s7868_s27 + $0xc8] sm:$0x1] %v6636_v55  ;;  %v4920_v1 = vshll.u32 %v4866_v18, 16  ;;  %v2960_v39 = vrot.slane %v6603_v53, 5 }
 0x20f   : > { %v3429_v4 = vpop.f32.mrf.mxu2  ;;  %4861 = vst [vmem:[%s7868_s27 + $0xcc] sm:$0xf] %v6636_v55  ;;  %v5230_v62 = vsel %vm8187_vm13, %v4915_v5, %v6327_v22  ;;  %v6329_v52 = vld [vmem:[%s7868_s27 + $0x18] sm:$0xf]  ;;  %v4429_v9 = vunpack.c.l.b16 %v4377_v20  ;;  %v8208_v58 = vrot.slane %v3894_v26, 5  ;;  %v8672_v5 = vunpack.c.l.b16 %v8101_v35 }
 0x210   : > { %v8199_v34 = vrot.slane %v4917_v31, 7  ;;  %v4749_v43 = vadd.f32 %v8007_v59, %v4713_v48  ;;  %v3503_v30 = vadd.f32 %v3429_v4, %v3188_v51  ;;  %v4111_v63 = vpop.f32.mrf.mxu3  ;;  %4862 = vst [vmem:[%s7868_s27 + $0xd0] sm:$0xf] %v6636_v55  ;;  %v3900_v31 = vrot.slane %v3898_v32, 4 }
 0x211   : > { %v3116_v18 = vpop.f32.mrf.mxu1  ;;  %4863 = vst [vmem:[%s7868_s27 + $0xd4] sm:$0x1] %v6636_v55  ;;  %v8673_v22 = vunpack.c.l.b16 %v8116_v46  ;;  %v2958_v20 = vsel %vm6860_vm5, %v5968_v14, %v2957_v2  ;;  %v8223_v26 = vrot.slane %v3891_v8, 4  ;;  %v2961_v35 = vsel %vm6860_vm5, %v2959_v56, %v2960_v39 }
 0x212   : > { %v4922_v48 = vor.u32 %v4920_v1, %v8199_v34  ;;  %v4781_v51 = vmax.f32 %v4749_v43, 0.0  ;;  %v4185_v4 = vadd.f32 %v4111_v63, %v3503_v30  ;;  %6326 = vst [vmem:[%s7868_s27 + $0x10] sm:$0xf] %v4914_v19  ;;  %v4023_v46 = vpack.c.b16 %v8173_v21, %v8166_v16  ;;  %v6256_v63 = vld [vmem:[%s6716_s12 + $0xa8] sm:$0xe] }
 0x213   : > { %v4539_v53 = vpop.f32.mrf.mxu0  ;;  %v3026_v10 = vpack.c.b16 %v8673_v22, %v8672_v5  ;;  %6328 = vst [vmem:[%s7868_s27 + $0x14] sm:$0x1] %v5230_v62  ;;  %v4449_v19 = vpack.c.b16 %v4429_v9, %v4428_v7  ;;  %v3901_v2 = vor.u32 %v3900_v31, %v8208_v58  ;;  %v3904_v14 = vshll.u32 %v8214_v3, 16  ;;  %v6187_v62 = vld [vmem:[%s6716_s12 + $0xb4] sm:$0xf] }
 0x214   : > { %v5233_v55 = vsel %vm8092_vm9, %v4922_v48, %v6329_v52  ;;  %v4867_v1 = vpack.c.bf16 %v4781_v51, %v4781_v51  ;;  %v4611_v32 = vadd.f32 %v8155_v57, %v4185_v4  ;;  %v3189_v30 = vadd.f32 %v3116_v18, %v7420_v13  ;;  %v6332_v31 = vld [vmem:[%s7868_s27 + $0x20] sm:$0x1] }
 0x215   : > { %6330 = vst [vmem:[%s7868_s27 + $0x18] sm:$0xf] %v5233_v55  ;;  %v3007_v57 = vunpack.c.l.b16 %v2958_v20  ;;  %v4923_v56 = vrot.slane %v8199_v34, 4  ;;  %v3008_v52 = vunpack.c.l.b16 %v2961_v35  ;;  %v3897_v16 = vsel %vm6855_vm4, %v8223_v26, %v8208_v58  ;;  %v6497_v4 = vld [vmem:[%s6716_s12 + $0x9c] sm:$0xff] }
 0x216   : > { %v4925_v8 = vshrl.u32 %v4867_v1, 16  ;;  %v4714_v43 = vmul.f32 %v7997_v11, %v4611_v32  ;;  %v4380_v21 = vrot.slane %v8162_v42, 5  ;;  %v4928_v9 = vshll.u32 %v4867_v1, 16 }
 0x217   : > { %v3431_v39 = vpop.f32.mrf.mxu2  ;;  %v3902_v5 = vrot.slane %v3901_v2, 4  ;;  %v3906_v34 = vrot.slane %v3904_v14, 5  ;;  %v6288_v22 = vrot.slane %v6256_v63, 9  ;;  %v3909_v20 = vshrl.u32 %v6187_v62, 16 }
 0x218   : > { %v4927_v7 = vrot.slane %v4925_v8, 7  ;;  %v4750_v13 = vadd.f32 %v8007_v59, %v4714_v43  ;;  %v3504_v18 = vadd.f32 %v3431_v39, %v3189_v30  ;;  %v4113_v48 = vpop.f32.mrf.mxu3  ;;  %v8249_v1 = vpack.c.b16 %v3008_v52, %v3007_v57  ;;  %v8257_v39 = vld [vmem:[%s6716_s12 + $0xb8] sm:$0xf] }
 0x219   : > { %v3119_v51 = vpop.f32.mrf.mxu1  ;;  %v4382_v35 = vrot.slane %v4380_v21, 4  ;;  %v4383_v8 = vrot.slane %v8214_v3, 5  ;;  %v3912_v43 = vshll.u32 %v6187_v62, 16  ;;  %v3907_v57 = vsel %vm6855_vm4, %v3902_v5, %v3906_v34  ;;  %v6604_v34 = vld [vmem:[%s6716_s12 + $0xac] sm:$0xf] }
 0x21a   : > { %v4930_v55 = vor.u32 %v4928_v9, %v4927_v7  ;;  %v4932_v32 = vrot.slane %v4927_v7, 4  ;;  %v4782_v58 = vmax.f32 %v4750_v13, 0.0  ;;  %v4186_v26 = vadd.f32 %v4113_v48, %v3504_v18 }
 0x21b   : > { %v4542_v42 = vpop.f32.mrf.mxu0  ;;  %v4381_v3 = vsel %vm6860_vm5, %v6288_v22, %v4380_v21  ;;  %v3911_v62 = vrot.slane %v3909_v20, 4  ;;  %v4384_v7 = vsel %vm6860_vm5, %v4382_v35, %v4383_v8  ;;  %v3914_v9 = vrot.slane %v3912_v43, 5  ;;  %v8280_v20 = vld [vmem:[%s6716_s12 + $0xbc] sm:$0x1] }
 0x21c   : > { %v4931_v2 = vsel %vm8147_vm12, %v4923_v56, %v4930_v55  ;;  %v5237_v14 = vsel %vm8187_vm13, %v4932_v32, %v6332_v31  ;;  %v4868_v30 = vpack.c.bf16 %v4782_v58, %v4782_v58  ;;  %v4612_v63 = vadd.f32 %v4539_v53, %v4186_v26  ;;  %3158 = vmatmul.bf16.gmra.mxu1 %v3026_v10 }
 0x21d   : > { %6331 = vst [vmem:[%s7868_s27 + $0x1c] sm:$0xf] %v4931_v2  ;;  %3473 = vmatmul.bf16.gmra.mxu2 %v6497_v4  ;;  %v3190_v53 = vadd.f32 %v3119_v51, %v7459_v23  ;;  %4155 = vmatmul.bf16.gmra.mxu3 %v4023_v46  ;;  %v3918_v21 = vshll.u32 %v8257_v39, 16  ;;  %v3922_v31 = vshrl.u32 %v8257_v39, 16  ;;  %v5937_v46 = vld [vmem:[%s6716_s12 + $0xa8] sm:$0xe]  ;;  %v8276_v5 = vunpack.c.l.b16 %v3897_v16 }
 0x21e   : > { %6333 = vst [vmem:[%s7868_s27 + $0x20] sm:$0x1] %v5237_v14  ;;  %v4934_v56 = vshrl.u32 %v4868_v30, 16  ;;  %v4715_v52 = vmul.f32 %v7997_v11, %v4612_v63  ;;  %4581 = vmatmul.bf16.gmra.mxu0 %v4449_v19  ;;  %v4937_v18 = vshll.u32 %v4868_v30, 16  ;;  %v6334_v51 = vld [vmem:[%s7868_s27 + $0x24] sm:$0xf]  ;;  %v3915_v55 = vor.u32 %v3914_v9, %v3911_v62 }
 0x21f   : > { %v3434_v10 = vpop.f32.mrf.mxu2  ;;  %v2964_v22 = vrot.slane %v6604_v34, 5  ;;  %v8282_v32 = vrot.slane %v3918_v21, 5  ;;  %v4005_v43 = vunpack.c.l.b16 %v3907_v57  ;;  %v4430_v2 = vunpack.c.l.b16 %v4381_v3 }
 0x220   : > { %v8271_v13 = vrot.slane %v4934_v56, 7  ;;  %v4751_v48 = vadd.f32 %v8007_v59, %v4715_v52  ;;  %v3505_v4 = vadd.f32 %v3434_v10, %v3190_v53  ;;  %v4116_v23 = vpop.f32.mrf.mxu3  ;;  %v4431_v14 = vunpack.c.l.b16 %v4384_v7  ;;  %v6605_v10 = vld [vmem:[%s6716_s12 + $0xb0] sm:$0x1]  ;;  %v8674_v7 = vld [vmem:[#allocation10_spill] sm:$0xff] }
 0x221   : > { %v3121_v19 = vpop.f32.mrf.mxu1  ;;  %v5969_v30 = vrot.slane %v5937_v46, 9  ;;  %v3924_v16 = vrot.slane %v3922_v31, 4  ;;  %v3928_v62 = vshll.u32 %v8280_v20, 16  ;;  %v2966_v53 = vrot.slane %v2964_v22, 4 }
 0x222   : > { %v4939_v58 = vor.u32 %v4937_v18, %v8271_v13  ;;  %v4783_v26 = vmax.f32 %v4751_v48, 0.0  ;;  %v4187_v35 = vadd.f32 %v4116_v23, %v3505_v4  ;;  %v2967_v9 = vrot.slane %v6605_v10, 5  ;;  %v6498_v10 = vld [vmem:[%s6716_s12 + $0xa8] sm:$0xff] }
 0x223   : > { %v4544_v8 = vpop.f32.mrf.mxu0  ;;  %v3916_v21 = vrot.slane %v3915_v55, 4  ;;  %v3925_v18 = vor.u32 %v3924_v16, %v8282_v32  ;;  %v3191_v31 = vadd.f32 %v3121_v19, %v8674_v7  ;;  %v4024_v48 = vpack.c.b16 %v4005_v43, %v8276_v5  ;;  %v6257_v16 = vld [vmem:[%s6716_s12 + $0xb4] sm:$0xe]  ;;  %v6337_v19 = vld [vmem:[%s7868_s27 + $0x2c] sm:$0x1] }
 0x224   : > { %v5240_v63 = vsel %vm8092_vm9, %v4939_v58, %v6334_v51  ;;  %v4869_v56 = vpack.c.bf16 %v4783_v26, %v4783_v26  ;;  %v4613_v52 = vadd.f32 %v4542_v42, %v4187_v35  ;;  %v4450_v4 = vpack.c.b16 %v4431_v14, %v4430_v2 }
 0x225   : > { %6335 = vst [vmem:[%s7868_s27 + $0x24] sm:$0xf] %v5240_v63  ;;  %v3926_v23 = vrot.slane %v3925_v18, 4  ;;  %v3930_v46 = vrot.slane %v3928_v62, 5  ;;  %v4387_v51 = vrot.slane %v8257_v39, 5  ;;  %v4940_v63 = vrot.slane %v8271_v13, 4 }
 0x226   : > { %v4942_v57 = vshrl.u32 %v4869_v56, 16  ;;  %v4716_v3 = vmul.f32 %v7997_v11, %v4613_v52  ;;  %v4945_v55 = vshll.u32 %v4869_v56, 16  ;;  %v2965_v5 = vsel %vm6860_vm5, %v5969_v30, %v2964_v22  ;;  %v6190_v13 = vld [vmem:[%s6716_s12 + $0xc0] sm:$0xf] }
 0x227   : > { %v3436_v42 = vpop.f32.mrf.mxu2  ;;  %v2968_v43 = vsel %vm6860_vm5, %v2966_v53, %v2967_v9  ;;  %v3921_v39 = vsel %vm6855_vm4, %v3916_v21, %v8282_v32  ;;  %v4389_v22 = vrot.slane %v4387_v51, 4  ;;  %v4390_v30 = vrot.slane %v8280_v20, 5 }
 0x228   : > { %v4944_v34 = vrot.slane %v4942_v57, 7  ;;  %v4752_v58 = vadd.f32 %v8007_v59, %v4716_v3  ;;  %v3506_v26 = vadd.f32 %v3436_v42, %v3191_v31  ;;  %v4118_v35 = vpop.f32.mrf.mxu3  ;;  %v3931_v57 = vsel %vm6855_vm4, %v3926_v23, %v3930_v46 }
 0x229   : > { %v3124_v52 = vpop.f32.mrf.mxu1  ;;  %v6289_v3 = vrot.slane %v6257_v16, 9  ;;  %v3009_v7 = vunpack.c.l.b16 %v2965_v5  ;;  %v3933_v31 = vshrl.u32 %v6190_v13, 16  ;;  %v3936_v42 = vshll.u32 %v6190_v13, 16 }
 0x22a   : > { %v4947_v2 = vor.u32 %v4945_v55, %v4944_v34  ;;  %v4949_v14 = vrot.slane %v4944_v34, 4  ;;  %v4784_v56 = vmax.f32 %v4752_v58, 0.0  ;;  %v4188_v62 = vadd.f32 %v4118_v35, %v3506_v26  ;;  %v8321_v55 = vld [vmem:[%s6716_s12 + $0xc4] sm:$0xf] }
 0x22b   : > { %v4547_v18 = vpop.f32.mrf.mxu0  ;;  %v3192_v46 = vadd.f32 %v3124_v52, %v7510_v41  ;;  %v3010_v34 = vunpack.c.l.b16 %v2968_v43  ;;  %v8323_v58 = vunpack.c.l.b16 %v3921_v39  ;;  %v4388_v26 = vsel %vm6860_vm5, %v6289_v3, %v4387_v51 }
 0x22c   : > { %v4948_v53 = vsel %vm8147_vm12, %v4940_v63, %v4947_v2  ;;  %v5244_v32 = vsel %vm8187_vm13, %v4949_v14, %v6337_v19  ;;  %v4870_v9 = vpack.c.bf16 %v4784_v56, %v4784_v56  ;;  %v4614_v21 = vadd.f32 %v4544_v8, %v4188_v62  ;;  %3163 = vmatmul.bf16.gmra.mxu1 %v8249_v1  ;;  %v6339_v19 = vld [vmem:[%s7868_s27 + $0x30] sm:$0xf] }
 0x22d   : > { %6336 = vst [vmem:[%s7868_s27 + $0x28] sm:$0xf] %v4948_v53  ;;  %3478 = vmatmul.bf16.gmra.mxu2 %v6498_v10  ;;  %4160 = vmatmul.bf16.gmra.mxu3 %v4024_v48  ;;  %v8325_v1 = vunpack.c.l.b16 %v3931_v57  ;;  %v4391_v35 = vsel %vm6860_vm5, %v4389_v22, %v4390_v30  ;;  %v6606_v10 = vld [vmem:[%s6716_s12 + $0xb8] sm:$0xf]  ;;  %v3935_v43 = vrot.slane %v3933_v31, 4  ;;  %v3938_v39 = vrot.slane %v3936_v42, 5 }
 0x22e   : > { %6338 = vst [vmem:[%s7868_s27 + $0x2c] sm:$0x1] %v5244_v32  ;;  %v4951_v23 = vshrl.u32 %v4870_v9, 16  ;;  %v4717_v20 = vmul.f32 %v7997_v11, %v4614_v21  ;;  %4586 = vmatmul.bf16.gmra.mxu0 %v4450_v4  ;;  %v4954_v41 = vshll.u32 %v4870_v9, 16  ;;  %v2971_v5 = vrot.slane %v6606_v10, 5 }
 0x22f   : > { %v3439_v8 = vpop.f32.mrf.mxu2  ;;  %v3942_v51 = vshll.u32 %v8321_v55, 16  ;;  %v3028_v13 = vpack.c.b16 %v3010_v34, %v3009_v7  ;;  %v5938_v57 = vld [vmem:[%s6716_s12 + $0xb4] sm:$0xe]  ;;  %v4025_v3 = vpack.c.b16 %v8325_v1, %v8323_v58  ;;  %v4432_v22 = vunpack.c.l.b16 %v4388_v26  ;;  %v6192_v31 = vld [vmem:[%s6716_s12 + $0xc8] sm:$0x1] }
 0x230   : > { %v8331_v16 = vrot.slane %v4951_v23, 7  ;;  %v4753_v48 = vadd.f32 %v8007_v59, %v4717_v20  ;;  %v3507_v4 = vadd.f32 %v3439_v8, %v3192_v46  ;;  %v4121_v63 = vpop.f32.mrf.mxu3  ;;  %v4433_v30 = vunpack.c.l.b16 %v4391_v35  ;;  %v6607_v20 = vld [vmem:[%s6716_s12 + $0xbc] sm:$0x1]  ;;  %v6258_v35 = vld [vmem:[%s6716_s12 + $0xc0] sm:$0xe] }
 0x231   : > { %v3126_v52 = vpop.f32.mrf.mxu1  ;;  %v8341_v53 = vrot.slane %v3942_v51, 5  ;;  %v3946_v42 = vshrl.u32 %v8321_v55, 16  ;;  %v5970_v23 = vrot.slane %v5938_v57, 9  ;;  %v2973_v7 = vrot.slane %v2971_v5, 4 }
 0x232   : > { %v4956_v2 = vor.u32 %v4954_v41, %v8331_v16  ;;  %v4785_v14 = vmax.f32 %v4753_v48, 0.0  ;;  %v4189_v56 = vadd.f32 %v4121_v63, %v3507_v4  ;;  %v2974_v46 = vrot.slane %v6607_v20, 5 }
 0x233   : > { %v4549_v62 = vpop.f32.mrf.mxu0  ;;  %v3939_v34 = vor.u32 %v3938_v39, %v3935_v43  ;;  %v3193_v1 = vadd.f32 %v3126_v52, %v7512_v29  ;;  %v3948_v26 = vrot.slane %v3946_v42, 4  ;;  %v4451_v48 = vpack.c.b16 %v4433_v30, %v4432_v22  ;;  %v6499_v52 = vld [vmem:[%s6716_s12 + $0xb4] sm:$0xff] }
 0x234   : > { %v5247_v32 = vsel %vm8092_vm9, %v4956_v2, %v6339_v19  ;;  %v4871_v9 = vpack.c.bf16 %v4785_v14, %v4785_v14  ;;  %v4615_v21 = vadd.f32 %v4547_v18, %v4189_v56  ;;  %v3952_v4 = vshll.u32 %v6192_v31, 16  ;;  %v6342_v14 = vld [vmem:[%s7868_s27 + $0x38] sm:$0x1] }
 0x235   : > { %6340 = vst [vmem:[%s7868_s27 + $0x30] sm:$0xf] %v5247_v32  ;;  %v4394_v63 = vrot.slane %v8321_v55, 5  ;;  %v3949_v39 = vor.u32 %v3948_v26, %v8341_v53  ;;  %v4957_v2 = vrot.slane %v8331_v16, 4  ;;  %v2972_v56 = vsel %vm6860_vm5, %v5970_v23, %v2971_v5 }
 0x236   : > { %v4959_v8 = vshrl.u32 %v4871_v9, 16  ;;  %v4718_v58 = vmul.f32 %v7997_v11, %v4615_v21  ;;  %v4962_v41 = vshll.u32 %v4871_v9, 16  ;;  %v3940_v57 = vrot.slane %v3939_v34, 4 }
 0x237   : > { %v3441_v18 = vpop.f32.mrf.mxu2  ;;  %v6290_v22 = vrot.slane %v6258_v35, 9  ;;  %v3950_v42 = vrot.slane %v3949_v39, 4  ;;  %v3954_v20 = vrot.slane %v3952_v4, 5  ;;  %v4397_v16 = vrot.slane %v6192_v31, 5 }
 0x238   : > { %v4961_v19 = vrot.slane %v4959_v8, 7  ;;  %v4754_v10 = vadd.f32 %v8007_v59, %v4718_v58  ;;  %v3508_v51 = vadd.f32 %v3441_v18, %v3193_v1  ;;  %v4123_v43 = vpop.f32.mrf.mxu3  ;;  %v4396_v8 = vrot.slane %v4394_v63, 4  ;;  %v6193_v1 = vld [vmem:[%s6716_s12 + $0xcc] sm:$0xf] }
 0x239   : > { %v3129_v29 = vpop.f32.mrf.mxu1  ;;  %v2975_v26 = vsel %vm6860_vm5, %v2973_v7, %v2974_v46  ;;  %v3945_v31 = vsel %vm6855_vm4, %v3940_v57, %v8341_v53  ;;  %v4395_v35 = vsel %vm6860_vm5, %v6290_v22, %v4394_v63  ;;  %v3955_v7 = vsel %vm6855_vm4, %v3950_v42, %v3954_v20 }
 0x23a   : > { %v4964_v55 = vor.u32 %v4962_v41, %v4961_v19  ;;  %v4966_v30 = vrot.slane %v4961_v19, 4  ;;  %v4786_v32 = vmax.f32 %v4754_v10, 0.0  ;;  %v4190_v9 = vadd.f32 %v4123_v43, %v3508_v51 }
 0x23b   : > { %v4552_v21 = vpop.f32.mrf.mxu0  ;;  %v4398_v53 = vsel %vm6860_vm5, %v4396_v8, %v4397_v16  ;;  %v3957_v46 = vshrl.u32 %v6193_v1, 16  ;;  %v3960_v63 = vshll.u32 %v6193_v1, 16  ;;  %v3011_v39 = vunpack.c.l.b16 %v2972_v56 }
 0x23c   : > { %v4965_v58 = vsel %vm8147_vm12, %v4957_v2, %v4964_v55  ;;  %v5251_v5 = vsel %vm8187_vm13, %v4966_v30, %v6342_v14  ;;  %v4872_v23 = vpack.c.bf16 %v4786_v32, %v4786_v32  ;;  %v4616_v34 = vadd.f32 %v4549_v62, %v4190_v9  ;;  %3168 = vmatmul.bf16.gmra.mxu1 %v3028_v13  ;;  %v8377_v13 = vld [vmem:[%s6716_s12 + $0xd0] sm:$0xf] }
 0x23d   : > { %6341 = vst [vmem:[%s7868_s27 + $0x34] sm:$0xf] %v4965_v58  ;;  %3483 = vmatmul.bf16.gmra.mxu2 %v6499_v52  ;;  %v3194_v62 = vadd.f32 %v3129_v29, %v7538_v12  ;;  %4165 = vmatmul.bf16.gmra.mxu3 %v4025_v3  ;;  %v6344_v3 = vld [vmem:[%s7868_s27 + $0x3c] sm:$0xf]  ;;  %v3012_v2 = vunpack.c.l.b16 %v2975_v26  ;;  %v8387_v14 = vunpack.c.l.b16 %v3945_v31  ;;  %v3966_v29 = vshll.u32 %v8377_v13, 16 }
 0x23e   : > { %6343 = vst [vmem:[%s7868_s27 + $0x38] sm:$0x1] %v5251_v5  ;;  %v4968_v41 = vshrl.u32 %v4872_v23, 16  ;;  %v4719_v18 = vmul.f32 %v7997_v11, %v4616_v34  ;;  %4591 = vmatmul.bf16.gmra.mxu0 %v4451_v48  ;;  %v4971_v10 = vshll.u32 %v4872_v23, 16  ;;  %v4434_v30 = vunpack.c.l.b16 %v4395_v35  ;;  %v8400_v31 = vld [vmem:[%s6716_s12 + $0xd4] sm:$0x1] }
 0x23f   : > { %v3444_v4 = vpop.f32.mrf.mxu2  ;;  %v4009_v32 = vunpack.c.l.b16 %v3955_v7  ;;  %v4435_v9 = vunpack.c.l.b16 %v4398_v53  ;;  %v3959_v42 = vrot.slane %v3957_v46, 4  ;;  %v3962_v20 = vrot.slane %v3960_v63, 5 }
 0x240   : > { %v8383_v19 = vrot.slane %v4968_v41, 7  ;;  %v4755_v51 = vadd.f32 %v8007_v59, %v4719_v18  ;;  %v3509_v43 = vadd.f32 %v3444_v4, %v3194_v62  ;;  %v4126_v12 = vpop.f32.mrf.mxu3  ;;  %v3970_v58 = vshrl.u32 %v8377_v13, 16  ;;  %v6608_v62 = vld [vmem:[%s6716_s12 + $0xc4] sm:$0xf] }
 0x241   : > { %v3131_v48 = vpop.f32.mrf.mxu1  ;;  %v3029_v5 = vpack.c.b16 %v3012_v2, %v3011_v39  ;;  %v8395_v23 = vrot.slane %v3966_v29, 5  ;;  %v4452_v18 = vpack.c.b16 %v4435_v9, %v4434_v30  ;;  %v2978_v4 = vrot.slane %v6608_v62, 5 }
 0x242   : > { %v4973_v52 = vor.u32 %v4971_v10, %v8383_v19  ;;  %v4787_v57 = vmax.f32 %v4755_v51, 0.0  ;;  %v4191_v22 = vadd.f32 %v4126_v12, %v3509_v43  ;;  %v3195_v26 = vadd.f32 %v3131_v48, %v7563_v38  ;;  %v5939_v38 = vld [vmem:[%s6716_s12 + $0xc0] sm:$0xe]  ;;  %v6347_v43 = vld [vmem:[%s7868_s27 + $0x44] sm:$0x1] }
 0x243   : > { %v4554_v55 = vpop.f32.mrf.mxu0  ;;  %v3972_v35 = vrot.slane %v3970_v58, 4  ;;  %v3963_v7 = vor.u32 %v3962_v20, %v3959_v42  ;;  %v4974_v51 = vrot.slane %v8383_v19, 4  ;;  %v3976_v39 = vshll.u32 %v8400_v31, 16  ;;  %v6609_v19 = vld [vmem:[%s6716_s12 + $0xc8] sm:$0x1] }
 0x244   : > { %v5254_v56 = vsel %vm8092_vm9, %v4973_v52, %v6344_v3  ;;  %v4873_v8 = vpack.c.bf16 %v4787_v57, %v4787_v57  ;;  %v4617_v16 = vadd.f32 %v4552_v21, %v4191_v22  ;;  %v4026_v21 = vpack.c.b16 %v4009_v32, %v8387_v14  ;;  %v6500_v3 = vld [vmem:[%s6716_s12 + $0xc0] sm:$0xff]  ;;  %v6259_v22 = vld [vmem:[%s6716_s12 + $0xcc] sm:$0xe] }
 0x245   : > { %6345 = vst [vmem:[%s7868_s27 + $0x3c] sm:$0xf] %v5254_v56  ;;  %v3973_v48 = vor.u32 %v3972_v35, %v8395_v23  ;;  %v4401_v2 = vrot.slane %v8377_v13, 5  ;;  %v5971_v30 = vrot.slane %v5939_v38, 9  ;;  %v2980_v32 = vrot.slane %v2978_v4, 4 }
 0x246   : > { %v4976_v34 = vshrl.u32 %v4873_v8, 16  ;;  %v4720_v1 = vmul.f32 %v7997_v11, %v4617_v16  ;;  %v4979_v46 = vshll.u32 %v4873_v8, 16  ;;  %v2981_v9 = vrot.slane %v6609_v19, 5  ;;  %v8424_v35 = vld [vmem:[%s8639_s2] ss:$0 sm:$0xff] }
 0x247   : > { %v3446_v41 = vpop.f32.mrf.mxu2  ;;  %v3964_v42 = vrot.slane %v3963_v7, 4  ;;  %v3978_v16 = vrot.slane %v3976_v39, 5  ;;  %v6291_v58 = vrot.slane %v6259_v22, 9  ;;  %v2979_v7 = vsel %vm6860_vm5, %v5971_v30, %v2978_v4  ;;  %v6349_v38 = vld [vmem:[%s7868_s27 + $0x48] sm:$0xf] }
 0x248   : > { %v4978_v53 = vrot.slane %v4976_v34, 7  ;;  %v4756_v63 = vadd.f32 %v8007_v59, %v4720_v1  ;;  %v3510_v11 = vadd.f32 %v3446_v41, %v3195_v26  ;;  %v4128_v10 = vpop.f32.mrf.mxu3  ;;  %v4403_v34 = vrot.slane %v4401_v2, 4 }
 0x249   : > { %v3134_v12 = vpop.f32.mrf.mxu1  ;;  %v4404_v1 = vrot.slane %v8400_v31, 5  ;;  %v4402_v4 = vsel %vm6860_vm5, %v6291_v58, %v4401_v2 }
 0x24a   : > { %v4981_v14 = vor.u32 %v4979_v46, %v4978_v53  ;;  %v4983_v29 = vrot.slane %v4978_v53, 4  ;;  %v4788_v59 = vmax.f32 %v4756_v63, 0.0  ;;  %v4192_v52 = vadd.f32 %v4128_v10, %v3510_v11  ;;  %v8433_v46 = vld [vmem:[%s8640_s3] ss:$0 sm:$0xff] }
 0x24b   : > { %v4557_v57 = vpop.f32.mrf.mxu0  ;;  %v4436_v33 = vunpack.c.l.b16 %v4402_v4 }
 0x24c   : > { %v4982_v20 = vsel %vm8147_vm12, %v4974_v51, %v4981_v14  ;;  %v5258_v56 = vsel %vm8187_vm13, %v4983_v29, %v6347_v43  ;;  %v4874_v13 = vpack.c.bf16 %v4788_v59, %v4788_v59  ;;  %v4618_v8 = vadd.f32 %v4554_v55, %v4192_v52  ;;  %3173 = vmatmul.bf16.gmra.mxu1 %v3029_v5 }
 0x24d   : > { %6346 = vst [vmem:[%s7868_s27 + $0x40] sm:$0xf] %v4982_v20  ;;  %3488 = vmatmul.bf16.gmra.mxu2 %v6500_v3  ;;  %v3196_v55 = vadd.f32 %v3134_v12, %v7584_v49  ;;  %4170 = vmatmul.bf16.gmra.mxu3 %v4026_v21  ;;  %v3974_v5 = vrot.slane %v3973_v48, 4  ;;  %v2982_v21 = vsel %vm6860_vm5, %v2980_v32, %v2981_v9  ;;  %v3013_v14 = vunpack.c.l.b16 %v2979_v7 }
 0x24e   : > { %6348 = vst [vmem:[%s7868_s27 + $0x44] sm:$0x1] %v5258_v56  ;;  %v4985_v26 = vshrl.u32 %v4874_v13, 16  ;;  %v4721_v41 = vmul.f32 %v8424_v35, %v4618_v8  ;;  %4596 = vmatmul.bf16.gmra.mxu0 %v4452_v18  ;;  %v4988_v53 = vshll.u32 %v4874_v13, 16  ;;  %v3969_v18 = vsel %vm6855_vm4, %v3964_v42, %v8395_v23 }
 0x24f   : > { %v3449_v62 = vpop.f32.mrf.mxu2  ;;  %v4405_v51 = vsel %vm6860_vm5, %v4403_v34, %v4404_v1  ;;  %v3979_v39 = vsel %vm6855_vm4, %v3974_v5, %v3978_v16  ;;  %v3014_v23 = vunpack.c.l.b16 %v2982_v21  ;;  %v4010_v2 = vunpack.c.l.b16 %v3969_v18  ;;  %v6352_v16 = vld [vmem:[%s7868_s27 + $0x50] sm:$0x1] }
 0x250   : > { %v4987_v31 = vrot.slane %v4985_v26, 7  ;;  %v4757_v63 = vadd.f32 %v8433_v46, %v4721_v41  ;;  %v3511_v11 = vadd.f32 %v3449_v62, %v3196_v55  ;;  %v4131_v10 = vpop.f32.mrf.mxu3  ;;  %v4011_v22 = vunpack.c.l.b16 %v3979_v39  ;;  %v6501_v1 = vld [vmem:[%s6716_s12 + $0xcc] sm:$0xff] }
 0x251   : > { %v3136_v49 = vpop.f32.mrf.mxu1  ;;  %v4437_v30 = vunpack.c.l.b16 %v4405_v51  ;;  %v3030_v34 = vpack.c.b16 %v3014_v23, %v3013_v14 }
 0x252   : > { %v4990_v43 = vor.u32 %v4988_v53, %v4987_v31  ;;  %v4789_v12 = vmax.f32 %v4757_v63, 0.0  ;;  %v4193_v3 = vadd.f32 %v4131_v10, %v3511_v11  ;;  %v3197_v27 = vadd.f32 %v3136_v49, %v7590_v37 }
 0x253   : > { %v4559_v48 = vpop.f32.mrf.mxu0  ;;  %v4991_v8 = vrot.slane %v4987_v31, 4  ;;  %v4027_v26 = vpack.c.b16 %v4011_v22, %v4010_v2  ;;  %v4453_v41 = vpack.c.b16 %v4437_v30, %v4436_v33 }
 0x254   : > { %v5261_v29 = vsel %vm8092_vm9, %v4990_v43, %v6349_v38  ;;  %v4875_v59 = vpack.c.bf16 %v4789_v12, %v4789_v12  ;;  %v4619_v52 = vadd.f32 %v4557_v57, %v4193_v3  ;;  %v6354_v3 = vld [vmem:[%s7868_s27 + $0x54] sm:$0xf] }
 0x255   : > { %6350 = vst [vmem:[%s7868_s27 + $0x48] sm:$0xf] %v5261_v29 }
 0x256   : > { %v4993_v32 = vshrl.u32 %v4875_v59, 16  ;;  %v4722_v19 = vmul.f32 %v8424_v35, %v4619_v52  ;;  %v4996_v20 = vshll.u32 %v4875_v59, 16 }
 0x257   : > { %v3451_v9 = vpop.f32.mrf.mxu2 }
 0x258   : > { %v4995_v42 = vrot.slane %v4993_v32, 7  ;;  %v4758_v56 = vadd.f32 %v8433_v46, %v4722_v19  ;;  %v3512_v13 = vadd.f32 %v3451_v9, %v3197_v27  ;;  %v4133_v57 = vpop.f32.mrf.mxu3 }
 0x259   : > { %v3139_v58 = vpop.f32.mrf.mxu1 }
 0x25a   : > { %v4998_v55 = vor.u32 %v4996_v20, %v4995_v42  ;;  %v5000_v5 = vrot.slane %v4995_v42, 4  ;;  %v4790_v62 = vmax.f32 %v4758_v56, 0.0  ;;  %v4194_v37 = vadd.f32 %v4133_v57, %v3512_v13  ;;  %v6357_v56 = vld [vmem:[%s7868_s27 + $0x5c] sm:$0x1] }
 0x25b   : > { %v4562_v7 = vpop.f32.mrf.mxu0  ;;  %v3198_v49 = vadd.f32 %v3139_v58, %v7607_v60 }
 0x25c   : > { %v4999_v53 = vsel %vm8147_vm12, %v4991_v8, %v4998_v55  ;;  %v5265_v63 = vsel %vm8187_vm13, %v5000_v5, %v6352_v16  ;;  %v4876_v31 = vpack.c.bf16 %v4790_v62, %v4790_v62  ;;  %v4620_v11 = vadd.f32 %v4559_v48, %v4194_v37  ;;  %3178 = vmatmul.bf16.gmra.mxu1 %v3030_v34 }
 0x25d   : > { %6351 = vst [vmem:[%s7868_s27 + $0x4c] sm:$0xf] %v4999_v53  ;;  %3493 = vmatmul.bf16.gmra.mxu2 %v6501_v1  ;;  %4175 = vmatmul.bf16.gmra.mxu3 %v4027_v26 }
 0x25e   : > { %6353 = vst [vmem:[%s7868_s27 + $0x50] sm:$0x1] %v5265_v63  ;;  %v5002_v10 = vshrl.u32 %v4876_v31, 16  ;;  %v4723_v38 = vmul.f32 %v8424_v35, %v4620_v11  ;;  %4601 = vmatmul.bf16.gmra.mxu0 %v4453_v41  ;;  %v5005_v4 = vshll.u32 %v4876_v31, 16 }
 0x25f   : > { %v3454_v21 = vpop.f32.mrf.mxu2 }
 0x260   : > { %v5004_v18 = vrot.slane %v5002_v10, 7  ;;  %v4759_v51 = vadd.f32 %v8433_v46, %v4723_v38  ;;  %v3513_v43 = vadd.f32 %v3454_v21, %v3198_v49  ;;  %v4136_v12 = vpop.f32.mrf.mxu3  ;;  %v6359_v10 = vld [vmem:[%s7868_s27 + $0x60] sm:$0xf] }
 0x261   : > { %v3141_v48 = vpop.f32.mrf.mxu1 }
 0x262   : > { %v5007_v39 = vor.u32 %v5005_v4, %v5004_v18  ;;  %v4791_v14 = vmax.f32 %v4759_v51, 0.0  ;;  %v4195_v29 = vadd.f32 %v4136_v12, %v3513_v43  ;;  %v3199_v33 = vadd.f32 %v3141_v48, %v7624_v47 }
 0x263   : > { %v4564_v59 = vpop.f32.mrf.mxu0  ;;  %v5008_v20 = vrot.slane %v5004_v18, 4 }
 0x264   : > { %v5268_v60 = vsel %vm8092_vm9, %v5007_v39, %v6354_v3  ;;  %v4877_v52 = vpack.c.bf16 %v4791_v14, %v4791_v14  ;;  %v4621_v23 = vadd.f32 %v4562_v7, %v4195_v29 }
 0x265   : > { %6355 = vst [vmem:[%s7868_s27 + $0x54] sm:$0xf] %v5268_v60 }
 0x266   : > { %v5010_v2 = vshrl.u32 %v4877_v52, 16  ;;  %v4724_v22 = vmul.f32 %v8424_v35, %v4621_v23  ;;  %v5013_v19 = vshll.u32 %v4877_v52, 16 }
 0x267   : > { %v3456_v30 = vpop.f32.mrf.mxu2 }
 0x268   : > { %v5012_v32 = vrot.slane %v5010_v2, 7  ;;  %v4760_v27 = vadd.f32 %v8433_v46, %v4724_v22  ;;  %v3514_v9 = vadd.f32 %v3456_v30, %v3199_v33  ;;  %v4138_v42 = vpop.f32.mrf.mxu3  ;;  %v6362_v2 = vld [vmem:[%s7868_s27 + $0x68] sm:$0x1] }
 0x269   : > { %v3144_v13 = vpop.f32.mrf.mxu1 }
 0x26a   : > { %v5015_v57 = vor.u32 %v5013_v19, %v5012_v32  ;;  %v5017_v8 = vrot.slane %v5012_v32, 4  ;;  %v4792_v16 = vmax.f32 %v4760_v27, 0.0  ;;  %v4196_v58 = vadd.f32 %v4138_v42, %v3514_v9 }
 0x26b   : > { %v4567_v34 = vpop.f32.mrf.mxu0  ;;  %v3200_v62 = vadd.f32 %v3144_v13, %v7646_v36 }
 0x26c   : > { %v5016_v47 = vsel %vm8147_vm12, %v5008_v20, %v5015_v57  ;;  %v5272_v1 = vsel %vm8187_vm13, %v5017_v8, %v6357_v56  ;;  %v4878_v26 = vpack.c.bf16 %v4792_v16, %v4792_v16  ;;  %v4622_v41 = vadd.f32 %v4564_v59, %v4196_v58 }
 0x26d   : > { %6356 = vst [vmem:[%s7868_s27 + $0x58] sm:$0xf] %v5016_v47 }
 0x26e   : > { %6358 = vst [vmem:[%s7868_s27 + $0x5c] sm:$0x1] %v5272_v1  ;;  %v5019_v55 = vshrl.u32 %v4878_v26, 16  ;;  %v4725_v5 = vmul.f32 %v8424_v35, %v4622_v41  ;;  %v5022_v53 = vshll.u32 %v4878_v26, 16  ;;  %v6364_v26 = vld [vmem:[%s7868_s27 + $0x6c] sm:$0xf] }
 0x26f   : > { %v3459_v37 = vpop.f32.mrf.mxu2 }
 0x270   : > { %v5021_v7 = vrot.slane %v5019_v55, 7  ;;  %v4761_v63 = vadd.f32 %v8433_v46, %v4725_v5  ;;  %v3515_v31 = vadd.f32 %v3459_v37, %v3200_v62  ;;  %v4141_v11 = vpop.f32.mrf.mxu3 }
 0x271   : > { %v3146_v38 = vpop.f32.mrf.mxu1 }
 0x272   : > { %v5024_v49 = vor.u32 %v5022_v53, %v5021_v7  ;;  %v4793_v21 = vmax.f32 %v4761_v63, 0.0  ;;  %v4197_v18 = vadd.f32 %v4141_v11, %v3515_v31  ;;  %v3201_v48 = vadd.f32 %v3146_v38, %v7656_v50 }
 0x273   : > { %v4569_v4 = vpop.f32.mrf.mxu0  ;;  %v5025_v23 = vrot.slane %v5021_v7, 4 }
 0x274   : > { %v5275_v51 = vsel %vm8092_vm9, %v5024_v49, %v6359_v10  ;;  %v4879_v43 = vpack.c.bf16 %v4793_v21, %v4793_v21  ;;  %v4623_v36 = vadd.f32 %v4567_v34, %v4197_v18 }
 0x275   : > { %6360 = vst [vmem:[%s7868_s27 + $0x60] sm:$0xf] %v5275_v51 }
 0x276   : > { %v5027_v12 = vshrl.u32 %v4879_v43, 16  ;;  %v4726_v3 = vmul.f32 %v8424_v35, %v4623_v36  ;;  %v5030_v29 = vshll.u32 %v4879_v43, 16  ;;  %v6367_v43 = vld [vmem:[%s7868_s27 + $0x74] sm:$0x1] }
 0x277   : > { %v3461_v39 = vpop.f32.mrf.mxu2 }
 0x278   : > { %v5029_v14 = vrot.slane %v5027_v12, 7  ;;  %v4762_v59 = vadd.f32 %v8433_v46, %v4726_v3  ;;  %v3516_v60 = vadd.f32 %v3461_v39, %v3201_v48  ;;  %v4143_v52 = vpop.f32.mrf.mxu3 }
 0x279   : > { %v3149_v22 = vpop.f32.mrf.mxu1 }
 0x27a   : > { %v5032_v33 = vor.u32 %v5030_v29, %v5029_v14  ;;  %v5034_v30 = vrot.slane %v5029_v14, 4  ;;  %v4794_v32 = vmax.f32 %v4762_v59, 0.0  ;;  %v4198_v19 = vadd.f32 %v4143_v52, %v3516_v60 }
 0x27b   : > { %v4572_v27 = vpop.f32.mrf.mxu0  ;;  %v3202_v57 = vadd.f32 %v3149_v22, %v7678_v28 }
 0x27c   : > { %v5033_v50 = vsel %vm8147_vm12, %v5025_v23, %v5032_v33  ;;  %v5279_v9 = vsel %vm8187_vm13, %v5034_v30, %v6362_v2  ;;  %v4880_v42 = vpack.c.bf16 %v4794_v32, %v4794_v32  ;;  %v4624_v20 = vadd.f32 %v4569_v4, %v4198_v19  ;;  %v6369_v19 = vld [vmem:[%s7868_s27 + $0x78] sm:$0xf] }
 0x27d   : > { %6361 = vst [vmem:[%s7868_s27 + $0x64] sm:$0xf] %v5033_v50 }
 0x27e   : > { %6363 = vst [vmem:[%s7868_s27 + $0x68] sm:$0x1] %v5279_v9  ;;  %v5036_v56 = vshrl.u32 %v4880_v42, 16  ;;  %v4727_v13 = vmul.f32 %v8424_v35, %v4624_v20  ;;  %v5039_v58 = vshll.u32 %v4880_v42, 16 }
 0x27f   : > { %v3464_v8 = vpop.f32.mrf.mxu2 }
 0x280   : > { %v5038_v16 = vrot.slane %v5036_v56, 7  ;;  %v4763_v34 = vadd.f32 %v8433_v46, %v4727_v13  ;;  %v3517_v47 = vadd.f32 %v3464_v8, %v3202_v57  ;;  %v4146_v1 = vpop.f32.mrf.mxu3 }
 0x281   : > { %v3151_v41 = vpop.f32.mrf.mxu1 }
 0x282   : > { %v5041_v55 = vor.u32 %v5039_v58, %v5038_v16  ;;  %v4795_v5 = vmax.f32 %v4763_v34, 0.0  ;;  %v4199_v62 = vadd.f32 %v4146_v1, %v3517_v47  ;;  %v3203_v11 = vadd.f32 %v3151_v41, %v7694_v15  ;;  %v6372_v41 = vld [vmem:[%s7868_s27 + $0x80] sm:$0x1] }
 0x283   : > { %v4574_v37 = vpop.f32.mrf.mxu0  ;;  %v5042_v51 = vrot.slane %v5038_v16, 4 }
 0x284   : > { %v5282_v7 = vsel %vm8092_vm9, %v5041_v55, %v6364_v26  ;;  %v4881_v53 = vpack.c.bf16 %v4795_v5, %v4795_v5  ;;  %v4625_v28 = vadd.f32 %v4572_v27, %v4199_v62 }
 0x285   : > { %6365 = vst [vmem:[%s7868_s27 + $0x6c] sm:$0xf] %v5282_v7 }
 0x286   : > { %v5044_v63 = vshrl.u32 %v4881_v53, 16  ;;  %v4728_v31 = vmul.f32 %v8424_v35, %v4625_v28  ;;  %v5047_v49 = vshll.u32 %v4881_v53, 16 }
 0x287   : > { %v3466_v10 = vpop.f32.mrf.mxu2 }
 0x288   : > { %v5046_v38 = vrot.slane %v5044_v63, 7  ;;  %v4764_v21 = vadd.f32 %v8433_v46, %v4728_v31  ;;  %v3518_v18 = vadd.f32 %v3466_v10, %v3203_v11  ;;  %v4148_v4 = vpop.f32.mrf.mxu3 }
 0x289   : > { %v3154_v39 = vpop.f32.mrf.mxu1 }
 0x28a   : > { %v5049_v36 = vor.u32 %v5047_v49, %v5046_v38  ;;  %v5051_v12 = vrot.slane %v5046_v38, 4  ;;  %v4796_v3 = vmax.f32 %v4764_v21, 0.0  ;;  %v4200_v48 = vadd.f32 %v4148_v4, %v3518_v18 }
 0x28b   : > { %v4577_v14 = vpop.f32.mrf.mxu0  ;;  %v3204_v2 = vadd.f32 %v3154_v39, %v7716_v24  ;;  %v6374_v39 = vld [vmem:[%s7868_s27 + $0x84] sm:$0xf] }
 0x28c   : > { %v5050_v15 = vsel %vm8147_vm12, %v5042_v51, %v5049_v36  ;;  %v5286_v29 = vsel %vm8187_vm13, %v5051_v12, %v6367_v43  ;;  %v4882_v59 = vpack.c.bf16 %v4796_v3, %v4796_v3  ;;  %v4626_v60 = vadd.f32 %v4574_v37, %v4200_v48 }
 0x28d   : > { %6366 = vst [vmem:[%s7868_s27 + $0x70] sm:$0xf] %v5050_v15 }
 0x28e   : > { %6368 = vst [vmem:[%s7868_s27 + $0x74] sm:$0x1] %v5286_v29  ;;  %v5053_v52 = vshrl.u32 %v4882_v59, 16  ;;  %v4729_v23 = vmul.f32 %v8424_v35, %v4626_v60  ;;  %v5056_v33 = vshll.u32 %v4882_v59, 16 }
 0x28f   : > { %v3469_v32 = vpop.f32.mrf.mxu2 }
 0x290   : > { %v5055_v22 = vrot.slane %v5053_v52, 7  ;;  %v4765_v30 = vadd.f32 %v8433_v46, %v4729_v23  ;;  %v3519_v27 = vadd.f32 %v3469_v32, %v3204_v2  ;;  %v4151_v50 = vpop.f32.mrf.mxu3 }
 0x291   : > { %v3156_v20 = vpop.f32.mrf.mxu1 }
 0x292   : > { %v5058_v9 = vor.u32 %v5056_v33, %v5055_v22  ;;  %v4797_v42 = vmax.f32 %v4765_v30, 0.0  ;;  %v4201_v56 = vadd.f32 %v4151_v50, %v3519_v27  ;;  %v3205_v34 = vadd.f32 %v3156_v20, %v7726_v45  ;;  %v6377_v20 = vld [vmem:[%s7868_s27 + $0x8c] sm:$0x1] }
 0x293   : > { %v4579_v13 = vpop.f32.mrf.mxu0  ;;  %v5059_v37 = vrot.slane %v5055_v22, 4 }
 0x294   : > { %v5289_v57 = vsel %vm8092_vm9, %v5058_v9, %v6369_v19  ;;  %v4883_v8 = vpack.c.bf16 %v4797_v42, %v4797_v42  ;;  %v4627_v24 = vadd.f32 %v4577_v14, %v4201_v56 }
 0x295   : > { %6370 = vst [vmem:[%s7868_s27 + $0x78] sm:$0xf] %v5289_v57 }
 0x296   : > { %v5061_v16 = vshrl.u32 %v4883_v8, 16  ;;  %v4730_v58 = vmul.f32 %v8424_v35, %v4627_v24  ;;  %v5064_v1 = vshll.u32 %v4883_v8, 16 }
 0x297   : > { %v3471_v26 = vpop.f32.mrf.mxu2 }
 0x298   : > { %v5063_v47 = vrot.slane %v5061_v16, 7  ;;  %v4766_v55 = vadd.f32 %v8433_v46, %v4730_v58  ;;  %v3520_v5 = vadd.f32 %v3471_v26, %v3205_v34  ;;  %v4153_v62 = vpop.f32.mrf.mxu3 }
 0x299   : > { %v3159_v28 = vpop.f32.mrf.mxu1 }
 0x29a   : > { %v5066_v7 = vor.u32 %v5064_v1, %v5063_v47  ;;  %v5068_v53 = vrot.slane %v5063_v47, 4  ;;  %v4798_v63 = vmax.f32 %v4766_v55, 0.0  ;;  %v4202_v31 = vadd.f32 %v4153_v62, %v3520_v5 }
 0x29b   : > { %v4582_v11 = vpop.f32.mrf.mxu0  ;;  %v3206_v4 = vadd.f32 %v3159_v28, %v7748_v44  ;;  %v6379_v28 = vld [vmem:[%s7868_s27 + $0x90] sm:$0xf] }
 0x29c   : > { %v5067_v45 = vsel %vm8147_vm12, %v5059_v37, %v5066_v7  ;;  %v5293_v10 = vsel %vm8187_vm13, %v5068_v53, %v6372_v41  ;;  %v4884_v38 = vpack.c.bf16 %v4798_v63, %v4798_v63  ;;  %v4628_v49 = vadd.f32 %v4579_v13, %v4202_v31 }
 0x29d   : > { %6371 = vst [vmem:[%s7868_s27 + $0x7c] sm:$0xf] %v5067_v45 }
 0x29e   : > { %6373 = vst [vmem:[%s7868_s27 + $0x80] sm:$0x1] %v5293_v10  ;;  %v5070_v21 = vshrl.u32 %v4884_v38, 16  ;;  %v4731_v18 = vmul.f32 %v8424_v35, %v4628_v49  ;;  %v5073_v36 = vshll.u32 %v4884_v38, 16 }
 0x2a0   : > { %v3474_v51 = vpop.f32.mrf.mxu2  ;;  %v5072_v43 = vrot.slane %v5070_v21, 7  ;;  %v4767_v12 = vadd.f32 %v8433_v46, %v4731_v18  ;;  %v4156_v48 = vpop.f32.mrf.mxu3 }
 0x2a1   : > { %v3521_v3 = vadd.f32 %v3474_v51, %v3206_v4  ;;  %v3161_v14 = vpop.f32.mrf.mxu1 }
 0x2a2   : > { %v5075_v15 = vor.u32 %v5073_v36, %v5072_v43  ;;  %v4799_v29 = vmax.f32 %v4767_v12, 0.0  ;;  %v3207_v33 = vadd.f32 %v3161_v14, %v7764_v40  ;;  %v5076_v42 = vrot.slane %v5072_v43, 4  ;;  %v6382_v14 = vld [vmem:[%s7868_s27 + $0x98] sm:$0x1] }
 0x2a3   : > { %v4203_v59 = vadd.f32 %v4156_v48, %v3521_v3  ;;  %v4584_v60 = vpop.f32.mrf.mxu0 }
 0x2a4   : > { %v5296_v52 = vsel %vm8092_vm9, %v5075_v15, %v6374_v39  ;;  %v4885_v23 = vpack.c.bf16 %v4799_v29, %v4799_v29 }
 0x2a5   : > { %v4629_v44 = vadd.f32 %v4582_v11, %v4203_v59  ;;  %6375 = vst [vmem:[%s7868_s27 + $0x84] sm:$0xf] %v5296_v52 }
 0x2a6   : > { %v5078_v2 = vshrl.u32 %v4885_v23, 16  ;;  %v5081_v19 = vshll.u32 %v4885_v23, 16 }
 0x2a7   : > { %v4732_v22 = vmul.f32 %v8424_v35, %v4629_v44 }
 0x2a8   : > { %v3476_v30 = vpop.f32.mrf.mxu2  ;;  %v5080_v32 = vrot.slane %v5078_v2, 7  ;;  %v4158_v9 = vpop.f32.mrf.mxu3 }
 0x2a9   : > { %v4768_v27 = vadd.f32 %v8433_v46, %v4732_v22  ;;  %v3522_v50 = vadd.f32 %v3476_v30, %v3207_v33  ;;  %v3164_v56 = vpop.f32.mrf.mxu1 }
 0x2aa   : > { %v5083_v13 = vor.u32 %v5081_v19, %v5080_v32  ;;  %v5085_v57 = vrot.slane %v5080_v32, 4  ;;  %v3208_v41 = vadd.f32 %v3164_v56, %v7786_v25  ;;  %v6384_v56 = vld [vmem:[%s7868_s27 + $0x9c] sm:$0xf] }
 0x2ab   : > { %v4800_v8 = vmax.f32 %v4768_v27, 0.0  ;;  %v4204_v24 = vadd.f32 %v4158_v9, %v3522_v50  ;;  %v4587_v16 = vpop.f32.mrf.mxu0 }
 0x2ac   : > { %v5084_v40 = vsel %vm8147_vm12, %v5076_v42, %v5083_v13  ;;  %v5300_v58 = vsel %vm8187_vm13, %v5085_v57, %v6377_v20 }
 0x2ad   : > { %v4886_v34 = vpack.c.bf16 %v4800_v8, %v4800_v8  ;;  %v4630_v47 = vadd.f32 %v4584_v60, %v4204_v24  ;;  %6376 = vst [vmem:[%s7868_s27 + $0x88] sm:$0xf] %v5084_v40 }
 0x2ae   : > { %6378 = vst [vmem:[%s7868_s27 + $0x8c] sm:$0x1] %v5300_v58 }
 0x2af   : > { %v5087_v1 = vshrl.u32 %v4886_v34, 16  ;;  %v4733_v26 = vmul.f32 %v8424_v35, %v4630_v47  ;;  %v5090_v62 = vshll.u32 %v4886_v34, 16 }
 0x2b0   : > { %v3479_v55 = vpop.f32.mrf.mxu2  ;;  %v4161_v53 = vpop.f32.mrf.mxu3 }
 0x2b1   : > { %v5089_v5 = vrot.slane %v5087_v1, 7  ;;  %v4769_v37 = vadd.f32 %v8433_v46, %v4733_v26  ;;  %v3523_v7 = vadd.f32 %v3479_v55, %v3208_v41  ;;  %v3166_v63 = vpop.f32.mrf.mxu1  ;;  %v8675_v1 = vld [vmem:[#allocation3_spill] sm:$0xff] }
 0x2b2   : > { %v3209_v4 = vadd.f32 %v3166_v63, %v7796_v61 }
 0x2b3   : > { %v5092_v31 = vor.u32 %v5090_v62, %v5089_v5  ;;  %v4801_v11 = vmax.f32 %v4769_v37, 0.0  ;;  %v4205_v45 = vadd.f32 %v4161_v53, %v3523_v7  ;;  %v4589_v10 = vpop.f32.mrf.mxu0  ;;  %v5093_v39 = vrot.slane %v5089_v5, 4 }
 0x2b5   : > { %v5303_v38 = vsel %vm8092_vm9, %v5092_v31, %v6379_v28  ;;  %v4887_v49 = vpack.c.bf16 %v4801_v11, %v4801_v11  ;;  %v4631_v25 = vadd.f32 %v4587_v16, %v4205_v45  ;;  %v6387_v28 = vld [vmem:[%s7868_s27 + $0xa4] sm:$0x1] }
 0x2b6   : > { %6380 = vst [vmem:[%s7868_s27 + $0x90] sm:$0xf] %v5303_v38 }
 0x2b7   : > { %v5095_v21 = vshrl.u32 %v4887_v49, 16  ;;  %v4734_v18 = vmul.f32 %v8424_v35, %v4631_v25  ;;  %v5098_v36 = vshll.u32 %v4887_v49, 16 }
 0x2b8   : > { %v3481_v51 = vpop.f32.mrf.mxu2  ;;  %v4163_v48 = vpop.f32.mrf.mxu3 }
 0x2b9   : > { %v5097_v43 = vrot.slane %v5095_v21, 7  ;;  %v4770_v12 = vadd.f32 %v8433_v46, %v4734_v18  ;;  %v3524_v3 = vadd.f32 %v3481_v51, %v3209_v4  ;;  %v3169_v15 = vpop.f32.mrf.mxu1 }
 0x2ba   : > { %v3210_v32 = vadd.f32 %v3169_v15, %v7818_v54 }
 0x2bb   : > { %v5100_v29 = vor.u32 %v5098_v36, %v5097_v43  ;;  %v5102_v59 = vrot.slane %v5097_v43, 4  ;;  %v4802_v60 = vmax.f32 %v4770_v12, 0.0  ;;  %v4206_v52 = vadd.f32 %v4163_v48, %v3524_v3  ;;  %v4592_v23 = vpop.f32.mrf.mxu0  ;;  %v8676_v43 = vld [vmem:[#allocation4_spill] sm:$0xff] }
 0x2bd   : > { %v5101_v61 = vsel %vm8147_vm12, %v5093_v39, %v5100_v29  ;;  %v5307_v44 = vsel %vm8187_vm13, %v5102_v59, %v6382_v14  ;;  %v4888_v2 = vpack.c.bf16 %v4802_v60, %v4802_v60  ;;  %v4632_v22 = vadd.f32 %v4589_v10, %v4206_v52  ;;  %v6389_v29 = vld [vmem:[%s7868_s27 + $0xa8] sm:$0xf] }
 0x2be   : > { %6381 = vst [vmem:[%s7868_s27 + $0x94] sm:$0xf] %v5101_v61 }
 0x2bf   : > { %6383 = vst [vmem:[%s7868_s27 + $0x98] sm:$0x1] %v5307_v44  ;;  %v5104_v33 = vshrl.u32 %v4888_v2, 16  ;;  %v4735_v30 = vmul.f32 %v8424_v35, %v4632_v22  ;;  %v5107_v50 = vshll.u32 %v4888_v2, 16 }
 0x2c0   : > { %v3484_v19 = vpop.f32.mrf.mxu2  ;;  %v4166_v20 = vpop.f32.mrf.mxu3 }
 0x2c1   : > { %v5106_v27 = vrot.slane %v5104_v33, 7  ;;  %v4771_v9 = vadd.f32 %v8433_v46, %v4735_v30  ;;  %v3525_v42 = vadd.f32 %v3484_v19, %v3210_v32  ;;  %v3171_v13 = vpop.f32.mrf.mxu1  ;;  %v8677_v30 = vld [vmem:[#allocation5_spill] sm:$0xff] }
 0x2c2   : > { %v3211_v26 = vadd.f32 %v3171_v13, %v8675_v1 }
 0x2c3   : > { %v5109_v57 = vor.u32 %v5107_v50, %v5106_v27  ;;  %v4803_v8 = vmax.f32 %v4771_v9, 0.0  ;;  %v4207_v24 = vadd.f32 %v4166_v20, %v3525_v42  ;;  %v4594_v16 = vpop.f32.mrf.mxu0  ;;  %v5110_v53 = vrot.slane %v5106_v27, 4 }
 0x2c5   : > { %v5310_v40 = vsel %vm8092_vm9, %v5109_v57, %v6384_v56  ;;  %v4889_v58 = vpack.c.bf16 %v4803_v8, %v4803_v8  ;;  %v4633_v54 = vadd.f32 %v4592_v23, %v4207_v24  ;;  %v6392_v57 = vld [vmem:[%s7868_s27 + $0xb0] sm:$0x1] }
 0x2c6   : > { %6385 = vst [vmem:[%s7868_s27 + $0x9c] sm:$0xf] %v5310_v40 }
 0x2c7   : > { %v5112_v34 = vshrl.u32 %v4889_v58, 16  ;;  %v4736_v47 = vmul.f32 %v8424_v35, %v4633_v54  ;;  %v5115_v5 = vshll.u32 %v4889_v58, 16 }
 0x2c8   : > { %v3486_v41 = vpop.f32.mrf.mxu2  ;;  %v4168_v7 = vpop.f32.mrf.mxu3 }
 0x2c9   : > { %v5114_v55 = vrot.slane %v5112_v34, 7  ;;  %v4772_v62 = vadd.f32 %v8433_v46, %v4736_v47  ;;  %v3526_v37 = vadd.f32 %v3486_v41, %v3211_v26  ;;  %v3174_v63 = vpop.f32.mrf.mxu1 }
 0x2ca   : > { %v3212_v36 = vadd.f32 %v3174_v63, %v8676_v43  ;;  %v8679_v43 = vld [vmem:[#allocation7_spill] sm:$0xff] }
 0x2cb   : > { %v5117_v31 = vor.u32 %v5115_v5, %v5114_v55  ;;  %v5119_v11 = vrot.slane %v5114_v55, 4  ;;  %v4804_v45 = vmax.f32 %v4772_v62, 0.0  ;;  %v4208_v10 = vadd.f32 %v4168_v7, %v3526_v37  ;;  %v4597_v18 = vpop.f32.mrf.mxu0  ;;  %v8678_v55 = vld [vmem:[#allocation6_spill] sm:$0xff] }
 0x2cd   : > { %v5118_v38 = vsel %vm8147_vm12, %v5110_v53, %v5117_v31  ;;  %v5314_v49 = vsel %vm8187_vm13, %v5119_v11, %v6387_v28  ;;  %v4890_v25 = vpack.c.bf16 %v4804_v45, %v4804_v45  ;;  %v4634_v21 = vadd.f32 %v4594_v16, %v4208_v10  ;;  %v6394_v31 = vld [vmem:[%s7868_s27 + $0xb4] sm:$0xf] }
 0x2ce   : > { %6386 = vst [vmem:[%s7868_s27 + $0xa0] sm:$0xf] %v5118_v38 }
 0x2cf   : > { %6388 = vst [vmem:[%s7868_s27 + $0xa4] sm:$0x1] %v5314_v49  ;;  %v5121_v4 = vshrl.u32 %v4890_v25, 16  ;;  %v4737_v51 = vmul.f32 %v8424_v35, %v4634_v21  ;;  %v5124_v48 = vshll.u32 %v4890_v25, 16 }
 0x2d0   : > { %v3489_v12 = vpop.f32.mrf.mxu2  ;;  %v4171_v15 = vpop.f32.mrf.mxu3 }
 0x2d1   : > { %v5123_v3 = vrot.slane %v5121_v4, 7  ;;  %v4773_v39 = vadd.f32 %v8433_v46, %v4737_v51  ;;  %v3527_v14 = vadd.f32 %v3489_v12, %v3212_v36  ;;  %v3176_v59 = vpop.f32.mrf.mxu1 }
 0x2d2   : > { %v3213_v32 = vadd.f32 %v3176_v59, %v8677_v30 }
 0x2d3   : > { %v5126_v60 = vor.u32 %v5124_v48, %v5123_v3  ;;  %v4805_v52 = vmax.f32 %v4773_v39, 0.0  ;;  %v4209_v23 = vadd.f32 %v4171_v15, %v3527_v14  ;;  %v4599_v19 = vpop.f32.mrf.mxu0  ;;  %v5127_v13 = vrot.slane %v5123_v3, 4 }
 0x2d5   : > { %v5317_v61 = vsel %vm8092_vm9, %v5126_v60, %v6389_v29  ;;  %v4891_v44 = vpack.c.bf16 %v4805_v52, %v4805_v52  ;;  %v4635_v2 = vadd.f32 %v4597_v18, %v4209_v23  ;;  %v6397_v29 = vld [vmem:[%s7868_s27 + $0xbc] sm:$0x1] }
 0x2d6   : > { %6390 = vst [vmem:[%s7868_s27 + $0xa8] sm:$0xf] %v5317_v61 }
 0x2d7   : > { %v5129_v22 = vshrl.u32 %v4891_v44, 16  ;;  %v4738_v33 = vmul.f32 %v8424_v35, %v4635_v2  ;;  %v5132_v9 = vshll.u32 %v4891_v44, 16 }
 0x2d8   : > { %v3491_v27 = vpop.f32.mrf.mxu2  ;;  %v4173_v56 = vpop.f32.mrf.mxu3 }
 0x2d9   : > { %v5131_v50 = vrot.slane %v5129_v22, 7  ;;  %v4774_v42 = vadd.f32 %v8433_v46, %v4738_v33  ;;  %v3528_v20 = vadd.f32 %v3491_v27, %v3213_v32  ;;  %v3179_v8 = vpop.f32.mrf.mxu1 }
 0x2da   : > { %v3214_v5 = vadd.f32 %v3179_v8, %v8678_v55 }
 0x2db   : > { %v5134_v24 = vor.u32 %v5132_v9, %v5131_v50  ;;  %v5136_v16 = vrot.slane %v5131_v50, 4  ;;  %v4806_v40 = vmax.f32 %v4774_v42, 0.0  ;;  %v4210_v58 = vadd.f32 %v4173_v56, %v3528_v20  ;;  %v4602_v11 = vpop.f32.mrf.mxu0  ;;  %v6399_v42 = vld [vmem:[%s7868_s27 + $0xc0] sm:$0xf] }
 0x2dd   : > { %v5135_v54 = vsel %vm8147_vm12, %v5127_v13, %v5134_v24  ;;  %v5321_v34 = vsel %vm8187_vm13, %v5136_v16, %v6392_v57  ;;  %v4892_v47 = vpack.c.bf16 %v4806_v40, %v4806_v40  ;;  %v4636_v1 = vadd.f32 %v4599_v19, %v4210_v58  ;;  %v6402_v40 = vld [vmem:[%s7868_s27 + $0xc8] sm:$0x1] }
 0x2de   : > { %6391 = vst [vmem:[%s7868_s27 + $0xac] sm:$0xf] %v5135_v54 }
 0x2df   : > { %6393 = vst [vmem:[%s7868_s27 + $0xb0] sm:$0x1] %v5321_v34  ;;  %v5138_v26 = vshrl.u32 %v4892_v47, 16  ;;  %v4739_v41 = vmul.f32 %v8424_v35, %v4636_v1  ;;  %v5141_v7 = vshll.u32 %v4892_v47, 16 }
 0x2e0   : > { %v3494_v62 = vpop.f32.mrf.mxu2  ;;  %v4176_v63 = vpop.f32.mrf.mxu3 }
 0x2e1   : > { %v5140_v37 = vrot.slane %v5138_v26, 7  ;;  %v4775_v53 = vadd.f32 %v8433_v46, %v4739_v41  ;;  %v3529_v28 = vadd.f32 %v3494_v62, %v3214_v5  ;;  %v3181_v49 = vpop.f32.mrf.mxu1 }
 0x2e2   : > { %v3215_v36 = vadd.f32 %v3181_v49, %v8679_v43 }
 0x2e3   : > { %v5143_v45 = vor.u32 %v5141_v7, %v5140_v37  ;;  %v4807_v10 = vmax.f32 %v4775_v53, 0.0  ;;  %v4211_v38 = vadd.f32 %v4176_v63, %v3529_v28  ;;  %v5144_v15 = vrot.slane %v5140_v37, 4  ;;  %v4604_v44 = vpop.f32.mrf.mxu0 }
 0x2e5   : > { %v5324_v25 = vsel %vm8092_vm9, %v5143_v45, %v6394_v31  ;;  %v4893_v21 = vpack.c.bf16 %v4807_v10, %v4807_v10  ;;  %v4637_v18 = vadd.f32 %v4602_v11, %v4211_v38 }
 0x2e6   : > { %6395 = vst [vmem:[%s7868_s27 + $0xb4] sm:$0xf] %v5324_v25 }
 0x2e7   : > { %v5146_v4 = vshrl.u32 %v4893_v21, 16  ;;  %v4740_v51 = vmul.f32 %v8424_v35, %v4637_v18  ;;  %v5149_v48 = vshll.u32 %v4893_v21, 16 }
 0x2e8   : > { %v3496_v12 = vpop.f32.mrf.mxu2  ;;  %v4178_v59 = vpop.f32.mrf.mxu3 }
 0x2e9   : > { %v5148_v3 = vrot.slane %v5146_v4, 7  ;;  %v4776_v39 = vadd.f32 %v8433_v46, %v4740_v51  ;;  %v3530_v14 = vadd.f32 %v3496_v12, %v3215_v36 }
 0x2eb   : > { %v5151_v60 = vor.u32 %v5149_v48, %v5148_v3  ;;  %v5153_v52 = vrot.slane %v5148_v3, 4  ;;  %v4808_v23 = vmax.f32 %v4776_v39, 0.0  ;;  %v4212_v61 = vadd.f32 %v4178_v59, %v3530_v14 }
 0x2ed   : > { %v5152_v2 = vsel %vm8147_vm12, %v5144_v15, %v5151_v60  ;;  %v5328_v22 = vsel %vm8187_vm13, %v5153_v52, %v6397_v29  ;;  %v4894_v33 = vpack.c.bf16 %v4808_v23, %v4808_v23  ;;  %v4638_v30 = vadd.f32 %v4604_v44, %v4212_v61 }
 0x2ee   : > { %6396 = vst [vmem:[%s7868_s27 + $0xb8] sm:$0xf] %v5152_v2 }
 0x2ef   : > { %6398 = vst [vmem:[%s7868_s27 + $0xbc] sm:$0x1] %v5328_v22  ;;  %v5155_v32 = vshrl.u32 %v4894_v33, 16  ;;  %v4741_v19 = vmul.f32 %v8424_v35, %v4638_v30  ;;  %v5158_v50 = vshll.u32 %v4894_v33, 16 }
 0x2f1   : > { %v5157_v27 = vrot.slane %v5155_v32, 7  ;;  %v4777_v9 = vadd.f32 %v8433_v46, %v4741_v19 }
 0x2f3   : > { %v5160_v20 = vor.u32 %v5158_v50, %v5157_v27  ;;  %v4809_v56 = vmax.f32 %v4777_v9, 0.0  ;;  %v5161_v58 = vrot.slane %v5157_v27, 4 }
 0x2f5   : > { %v5331_v13 = vsel %vm8092_vm9, %v5160_v20, %v6399_v42  ;;  %v4895_v57 = vpack.c.bf16 %v4809_v56, %v4809_v56 }
 0x2f6   : > { %6400 = vst [vmem:[%s7868_s27 + $0xc0] sm:$0xf] %v5331_v13 }
 0x2f7   : > { %v5163_v8 = vshrl.u32 %v4895_v57, 16  ;;  %v5166_v16 = vshll.u32 %v4895_v57, 16 }
 0x2f9   : > { %v5165_v24 = vrot.slane %v5163_v8, 7 }
 0x2fb   : > { %v5168_v35 = vor.u32 %v5166_v16, %v5165_v24  ;;  %v5170_v54 = vrot.slane %v5165_v24, 4 }
 0x2fd   : > { %v5169_v46 = vsel %vm8147_vm12, %v5161_v58, %v5168_v35  ;;  %v5335_v34 = vsel %vm8187_vm13, %v5170_v54, %v6402_v40 }
 0x2fe   : > { %6401 = vst [vmem:[%s7868_s27 + $0xc4] sm:$0xf] %v5169_v46 }
 0x2ff   : > { %6403 = vst [vmem:[%s7868_s27 + $0xc8] sm:$0x1] %v5335_v34 }
 0x300 PF: > { %s14_s17 = sadd.s32 1, %s6634_s17   ;;  %s8680_s15 = smov %s6630_s16 }
 0x301   : > { %p11_p5 = scmp.ge.s32.totalorder %s14_s17, 4   ;;  %s8681_s16 = smov %s8683_s18 }
 0x303   :  { %13 = sbr.rel (!%p11_p5) target bundleno = 2 (0x2), region = 94 }

</bundles_post_ra>
